<compile_context>
chip_gen: v6e
topology: v6e:2x2x1
jax: 0.10.0
libtpu: 0.0.40
codegen_flags: <defaults>
</compile_context>

<pallas_src>
import functools

import jax
import jax.numpy as jnp
from jax import lax
from jax.experimental import pallas as pl
from jax.experimental.pallas import tpu as pltpu

_NEG = -1e30  # additive mask value for non-edges / other-graph nodes


# ----------------------------- in-kernel helpers ----------------------------

def _gatconv_heads(x_bf, w_ref, a_ref, b_ref, adjb, *, heads, d_out, neg_slope):
    """One dense-edge-softmax GATConv: returns per-head [N, d_out] f32 outputs
    (bias added, ReLU applied).  x_bf is bf16; w/a refs are bf16."""
    # shared projection for all heads: one MXU matmul  [N,F] @ [F, H*d_out]
    xl = jnp.dot(x_bf, w_ref[...], preferred_element_type=jnp.float32)
    # attention logits for all heads: [N, 2H]  (cols 0..H-1 = dst, H..2H-1 = src)
    s = jnp.dot(xl.astype(jnp.bfloat16), a_ref[...],
                preferred_element_type=jnp.float32)
    outs = []
    for h in range(heads):                                   # static unroll
        xl_h = xl[:, h * d_out:(h + 1) * d_out]              # [N, d_out]
        scores = s[:, h:h + 1] + s[:, heads + h:heads + h + 1].T   # [N, N]
        scores = jnp.where(scores >= 0.0, scores, neg_slope * scores)  # LeakyReLU
        scores = scores + adjb                               # mask non-edges
        m = jnp.max(scores, axis=-1, keepdims=True)
        p = jnp.exp(scores - m)
        inv = pl.reciprocal(jnp.sum(p, axis=-1, keepdims=True), approx=True)
        alpha = (p * inv).astype(jnp.bfloat16)               # softmax over src
        out_h = jnp.dot(alpha, xl_h.astype(jnp.bfloat16),
                        preferred_element_type=jnp.float32)
        out_h = out_h + b_ref[0:1, h * d_out:(h + 1) * d_out]
        outs.append(jnp.maximum(out_h, 0.0))                 # ReLU
    return outs


def _gat2_branch(x_ref, w1_ref, a1_ref, b1_ref, adjb_ref, w2_ref, a2_ref, b2_ref,
                 h1_ref, *, heads, d1, neg_slope):
    """relu(GATConv2(relu(GATConv1(x))))  ->  [N, d2] f32 node features."""
    adjb = adjb_ref[...]
    # layer 1: multi-head (concat) -> VMEM scratch (bf16), never leaves VMEM
    outs = _gatconv_heads(x_ref[...], w1_ref, a1_ref, b1_ref, adjb,
                          heads=heads, d_out=d1, neg_slope=neg_slope)
    for h, o in enumerate(outs):
        h1_ref[:, h * d1:(h + 1) * d1] = o.astype(jnp.bfloat16)
    # layer 2: single head
    d2 = w2_ref.shape[1]
    (h2,) = _gatconv_heads(h1_ref[...], w2_ref, a2_ref, b2_ref, adjb,
                           heads=1, d_out=d2, neg_slope=neg_slope)
    return h2


# ------------------------------ fused kernels -------------------------------

def _gat_fused_kernel(x_ref, w1_ref, a1_ref, b1_ref, adjb_ref,
                      w2_ref, a2_ref, b2_ref,
                      xe_ref, w3_ref, a3_ref, b3_ref, adjbe_ref,
                      w4_ref, a4_ref, b4_ref,
                      maskb_ref, diag_ref,
                      xc_ref, hp_ref, he_ref,
                      h1_scr, h1e_scr,
                      *, heads, d1, nb, df, neg_slope):
    # ---- entity branch: relu(gcn4(relu(gcn3(x_e)))) ----
    he = _gat2_branch(xe_ref, w3_ref, a3_ref, b3_ref, adjbe_ref,
                      w4_ref, a4_ref, b4_ref, h1e_scr,
                      heads=heads, d1=d1, neg_slope=neg_slope)
    he_ref[...] = he
    # ---- drug branch: relu(gcn2(relu(gcn1(x)))) ----
    h2 = _gat2_branch(x_ref, w1_ref, a1_ref, b1_ref, adjb_ref,
                      w2_ref, a2_ref, b2_ref, h1_scr,
                      heads=heads, d1=d1, neg_slope=neg_slope)
    # ---- epilogue: global max pool + optional DiagLayer + hp @ he.T ----
    maskb = maskb_ref[...]                        # [N, B] additive pool mask
    he_bf = he.astype(jnp.bfloat16)
    for b in range(nb):                           # B is tiny; no [B,N,D] bcast
        pooled = jnp.max(h2 + maskb[:, b:b + 1], axis=0, keepdims=True)  # [1,D]
        hp_ref[b:b + 1, :] = pooled
        pooled = pooled * diag_ref[...] if df else pooled
        xc_ref[b:b + 1, :] = lax.dot_general(
            pooled.astype(jnp.bfloat16), he_bf, (((1,), (1,)), ((), ())),
            preferred_element_type=jnp.float32)


def _fc_head_kernel(hp_ref, he_ref, w1_ref, b1_ref, w2_ref, b2_ref,
                    w3_ref, b3_ref, w4_ref, b4_ref, diag_ref,
                    xc_ref, hpo_ref, heo_ref, *, df):
    """Optional FC path: fc_g1/2 on hp, fc_g3/4 on he, then diag + hp @ he.T."""
    def lin(x, w_ref, b_ref, relu):
        y = jnp.dot(x.astype(jnp.bfloat16), w_ref[...],
                    preferred_element_type=jnp.float32) + b_ref[...]
        return jnp.maximum(y, 0.0) if relu else y
    hp = lin(hp_ref[...], w1_ref, b1_ref, True)    # dropout = identity (eval)
    hp = lin(hp, w2_ref, b2_ref, False)
    he = lin(he_ref[...], w3_ref, b3_ref, True)
    he = lin(he, w4_ref, b4_ref, False)
    hpo_ref[...] = hp
    heo_ref[...] = he
    hp_ = hp * diag_ref[...] if df else hp
    xc_ref[...] = lax.dot_general(hp_.astype(jnp.bfloat16),
                                  he.astype(jnp.bfloat16),
                                  (((1,), (1,)), ((), ())),
                                  preferred_element_type=jnp.float32)


# ------------------------------ pallas wrappers ------------------------------

def pallas_gat_fused(pp, x_pad, adjb, maskb, xe_pad, adjb_e, *, df):
    n, f1 = x_pad.shape
    ne, f1e = xe_pad.shape
    heads, d1, d2 = pp["heads"], pp["d1"], pp["d2"]
    hd = heads * d1
    nb = maskb.shape[1]
    fs = lambda s: pl.BlockSpec(s, lambda i: (0, 0))
    kernel = functools.partial(_gat_fused_kernel, heads=heads, d1=d1, nb=nb,
                               df=df, neg_slope=0.2)
    return pl.pallas_call(
        kernel,
        out_shape=(jax.ShapeDtypeStruct((nb, ne), jnp.float32),    # xc
                   jax.ShapeDtypeStruct((nb, d2), jnp.float32),    # hp (padded)
                   jax.ShapeDtypeStruct((ne, d2), jnp.float32)),   # he (padded)
        grid=(1,),
        in_specs=[
            fs((n, f1)),          # x (bf16, padded)
            fs((f1, hd)),         # w1 (bf16)
            fs((hd, 2 * heads)),  # a1 block-diag (dst | src)
            fs((1, hd)),          # b1
            fs((n, n)),           # drug adjacency additive mask
            fs((hd, d2)),         # w2 (bf16)
            fs((d2, 2)),          # a2
            fs((1, d2)),          # b2
            fs((ne, f1e)),        # x_e (bf16, padded)
            fs((f1e, hd)),        # w3 (bf16)
            fs((hd, 2 * heads)),  # a3
            fs((1, hd)),          # b3
            fs((ne, ne)),         # entity adjacency additive mask
            fs((hd, d2)),         # w4 (bf16)
            fs((d2, 2)),          # a4
            fs((1, d2)),          # b4
            fs((n, nb)),          # pool mask additive bias
            fs((1, d2)),          # diag weight (padded)
        ],
        out_specs=(fs((nb, ne)), fs((nb, d2)), fs((ne, d2))),
        scratch_shapes=[pltpu.VMEM((n, hd), jnp.bfloat16),
                        pltpu.VMEM((ne, hd), jnp.bfloat16)],
    )(x_pad, pp["w1"], pp["a1"], pp["b1"], adjb,
      pp["w2"], pp["a2"], pp["b2"],
      xe_pad, pp["w3"], pp["a3"], pp["b3"], adjb_e,
      pp["w4"], pp["a4"], pp["b4"],
      maskb, pp["diag_w"])


def pallas_fc_head(pp, hp_pad, he_pad, *, df):
    b, d2 = hp_pad.shape
    ne = he_pad.shape[0]
    fs = lambda s: pl.BlockSpec(s, lambda i: (0, 0))
    return pl.pallas_call(
        functools.partial(_fc_head_kernel, df=df),
        out_shape=(jax.ShapeDtypeStruct((b, ne), jnp.float32),
                   jax.ShapeDtypeStruct((b, d2), jnp.float32),
                   jax.ShapeDtypeStruct((ne, d2), jnp.float32)),
        grid=(1,),
        in_specs=[fs((b, d2)), fs((ne, d2)),
                  fs((d2, d2)), fs((1, d2)),
                  fs((d2, d2)), fs((1, d2)),
                  fs((d2, d2)), fs((1, d2)),
                  fs((d2, d2)), fs((1, d2)),
                  fs((1, d2))],
        out_specs=(fs((b, ne)), fs((b, d2)), fs((ne, d2))),
    )(hp_pad, he_pad,
      pp["fc1_w"], pp["fc1_b"], pp["fc2_w"], pp["fc2_b"],
      pp["fc3_w"], pp["fc3_b"], pp["fc4_w"], pp["fc4_b"],
      pp["diag_w"])


# ------------------------------- parameters ---------------------------------

def _rup(x, m=128):
    return ((x + m - 1) // m) * m


def init_gatconv(key, in_dim, out_dim, heads=1):
    k1, k2, k3 = jax.random.split(key, 3)
    glorot = (2.0 / (in_dim + heads * out_dim)) ** 0.5
    return {
        "lin_w": glorot * jax.random.normal(k1, (in_dim, heads * out_dim),
                                            jnp.float32),
        "att_src": (1.0 / out_dim ** 0.5)
                   * jax.random.normal(k2, (heads, out_dim), jnp.float32),
        "att_dst": (1.0 / out_dim ** 0.5)
                   * jax.random.normal(k3, (heads, out_dim), jnp.float32),
        "bias": jnp.zeros((heads * out_dim,), jnp.float32),
    }


def init_linear(key, in_dim, out_dim):
    k1, k2 = jax.random.split(key)
    bound = 1.0 / in_dim ** 0.5
    return {"w": bound * jax.random.normal(k1, (in_dim, out_dim), jnp.float32),
            "b": bound * jax.random.normal(k2, (out_dim,), jnp.float32)}


def init_gat_params(key, input_dim=109, input_dim_e=243, output_dim=200,
                    heads=10):
    ks = jax.random.split(key, 10)
    return {
        "gcn1": init_gatconv(ks[0], input_dim, 128, heads),
        "gcn2": init_gatconv(ks[1], 128 * heads, output_dim, 1),
        "gcn3": init_gatconv(ks[2], input_dim_e, 128, heads),
        "gcn4": init_gatconv(ks[3], 128 * heads, output_dim, 1),
        "fc_g1": init_linear(ks[4], output_dim, output_dim),
        "fc_g2": init_linear(ks[5], output_dim, output_dim),
        "fc_g3": init_linear(ks[6], output_dim, output_dim),
        "fc_g4": init_linear(ks[7], output_dim, output_dim),
        # DiagLayer(num_et=1, in_dim=output_dim)
        "diag_w": (1.0 / output_dim ** 0.5)
                  * jax.random.normal(ks[8], (1, output_dim), jnp.float32),
    }


def _att_mat(att_dst, att_src, d_pad):
    """Block-diagonal attention projection [H*d_pad, 2H]: col h (dst) / H+h (src)
    holds att[h, :] in rows h*d_pad .. h*d_pad+D-1."""
    h, d = att_dst.shape
    rows = (jnp.arange(h)[:, None] * d_pad + jnp.arange(d)[None, :]).reshape(-1)
    cols = jnp.repeat(jnp.arange(h), d)
    dst = jnp.zeros((h * d_pad, h), jnp.float32).at[rows, cols].set(
        att_dst.reshape(-1))
    src = jnp.zeros((h * d_pad, h), jnp.float32).at[rows, cols].set(
        att_src.reshape(-1))
    return jnp.concatenate([dst, src], axis=1)


def prepare_gatconv(p, in_pad, out_pad):
    """Pad to lane multiples, cast weights to bf16, build block-diag att matrix."""
    heads, out_dim = p["att_src"].shape
    in_dim = p["lin_w"].shape[0]
    w = p["lin_w"].reshape(in_dim, heads, out_dim)
    w = jnp.pad(w, ((0, in_pad - in_dim), (0, 0), (0, out_pad - out_dim)))
    w = w.reshape(in_pad, heads * out_pad).astype(jnp.bfloat16)
    b = p["bias"].reshape(heads, out_dim)
    b = jnp.pad(b, ((0, 0), (0, out_pad - out_dim))).reshape(1, heads * out_pad)
    a = _att_mat(p["att_dst"], p["att_src"], out_pad).astype(jnp.bfloat16)
    return {"w": w, "a": a, "b": b.astype(jnp.float32)}


def prepare_params(params, *, input_dim=109, input_dim_e=243, output_dim=200,
                   heads=10):
    d1 = 128
    f1, f1e, d2 = _rup(input_dim), _rup(input_dim_e), _rup(output_dim)
    g1 = prepare_gatconv(params["gcn1"], f1, d1)
    g2 = prepare_gatconv(params["gcn2"], heads * d1, d2)
    g3 = prepare_gatconv(params["gcn3"], f1e, d1)
    g4 = prepare_gatconv(params["gcn4"], heads * d1, d2)

    def prep_fc(p):
        w = jnp.pad(p["w"], ((0, d2 - p["w"].shape[0]), (0, d2 - p["w"].shape[1])))
        b = jnp.pad(p["b"], (0, d2 - p["b"].shape[0]))
        return w.astype(jnp.bfloat16), b.reshape(1, d2).astype(jnp.float32)

    fc1_w, fc1_b = prep_fc(params["fc_g1"])
    fc2_w, fc2_b = prep_fc(params["fc_g2"])
    fc3_w, fc3_b = prep_fc(params["fc_g3"])
    fc4_w, fc4_b = prep_fc(params["fc_g4"])
    diag_w = jnp.pad(params["diag_w"],
                     ((0, 0), (0, d2 - output_dim))).astype(jnp.float32)
    return {
        "w1": g1["w"], "a1": g1["a"], "b1": g1["b"],
        "w2": g2["w"], "a2": g2["a"], "b2": g2["b"],
        "w3": g3["w"], "a3": g3["a"], "b3": g3["b"],
        "w4": g4["w"], "a4": g4["a"], "b4": g4["b"],
        "fc1_w": fc1_w, "fc1_b": fc1_b, "fc2_w": fc2_w, "fc2_b": fc2_b,
        "fc3_w": fc3_w, "fc3_b": fc3_b, "fc4_w": fc4_w, "fc4_b": fc4_b,
        "diag_w": diag_w,
        "heads": heads, "d1": d1, "d2": d2, "f1": f1, "f1e": f1e,
        "output_dim": output_dim,
    }


# ------------------------------ input preparation ----------------------------

def pad_features(x, to_dim):
    return jnp.pad(x, ((0, 0), (0, to_dim - x.shape[1]))).astype(jnp.bfloat16)


def dense_adj_bias(edge_index, num_nodes):
    """Additive mask: 0 for edges src->dst (adj[dst, src]) + self loops, else -1e30."""
    src, dst = edge_index[0], edge_index[1]
    adj = jnp.zeros((num_nodes, num_nodes), jnp.float32)
    adj = adj.at[dst, src].set(1.0)
    adj = jnp.maximum(adj, jnp.eye(num_nodes, dtype=jnp.float32))
    return jnp.where(adj > 0.0, 0.0, _NEG).astype(jnp.float32)


def pool_mask_bias(batch, num_graphs):
    """[N, B] additive bias: 0 if node n belongs to graph b, else -1e30."""
    m = batch[:, None] == jnp.arange(num_graphs)[None, :]
    return jnp.where(m, 0.0, _NEG).astype(jnp.float32)


# --------------------------------- forward -----------------------------------

def gat_forward(pp, x_pad, adjb, maskb, xe_pad, adjb_e, DF=False, not_FC=True):
    out_dim = pp["output_dim"]
    xc, hp_pad, he_pad = pallas_gat_fused(pp, x_pad, adjb, maskb, xe_pad, adjb_e,
                                          df=DF)
    if not_FC:
        return xc, hp_pad[:, :out_dim], he_pad[:, :out_dim]
    # Optional FC path (F.dropout is identity in eval mode); the head matmul is
    # recomputed on the FC'd features in a second small fused call.
    xc_fc, hp_fc, he_fc = pallas_fc_head(pp, hp_pad, he_pad, df=DF)
    return xc_fc, hp_fc[:, :out_dim], he_fc[:, :out_dim]


# ----------------------------------- main -------------------------------------

if __name__ == "__main__":
    key = jax.random.PRNGKey(0)
    k_par, k_x, k_xe = jax.random.split(key, 3)

    HEADS, OUT_DIM = 10, 200
    params = init_gat_params(k_par, heads=HEADS, output_dim=OUT_DIM)
    pp = prepare_params(params, heads=HEADS, output_dim=OUT_DIM)

    # drug graph: 2 graphs of 4 nodes each (bidirectional rings)
    N = 8
    x = jax.random.normal(k_x, (N, 109), jnp.float32)
    ring0 = [(0, 1), (1, 2), (2, 3), (3, 0)]
    ring1 = [(4, 5), (5, 6), (6, 7), (7, 4)]
    edges = ring0 + [(b, a) for a, b in ring0] + ring1 + [(b, a) for a, b in ring1]
    edge_index = jnp.array(edges, jnp.int32).T                    # [2, 16]
    batch = jnp.array([0, 0, 0, 0, 1, 1, 1, 1], jnp.int32)
    B = 2

    # entity graph: 6 nodes, bidirectional chain
    N_e = 6
    x_e = jax.random.normal(k_xe, (N_e, 243), jnp.float32)
    chain = [(i, i + 1) for i in range(N_e - 1)]
    edges_e = chain + [(b, a) for a, b in chain]
    edge_index_e = jnp.array(edges_e, jnp.int32).T                # [2, 10]

    # host-side prep (padding, dense masks) done once, outside the kernels
    x_pad = pad_features(x, pp["f1"])
    xe_pad = pad_features(x_e, pp["f1e"])
    adjb = dense_adj_bias(edge_index, N)
    adjb_e = dense_adj_bias(edge_index_e, N_e)
    maskb = pool_mask_bias(batch, B)

    # default forward path (DF=False, not_FC=True) — single fused launch
    xc, x_out, xe_out = gat_forward(pp, x_pad, adjb, maskb, xe_pad, adjb_e,
                                    DF=False, not_FC=True)
    jax.block_until_ready((xc, x_out, xe_out))
    assert xc.shape == (B, N_e)
    assert x_out.shape == (B, OUT_DIM)
    assert xe_out.shape == (N_e, OUT_DIM)
    assert bool(jnp.all(jnp.isfinite(xc)))

    # optional path coverage (DF=True, not_FC=False) — two launches
    xc2, x2, xe2 = gat_forward(pp, x_pad, adjb, maskb, xe_pad, adjb_e,
                               DF=True, not_FC=False)
    jax.block_until_ready((xc2, x2, xe2))
    assert xc2.shape == (B, N_e)
    assert x2.shape == (B, OUT_DIM)
    assert xe2.shape == (N_e, OUT_DIM)
    assert bool(jnp.all(jnp.isfinite(xc2)))

    print("KERNEL_OK")
</pallas_src>

<mosaic_0001>
module attributes {stable_mosaic.version = 11 : i64} {
  func.func @_gat_fused_kernel(%arg0: i32, %arg1: memref<8x128xbf16, #tpu.memory_space<vmem>>, %arg2: memref<128x1280xbf16, #tpu.memory_space<vmem>>, %arg3: memref<1280x20xbf16, #tpu.memory_space<vmem>>, %arg4: memref<1x1280xf32, #tpu.memory_space<vmem>>, %arg5: memref<8x8xf32, #tpu.memory_space<vmem>>, %arg6: memref<1280x256xbf16, #tpu.memory_space<vmem>>, %arg7: memref<256x2xbf16, #tpu.memory_space<vmem>>, %arg8: memref<1x256xf32, #tpu.memory_space<vmem>>, %arg9: memref<6x256xbf16, #tpu.memory_space<vmem>>, %arg10: memref<256x1280xbf16, #tpu.memory_space<vmem>>, %arg11: memref<1280x20xbf16, #tpu.memory_space<vmem>>, %arg12: memref<1x1280xf32, #tpu.memory_space<vmem>>, %arg13: memref<6x6xf32, #tpu.memory_space<vmem>>, %arg14: memref<1280x256xbf16, #tpu.memory_space<vmem>>, %arg15: memref<256x2xbf16, #tpu.memory_space<vmem>>, %arg16: memref<1x256xf32, #tpu.memory_space<vmem>>, %arg17: memref<8x2xf32, #tpu.memory_space<vmem>>, %arg18: memref<1x256xf32, #tpu.memory_space<vmem>>, %arg19: memref<2x6xf32, #tpu.memory_space<vmem>>, %arg20: memref<2x256xf32, #tpu.memory_space<vmem>>, %arg21: memref<6x256xf32, #tpu.memory_space<vmem>>, %arg22: memref<8x1280xbf16, #tpu.memory_space<vmem>>, %arg23: memref<6x1280xbf16, #tpu.memory_space<vmem>>) attributes {dimension_semantics = [#tpu.dimension_semantics<arbitrary>], iteration_bounds = array<i64: 1>, scalar_prefetch = 0 : i64, scratch_operands = 2 : i64, tpu.core_type = #tpu.core_type<tc>, window_params = [{pipeline_mode = #tpu.pipeline_mode<synchronous>, transform_indices = @transform_0, window_bounds = array<i64: 8, 128>}, {pipeline_mode = #tpu.pipeline_mode<synchronous>, transform_indices = @transform_1, window_bounds = array<i64: 128, 1280>}, {pipeline_mode = #tpu.pipeline_mode<synchronous>, transform_indices = @transform_2, window_bounds = array<i64: 1280, 20>}, {pipeline_mode = #tpu.pipeline_mode<synchronous>, transform_indices = @transform_3, window_bounds = array<i64: 1, 1280>}, {pipeline_mode = #tpu.pipeline_mode<synchronous>, transform_indices = @transform_4, window_bounds = array<i64: 8, 8>}, {pipeline_mode = #tpu.pipeline_mode<synchronous>, transform_indices = @transform_5, window_bounds = array<i64: 1280, 256>}, {pipeline_mode = #tpu.pipeline_mode<synchronous>, transform_indices = @transform_6, window_bounds = array<i64: 256, 2>}, {pipeline_mode = #tpu.pipeline_mode<synchronous>, transform_indices = @transform_7, window_bounds = array<i64: 1, 256>}, {pipeline_mode = #tpu.pipeline_mode<synchronous>, transform_indices = @transform_8, window_bounds = array<i64: 6, 256>}, {pipeline_mode = #tpu.pipeline_mode<synchronous>, transform_indices = @transform_9, window_bounds = array<i64: 256, 1280>}, {pipeline_mode = #tpu.pipeline_mode<synchronous>, transform_indices = @transform_10, window_bounds = array<i64: 1280, 20>}, {pipeline_mode = #tpu.pipeline_mode<synchronous>, transform_indices = @transform_11, window_bounds = array<i64: 1, 1280>}, {pipeline_mode = #tpu.pipeline_mode<synchronous>, transform_indices = @transform_12, window_bounds = array<i64: 6, 6>}, {pipeline_mode = #tpu.pipeline_mode<synchronous>, transform_indices = @transform_13, window_bounds = array<i64: 1280, 256>}, {pipeline_mode = #tpu.pipeline_mode<synchronous>, transform_indices = @transform_14, window_bounds = array<i64: 256, 2>}, {pipeline_mode = #tpu.pipeline_mode<synchronous>, transform_indices = @transform_15, window_bounds = array<i64: 1, 256>}, {pipeline_mode = #tpu.pipeline_mode<synchronous>, transform_indices = @transform_16, window_bounds = array<i64: 8, 2>}, {pipeline_mode = #tpu.pipeline_mode<synchronous>, transform_indices = @transform_17, window_bounds = array<i64: 1, 256>}, {pipeline_mode = #tpu.pipeline_mode<synchronous>, transform_indices = @transform_18, window_bounds = array<i64: 2, 6>}, {pipeline_mode = #tpu.pipeline_mode<synchronous>, transform_indices = @transform_19, window_bounds = array<i64: 2, 256>}, {pipeline_mode = #tpu.pipeline_mode<synchronous>, transform_indices = @transform_20, window_bounds = array<i64: 6, 256>}]} {
    %c0 = arith.constant 0 : index
    %c0_0 = arith.constant 0 : index
    %0 = vector.load %arg13[%c0, %c0_0] : memref<6x6xf32, #tpu.memory_space<vmem>>, vector<6x6xf32>
    %c0_1 = arith.constant 0 : index
    %c0_2 = arith.constant 0 : index
    %1 = vector.load %arg9[%c0_1, %c0_2] : memref<6x256xbf16, #tpu.memory_space<vmem>>, vector<6x256xbf16>
    %c0_3 = arith.constant 0 : index
    %c0_4 = arith.constant 0 : index
    %2 = vector.load %arg10[%c0_3, %c0_4] : memref<256x1280xbf16, #tpu.memory_space<vmem>>, vector<256x1280xbf16>
    %cst = arith.constant dense<0.000000e+00> : vector<6x1280xf32>
    %3 = tpu.matmul %1, %2, %cst {dimension_numbers = #tpu.dot_dimension_numbers<[1], [0], [0], [1], [0, 0, 1, 1], [], []>} : vector<6x256xbf16>, vector<256x1280xbf16>, vector<6x1280xf32> -> vector<6x1280xf32>
    %4 = arith.truncf %3 : vector<6x1280xf32> to vector<6x1280xbf16>
    %c0_5 = arith.constant 0 : index
    %c0_6 = arith.constant 0 : index
    %5 = vector.load %arg11[%c0_5, %c0_6] : memref<1280x20xbf16, #tpu.memory_space<vmem>>, vector<1280x20xbf16>
    %cst_7 = arith.constant dense<0.000000e+00> : vector<6x20xf32>
    %6 = tpu.matmul %4, %5, %cst_7 {dimension_numbers = #tpu.dot_dimension_numbers<[1], [0], [0], [1], [0, 0, 1, 1], [], []>} : vector<6x1280xbf16>, vector<1280x20xbf16>, vector<6x20xf32> -> vector<6x20xf32>
    %7 = vector.extract_strided_slice %3 {offsets = [0, 0], sizes = [6, 128], strides = [1, 1]} : vector<6x1280xf32> to vector<6x128xf32>
    %8 = vector.extract_strided_slice %6 {offsets = [0, 0], sizes = [6, 1], strides = [1, 1]} : vector<6x20xf32> to vector<6x1xf32>
    %9 = vector.extract_strided_slice %6 {offsets = [0, 10], sizes = [6, 1], strides = [1, 1]} : vector<6x20xf32> to vector<6x1xf32>
    %10 = tpu.transpose %9, [1, 0] : vector<6x1xf32> -> vector<1x6xf32>
    %11 = vector.broadcast %8 : vector<6x1xf32> to vector<6x6xf32>
    %12 = vector.broadcast %10 : vector<1x6xf32> to vector<6x6xf32>
    %13 = arith.addf %11, %12 : vector<6x6xf32>
    %cst_8 = arith.constant 0.000000e+00 : f32
    %14 = vector.broadcast %cst_8 : f32 to vector<6x6xf32>
    %15 = arith.cmpf oge, %13, %14 : vector<6x6xf32>
    %cst_9 = arith.constant 2.000000e-01 : f32
    %16 = vector.broadcast %cst_9 : f32 to vector<6x6xf32>
    %17 = arith.mulf %16, %13 : vector<6x6xf32>
    %18 = arith.select %15, %13, %17 : vector<6x6xi1>, vector<6x6xf32>
    %19 = arith.addf %18, %0 : vector<6x6xf32>
    %cst_10 = arith.constant dense<0xFF800000> : vector<6xf32>
    %20 = vector.multi_reduction <maximumf>, %19, %cst_10 [1] : vector<6x6xf32> to vector<6xf32>
    %21 = vector.shape_cast %20 : vector<6xf32> to vector<6x1xf32>
    %22 = vector.broadcast %21 : vector<6x1xf32> to vector<6x6xf32>
    %23 = arith.subf %19, %22 : vector<6x6xf32>
    %24 = math.exp %23 : vector<6x6xf32>
    %cst_11 = arith.constant dense<0.000000e+00> : vector<6xf32>
    %25 = vector.multi_reduction <add>, %24, %cst_11 [1] : vector<6x6xf32> to vector<6xf32>
    %26 = vector.shape_cast %25 : vector<6xf32> to vector<6x1xf32>
    %27 = tpu.reciprocal %26 {approx = true} : vector<6x1xf32> -> vector<6x1xf32>
    %28 = vector.broadcast %27 : vector<6x1xf32> to vector<6x6xf32>
    %29 = arith.mulf %24, %28 : vector<6x6xf32>
    %30 = arith.truncf %29 : vector<6x6xf32> to vector<6x6xbf16>
    %31 = arith.truncf %7 : vector<6x128xf32> to vector<6x128xbf16>
    %cst_12 = arith.constant dense<0.000000e+00> : vector<6x128xf32>
    %32 = tpu.matmul %30, %31, %cst_12 {dimension_numbers = #tpu.dot_dimension_numbers<[1], [0], [0], [1], [0, 0, 1, 1], [], []>} : vector<6x6xbf16>, vector<6x128xbf16>, vector<6x128xf32> -> vector<6x128xf32>
    %c0_13 = arith.constant 0 : index
    %c0_14 = arith.constant 0 : index
    %33 = vector.load %arg12[%c0_13, %c0_14] : memref<1x1280xf32, #tpu.memory_space<vmem>>, vector<1x128xf32>
    %34 = vector.broadcast %33 : vector<1x128xf32> to vector<6x128xf32>
    %35 = arith.addf %32, %34 : vector<6x128xf32>
    %cst_15 = arith.constant 0.000000e+00 : f32
    %36 = vector.broadcast %cst_15 : f32 to vector<6x128xf32>
    %37 = arith.maximumf %35, %36 : vector<6x128xf32>
    %38 = vector.extract_strided_slice %3 {offsets = [0, 128], sizes = [6, 128], strides = [1, 1]} : vector<6x1280xf32> to vector<6x128xf32>
    %39 = vector.extract_strided_slice %6 {offsets = [0, 1], sizes = [6, 1], strides = [1, 1]} : vector<6x20xf32> to vector<6x1xf32>
    %40 = vector.extract_strided_slice %6 {offsets = [0, 11], sizes = [6, 1], strides = [1, 1]} : vector<6x20xf32> to vector<6x1xf32>
    %41 = tpu.transpose %40, [1, 0] : vector<6x1xf32> -> vector<1x6xf32>
    %42 = vector.broadcast %39 : vector<6x1xf32> to vector<6x6xf32>
    %43 = vector.broadcast %41 : vector<1x6xf32> to vector<6x6xf32>
    %44 = arith.addf %42, %43 : vector<6x6xf32>
    %cst_16 = arith.constant 0.000000e+00 : f32
    %45 = vector.broadcast %cst_16 : f32 to vector<6x6xf32>
    %46 = arith.cmpf oge, %44, %45 : vector<6x6xf32>
    %cst_17 = arith.constant 2.000000e-01 : f32
    %47 = vector.broadcast %cst_17 : f32 to vector<6x6xf32>
    %48 = arith.mulf %47, %44 : vector<6x6xf32>
    %49 = arith.select %46, %44, %48 : vector<6x6xi1>, vector<6x6xf32>
    %50 = arith.addf %49, %0 : vector<6x6xf32>
    %cst_18 = arith.constant dense<0xFF800000> : vector<6xf32>
    %51 = vector.multi_reduction <maximumf>, %50, %cst_18 [1] : vector<6x6xf32> to vector<6xf32>
    %52 = vector.shape_cast %51 : vector<6xf32> to vector<6x1xf32>
    %53 = vector.broadcast %52 : vector<6x1xf32> to vector<6x6xf32>
    %54 = arith.subf %50, %53 : vector<6x6xf32>
    %55 = math.exp %54 : vector<6x6xf32>
    %cst_19 = arith.constant dense<0.000000e+00> : vector<6xf32>
    %56 = vector.multi_reduction <add>, %55, %cst_19 [1] : vector<6x6xf32> to vector<6xf32>
    %57 = vector.shape_cast %56 : vector<6xf32> to vector<6x1xf32>
    %58 = tpu.reciprocal %57 {approx = true} : vector<6x1xf32> -> vector<6x1xf32>
    %59 = vector.broadcast %58 : vector<6x1xf32> to vector<6x6xf32>
    %60 = arith.mulf %55, %59 : vector<6x6xf32>
    %61 = arith.truncf %60 : vector<6x6xf32> to vector<6x6xbf16>
    %62 = arith.truncf %38 : vector<6x128xf32> to vector<6x128xbf16>
    %cst_20 = arith.constant dense<0.000000e+00> : vector<6x128xf32>
    %63 = tpu.matmul %61, %62, %cst_20 {dimension_numbers = #tpu.dot_dimension_numbers<[1], [0], [0], [1], [0, 0, 1, 1], [], []>} : vector<6x6xbf16>, vector<6x128xbf16>, vector<6x128xf32> -> vector<6x128xf32>
    %c0_21 = arith.constant 0 : index
    %c128 = arith.constant 128 : index
    %64 = vector.load %arg12[%c0_21, %c128] : memref<1x1280xf32, #tpu.memory_space<vmem>>, vector<1x128xf32>
    %65 = vector.broadcast %64 : vector<1x128xf32> to vector<6x128xf32>
    %66 = arith.addf %63, %65 : vector<6x128xf32>
    %cst_22 = arith.constant 0.000000e+00 : f32
    %67 = vector.broadcast %cst_22 : f32 to vector<6x128xf32>
    %68 = arith.maximumf %66, %67 : vector<6x128xf32>
    %69 = vector.extract_strided_slice %3 {offsets = [0, 256], sizes = [6, 128], strides = [1, 1]} : vector<6x1280xf32> to vector<6x128xf32>
    %70 = vector.extract_strided_slice %6 {offsets = [0, 2], sizes = [6, 1], strides = [1, 1]} : vector<6x20xf32> to vector<6x1xf32>
    %71 = vector.extract_strided_slice %6 {offsets = [0, 12], sizes = [6, 1], strides = [1, 1]} : vector<6x20xf32> to vector<6x1xf32>
    %72 = tpu.transpose %71, [1, 0] : vector<6x1xf32> -> vector<1x6xf32>
    %73 = vector.broadcast %70 : vector<6x1xf32> to vector<6x6xf32>
    %74 = vector.broadcast %72 : vector<1x6xf32> to vector<6x6xf32>
    %75 = arith.addf %73, %74 : vector<6x6xf32>
    %cst_23 = arith.constant 0.000000e+00 : f32
    %76 = vector.broadcast %cst_23 : f32 to vector<6x6xf32>
    %77 = arith.cmpf oge, %75, %76 : vector<6x6xf32>
    %cst_24 = arith.constant 2.000000e-01 : f32
    %78 = vector.broadcast %cst_24 : f32 to vector<6x6xf32>
    %79 = arith.mulf %78, %75 : vector<6x6xf32>
    %80 = arith.select %77, %75, %79 : vector<6x6xi1>, vector<6x6xf32>
    %81 = arith.addf %80, %0 : vector<6x6xf32>
    %cst_25 = arith.constant dense<0xFF800000> : vector<6xf32>
    %82 = vector.multi_reduction <maximumf>, %81, %cst_25 [1] : vector<6x6xf32> to vector<6xf32>
    %83 = vector.shape_cast %82 : vector<6xf32> to vector<6x1xf32>
    %84 = vector.broadcast %83 : vector<6x1xf32> to vector<6x6xf32>
    %85 = arith.subf %81, %84 : vector<6x6xf32>
    %86 = math.exp %85 : vector<6x6xf32>
    %cst_26 = arith.constant dense<0.000000e+00> : vector<6xf32>
    %87 = vector.multi_reduction <add>, %86, %cst_26 [1] : vector<6x6xf32> to vector<6xf32>
    %88 = vector.shape_cast %87 : vector<6xf32> to vector<6x1xf32>
    %89 = tpu.reciprocal %88 {approx = true} : vector<6x1xf32> -> vector<6x1xf32>
    %90 = vector.broadcast %89 : vector<6x1xf32> to vector<6x6xf32>
    %91 = arith.mulf %86, %90 : vector<6x6xf32>
    %92 = arith.truncf %91 : vector<6x6xf32> to vector<6x6xbf16>
    %93 = arith.truncf %69 : vector<6x128xf32> to vector<6x128xbf16>
    %cst_27 = arith.constant dense<0.000000e+00> : vector<6x128xf32>
    %94 = tpu.matmul %92, %93, %cst_27 {dimension_numbers = #tpu.dot_dimension_numbers<[1], [0], [0], [1], [0, 0, 1, 1], [], []>} : vector<6x6xbf16>, vector<6x128xbf16>, vector<6x128xf32> -> vector<6x128xf32>
    %c0_28 = arith.constant 0 : index
    %c256 = arith.constant 256 : index
    %95 = vector.load %arg12[%c0_28, %c256] : memref<1x1280xf32, #tpu.memory_space<vmem>>, vector<1x128xf32>
    %96 = vector.broadcast %95 : vector<1x128xf32> to vector<6x128xf32>
    %97 = arith.addf %94, %96 : vector<6x128xf32>
    %cst_29 = arith.constant 0.000000e+00 : f32
    %98 = vector.broadcast %cst_29 : f32 to vector<6x128xf32>
    %99 = arith.maximumf %97, %98 : vector<6x128xf32>
    %100 = vector.extract_strided_slice %3 {offsets = [0, 384], sizes = [6, 128], strides = [1, 1]} : vector<6x1280xf32> to vector<6x128xf32>
    %101 = vector.extract_strided_slice %6 {offsets = [0, 3], sizes = [6, 1], strides = [1, 1]} : vector<6x20xf32> to vector<6x1xf32>
    %102 = vector.extract_strided_slice %6 {offsets = [0, 13], sizes = [6, 1], strides = [1, 1]} : vector<6x20xf32> to vector<6x1xf32>
    %103 = tpu.transpose %102, [1, 0] : vector<6x1xf32> -> vector<1x6xf32>
    %104 = vector.broadcast %101 : vector<6x1xf32> to vector<6x6xf32>
    %105 = vector.broadcast %103 : vector<1x6xf32> to vector<6x6xf32>
    %106 = arith.addf %104, %105 : vector<6x6xf32>
    %cst_30 = arith.constant 0.000000e+00 : f32
    %107 = vector.broadcast %cst_30 : f32 to vector<6x6xf32>
    %108 = arith.cmpf oge, %106, %107 : vector<6x6xf32>
    %cst_31 = arith.constant 2.000000e-01 : f32
    %109 = vector.broadcast %cst_31 : f32 to vector<6x6xf32>
    %110 = arith.mulf %109, %106 : vector<6x6xf32>
    %111 = arith.select %108, %106, %110 : vector<6x6xi1>, vector<6x6xf32>
    %112 = arith.addf %111, %0 : vector<6x6xf32>
    %cst_32 = arith.constant dense<0xFF800000> : vector<6xf32>
    %113 = vector.multi_reduction <maximumf>, %112, %cst_32 [1] : vector<6x6xf32> to vector<6xf32>
    %114 = vector.shape_cast %113 : vector<6xf32> to vector<6x1xf32>
    %115 = vector.broadcast %114 : vector<6x1xf32> to vector<6x6xf32>
    %116 = arith.subf %112, %115 : vector<6x6xf32>
    %117 = math.exp %116 : vector<6x6xf32>
    %cst_33 = arith.constant dense<0.000000e+00> : vector<6xf32>
    %118 = vector.multi_reduction <add>, %117, %cst_33 [1] : vector<6x6xf32> to vector<6xf32>
    %119 = vector.shape_cast %118 : vector<6xf32> to vector<6x1xf32>
    %120 = tpu.reciprocal %119 {approx = true} : vector<6x1xf32> -> vector<6x1xf32>
    %121 = vector.broadcast %120 : vector<6x1xf32> to vector<6x6xf32>
    %122 = arith.mulf %117, %121 : vector<6x6xf32>
    %123 = arith.truncf %122 : vector<6x6xf32> to vector<6x6xbf16>
    %124 = arith.truncf %100 : vector<6x128xf32> to vector<6x128xbf16>
    %cst_34 = arith.constant dense<0.000000e+00> : vector<6x128xf32>
    %125 = tpu.matmul %123, %124, %cst_34 {dimension_numbers = #tpu.dot_dimension_numbers<[1], [0], [0], [1], [0, 0, 1, 1], [], []>} : vector<6x6xbf16>, vector<6x128xbf16>, vector<6x128xf32> -> vector<6x128xf32>
    %c0_35 = arith.constant 0 : index
    %c384 = arith.constant 384 : index
    %126 = vector.load %arg12[%c0_35, %c384] : memref<1x1280xf32, #tpu.memory_space<vmem>>, vector<1x128xf32>
    %127 = vector.broadcast %126 : vector<1x128xf32> to vector<6x128xf32>
    %128 = arith.addf %125, %127 : vector<6x128xf32>
    %cst_36 = arith.constant 0.000000e+00 : f32
    %129 = vector.broadcast %cst_36 : f32 to vector<6x128xf32>
    %130 = arith.maximumf %128, %129 : vector<6x128xf32>
    %131 = vector.extract_strided_slice %3 {offsets = [0, 512], sizes = [6, 128], strides = [1, 1]} : vector<6x1280xf32> to vector<6x128xf32>
    %132 = vector.extract_strided_slice %6 {offsets = [0, 4], sizes = [6, 1], strides = [1, 1]} : vector<6x20xf32> to vector<6x1xf32>
    %133 = vector.extract_strided_slice %6 {offsets = [0, 14], sizes = [6, 1], strides = [1, 1]} : vector<6x20xf32> to vector<6x1xf32>
    %134 = tpu.transpose %133, [1, 0] : vector<6x1xf32> -> vector<1x6xf32>
    %135 = vector.broadcast %132 : vector<6x1xf32> to vector<6x6xf32>
    %136 = vector.broadcast %134 : vector<1x6xf32> to vector<6x6xf32>
    %137 = arith.addf %135, %136 : vector<6x6xf32>
    %cst_37 = arith.constant 0.000000e+00 : f32
    %138 = vector.broadcast %cst_37 : f32 to vector<6x6xf32>
    %139 = arith.cmpf oge, %137, %138 : vector<6x6xf32>
    %cst_38 = arith.constant 2.000000e-01 : f32
    %140 = vector.broadcast %cst_38 : f32 to vector<6x6xf32>
    %141 = arith.mulf %140, %137 : vector<6x6xf32>
    %142 = arith.select %139, %137, %141 : vector<6x6xi1>, vector<6x6xf32>
    %143 = arith.addf %142, %0 : vector<6x6xf32>
    %cst_39 = arith.constant dense<0xFF800000> : vector<6xf32>
    %144 = vector.multi_reduction <maximumf>, %143, %cst_39 [1] : vector<6x6xf32> to vector<6xf32>
    %145 = vector.shape_cast %144 : vector<6xf32> to vector<6x1xf32>
    %146 = vector.broadcast %145 : vector<6x1xf32> to vector<6x6xf32>
    %147 = arith.subf %143, %146 : vector<6x6xf32>
    %148 = math.exp %147 : vector<6x6xf32>
    %cst_40 = arith.constant dense<0.000000e+00> : vector<6xf32>
    %149 = vector.multi_reduction <add>, %148, %cst_40 [1] : vector<6x6xf32> to vector<6xf32>
    %150 = vector.shape_cast %149 : vector<6xf32> to vector<6x1xf32>
    %151 = tpu.reciprocal %150 {approx = true} : vector<6x1xf32> -> vector<6x1xf32>
    %152 = vector.broadcast %151 : vector<6x1xf32> to vector<6x6xf32>
    %153 = arith.mulf %148, %152 : vector<6x6xf32>
    %154 = arith.truncf %153 : vector<6x6xf32> to vector<6x6xbf16>
    %155 = arith.truncf %131 : vector<6x128xf32> to vector<6x128xbf16>
    %cst_41 = arith.constant dense<0.000000e+00> : vector<6x128xf32>
    %156 = tpu.matmul %154, %155, %cst_41 {dimension_numbers = #tpu.dot_dimension_numbers<[1], [0], [0], [1], [0, 0, 1, 1], [], []>} : vector<6x6xbf16>, vector<6x128xbf16>, vector<6x128xf32> -> vector<6x128xf32>
    %c0_42 = arith.constant 0 : index
    %c512 = arith.constant 512 : index
    %157 = vector.load %arg12[%c0_42, %c512] : memref<1x1280xf32, #tpu.memory_space<vmem>>, vector<1x128xf32>
    %158 = vector.broadcast %157 : vector<1x128xf32> to vector<6x128xf32>
    %159 = arith.addf %156, %158 : vector<6x128xf32>
    %cst_43 = arith.constant 0.000000e+00 : f32
    %160 = vector.broadcast %cst_43 : f32 to vector<6x128xf32>
    %161 = arith.maximumf %159, %160 : vector<6x128xf32>
    %162 = vector.extract_strided_slice %3 {offsets = [0, 640], sizes = [6, 128], strides = [1, 1]} : vector<6x1280xf32> to vector<6x128xf32>
    %163 = vector.extract_strided_slice %6 {offsets = [0, 5], sizes = [6, 1], strides = [1, 1]} : vector<6x20xf32> to vector<6x1xf32>
    %164 = vector.extract_strided_slice %6 {offsets = [0, 15], sizes = [6, 1], strides = [1, 1]} : vector<6x20xf32> to vector<6x1xf32>
    %165 = tpu.transpose %164, [1, 0] : vector<6x1xf32> -> vector<1x6xf32>
    %166 = vector.broadcast %163 : vector<6x1xf32> to vector<6x6xf32>
    %167 = vector.broadcast %165 : vector<1x6xf32> to vector<6x6xf32>
    %168 = arith.addf %166, %167 : vector<6x6xf32>
    %cst_44 = arith.constant 0.000000e+00 : f32
    %169 = vector.broadcast %cst_44 : f32 to vector<6x6xf32>
    %170 = arith.cmpf oge, %168, %169 : vector<6x6xf32>
    %cst_45 = arith.constant 2.000000e-01 : f32
    %171 = vector.broadcast %cst_45 : f32 to vector<6x6xf32>
    %172 = arith.mulf %171, %168 : vector<6x6xf32>
    %173 = arith.select %170, %168, %172 : vector<6x6xi1>, vector<6x6xf32>
    %174 = arith.addf %173, %0 : vector<6x6xf32>
    %cst_46 = arith.constant dense<0xFF800000> : vector<6xf32>
    %175 = vector.multi_reduction <maximumf>, %174, %cst_46 [1] : vector<6x6xf32> to vector<6xf32>
    %176 = vector.shape_cast %175 : vector<6xf32> to vector<6x1xf32>
    %177 = vector.broadcast %176 : vector<6x1xf32> to vector<6x6xf32>
    %178 = arith.subf %174, %177 : vector<6x6xf32>
    %179 = math.exp %178 : vector<6x6xf32>
    %cst_47 = arith.constant dense<0.000000e+00> : vector<6xf32>
    %180 = vector.multi_reduction <add>, %179, %cst_47 [1] : vector<6x6xf32> to vector<6xf32>
    %181 = vector.shape_cast %180 : vector<6xf32> to vector<6x1xf32>
    %182 = tpu.reciprocal %181 {approx = true} : vector<6x1xf32> -> vector<6x1xf32>
    %183 = vector.broadcast %182 : vector<6x1xf32> to vector<6x6xf32>
    %184 = arith.mulf %179, %183 : vector<6x6xf32>
    %185 = arith.truncf %184 : vector<6x6xf32> to vector<6x6xbf16>
    %186 = arith.truncf %162 : vector<6x128xf32> to vector<6x128xbf16>
    %cst_48 = arith.constant dense<0.000000e+00> : vector<6x128xf32>
    %187 = tpu.matmul %185, %186, %cst_48 {dimension_numbers = #tpu.dot_dimension_numbers<[1], [0], [0], [1], [0, 0, 1, 1], [], []>} : vector<6x6xbf16>, vector<6x128xbf16>, vector<6x128xf32> -> vector<6x128xf32>
    %c0_49 = arith.constant 0 : index
    %c640 = arith.constant 640 : index
    %188 = vector.load %arg12[%c0_49, %c640] : memref<1x1280xf32, #tpu.memory_space<vmem>>, vector<1x128xf32>
    %189 = vector.broadcast %188 : vector<1x128xf32> to vector<6x128xf32>
    %190 = arith.addf %187, %189 : vector<6x128xf32>
    %cst_50 = arith.constant 0.000000e+00 : f32
    %191 = vector.broadcast %cst_50 : f32 to vector<6x128xf32>
    %192 = arith.maximumf %190, %191 : vector<6x128xf32>
    %193 = vector.extract_strided_slice %3 {offsets = [0, 768], sizes = [6, 128], strides = [1, 1]} : vector<6x1280xf32> to vector<6x128xf32>
    %194 = vector.extract_strided_slice %6 {offsets = [0, 6], sizes = [6, 1], strides = [1, 1]} : vector<6x20xf32> to vector<6x1xf32>
    %195 = vector.extract_strided_slice %6 {offsets = [0, 16], sizes = [6, 1], strides = [1, 1]} : vector<6x20xf32> to vector<6x1xf32>
    %196 = tpu.transpose %195, [1, 0] : vector<6x1xf32> -> vector<1x6xf32>
    %197 = vector.broadcast %194 : vector<6x1xf32> to vector<6x6xf32>
    %198 = vector.broadcast %196 : vector<1x6xf32> to vector<6x6xf32>
    %199 = arith.addf %197, %198 : vector<6x6xf32>
    %cst_51 = arith.constant 0.000000e+00 : f32
    %200 = vector.broadcast %cst_51 : f32 to vector<6x6xf32>
    %201 = arith.cmpf oge, %199, %200 : vector<6x6xf32>
    %cst_52 = arith.constant 2.000000e-01 : f32
    %202 = vector.broadcast %cst_52 : f32 to vector<6x6xf32>
    %203 = arith.mulf %202, %199 : vector<6x6xf32>
    %204 = arith.select %201, %199, %203 : vector<6x6xi1>, vector<6x6xf32>
    %205 = arith.addf %204, %0 : vector<6x6xf32>
    %cst_53 = arith.constant dense<0xFF800000> : vector<6xf32>
    %206 = vector.multi_reduction <maximumf>, %205, %cst_53 [1] : vector<6x6xf32> to vector<6xf32>
    %207 = vector.shape_cast %206 : vector<6xf32> to vector<6x1xf32>
    %208 = vector.broadcast %207 : vector<6x1xf32> to vector<6x6xf32>
    %209 = arith.subf %205, %208 : vector<6x6xf32>
    %210 = math.exp %209 : vector<6x6xf32>
    %cst_54 = arith.constant dense<0.000000e+00> : vector<6xf32>
    %211 = vector.multi_reduction <add>, %210, %cst_54 [1] : vector<6x6xf32> to vector<6xf32>
    %212 = vector.shape_cast %211 : vector<6xf32> to vector<6x1xf32>
    %213 = tpu.reciprocal %212 {approx = true} : vector<6x1xf32> -> vector<6x1xf32>
    %214 = vector.broadcast %213 : vector<6x1xf32> to vector<6x6xf32>
    %215 = arith.mulf %210, %214 : vector<6x6xf32>
    %216 = arith.truncf %215 : vector<6x6xf32> to vector<6x6xbf16>
    %217 = arith.truncf %193 : vector<6x128xf32> to vector<6x128xbf16>
    %cst_55 = arith.constant dense<0.000000e+00> : vector<6x128xf32>
    %218 = tpu.matmul %216, %217, %cst_55 {dimension_numbers = #tpu.dot_dimension_numbers<[1], [0], [0], [1], [0, 0, 1, 1], [], []>} : vector<6x6xbf16>, vector<6x128xbf16>, vector<6x128xf32> -> vector<6x128xf32>
    %c0_56 = arith.constant 0 : index
    %c768 = arith.constant 768 : index
    %219 = vector.load %arg12[%c0_56, %c768] : memref<1x1280xf32, #tpu.memory_space<vmem>>, vector<1x128xf32>
    %220 = vector.broadcast %219 : vector<1x128xf32> to vector<6x128xf32>
    %221 = arith.addf %218, %220 : vector<6x128xf32>
    %cst_57 = arith.constant 0.000000e+00 : f32
    %222 = vector.broadcast %cst_57 : f32 to vector<6x128xf32>
    %223 = arith.maximumf %221, %222 : vector<6x128xf32>
    %224 = vector.extract_strided_slice %3 {offsets = [0, 896], sizes = [6, 128], strides = [1, 1]} : vector<6x1280xf32> to vector<6x128xf32>
    %225 = vector.extract_strided_slice %6 {offsets = [0, 7], sizes = [6, 1], strides = [1, 1]} : vector<6x20xf32> to vector<6x1xf32>
    %226 = vector.extract_strided_slice %6 {offsets = [0, 17], sizes = [6, 1], strides = [1, 1]} : vector<6x20xf32> to vector<6x1xf32>
    %227 = tpu.transpose %226, [1, 0] : vector<6x1xf32> -> vector<1x6xf32>
    %228 = vector.broadcast %225 : vector<6x1xf32> to vector<6x6xf32>
    %229 = vector.broadcast %227 : vector<1x6xf32> to vector<6x6xf32>
    %230 = arith.addf %228, %229 : vector<6x6xf32>
    %cst_58 = arith.constant 0.000000e+00 : f32
    %231 = vector.broadcast %cst_58 : f32 to vector<6x6xf32>
    %232 = arith.cmpf oge, %230, %231 : vector<6x6xf32>
    %cst_59 = arith.constant 2.000000e-01 : f32
    %233 = vector.broadcast %cst_59 : f32 to vector<6x6xf32>
    %234 = arith.mulf %233, %230 : vector<6x6xf32>
    %235 = arith.select %232, %230, %234 : vector<6x6xi1>, vector<6x6xf32>
    %236 = arith.addf %235, %0 : vector<6x6xf32>
    %cst_60 = arith.constant dense<0xFF800000> : vector<6xf32>
    %237 = vector.multi_reduction <maximumf>, %236, %cst_60 [1] : vector<6x6xf32> to vector<6xf32>
    %238 = vector.shape_cast %237 : vector<6xf32> to vector<6x1xf32>
    %239 = vector.broadcast %238 : vector<6x1xf32> to vector<6x6xf32>
    %240 = arith.subf %236, %239 : vector<6x6xf32>
    %241 = math.exp %240 : vector<6x6xf32>
    %cst_61 = arith.constant dense<0.000000e+00> : vector<6xf32>
    %242 = vector.multi_reduction <add>, %241, %cst_61 [1] : vector<6x6xf32> to vector<6xf32>
    %243 = vector.shape_cast %242 : vector<6xf32> to vector<6x1xf32>
    %244 = tpu.reciprocal %243 {approx = true} : vector<6x1xf32> -> vector<6x1xf32>
    %245 = vector.broadcast %244 : vector<6x1xf32> to vector<6x6xf32>
    %246 = arith.mulf %241, %245 : vector<6x6xf32>
    %247 = arith.truncf %246 : vector<6x6xf32> to vector<6x6xbf16>
    %248 = arith.truncf %224 : vector<6x128xf32> to vector<6x128xbf16>
    %cst_62 = arith.constant dense<0.000000e+00> : vector<6x128xf32>
    %249 = tpu.matmul %247, %248, %cst_62 {dimension_numbers = #tpu.dot_dimension_numbers<[1], [0], [0], [1], [0, 0, 1, 1], [], []>} : vector<6x6xbf16>, vector<6x128xbf16>, vector<6x128xf32> -> vector<6x128xf32>
    %c0_63 = arith.constant 0 : index
    %c896 = arith.constant 896 : index
    %250 = vector.load %arg12[%c0_63, %c896] : memref<1x1280xf32, #tpu.memory_space<vmem>>, vector<1x128xf32>
    %251 = vector.broadcast %250 : vector<1x128xf32> to vector<6x128xf32>
    %252 = arith.addf %249, %251 : vector<6x128xf32>
    %cst_64 = arith.constant 0.000000e+00 : f32
    %253 = vector.broadcast %cst_64 : f32 to vector<6x128xf32>
    %254 = arith.maximumf %252, %253 : vector<6x128xf32>
    %255 = vector.extract_strided_slice %3 {offsets = [0, 1024], sizes = [6, 128], strides = [1, 1]} : vector<6x1280xf32> to vector<6x128xf32>
    %256 = vector.extract_strided_slice %6 {offsets = [0, 8], sizes = [6, 1], strides = [1, 1]} : vector<6x20xf32> to vector<6x1xf32>
    %257 = vector.extract_strided_slice %6 {offsets = [0, 18], sizes = [6, 1], strides = [1, 1]} : vector<6x20xf32> to vector<6x1xf32>
    %258 = tpu.transpose %257, [1, 0] : vector<6x1xf32> -> vector<1x6xf32>
    %259 = vector.broadcast %256 : vector<6x1xf32> to vector<6x6xf32>
    %260 = vector.broadcast %258 : vector<1x6xf32> to vector<6x6xf32>
    %261 = arith.addf %259, %260 : vector<6x6xf32>
    %cst_65 = arith.constant 0.000000e+00 : f32
    %262 = vector.broadcast %cst_65 : f32 to vector<6x6xf32>
    %263 = arith.cmpf oge, %261, %262 : vector<6x6xf32>
    %cst_66 = arith.constant 2.000000e-01 : f32
    %264 = vector.broadcast %cst_66 : f32 to vector<6x6xf32>
    %265 = arith.mulf %264, %261 : vector<6x6xf32>
    %266 = arith.select %263, %261, %265 : vector<6x6xi1>, vector<6x6xf32>
    %267 = arith.addf %266, %0 : vector<6x6xf32>
    %cst_67 = arith.constant dense<0xFF800000> : vector<6xf32>
    %268 = vector.multi_reduction <maximumf>, %267, %cst_67 [1] : vector<6x6xf32> to vector<6xf32>
    %269 = vector.shape_cast %268 : vector<6xf32> to vector<6x1xf32>
    %270 = vector.broadcast %269 : vector<6x1xf32> to vector<6x6xf32>
    %271 = arith.subf %267, %270 : vector<6x6xf32>
    %272 = math.exp %271 : vector<6x6xf32>
    %cst_68 = arith.constant dense<0.000000e+00> : vector<6xf32>
    %273 = vector.multi_reduction <add>, %272, %cst_68 [1] : vector<6x6xf32> to vector<6xf32>
    %274 = vector.shape_cast %273 : vector<6xf32> to vector<6x1xf32>
    %275 = tpu.reciprocal %274 {approx = true} : vector<6x1xf32> -> vector<6x1xf32>
    %276 = vector.broadcast %275 : vector<6x1xf32> to vector<6x6xf32>
    %277 = arith.mulf %272, %276 : vector<6x6xf32>
    %278 = arith.truncf %277 : vector<6x6xf32> to vector<6x6xbf16>
    %279 = arith.truncf %255 : vector<6x128xf32> to vector<6x128xbf16>
    %cst_69 = arith.constant dense<0.000000e+00> : vector<6x128xf32>
    %280 = tpu.matmul %278, %279, %cst_69 {dimension_numbers = #tpu.dot_dimension_numbers<[1], [0], [0], [1], [0, 0, 1, 1], [], []>} : vector<6x6xbf16>, vector<6x128xbf16>, vector<6x128xf32> -> vector<6x128xf32>
    %c0_70 = arith.constant 0 : index
    %c1024 = arith.constant 1024 : index
    %281 = vector.load %arg12[%c0_70, %c1024] : memref<1x1280xf32, #tpu.memory_space<vmem>>, vector<1x128xf32>
    %282 = vector.broadcast %281 : vector<1x128xf32> to vector<6x128xf32>
    %283 = arith.addf %280, %282 : vector<6x128xf32>
    %cst_71 = arith.constant 0.000000e+00 : f32
    %284 = vector.broadcast %cst_71 : f32 to vector<6x128xf32>
    %285 = arith.maximumf %283, %284 : vector<6x128xf32>
    %286 = vector.extract_strided_slice %3 {offsets = [0, 1152], sizes = [6, 128], strides = [1, 1]} : vector<6x1280xf32> to vector<6x128xf32>
    %287 = vector.extract_strided_slice %6 {offsets = [0, 9], sizes = [6, 1], strides = [1, 1]} : vector<6x20xf32> to vector<6x1xf32>
    %288 = vector.extract_strided_slice %6 {offsets = [0, 19], sizes = [6, 1], strides = [1, 1]} : vector<6x20xf32> to vector<6x1xf32>
    %289 = tpu.transpose %288, [1, 0] : vector<6x1xf32> -> vector<1x6xf32>
    %290 = vector.broadcast %287 : vector<6x1xf32> to vector<6x6xf32>
    %291 = vector.broadcast %289 : vector<1x6xf32> to vector<6x6xf32>
    %292 = arith.addf %290, %291 : vector<6x6xf32>
    %cst_72 = arith.constant 0.000000e+00 : f32
    %293 = vector.broadcast %cst_72 : f32 to vector<6x6xf32>
    %294 = arith.cmpf oge, %292, %293 : vector<6x6xf32>
    %cst_73 = arith.constant 2.000000e-01 : f32
    %295 = vector.broadcast %cst_73 : f32 to vector<6x6xf32>
    %296 = arith.mulf %295, %292 : vector<6x6xf32>
    %297 = arith.select %294, %292, %296 : vector<6x6xi1>, vector<6x6xf32>
    %298 = arith.addf %297, %0 : vector<6x6xf32>
    %cst_74 = arith.constant dense<0xFF800000> : vector<6xf32>
    %299 = vector.multi_reduction <maximumf>, %298, %cst_74 [1] : vector<6x6xf32> to vector<6xf32>
    %300 = vector.shape_cast %299 : vector<6xf32> to vector<6x1xf32>
    %301 = vector.broadcast %300 : vector<6x1xf32> to vector<6x6xf32>
    %302 = arith.subf %298, %301 : vector<6x6xf32>
    %303 = math.exp %302 : vector<6x6xf32>
    %cst_75 = arith.constant dense<0.000000e+00> : vector<6xf32>
    %304 = vector.multi_reduction <add>, %303, %cst_75 [1] : vector<6x6xf32> to vector<6xf32>
    %305 = vector.shape_cast %304 : vector<6xf32> to vector<6x1xf32>
    %306 = tpu.reciprocal %305 {approx = true} : vector<6x1xf32> -> vector<6x1xf32>
    %307 = vector.broadcast %306 : vector<6x1xf32> to vector<6x6xf32>
    %308 = arith.mulf %303, %307 : vector<6x6xf32>
    %309 = arith.truncf %308 : vector<6x6xf32> to vector<6x6xbf16>
    %310 = arith.truncf %286 : vector<6x128xf32> to vector<6x128xbf16>
    %cst_76 = arith.constant dense<0.000000e+00> : vector<6x128xf32>
    %311 = tpu.matmul %309, %310, %cst_76 {dimension_numbers = #tpu.dot_dimension_numbers<[1], [0], [0], [1], [0, 0, 1, 1], [], []>} : vector<6x6xbf16>, vector<6x128xbf16>, vector<6x128xf32> -> vector<6x128xf32>
    %c0_77 = arith.constant 0 : index
    %c1152 = arith.constant 1152 : index
    %312 = vector.load %arg12[%c0_77, %c1152] : memref<1x1280xf32, #tpu.memory_space<vmem>>, vector<1x128xf32>
    %313 = vector.broadcast %312 : vector<1x128xf32> to vector<6x128xf32>
    %314 = arith.addf %311, %313 : vector<6x128xf32>
    %cst_78 = arith.constant 0.000000e+00 : f32
    %315 = vector.broadcast %cst_78 : f32 to vector<6x128xf32>
    %316 = arith.maximumf %314, %315 : vector<6x128xf32>
    %317 = arith.truncf %37 : vector<6x128xf32> to vector<6x128xbf16>
    %c0_79 = arith.constant 0 : index
    %c0_80 = arith.constant 0 : index
    %318 = vector.load %arg23[%c0_79, %c0_80] : memref<6x1280xbf16, #tpu.memory_space<vmem>>, vector<6x128xbf16>
    tpu.vector_store %arg23[%c0_79, %c0_80], %317 {strides = array<i32>} : memref<6x1280xbf16, #tpu.memory_space<vmem>>, vector<6x128xbf16>,
    %319 = arith.truncf %68 : vector<6x128xf32> to vector<6x128xbf16>
    %c0_81 = arith.constant 0 : index
    %c128_82 = arith.constant 128 : index
    %320 = vector.load %arg23[%c0_81, %c128_82] : memref<6x1280xbf16, #tpu.memory_space<vmem>>, vector<6x128xbf16>
    tpu.vector_store %arg23[%c0_81, %c128_82], %319 {strides = array<i32>} : memref<6x1280xbf16, #tpu.memory_space<vmem>>, vector<6x128xbf16>,
    %321 = arith.truncf %99 : vector<6x128xf32> to vector<6x128xbf16>
    %c0_83 = arith.constant 0 : index
    %c256_84 = arith.constant 256 : index
    %322 = vector.load %arg23[%c0_83, %c256_84] : memref<6x1280xbf16, #tpu.memory_space<vmem>>, vector<6x128xbf16>
    tpu.vector_store %arg23[%c0_83, %c256_84], %321 {strides = array<i32>} : memref<6x1280xbf16, #tpu.memory_space<vmem>>, vector<6x128xbf16>,
    %323 = arith.truncf %130 : vector<6x128xf32> to vector<6x128xbf16>
    %c0_85 = arith.constant 0 : index
    %c384_86 = arith.constant 384 : index
    %324 = vector.load %arg23[%c0_85, %c384_86] : memref<6x1280xbf16, #tpu.memory_space<vmem>>, vector<6x128xbf16>
    tpu.vector_store %arg23[%c0_85, %c384_86], %323 {strides = array<i32>} : memref<6x1280xbf16, #tpu.memory_space<vmem>>, vector<6x128xbf16>,
    %325 = arith.truncf %161 : vector<6x128xf32> to vector<6x128xbf16>
    %c0_87 = arith.constant 0 : index
    %c512_88 = arith.constant 512 : index
    %326 = vector.load %arg23[%c0_87, %c512_88] : memref<6x1280xbf16, #tpu.memory_space<vmem>>, vector<6x128xbf16>
    tpu.vector_store %arg23[%c0_87, %c512_88], %325 {strides = array<i32>} : memref<6x1280xbf16, #tpu.memory_space<vmem>>, vector<6x128xbf16>,
    %327 = arith.truncf %192 : vector<6x128xf32> to vector<6x128xbf16>
    %c0_89 = arith.constant 0 : index
    %c640_90 = arith.constant 640 : index
    %328 = vector.load %arg23[%c0_89, %c640_90] : memref<6x1280xbf16, #tpu.memory_space<vmem>>, vector<6x128xbf16>
    tpu.vector_store %arg23[%c0_89, %c640_90], %327 {strides = array<i32>} : memref<6x1280xbf16, #tpu.memory_space<vmem>>, vector<6x128xbf16>,
    %329 = arith.truncf %223 : vector<6x128xf32> to vector<6x128xbf16>
    %c0_91 = arith.constant 0 : index
    %c768_92 = arith.constant 768 : index
    %330 = vector.load %arg23[%c0_91, %c768_92] : memref<6x1280xbf16, #tpu.memory_space<vmem>>, vector<6x128xbf16>
    tpu.vector_store %arg23[%c0_91, %c768_92], %329 {strides = array<i32>} : memref<6x1280xbf16, #tpu.memory_space<vmem>>, vector<6x128xbf16>,
    %331 = arith.truncf %254 : vector<6x128xf32> to vector<6x128xbf16>
    %c0_93 = arith.constant 0 : index
    %c896_94 = arith.constant 896 : index
    %332 = vector.load %arg23[%c0_93, %c896_94] : memref<6x1280xbf16, #tpu.memory_space<vmem>>, vector<6x128xbf16>
    tpu.vector_store %arg23[%c0_93, %c896_94], %331 {strides = array<i32>} : memref<6x1280xbf16, #tpu.memory_space<vmem>>, vector<6x128xbf16>,
    %333 = arith.truncf %285 : vector<6x128xf32> to vector<6x128xbf16>
    %c0_95 = arith.constant 0 : index
    %c1024_96 = arith.constant 1024 : index
    %334 = vector.load %arg23[%c0_95, %c1024_96] : memref<6x1280xbf16, #tpu.memory_space<vmem>>, vector<6x128xbf16>
    tpu.vector_store %arg23[%c0_95, %c1024_96], %333 {strides = array<i32>} : memref<6x1280xbf16, #tpu.memory_space<vmem>>, vector<6x128xbf16>,
    %335 = arith.truncf %316 : vector<6x128xf32> to vector<6x128xbf16>
    %c0_97 = arith.constant 0 : index
    %c1152_98 = arith.constant 1152 : index
    %336 = vector.load %arg23[%c0_97, %c1152_98] : memref<6x1280xbf16, #tpu.memory_space<vmem>>, vector<6x128xbf16>
    tpu.vector_store %arg23[%c0_97, %c1152_98], %335 {strides = array<i32>} : memref<6x1280xbf16, #tpu.memory_space<vmem>>, vector<6x128xbf16>,
    %c0_99 = arith.constant 0 : index
    %c0_100 = arith.constant 0 : index
    %337 = vector.load %arg23[%c0_99, %c0_100] : memref<6x1280xbf16, #tpu.memory_space<vmem>>, vector<6x1280xbf16>
    %c0_101 = arith.constant 0 : index
    %c0_102 = arith.constant 0 : index
    %338 = vector.load %arg14[%c0_101, %c0_102] : memref<1280x256xbf16, #tpu.memory_space<vmem>>, vector<1280x256xbf16>
    %cst_103 = arith.constant dense<0.000000e+00> : vector<6x256xf32>
    %339 = tpu.matmul %337, %338, %cst_103 {dimension_numbers = #tpu.dot_dimension_numbers<[1], [0], [0], [1], [0, 0, 1, 1], [], []>} : vector<6x1280xbf16>, vector<1280x256xbf16>, vector<6x256xf32> -> vector<6x256xf32>
    %340 = arith.truncf %339 : vector<6x256xf32> to vector<6x256xbf16>
    %c0_104 = arith.constant 0 : index
    %c0_105 = arith.constant 0 : index
    %341 = vector.load %arg15[%c0_104, %c0_105] : memref<256x2xbf16, #tpu.memory_space<vmem>>, vector<256x2xbf16>
    %cst_106 = arith.constant dense<0.000000e+00> : vector<6x2xf32>
    %342 = tpu.matmul %340, %341, %cst_106 {dimension_numbers = #tpu.dot_dimension_numbers<[1], [0], [0], [1], [0, 0, 1, 1], [], []>} : vector<6x256xbf16>, vector<256x2xbf16>, vector<6x2xf32> -> vector<6x2xf32>
    %343 = vector.extract_strided_slice %342 {offsets = [0, 0], sizes = [6, 1], strides = [1, 1]} : vector<6x2xf32> to vector<6x1xf32>
    %344 = vector.extract_strided_slice %342 {offsets = [0, 1], sizes = [6, 1], strides = [1, 1]} : vector<6x2xf32> to vector<6x1xf32>
    %345 = tpu.transpose %344, [1, 0] : vector<6x1xf32> -> vector<1x6xf32>
    %346 = vector.broadcast %343 : vector<6x1xf32> to vector<6x6xf32>
    %347 = vector.broadcast %345 : vector<1x6xf32> to vector<6x6xf32>
    %348 = arith.addf %346, %347 : vector<6x6xf32>
    %cst_107 = arith.constant 0.000000e+00 : f32
    %349 = vector.broadcast %cst_107 : f32 to vector<6x6xf32>
    %350 = arith.cmpf oge, %348, %349 : vector<6x6xf32>
    %cst_108 = arith.constant 2.000000e-01 : f32
    %351 = vector.broadcast %cst_108 : f32 to vector<6x6xf32>
    %352 = arith.mulf %351, %348 : vector<6x6xf32>
    %353 = arith.select %350, %348, %352 : vector<6x6xi1>, vector<6x6xf32>
    %354 = arith.addf %353, %0 : vector<6x6xf32>
    %cst_109 = arith.constant dense<0xFF800000> : vector<6xf32>
    %355 = vector.multi_reduction <maximumf>, %354, %cst_109 [1] : vector<6x6xf32> to vector<6xf32>
    %356 = vector.shape_cast %355 : vector<6xf32> to vector<6x1xf32>
    %357 = vector.broadcast %356 : vector<6x1xf32> to vector<6x6xf32>
    %358 = arith.subf %354, %357 : vector<6x6xf32>
    %359 = math.exp %358 : vector<6x6xf32>
    %cst_110 = arith.constant dense<0.000000e+00> : vector<6xf32>
    %360 = vector.multi_reduction <add>, %359, %cst_110 [1] : vector<6x6xf32> to vector<6xf32>
    %361 = vector.shape_cast %360 : vector<6xf32> to vector<6x1xf32>
    %362 = tpu.reciprocal %361 {approx = true} : vector<6x1xf32> -> vector<6x1xf32>
    %363 = vector.broadcast %362 : vector<6x1xf32> to vector<6x6xf32>
    %364 = arith.mulf %359, %363 : vector<6x6xf32>
    %365 = arith.truncf %364 : vector<6x6xf32> to vector<6x6xbf16>
    %366 = arith.truncf %339 : vector<6x256xf32> to vector<6x256xbf16>
    %cst_111 = arith.constant dense<0.000000e+00> : vector<6x256xf32>
    %367 = tpu.matmul %365, %366, %cst_111 {dimension_numbers = #tpu.dot_dimension_numbers<[1], [0], [0], [1], [0, 0, 1, 1], [], []>} : vector<6x6xbf16>, vector<6x256xbf16>, vector<6x256xf32> -> vector<6x256xf32>
    %c0_112 = arith.constant 0 : index
    %c0_113 = arith.constant 0 : index
    %368 = vector.load %arg16[%c0_112, %c0_113] : memref<1x256xf32, #tpu.memory_space<vmem>>, vector<1x256xf32>
    %369 = vector.broadcast %368 : vector<1x256xf32> to vector<6x256xf32>
    %370 = arith.addf %367, %369 : vector<6x256xf32>
    %cst_114 = arith.constant 0.000000e+00 : f32
    %371 = vector.broadcast %cst_114 : f32 to vector<6x256xf32>
    %372 = arith.maximumf %370, %371 : vector<6x256xf32>
    %c0_115 = arith.constant 0 : index
    %c0_116 = arith.constant 0 : index
    %373 = vector.load %arg21[%c0_115, %c0_116] : memref<6x256xf32, #tpu.memory_space<vmem>>, vector<6x256xf32>
    tpu.vector_store %arg21[%c0_115, %c0_116], %372 {strides = array<i32>} : memref<6x256xf32, #tpu.memory_space<vmem>>, vector<6x256xf32>,
    %c0_117 = arith.constant 0 : index
    %c0_118 = arith.constant 0 : index
    %374 = vector.load %arg5[%c0_117, %c0_118] : memref<8x8xf32, #tpu.memory_space<vmem>>, vector<8x8xf32>
    %c0_119 = arith.constant 0 : index
    %c0_120 = arith.constant 0 : index
    %375 = vector.load %arg1[%c0_119, %c0_120] : memref<8x128xbf16, #tpu.memory_space<vmem>>, vector<8x128xbf16>
    %c0_121 = arith.constant 0 : index
    %c0_122 = arith.constant 0 : index
    %376 = vector.load %arg2[%c0_121, %c0_122] : memref<128x1280xbf16, #tpu.memory_space<vmem>>, vector<128x1280xbf16>
    %cst_123 = arith.constant dense<0.000000e+00> : vector<8x1280xf32>
    %377 = tpu.matmul %375, %376, %cst_123 {dimension_numbers = #tpu.dot_dimension_numbers<[1], [0], [0], [1], [0, 0, 1, 1], [], []>} : vector<8x128xbf16>, vector<128x1280xbf16>, vector<8x1280xf32> -> vector<8x1280xf32>
    %378 = arith.truncf %377 : vector<8x1280xf32> to vector<8x1280xbf16>
    %c0_124 = arith.constant 0 : index
    %c0_125 = arith.constant 0 : index
    %379 = vector.load %arg3[%c0_124, %c0_125] : memref<1280x20xbf16, #tpu.memory_space<vmem>>, vector<1280x20xbf16>
    %cst_126 = arith.constant dense<0.000000e+00> : vector<8x20xf32>
    %380 = tpu.matmul %378, %379, %cst_126 {dimension_numbers = #tpu.dot_dimension_numbers<[1], [0], [0], [1], [0, 0, 1, 1], [], []>} : vector<8x1280xbf16>, vector<1280x20xbf16>, vector<8x20xf32> -> vector<8x20xf32>
    %381 = vector.extract_strided_slice %377 {offsets = [0, 0], sizes = [8, 128], strides = [1, 1]} : vector<8x1280xf32> to vector<8x128xf32>
    %382 = vector.extract_strided_slice %380 {offsets = [0, 0], sizes = [8, 1], strides = [1, 1]} : vector<8x20xf32> to vector<8x1xf32>
    %383 = vector.extract_strided_slice %380 {offsets = [0, 10], sizes = [8, 1], strides = [1, 1]} : vector<8x20xf32> to vector<8x1xf32>
    %384 = tpu.transpose %383, [1, 0] : vector<8x1xf32> -> vector<1x8xf32>
    %385 = vector.broadcast %382 : vector<8x1xf32> to vector<8x8xf32>
    %386 = vector.broadcast %384 : vector<1x8xf32> to vector<8x8xf32>
    %387 = arith.addf %385, %386 : vector<8x8xf32>
    %cst_127 = arith.constant 0.000000e+00 : f32
    %388 = vector.broadcast %cst_127 : f32 to vector<8x8xf32>
    %389 = arith.cmpf oge, %387, %388 : vector<8x8xf32>
    %cst_128 = arith.constant 2.000000e-01 : f32
    %390 = vector.broadcast %cst_128 : f32 to vector<8x8xf32>
    %391 = arith.mulf %390, %387 : vector<8x8xf32>
    %392 = arith.select %389, %387, %391 : vector<8x8xi1>, vector<8x8xf32>
    %393 = arith.addf %392, %374 : vector<8x8xf32>
    %cst_129 = arith.constant dense<0xFF800000> : vector<8xf32>
    %394 = vector.multi_reduction <maximumf>, %393, %cst_129 [1] : vector<8x8xf32> to vector<8xf32>
    %395 = vector.shape_cast %394 : vector<8xf32> to vector<8x1xf32>
    %396 = vector.broadcast %395 : vector<8x1xf32> to vector<8x8xf32>
    %397 = arith.subf %393, %396 : vector<8x8xf32>
    %398 = math.exp %397 : vector<8x8xf32>
    %cst_130 = arith.constant dense<0.000000e+00> : vector<8xf32>
    %399 = vector.multi_reduction <add>, %398, %cst_130 [1] : vector<8x8xf32> to vector<8xf32>
    %400 = vector.shape_cast %399 : vector<8xf32> to vector<8x1xf32>
    %401 = tpu.reciprocal %400 {approx = true} : vector<8x1xf32> -> vector<8x1xf32>
    %402 = vector.broadcast %401 : vector<8x1xf32> to vector<8x8xf32>
    %403 = arith.mulf %398, %402 : vector<8x8xf32>
    %404 = arith.truncf %403 : vector<8x8xf32> to vector<8x8xbf16>
    %405 = arith.truncf %381 : vector<8x128xf32> to vector<8x128xbf16>
    %cst_131 = arith.constant dense<0.000000e+00> : vector<8x128xf32>
    %406 = tpu.matmul %404, %405, %cst_131 {dimension_numbers = #tpu.dot_dimension_numbers<[1], [0], [0], [1], [0, 0, 1, 1], [], []>} : vector<8x8xbf16>, vector<8x128xbf16>, vector<8x128xf32> -> vector<8x128xf32>
    %c0_132 = arith.constant 0 : index
    %c0_133 = arith.constant 0 : index
    %407 = vector.load %arg4[%c0_132, %c0_133] : memref<1x1280xf32, #tpu.memory_space<vmem>>, vector<1x128xf32>
    %408 = vector.broadcast %407 : vector<1x128xf32> to vector<8x128xf32>
    %409 = arith.addf %406, %408 : vector<8x128xf32>
    %cst_134 = arith.constant 0.000000e+00 : f32
    %410 = vector.broadcast %cst_134 : f32 to vector<8x128xf32>
    %411 = arith.maximumf %409, %410 : vector<8x128xf32>
    %412 = vector.extract_strided_slice %377 {offsets = [0, 128], sizes = [8, 128], strides = [1, 1]} : vector<8x1280xf32> to vector<8x128xf32>
    %413 = vector.extract_strided_slice %380 {offsets = [0, 1], sizes = [8, 1], strides = [1, 1]} : vector<8x20xf32> to vector<8x1xf32>
    %414 = vector.extract_strided_slice %380 {offsets = [0, 11], sizes = [8, 1], strides = [1, 1]} : vector<8x20xf32> to vector<8x1xf32>
    %415 = tpu.transpose %414, [1, 0] : vector<8x1xf32> -> vector<1x8xf32>
    %416 = vector.broadcast %413 : vector<8x1xf32> to vector<8x8xf32>
    %417 = vector.broadcast %415 : vector<1x8xf32> to vector<8x8xf32>
    %418 = arith.addf %416, %417 : vector<8x8xf32>
    %cst_135 = arith.constant 0.000000e+00 : f32
    %419 = vector.broadcast %cst_135 : f32 to vector<8x8xf32>
    %420 = arith.cmpf oge, %418, %419 : vector<8x8xf32>
    %cst_136 = arith.constant 2.000000e-01 : f32
    %421 = vector.broadcast %cst_136 : f32 to vector<8x8xf32>
    %422 = arith.mulf %421, %418 : vector<8x8xf32>
    %423 = arith.select %420, %418, %422 : vector<8x8xi1>, vector<8x8xf32>
    %424 = arith.addf %423, %374 : vector<8x8xf32>
    %cst_137 = arith.constant dense<0xFF800000> : vector<8xf32>
    %425 = vector.multi_reduction <maximumf>, %424, %cst_137 [1] : vector<8x8xf32> to vector<8xf32>
    %426 = vector.shape_cast %425 : vector<8xf32> to vector<8x1xf32>
    %427 = vector.broadcast %426 : vector<8x1xf32> to vector<8x8xf32>
    %428 = arith.subf %424, %427 : vector<8x8xf32>
    %429 = math.exp %428 : vector<8x8xf32>
    %cst_138 = arith.constant dense<0.000000e+00> : vector<8xf32>
    %430 = vector.multi_reduction <add>, %429, %cst_138 [1] : vector<8x8xf32> to vector<8xf32>
    %431 = vector.shape_cast %430 : vector<8xf32> to vector<8x1xf32>
    %432 = tpu.reciprocal %431 {approx = true} : vector<8x1xf32> -> vector<8x1xf32>
    %433 = vector.broadcast %432 : vector<8x1xf32> to vector<8x8xf32>
    %434 = arith.mulf %429, %433 : vector<8x8xf32>
    %435 = arith.truncf %434 : vector<8x8xf32> to vector<8x8xbf16>
    %436 = arith.truncf %412 : vector<8x128xf32> to vector<8x128xbf16>
    %cst_139 = arith.constant dense<0.000000e+00> : vector<8x128xf32>
    %437 = tpu.matmul %435, %436, %cst_139 {dimension_numbers = #tpu.dot_dimension_numbers<[1], [0], [0], [1], [0, 0, 1, 1], [], []>} : vector<8x8xbf16>, vector<8x128xbf16>, vector<8x128xf32> -> vector<8x128xf32>
    %c0_140 = arith.constant 0 : index
    %c128_141 = arith.constant 128 : index
    %438 = vector.load %arg4[%c0_140, %c128_141] : memref<1x1280xf32, #tpu.memory_space<vmem>>, vector<1x128xf32>
    %439 = vector.broadcast %438 : vector<1x128xf32> to vector<8x128xf32>
    %440 = arith.addf %437, %439 : vector<8x128xf32>
    %cst_142 = arith.constant 0.000000e+00 : f32
    %441 = vector.broadcast %cst_142 : f32 to vector<8x128xf32>
    %442 = arith.maximumf %440, %441 : vector<8x128xf32>
    %443 = vector.extract_strided_slice %377 {offsets = [0, 256], sizes = [8, 128], strides = [1, 1]} : vector<8x1280xf32> to vector<8x128xf32>
    %444 = vector.extract_strided_slice %380 {offsets = [0, 2], sizes = [8, 1], strides = [1, 1]} : vector<8x20xf32> to vector<8x1xf32>
    %445 = vector.extract_strided_slice %380 {offsets = [0, 12], sizes = [8, 1], strides = [1, 1]} : vector<8x20xf32> to vector<8x1xf32>
    %446 = tpu.transpose %445, [1, 0] : vector<8x1xf32> -> vector<1x8xf32>
    %447 = vector.broadcast %444 : vector<8x1xf32> to vector<8x8xf32>
    %448 = vector.broadcast %446 : vector<1x8xf32> to vector<8x8xf32>
    %449 = arith.addf %447, %448 : vector<8x8xf32>
    %cst_143 = arith.constant 0.000000e+00 : f32
    %450 = vector.broadcast %cst_143 : f32 to vector<8x8xf32>
    %451 = arith.cmpf oge, %449, %450 : vector<8x8xf32>
    %cst_144 = arith.constant 2.000000e-01 : f32
    %452 = vector.broadcast %cst_144 : f32 to vector<8x8xf32>
    %453 = arith.mulf %452, %449 : vector<8x8xf32>
    %454 = arith.select %451, %449, %453 : vector<8x8xi1>, vector<8x8xf32>
    %455 = arith.addf %454, %374 : vector<8x8xf32>
    %cst_145 = arith.constant dense<0xFF800000> : vector<8xf32>
    %456 = vector.multi_reduction <maximumf>, %455, %cst_145 [1] : vector<8x8xf32> to vector<8xf32>
    %457 = vector.shape_cast %456 : vector<8xf32> to vector<8x1xf32>
    %458 = vector.broadcast %457 : vector<8x1xf32> to vector<8x8xf32>
    %459 = arith.subf %455, %458 : vector<8x8xf32>
    %460 = math.exp %459 : vector<8x8xf32>
    %cst_146 = arith.constant dense<0.000000e+00> : vector<8xf32>
    %461 = vector.multi_reduction <add>, %460, %cst_146 [1] : vector<8x8xf32> to vector<8xf32>
    %462 = vector.shape_cast %461 : vector<8xf32> to vector<8x1xf32>
    %463 = tpu.reciprocal %462 {approx = true} : vector<8x1xf32> -> vector<8x1xf32>
    %464 = vector.broadcast %463 : vector<8x1xf32> to vector<8x8xf32>
    %465 = arith.mulf %460, %464 : vector<8x8xf32>
    %466 = arith.truncf %465 : vector<8x8xf32> to vector<8x8xbf16>
    %467 = arith.truncf %443 : vector<8x128xf32> to vector<8x128xbf16>
    %cst_147 = arith.constant dense<0.000000e+00> : vector<8x128xf32>
    %468 = tpu.matmul %466, %467, %cst_147 {dimension_numbers = #tpu.dot_dimension_numbers<[1], [0], [0], [1], [0, 0, 1, 1], [], []>} : vector<8x8xbf16>, vector<8x128xbf16>, vector<8x128xf32> -> vector<8x128xf32>
    %c0_148 = arith.constant 0 : index
    %c256_149 = arith.constant 256 : index
    %469 = vector.load %arg4[%c0_148, %c256_149] : memref<1x1280xf32, #tpu.memory_space<vmem>>, vector<1x128xf32>
    %470 = vector.broadcast %469 : vector<1x128xf32> to vector<8x128xf32>
    %471 = arith.addf %468, %470 : vector<8x128xf32>
    %cst_150 = arith.constant 0.000000e+00 : f32
    %472 = vector.broadcast %cst_150 : f32 to vector<8x128xf32>
    %473 = arith.maximumf %471, %472 : vector<8x128xf32>
    %474 = vector.extract_strided_slice %377 {offsets = [0, 384], sizes = [8, 128], strides = [1, 1]} : vector<8x1280xf32> to vector<8x128xf32>
    %475 = vector.extract_strided_slice %380 {offsets = [0, 3], sizes = [8, 1], strides = [1, 1]} : vector<8x20xf32> to vector<8x1xf32>
    %476 = vector.extract_strided_slice %380 {offsets = [0, 13], sizes = [8, 1], strides = [1, 1]} : vector<8x20xf32> to vector<8x1xf32>
    %477 = tpu.transpose %476, [1, 0] : vector<8x1xf32> -> vector<1x8xf32>
    %478 = vector.broadcast %475 : vector<8x1xf32> to vector<8x8xf32>
    %479 = vector.broadcast %477 : vector<1x8xf32> to vector<8x8xf32>
    %480 = arith.addf %478, %479 : vector<8x8xf32>
    %cst_151 = arith.constant 0.000000e+00 : f32
    %481 = vector.broadcast %cst_151 : f32 to vector<8x8xf32>
    %482 = arith.cmpf oge, %480, %481 : vector<8x8xf32>
    %cst_152 = arith.constant 2.000000e-01 : f32
    %483 = vector.broadcast %cst_152 : f32 to vector<8x8xf32>
    %484 = arith.mulf %483, %480 : vector<8x8xf32>
    %485 = arith.select %482, %480, %484 : vector<8x8xi1>, vector<8x8xf32>
    %486 = arith.addf %485, %374 : vector<8x8xf32>
    %cst_153 = arith.constant dense<0xFF800000> : vector<8xf32>
    %487 = vector.multi_reduction <maximumf>, %486, %cst_153 [1] : vector<8x8xf32> to vector<8xf32>
    %488 = vector.shape_cast %487 : vector<8xf32> to vector<8x1xf32>
    %489 = vector.broadcast %488 : vector<8x1xf32> to vector<8x8xf32>
    %490 = arith.subf %486, %489 : vector<8x8xf32>
    %491 = math.exp %490 : vector<8x8xf32>
    %cst_154 = arith.constant dense<0.000000e+00> : vector<8xf32>
    %492 = vector.multi_reduction <add>, %491, %cst_154 [1] : vector<8x8xf32> to vector<8xf32>
    %493 = vector.shape_cast %492 : vector<8xf32> to vector<8x1xf32>
    %494 = tpu.reciprocal %493 {approx = true} : vector<8x1xf32> -> vector<8x1xf32>
    %495 = vector.broadcast %494 : vector<8x1xf32> to vector<8x8xf32>
    %496 = arith.mulf %491, %495 : vector<8x8xf32>
    %497 = arith.truncf %496 : vector<8x8xf32> to vector<8x8xbf16>
    %498 = arith.truncf %474 : vector<8x128xf32> to vector<8x128xbf16>
    %cst_155 = arith.constant dense<0.000000e+00> : vector<8x128xf32>
    %499 = tpu.matmul %497, %498, %cst_155 {dimension_numbers = #tpu.dot_dimension_numbers<[1], [0], [0], [1], [0, 0, 1, 1], [], []>} : vector<8x8xbf16>, vector<8x128xbf16>, vector<8x128xf32> -> vector<8x128xf32>
    %c0_156 = arith.constant 0 : index
    %c384_157 = arith.constant 384 : index
    %500 = vector.load %arg4[%c0_156, %c384_157] : memref<1x1280xf32, #tpu.memory_space<vmem>>, vector<1x128xf32>
    %501 = vector.broadcast %500 : vector<1x128xf32> to vector<8x128xf32>
    %502 = arith.addf %499, %501 : vector<8x128xf32>
    %cst_158 = arith.constant 0.000000e+00 : f32
    %503 = vector.broadcast %cst_158 : f32 to vector<8x128xf32>
    %504 = arith.maximumf %502, %503 : vector<8x128xf32>
    %505 = vector.extract_strided_slice %377 {offsets = [0, 512], sizes = [8, 128], strides = [1, 1]} : vector<8x1280xf32> to vector<8x128xf32>
    %506 = vector.extract_strided_slice %380 {offsets = [0, 4], sizes = [8, 1], strides = [1, 1]} : vector<8x20xf32> to vector<8x1xf32>
    %507 = vector.extract_strided_slice %380 {offsets = [0, 14], sizes = [8, 1], strides = [1, 1]} : vector<8x20xf32> to vector<8x1xf32>
    %508 = tpu.transpose %507, [1, 0] : vector<8x1xf32> -> vector<1x8xf32>
    %509 = vector.broadcast %506 : vector<8x1xf32> to vector<8x8xf32>
    %510 = vector.broadcast %508 : vector<1x8xf32> to vector<8x8xf32>
    %511 = arith.addf %509, %510 : vector<8x8xf32>
    %cst_159 = arith.constant 0.000000e+00 : f32
    %512 = vector.broadcast %cst_159 : f32 to vector<8x8xf32>
    %513 = arith.cmpf oge, %511, %512 : vector<8x8xf32>
    %cst_160 = arith.constant 2.000000e-01 : f32
    %514 = vector.broadcast %cst_160 : f32 to vector<8x8xf32>
    %515 = arith.mulf %514, %511 : vector<8x8xf32>
    %516 = arith.select %513, %511, %515 : vector<8x8xi1>, vector<8x8xf32>
    %517 = arith.addf %516, %374 : vector<8x8xf32>
    %cst_161 = arith.constant dense<0xFF800000> : vector<8xf32>
    %518 = vector.multi_reduction <maximumf>, %517, %cst_161 [1] : vector<8x8xf32> to vector<8xf32>
    %519 = vector.shape_cast %518 : vector<8xf32> to vector<8x1xf32>
    %520 = vector.broadcast %519 : vector<8x1xf32> to vector<8x8xf32>
    %521 = arith.subf %517, %520 : vector<8x8xf32>
    %522 = math.exp %521 : vector<8x8xf32>
    %cst_162 = arith.constant dense<0.000000e+00> : vector<8xf32>
    %523 = vector.multi_reduction <add>, %522, %cst_162 [1] : vector<8x8xf32> to vector<8xf32>
    %524 = vector.shape_cast %523 : vector<8xf32> to vector<8x1xf32>
    %525 = tpu.reciprocal %524 {approx = true} : vector<8x1xf32> -> vector<8x1xf32>
    %526 = vector.broadcast %525 : vector<8x1xf32> to vector<8x8xf32>
    %527 = arith.mulf %522, %526 : vector<8x8xf32>
    %528 = arith.truncf %527 : vector<8x8xf32> to vector<8x8xbf16>
    %529 = arith.truncf %505 : vector<8x128xf32> to vector<8x128xbf16>
    %cst_163 = arith.constant dense<0.000000e+00> : vector<8x128xf32>
    %530 = tpu.matmul %528, %529, %cst_163 {dimension_numbers = #tpu.dot_dimension_numbers<[1], [0], [0], [1], [0, 0, 1, 1], [], []>} : vector<8x8xbf16>, vector<8x128xbf16>, vector<8x128xf32> -> vector<8x128xf32>
    %c0_164 = arith.constant 0 : index
    %c512_165 = arith.constant 512 : index
    %531 = vector.load %arg4[%c0_164, %c512_165] : memref<1x1280xf32, #tpu.memory_space<vmem>>, vector<1x128xf32>
    %532 = vector.broadcast %531 : vector<1x128xf32> to vector<8x128xf32>
    %533 = arith.addf %530, %532 : vector<8x128xf32>
    %cst_166 = arith.constant 0.000000e+00 : f32
    %534 = vector.broadcast %cst_166 : f32 to vector<8x128xf32>
    %535 = arith.maximumf %533, %534 : vector<8x128xf32>
    %536 = vector.extract_strided_slice %377 {offsets = [0, 640], sizes = [8, 128], strides = [1, 1]} : vector<8x1280xf32> to vector<8x128xf32>
    %537 = vector.extract_strided_slice %380 {offsets = [0, 5], sizes = [8, 1], strides = [1, 1]} : vector<8x20xf32> to vector<8x1xf32>
    %538 = vector.extract_strided_slice %380 {offsets = [0, 15], sizes = [8, 1], strides = [1, 1]} : vector<8x20xf32> to vector<8x1xf32>
    %539 = tpu.transpose %538, [1, 0] : vector<8x1xf32> -> vector<1x8xf32>
    %540 = vector.broadcast %537 : vector<8x1xf32> to vector<8x8xf32>
    %541 = vector.broadcast %539 : vector<1x8xf32> to vector<8x8xf32>
    %542 = arith.addf %540, %541 : vector<8x8xf32>
    %cst_167 = arith.constant 0.000000e+00 : f32
    %543 = vector.broadcast %cst_167 : f32 to vector<8x8xf32>
    %544 = arith.cmpf oge, %542, %543 : vector<8x8xf32>
    %cst_168 = arith.constant 2.000000e-01 : f32
    %545 = vector.broadcast %cst_168 : f32 to vector<8x8xf32>
    %546 = arith.mulf %545, %542 : vector<8x8xf32>
    %547 = arith.select %544, %542, %546 : vector<8x8xi1>, vector<8x8xf32>
    %548 = arith.addf %547, %374 : vector<8x8xf32>
    %cst_169 = arith.constant dense<0xFF800000> : vector<8xf32>
    %549 = vector.multi_reduction <maximumf>, %548, %cst_169 [1] : vector<8x8xf32> to vector<8xf32>
    %550 = vector.shape_cast %549 : vector<8xf32> to vector<8x1xf32>
    %551 = vector.broadcast %550 : vector<8x1xf32> to vector<8x8xf32>
    %552 = arith.subf %548, %551 : vector<8x8xf32>
    %553 = math.exp %552 : vector<8x8xf32>
    %cst_170 = arith.constant dense<0.000000e+00> : vector<8xf32>
    %554 = vector.multi_reduction <add>, %553, %cst_170 [1] : vector<8x8xf32> to vector<8xf32>
    %555 = vector.shape_cast %554 : vector<8xf32> to vector<8x1xf32>
    %556 = tpu.reciprocal %555 {approx = true} : vector<8x1xf32> -> vector<8x1xf32>
    %557 = vector.broadcast %556 : vector<8x1xf32> to vector<8x8xf32>
    %558 = arith.mulf %553, %557 : vector<8x8xf32>
    %559 = arith.truncf %558 : vector<8x8xf32> to vector<8x8xbf16>
    %560 = arith.truncf %536 : vector<8x128xf32> to vector<8x128xbf16>
    %cst_171 = arith.constant dense<0.000000e+00> : vector<8x128xf32>
    %561 = tpu.matmul %559, %560, %cst_171 {dimension_numbers = #tpu.dot_dimension_numbers<[1], [0], [0], [1], [0, 0, 1, 1], [], []>} : vector<8x8xbf16>, vector<8x128xbf16>, vector<8x128xf32> -> vector<8x128xf32>
    %c0_172 = arith.constant 0 : index
    %c640_173 = arith.constant 640 : index
    %562 = vector.load %arg4[%c0_172, %c640_173] : memref<1x1280xf32, #tpu.memory_space<vmem>>, vector<1x128xf32>
    %563 = vector.broadcast %562 : vector<1x128xf32> to vector<8x128xf32>
    %564 = arith.addf %561, %563 : vector<8x128xf32>
    %cst_174 = arith.constant 0.000000e+00 : f32
    %565 = vector.broadcast %cst_174 : f32 to vector<8x128xf32>
    %566 = arith.maximumf %564, %565 : vector<8x128xf32>
    %567 = vector.extract_strided_slice %377 {offsets = [0, 768], sizes = [8, 128], strides = [1, 1]} : vector<8x1280xf32> to vector<8x128xf32>
    %568 = vector.extract_strided_slice %380 {offsets = [0, 6], sizes = [8, 1], strides = [1, 1]} : vector<8x20xf32> to vector<8x1xf32>
    %569 = vector.extract_strided_slice %380 {offsets = [0, 16], sizes = [8, 1], strides = [1, 1]} : vector<8x20xf32> to vector<8x1xf32>
    %570 = tpu.transpose %569, [1, 0] : vector<8x1xf32> -> vector<1x8xf32>
    %571 = vector.broadcast %568 : vector<8x1xf32> to vector<8x8xf32>
    %572 = vector.broadcast %570 : vector<1x8xf32> to vector<8x8xf32>
    %573 = arith.addf %571, %572 : vector<8x8xf32>
    %cst_175 = arith.constant 0.000000e+00 : f32
    %574 = vector.broadcast %cst_175 : f32 to vector<8x8xf32>
    %575 = arith.cmpf oge, %573, %574 : vector<8x8xf32>
    %cst_176 = arith.constant 2.000000e-01 : f32
    %576 = vector.broadcast %cst_176 : f32 to vector<8x8xf32>
    %577 = arith.mulf %576, %573 : vector<8x8xf32>
    %578 = arith.select %575, %573, %577 : vector<8x8xi1>, vector<8x8xf32>
    %579 = arith.addf %578, %374 : vector<8x8xf32>
    %cst_177 = arith.constant dense<0xFF800000> : vector<8xf32>
    %580 = vector.multi_reduction <maximumf>, %579, %cst_177 [1] : vector<8x8xf32> to vector<8xf32>
    %581 = vector.shape_cast %580 : vector<8xf32> to vector<8x1xf32>
    %582 = vector.broadcast %581 : vector<8x1xf32> to vector<8x8xf32>
    %583 = arith.subf %579, %582 : vector<8x8xf32>
    %584 = math.exp %583 : vector<8x8xf32>
    %cst_178 = arith.constant dense<0.000000e+00> : vector<8xf32>
    %585 = vector.multi_reduction <add>, %584, %cst_178 [1] : vector<8x8xf32> to vector<8xf32>
    %586 = vector.shape_cast %585 : vector<8xf32> to vector<8x1xf32>
    %587 = tpu.reciprocal %586 {approx = true} : vector<8x1xf32> -> vector<8x1xf32>
    %588 = vector.broadcast %587 : vector<8x1xf32> to vector<8x8xf32>
    %589 = arith.mulf %584, %588 : vector<8x8xf32>
    %590 = arith.truncf %589 : vector<8x8xf32> to vector<8x8xbf16>
    %591 = arith.truncf %567 : vector<8x128xf32> to vector<8x128xbf16>
    %cst_179 = arith.constant dense<0.000000e+00> : vector<8x128xf32>
    %592 = tpu.matmul %590, %591, %cst_179 {dimension_numbers = #tpu.dot_dimension_numbers<[1], [0], [0], [1], [0, 0, 1, 1], [], []>} : vector<8x8xbf16>, vector<8x128xbf16>, vector<8x128xf32> -> vector<8x128xf32>
    %c0_180 = arith.constant 0 : index
    %c768_181 = arith.constant 768 : index
    %593 = vector.load %arg4[%c0_180, %c768_181] : memref<1x1280xf32, #tpu.memory_space<vmem>>, vector<1x128xf32>
    %594 = vector.broadcast %593 : vector<1x128xf32> to vector<8x128xf32>
    %595 = arith.addf %592, %594 : vector<8x128xf32>
    %cst_182 = arith.constant 0.000000e+00 : f32
    %596 = vector.broadcast %cst_182 : f32 to vector<8x128xf32>
    %597 = arith.maximumf %595, %596 : vector<8x128xf32>
    %598 = vector.extract_strided_slice %377 {offsets = [0, 896], sizes = [8, 128], strides = [1, 1]} : vector<8x1280xf32> to vector<8x128xf32>
    %599 = vector.extract_strided_slice %380 {offsets = [0, 7], sizes = [8, 1], strides = [1, 1]} : vector<8x20xf32> to vector<8x1xf32>
    %600 = vector.extract_strided_slice %380 {offsets = [0, 17], sizes = [8, 1], strides = [1, 1]} : vector<8x20xf32> to vector<8x1xf32>
    %601 = tpu.transpose %600, [1, 0] : vector<8x1xf32> -> vector<1x8xf32>
    %602 = vector.broadcast %599 : vector<8x1xf32> to vector<8x8xf32>
    %603 = vector.broadcast %601 : vector<1x8xf32> to vector<8x8xf32>
    %604 = arith.addf %602, %603 : vector<8x8xf32>
    %cst_183 = arith.constant 0.000000e+00 : f32
    %605 = vector.broadcast %cst_183 : f32 to vector<8x8xf32>
    %606 = arith.cmpf oge, %604, %605 : vector<8x8xf32>
    %cst_184 = arith.constant 2.000000e-01 : f32
    %607 = vector.broadcast %cst_184 : f32 to vector<8x8xf32>
    %608 = arith.mulf %607, %604 : vector<8x8xf32>
    %609 = arith.select %606, %604, %608 : vector<8x8xi1>, vector<8x8xf32>
    %610 = arith.addf %609, %374 : vector<8x8xf32>
    %cst_185 = arith.constant dense<0xFF800000> : vector<8xf32>
    %611 = vector.multi_reduction <maximumf>, %610, %cst_185 [1] : vector<8x8xf32> to vector<8xf32>
    %612 = vector.shape_cast %611 : vector<8xf32> to vector<8x1xf32>
    %613 = vector.broadcast %612 : vector<8x1xf32> to vector<8x8xf32>
    %614 = arith.subf %610, %613 : vector<8x8xf32>
    %615 = math.exp %614 : vector<8x8xf32>
    %cst_186 = arith.constant dense<0.000000e+00> : vector<8xf32>
    %616 = vector.multi_reduction <add>, %615, %cst_186 [1] : vector<8x8xf32> to vector<8xf32>
    %617 = vector.shape_cast %616 : vector<8xf32> to vector<8x1xf32>
    %618 = tpu.reciprocal %617 {approx = true} : vector<8x1xf32> -> vector<8x1xf32>
    %619 = vector.broadcast %618 : vector<8x1xf32> to vector<8x8xf32>
    %620 = arith.mulf %615, %619 : vector<8x8xf32>
    %621 = arith.truncf %620 : vector<8x8xf32> to vector<8x8xbf16>
    %622 = arith.truncf %598 : vector<8x128xf32> to vector<8x128xbf16>
    %cst_187 = arith.constant dense<0.000000e+00> : vector<8x128xf32>
    %623 = tpu.matmul %621, %622, %cst_187 {dimension_numbers = #tpu.dot_dimension_numbers<[1], [0], [0], [1], [0, 0, 1, 1], [], []>} : vector<8x8xbf16>, vector<8x128xbf16>, vector<8x128xf32> -> vector<8x128xf32>
    %c0_188 = arith.constant 0 : index
    %c896_189 = arith.constant 896 : index
    %624 = vector.load %arg4[%c0_188, %c896_189] : memref<1x1280xf32, #tpu.memory_space<vmem>>, vector<1x128xf32>
    %625 = vector.broadcast %624 : vector<1x128xf32> to vector<8x128xf32>
    %626 = arith.addf %623, %625 : vector<8x128xf32>
    %cst_190 = arith.constant 0.000000e+00 : f32
    %627 = vector.broadcast %cst_190 : f32 to vector<8x128xf32>
    %628 = arith.maximumf %626, %627 : vector<8x128xf32>
    %629 = vector.extract_strided_slice %377 {offsets = [0, 1024], sizes = [8, 128], strides = [1, 1]} : vector<8x1280xf32> to vector<8x128xf32>
    %630 = vector.extract_strided_slice %380 {offsets = [0, 8], sizes = [8, 1], strides = [1, 1]} : vector<8x20xf32> to vector<8x1xf32>
    %631 = vector.extract_strided_slice %380 {offsets = [0, 18], sizes = [8, 1], strides = [1, 1]} : vector<8x20xf32> to vector<8x1xf32>
    %632 = tpu.transpose %631, [1, 0] : vector<8x1xf32> -> vector<1x8xf32>
    %633 = vector.broadcast %630 : vector<8x1xf32> to vector<8x8xf32>
    %634 = vector.broadcast %632 : vector<1x8xf32> to vector<8x8xf32>
    %635 = arith.addf %633, %634 : vector<8x8xf32>
    %cst_191 = arith.constant 0.000000e+00 : f32
    %636 = vector.broadcast %cst_191 : f32 to vector<8x8xf32>
    %637 = arith.cmpf oge, %635, %636 : vector<8x8xf32>
    %cst_192 = arith.constant 2.000000e-01 : f32
    %638 = vector.broadcast %cst_192 : f32 to vector<8x8xf32>
    %639 = arith.mulf %638, %635 : vector<8x8xf32>
    %640 = arith.select %637, %635, %639 : vector<8x8xi1>, vector<8x8xf32>
    %641 = arith.addf %640, %374 : vector<8x8xf32>
    %cst_193 = arith.constant dense<0xFF800000> : vector<8xf32>
    %642 = vector.multi_reduction <maximumf>, %641, %cst_193 [1] : vector<8x8xf32> to vector<8xf32>
    %643 = vector.shape_cast %642 : vector<8xf32> to vector<8x1xf32>
    %644 = vector.broadcast %643 : vector<8x1xf32> to vector<8x8xf32>
    %645 = arith.subf %641, %644 : vector<8x8xf32>
    %646 = math.exp %645 : vector<8x8xf32>
    %cst_194 = arith.constant dense<0.000000e+00> : vector<8xf32>
    %647 = vector.multi_reduction <add>, %646, %cst_194 [1] : vector<8x8xf32> to vector<8xf32>
    %648 = vector.shape_cast %647 : vector<8xf32> to vector<8x1xf32>
    %649 = tpu.reciprocal %648 {approx = true} : vector<8x1xf32> -> vector<8x1xf32>
    %650 = vector.broadcast %649 : vector<8x1xf32> to vector<8x8xf32>
    %651 = arith.mulf %646, %650 : vector<8x8xf32>
    %652 = arith.truncf %651 : vector<8x8xf32> to vector<8x8xbf16>
    %653 = arith.truncf %629 : vector<8x128xf32> to vector<8x128xbf16>
    %cst_195 = arith.constant dense<0.000000e+00> : vector<8x128xf32>
    %654 = tpu.matmul %652, %653, %cst_195 {dimension_numbers = #tpu.dot_dimension_numbers<[1], [0], [0], [1], [0, 0, 1, 1], [], []>} : vector<8x8xbf16>, vector<8x128xbf16>, vector<8x128xf32> -> vector<8x128xf32>
    %c0_196 = arith.constant 0 : index
    %c1024_197 = arith.constant 1024 : index
    %655 = vector.load %arg4[%c0_196, %c1024_197] : memref<1x1280xf32, #tpu.memory_space<vmem>>, vector<1x128xf32>
    %656 = vector.broadcast %655 : vector<1x128xf32> to vector<8x128xf32>
    %657 = arith.addf %654, %656 : vector<8x128xf32>
    %cst_198 = arith.constant 0.000000e+00 : f32
    %658 = vector.broadcast %cst_198 : f32 to vector<8x128xf32>
    %659 = arith.maximumf %657, %658 : vector<8x128xf32>
    %660 = vector.extract_strided_slice %377 {offsets = [0, 1152], sizes = [8, 128], strides = [1, 1]} : vector<8x1280xf32> to vector<8x128xf32>
    %661 = vector.extract_strided_slice %380 {offsets = [0, 9], sizes = [8, 1], strides = [1, 1]} : vector<8x20xf32> to vector<8x1xf32>
    %662 = vector.extract_strided_slice %380 {offsets = [0, 19], sizes = [8, 1], strides = [1, 1]} : vector<8x20xf32> to vector<8x1xf32>
    %663 = tpu.transpose %662, [1, 0] : vector<8x1xf32> -> vector<1x8xf32>
    %664 = vector.broadcast %661 : vector<8x1xf32> to vector<8x8xf32>
    %665 = vector.broadcast %663 : vector<1x8xf32> to vector<8x8xf32>
    %666 = arith.addf %664, %665 : vector<8x8xf32>
    %cst_199 = arith.constant 0.000000e+00 : f32
    %667 = vector.broadcast %cst_199 : f32 to vector<8x8xf32>
    %668 = arith.cmpf oge, %666, %667 : vector<8x8xf32>
    %cst_200 = arith.constant 2.000000e-01 : f32
    %669 = vector.broadcast %cst_200 : f32 to vector<8x8xf32>
    %670 = arith.mulf %669, %666 : vector<8x8xf32>
    %671 = arith.select %668, %666, %670 : vector<8x8xi1>, vector<8x8xf32>
    %672 = arith.addf %671, %374 : vector<8x8xf32>
    %cst_201 = arith.constant dense<0xFF800000> : vector<8xf32>
    %673 = vector.multi_reduction <maximumf>, %672, %cst_201 [1] : vector<8x8xf32> to vector<8xf32>
    %674 = vector.shape_cast %673 : vector<8xf32> to vector<8x1xf32>
    %675 = vector.broadcast %674 : vector<8x1xf32> to vector<8x8xf32>
    %676 = arith.subf %672, %675 : vector<8x8xf32>
    %677 = math.exp %676 : vector<8x8xf32>
    %cst_202 = arith.constant dense<0.000000e+00> : vector<8xf32>
    %678 = vector.multi_reduction <add>, %677, %cst_202 [1] : vector<8x8xf32> to vector<8xf32>
    %679 = vector.shape_cast %678 : vector<8xf32> to vector<8x1xf32>
    %680 = tpu.reciprocal %679 {approx = true} : vector<8x1xf32> -> vector<8x1xf32>
    %681 = vector.broadcast %680 : vector<8x1xf32> to vector<8x8xf32>
    %682 = arith.mulf %677, %681 : vector<8x8xf32>
    %683 = arith.truncf %682 : vector<8x8xf32> to vector<8x8xbf16>
    %684 = arith.truncf %660 : vector<8x128xf32> to vector<8x128xbf16>
    %cst_203 = arith.constant dense<0.000000e+00> : vector<8x128xf32>
    %685 = tpu.matmul %683, %684, %cst_203 {dimension_numbers = #tpu.dot_dimension_numbers<[1], [0], [0], [1], [0, 0, 1, 1], [], []>} : vector<8x8xbf16>, vector<8x128xbf16>, vector<8x128xf32> -> vector<8x128xf32>
    %c0_204 = arith.constant 0 : index
    %c1152_205 = arith.constant 1152 : index
    %686 = vector.load %arg4[%c0_204, %c1152_205] : memref<1x1280xf32, #tpu.memory_space<vmem>>, vector<1x128xf32>
    %687 = vector.broadcast %686 : vector<1x128xf32> to vector<8x128xf32>
    %688 = arith.addf %685, %687 : vector<8x128xf32>
    %cst_206 = arith.constant 0.000000e+00 : f32
    %689 = vector.broadcast %cst_206 : f32 to vector<8x128xf32>
    %690 = arith.maximumf %688, %689 : vector<8x128xf32>
    %691 = arith.truncf %411 : vector<8x128xf32> to vector<8x128xbf16>
    %c0_207 = arith.constant 0 : index
    %c0_208 = arith.constant 0 : index
    %692 = vector.load %arg22[%c0_207, %c0_208] : memref<8x1280xbf16, #tpu.memory_space<vmem>>, vector<8x128xbf16>
    tpu.vector_store %arg22[%c0_207, %c0_208], %691 {strides = array<i32>} : memref<8x1280xbf16, #tpu.memory_space<vmem>>, vector<8x128xbf16>,
    %693 = arith.truncf %442 : vector<8x128xf32> to vector<8x128xbf16>
    %c0_209 = arith.constant 0 : index
    %c128_210 = arith.constant 128 : index
    %694 = vector.load %arg22[%c0_209, %c128_210] : memref<8x1280xbf16, #tpu.memory_space<vmem>>, vector<8x128xbf16>
    tpu.vector_store %arg22[%c0_209, %c128_210], %693 {strides = array<i32>} : memref<8x1280xbf16, #tpu.memory_space<vmem>>, vector<8x128xbf16>,
    %695 = arith.truncf %473 : vector<8x128xf32> to vector<8x128xbf16>
    %c0_211 = arith.constant 0 : index
    %c256_212 = arith.constant 256 : index
    %696 = vector.load %arg22[%c0_211, %c256_212] : memref<8x1280xbf16, #tpu.memory_space<vmem>>, vector<8x128xbf16>
    tpu.vector_store %arg22[%c0_211, %c256_212], %695 {strides = array<i32>} : memref<8x1280xbf16, #tpu.memory_space<vmem>>, vector<8x128xbf16>,
    %697 = arith.truncf %504 : vector<8x128xf32> to vector<8x128xbf16>
    %c0_213 = arith.constant 0 : index
    %c384_214 = arith.constant 384 : index
    %698 = vector.load %arg22[%c0_213, %c384_214] : memref<8x1280xbf16, #tpu.memory_space<vmem>>, vector<8x128xbf16>
    tpu.vector_store %arg22[%c0_213, %c384_214], %697 {strides = array<i32>} : memref<8x1280xbf16, #tpu.memory_space<vmem>>, vector<8x128xbf16>,
    %699 = arith.truncf %535 : vector<8x128xf32> to vector<8x128xbf16>
    %c0_215 = arith.constant 0 : index
    %c512_216 = arith.constant 512 : index
    %700 = vector.load %arg22[%c0_215, %c512_216] : memref<8x1280xbf16, #tpu.memory_space<vmem>>, vector<8x128xbf16>
    tpu.vector_store %arg22[%c0_215, %c512_216], %699 {strides = array<i32>} : memref<8x1280xbf16, #tpu.memory_space<vmem>>, vector<8x128xbf16>,
    %701 = arith.truncf %566 : vector<8x128xf32> to vector<8x128xbf16>
    %c0_217 = arith.constant 0 : index
    %c640_218 = arith.constant 640 : index
    %702 = vector.load %arg22[%c0_217, %c640_218] : memref<8x1280xbf16, #tpu.memory_space<vmem>>, vector<8x128xbf16>
    tpu.vector_store %arg22[%c0_217, %c640_218], %701 {strides = array<i32>} : memref<8x1280xbf16, #tpu.memory_space<vmem>>, vector<8x128xbf16>,
    %703 = arith.truncf %597 : vector<8x128xf32> to vector<8x128xbf16>
    %c0_219 = arith.constant 0 : index
    %c768_220 = arith.constant 768 : index
    %704 = vector.load %arg22[%c0_219, %c768_220] : memref<8x1280xbf16, #tpu.memory_space<vmem>>, vector<8x128xbf16>
    tpu.vector_store %arg22[%c0_219, %c768_220], %703 {strides = array<i32>} : memref<8x1280xbf16, #tpu.memory_space<vmem>>, vector<8x128xbf16>,
    %705 = arith.truncf %628 : vector<8x128xf32> to vector<8x128xbf16>
    %c0_221 = arith.constant 0 : index
    %c896_222 = arith.constant 896 : index
    %706 = vector.load %arg22[%c0_221, %c896_222] : memref<8x1280xbf16, #tpu.memory_space<vmem>>, vector<8x128xbf16>
    tpu.vector_store %arg22[%c0_221, %c896_222], %705 {strides = array<i32>} : memref<8x1280xbf16, #tpu.memory_space<vmem>>, vector<8x128xbf16>,
    %707 = arith.truncf %659 : vector<8x128xf32> to vector<8x128xbf16>
    %c0_223 = arith.constant 0 : index
    %c1024_224 = arith.constant 1024 : index
    %708 = vector.load %arg22[%c0_223, %c1024_224] : memref<8x1280xbf16, #tpu.memory_space<vmem>>, vector<8x128xbf16>
    tpu.vector_store %arg22[%c0_223, %c1024_224], %707 {strides = array<i32>} : memref<8x1280xbf16, #tpu.memory_space<vmem>>, vector<8x128xbf16>,
    %709 = arith.truncf %690 : vector<8x128xf32> to vector<8x128xbf16>
    %c0_225 = arith.constant 0 : index
    %c1152_226 = arith.constant 1152 : index
    %710 = vector.load %arg22[%c0_225, %c1152_226] : memref<8x1280xbf16, #tpu.memory_space<vmem>>, vector<8x128xbf16>
    tpu.vector_store %arg22[%c0_225, %c1152_226], %709 {strides = array<i32>} : memref<8x1280xbf16, #tpu.memory_space<vmem>>, vector<8x128xbf16>,
    %c0_227 = arith.constant 0 : index
    %c0_228 = arith.constant 0 : index
    %711 = vector.load %arg22[%c0_227, %c0_228] : memref<8x1280xbf16, #tpu.memory_space<vmem>>, vector<8x1280xbf16>
    %c0_229 = arith.constant 0 : index
    %c0_230 = arith.constant 0 : index
    %712 = vector.load %arg6[%c0_229, %c0_230] : memref<1280x256xbf16, #tpu.memory_space<vmem>>, vector<1280x256xbf16>
    %cst_231 = arith.constant dense<0.000000e+00> : vector<8x256xf32>
    %713 = tpu.matmul %711, %712, %cst_231 {dimension_numbers = #tpu.dot_dimension_numbers<[1], [0], [0], [1], [0, 0, 1, 1], [], []>} : vector<8x1280xbf16>, vector<1280x256xbf16>, vector<8x256xf32> -> vector<8x256xf32>
    %714 = arith.truncf %713 : vector<8x256xf32> to vector<8x256xbf16>
    %c0_232 = arith.constant 0 : index
    %c0_233 = arith.constant 0 : index
    %715 = vector.load %arg7[%c0_232, %c0_233] : memref<256x2xbf16, #tpu.memory_space<vmem>>, vector<256x2xbf16>
    %cst_234 = arith.constant dense<0.000000e+00> : vector<8x2xf32>
    %716 = tpu.matmul %714, %715, %cst_234 {dimension_numbers = #tpu.dot_dimension_numbers<[1], [0], [0], [1], [0, 0, 1, 1], [], []>} : vector<8x256xbf16>, vector<256x2xbf16>, vector<8x2xf32> -> vector<8x2xf32>
    %717 = vector.extract_strided_slice %716 {offsets = [0, 0], sizes = [8, 1], strides = [1, 1]} : vector<8x2xf32> to vector<8x1xf32>
    %718 = vector.extract_strided_slice %716 {offsets = [0, 1], sizes = [8, 1], strides = [1, 1]} : vector<8x2xf32> to vector<8x1xf32>
    %719 = tpu.transpose %718, [1, 0] : vector<8x1xf32> -> vector<1x8xf32>
    %720 = vector.broadcast %717 : vector<8x1xf32> to vector<8x8xf32>
    %721 = vector.broadcast %719 : vector<1x8xf32> to vector<8x8xf32>
    %722 = arith.addf %720, %721 : vector<8x8xf32>
    %cst_235 = arith.constant 0.000000e+00 : f32
    %723 = vector.broadcast %cst_235 : f32 to vector<8x8xf32>
    %724 = arith.cmpf oge, %722, %723 : vector<8x8xf32>
    %cst_236 = arith.constant 2.000000e-01 : f32
    %725 = vector.broadcast %cst_236 : f32 to vector<8x8xf32>
    %726 = arith.mulf %725, %722 : vector<8x8xf32>
    %727 = arith.select %724, %722, %726 : vector<8x8xi1>, vector<8x8xf32>
    %728 = arith.addf %727, %374 : vector<8x8xf32>
    %cst_237 = arith.constant dense<0xFF800000> : vector<8xf32>
    %729 = vector.multi_reduction <maximumf>, %728, %cst_237 [1] : vector<8x8xf32> to vector<8xf32>
    %730 = vector.shape_cast %729 : vector<8xf32> to vector<8x1xf32>
    %731 = vector.broadcast %730 : vector<8x1xf32> to vector<8x8xf32>
    %732 = arith.subf %728, %731 : vector<8x8xf32>
    %733 = math.exp %732 : vector<8x8xf32>
    %cst_238 = arith.constant dense<0.000000e+00> : vector<8xf32>
    %734 = vector.multi_reduction <add>, %733, %cst_238 [1] : vector<8x8xf32> to vector<8xf32>
    %735 = vector.shape_cast %734 : vector<8xf32> to vector<8x1xf32>
    %736 = tpu.reciprocal %735 {approx = true} : vector<8x1xf32> -> vector<8x1xf32>
    %737 = vector.broadcast %736 : vector<8x1xf32> to vector<8x8xf32>
    %738 = arith.mulf %733, %737 : vector<8x8xf32>
    %739 = arith.truncf %738 : vector<8x8xf32> to vector<8x8xbf16>
    %740 = arith.truncf %713 : vector<8x256xf32> to vector<8x256xbf16>
    %cst_239 = arith.constant dense<0.000000e+00> : vector<8x256xf32>
    %741 = tpu.matmul %739, %740, %cst_239 {dimension_numbers = #tpu.dot_dimension_numbers<[1], [0], [0], [1], [0, 0, 1, 1], [], []>} : vector<8x8xbf16>, vector<8x256xbf16>, vector<8x256xf32> -> vector<8x256xf32>
    %c0_240 = arith.constant 0 : index
    %c0_241 = arith.constant 0 : index
    %742 = vector.load %arg8[%c0_240, %c0_241] : memref<1x256xf32, #tpu.memory_space<vmem>>, vector<1x256xf32>
    %743 = vector.broadcast %742 : vector<1x256xf32> to vector<8x256xf32>
    %744 = arith.addf %741, %743 : vector<8x256xf32>
    %cst_242 = arith.constant 0.000000e+00 : f32
    %745 = vector.broadcast %cst_242 : f32 to vector<8x256xf32>
    %746 = arith.maximumf %744, %745 : vector<8x256xf32>
    %c0_243 = arith.constant 0 : index
    %c0_244 = arith.constant 0 : index
    %747 = vector.load %arg17[%c0_243, %c0_244] : memref<8x2xf32, #tpu.memory_space<vmem>>, vector<8x2xf32>
    %748 = arith.truncf %372 : vector<6x256xf32> to vector<6x256xbf16>
    %749 = vector.extract_strided_slice %747 {offsets = [0, 0], sizes = [8, 1], strides = [1, 1]} : vector<8x2xf32> to vector<8x1xf32>
    %750 = vector.broadcast %749 : vector<8x1xf32> to vector<8x256xf32>
    %751 = arith.addf %746, %750 : vector<8x256xf32>
    %cst_245 = arith.constant dense<0xFF800000> : vector<256xf32>
    %752 = vector.multi_reduction <maximumf>, %751, %cst_245 [0] : vector<8x256xf32> to vector<256xf32>
    %753 = vector.shape_cast %752 : vector<256xf32> to vector<1x256xf32>
    %c0_246 = arith.constant 0 : index
    %c0_247 = arith.constant 0 : index
    %754 = vector.load %arg20[%c0_246, %c0_247] : memref<2x256xf32, #tpu.memory_space<vmem>>, vector<1x256xf32>
    tpu.vector_store %arg20[%c0_246, %c0_247], %753 {strides = array<i32>} : memref<2x256xf32, #tpu.memory_space<vmem>>, vector<1x256xf32>,
    %755 = arith.truncf %753 : vector<1x256xf32> to vector<1x256xbf16>
    %cst_248 = arith.constant dense<0.000000e+00> : vector<1x6xf32>
    %756 = tpu.matmul %755, %748, %cst_248 {dimension_numbers = #tpu.dot_dimension_numbers<[1], [1], [0], [0], [0, 0, 1, 0], [], []>} : vector<1x256xbf16>, vector<6x256xbf16>, vector<1x6xf32> -> vector<1x6xf32>
    %c0_249 = arith.constant 0 : index
    %c0_250 = arith.constant 0 : index
    %757 = vector.load %arg19[%c0_249, %c0_250] : memref<2x6xf32, #tpu.memory_space<vmem>>, vector<1x6xf32>
    tpu.vector_store %arg19[%c0_249, %c0_250], %756 {strides = array<i32>} : memref<2x6xf32, #tpu.memory_space<vmem>>, vector<1x6xf32>,
    %758 = vector.extract_strided_slice %747 {offsets = [0, 1], sizes = [8, 1], strides = [1, 1]} : vector<8x2xf32> to vector<8x1xf32>
    %759 = vector.broadcast %758 : vector<8x1xf32> to vector<8x256xf32>
    %760 = arith.addf %746, %759 : vector<8x256xf32>
    %cst_251 = arith.constant dense<0xFF800000> : vector<256xf32>
    %761 = vector.multi_reduction <maximumf>, %760, %cst_251 [0] : vector<8x256xf32> to vector<256xf32>
    %762 = vector.shape_cast %761 : vector<256xf32> to vector<1x256xf32>
    %c1 = arith.constant 1 : index
    %c0_252 = arith.constant 0 : index
    %763 = vector.load %arg20[%c1, %c0_252] : memref<2x256xf32, #tpu.memory_space<vmem>>, vector<1x256xf32>
    tpu.vector_store %arg20[%c1, %c0_252], %762 {strides = array<i32>} : memref<2x256xf32, #tpu.memory_space<vmem>>, vector<1x256xf32>,
    %764 = arith.truncf %762 : vector<1x256xf32> to vector<1x256xbf16>
    %cst_253 = arith.constant dense<0.000000e+00> : vector<1x6xf32>
    %765 = tpu.matmul %764, %748, %cst_253 {dimension_numbers = #tpu.dot_dimension_numbers<[1], [1], [0], [0], [0, 0, 1, 0], [], []>} : vector<1x256xbf16>, vector<6x256xbf16>, vector<1x6xf32> -> vector<1x6xf32>
    %c1_254 = arith.constant 1 : index
    %c0_255 = arith.constant 0 : index
    %766 = vector.load %arg19[%c1_254, %c0_255] : memref<2x6xf32, #tpu.memory_space<vmem>>, vector<1x6xf32>
    tpu.vector_store %arg19[%c1_254, %c0_255], %765 {strides = array<i32>} : memref<2x6xf32, #tpu.memory_space<vmem>>, vector<1x6xf32>,
    return
  }
  func.func @transform_0(%arg0: i32) -> (i32, i32) {
    %c0_i32 = arith.constant 0 : i32
    %c0_i32_0 = arith.constant 0 : i32
    %c0_i32_1 = arith.constant 0 : i32
    return %c0_i32, %c0_i32_0 : i32, i32
  }
  func.func @transform_1(%arg0: i32) -> (i32, i32) {
    %c0_i32 = arith.constant 0 : i32
    %c0_i32_0 = arith.constant 0 : i32
    %c0_i32_1 = arith.constant 0 : i32
    return %c0_i32, %c0_i32_0 : i32, i32
  }
  func.func @transform_2(%arg0: i32) -> (i32, i32) {
    %c0_i32 = arith.constant 0 : i32
    %c0_i32_0 = arith.constant 0 : i32
    %c0_i32_1 = arith.constant 0 : i32
    return %c0_i32, %c0_i32_0 : i32, i32
  }
  func.func @transform_3(%arg0: i32) -> (i32, i32) {
    %c0_i32 = arith.constant 0 : i32
    %c0_i32_0 = arith.constant 0 : i32
    %c0_i32_1 = arith.constant 0 : i32
    return %c0_i32, %c0_i32_0 : i32, i32
  }
  func.func @transform_4(%arg0: i32) -> (i32, i32) {
    %c0_i32 = arith.constant 0 : i32
    %c0_i32_0 = arith.constant 0 : i32
    %c0_i32_1 = arith.constant 0 : i32
    return %c0_i32, %c0_i32_0 : i32, i32
  }
  func.func @transform_5(%arg0: i32) -> (i32, i32) {
    %c0_i32 = arith.constant 0 : i32
    %c0_i32_0 = arith.constant 0 : i32
    %c0_i32_1 = arith.constant 0 : i32
    return %c0_i32, %c0_i32_0 : i32, i32
  }
  func.func @transform_6(%arg0: i32) -> (i32, i32) {
    %c0_i32 = arith.constant 0 : i32
    %c0_i32_0 = arith.constant 0 : i32
    %c0_i32_1 = arith.constant 0 : i32
    return %c0_i32, %c0_i32_0 : i32, i32
  }
  func.func @transform_7(%arg0: i32) -> (i32, i32) {
    %c0_i32 = arith.constant 0 : i32
    %c0_i32_0 = arith.constant 0 : i32
    %c0_i32_1 = arith.constant 0 : i32
    return %c0_i32, %c0_i32_0 : i32, i32
  }
  func.func @transform_8(%arg0: i32) -> (i32, i32) {
    %c0_i32 = arith.constant 0 : i32
    %c0_i32_0 = arith.constant 0 : i32
    %c0_i32_1 = arith.constant 0 : i32
    return %c0_i32, %c0_i32_0 : i32, i32
  }
  func.func @transform_9(%arg0: i32) -> (i32, i32) {
    %c0_i32 = arith.constant 0 : i32
    %c0_i32_0 = arith.constant 0 : i32
    %c0_i32_1 = arith.constant 0 : i32
    return %c0_i32, %c0_i32_0 : i32, i32
  }
  func.func @transform_10(%arg0: i32) -> (i32, i32) {
    %c0_i32 = arith.constant 0 : i32
    %c0_i32_0 = arith.constant 0 : i32
    %c0_i32_1 = arith.constant 0 : i32
    return %c0_i32, %c0_i32_0 : i32, i32
  }
  func.func @transform_11(%arg0: i32) -> (i32, i32) {
    %c0_i32 = arith.constant 0 : i32
    %c0_i32_0 = arith.constant 0 : i32
    %c0_i32_1 = arith.constant 0 : i32
    return %c0_i32, %c0_i32_0 : i32, i32
  }
  func.func @transform_12(%arg0: i32) -> (i32, i32) {
    %c0_i32 = arith.constant 0 : i32
    %c0_i32_0 = arith.constant 0 : i32
    %c0_i32_1 = arith.constant 0 : i32
    return %c0_i32, %c0_i32_0 : i32, i32
  }
  func.func @transform_13(%arg0: i32) -> (i32, i32) {
    %c0_i32 = arith.constant 0 : i32
    %c0_i32_0 = arith.constant 0 : i32
    %c0_i32_1 = arith.constant 0 : i32
    return %c0_i32, %c0_i32_0 : i32, i32
  }
  func.func @transform_14(%arg0: i32) -> (i32, i32) {
    %c0_i32 = arith.constant 0 : i32
    %c0_i32_0 = arith.constant 0 : i32
    %c0_i32_1 = arith.constant 0 : i32
    return %c0_i32, %c0_i32_0 : i32, i32
  }
  func.func @transform_15(%arg0: i32) -> (i32, i32) {
    %c0_i32 = arith.constant 0 : i32
    %c0_i32_0 = arith.constant 0 : i32
    %c0_i32_1 = arith.constant 0 : i32
    return %c0_i32, %c0_i32_0 : i32, i32
  }
  func.func @transform_16(%arg0: i32) -> (i32, i32) {
    %c0_i32 = arith.constant 0 : i32
    %c0_i32_0 = arith.constant 0 : i32
    %c0_i32_1 = arith.constant 0 : i32
    return %c0_i32, %c0_i32_0 : i32, i32
  }
  func.func @transform_17(%arg0: i32) -> (i32, i32) {
    %c0_i32 = arith.constant 0 : i32
    %c0_i32_0 = arith.constant 0 : i32
    %c0_i32_1 = arith.constant 0 : i32
    return %c0_i32, %c0_i32_0 : i32, i32
  }
  func.func @transform_18(%arg0: i32) -> (i32, i32) {
    %c0_i32 = arith.constant 0 : i32
    %c0_i32_0 = arith.constant 0 : i32
    %c0_i32_1 = arith.constant 0 : i32
    return %c0_i32, %c0_i32_0 : i32, i32
  }
  func.func @transform_19(%arg0: i32) -> (i32, i32) {
    %c0_i32 = arith.constant 0 : i32
    %c0_i32_0 = arith.constant 0 : i32
    %c0_i32_1 = arith.constant 0 : i32
    return %c0_i32, %c0_i32_0 : i32, i32
  }
  func.func @transform_20(%arg0: i32) -> (i32, i32) {
    %c0_i32 = arith.constant 0 : i32
    %c0_i32_0 = arith.constant 0 : i32
    %c0_i32_1 = arith.constant 0 : i32
    return %c0_i32, %c0_i32_0 : i32, i32
  }
}

</mosaic_0001>

<bundles_post_ra>
// kernel: tpu_custom_call.1
= control target key start
LH: loop header
LB: loop body
LE: loop exit
PB: predicated region body
PF: predicated region fallthrough
CT: control target
= control target key end

     0   :  { %s13647_s0 = inlined_call_operand.vmem [shape: bf16[8,128], index: 0, kind: input, shape index: {}]   ;;  %s13648_s1 = inlined_call_operand.hbm [shape: bf16[128,1280], index: 1, kind: input, shape index: {}]   ;;  %s13649_s2 = inlined_call_operand.vmem [shape: bf16[1280,20], index: 2, kind: input, shape index: {}]   ;;  %s13650_s3 = inlined_call_operand.vmem [shape: f32[1,1280], index: 3, kind: input, shape index: {}]   ;;  %s13651_s4 = inlined_call_operand.vmem [shape: f32[8,8], index: 4, kind: input, shape index: {}]   ;;  %s13652_s5 = inlined_call_operand.vmem [shape: bf16[1280,256], index: 5, kind: input, shape index: {}]   ;;  %s13653_s6 = inlined_call_operand.vmem [shape: bf16[256,2], index: 6, kind: input, shape index: {}]   ;;  %s13654_s7 = inlined_call_operand.vmem [shape: f32[1,256], index: 7, kind: input, shape index: {}]   ;;  %s13655_s8 = inlined_call_operand.vmem [shape: bf16[6,256], index: 8, kind: input, shape index: {}]   ;;  %s13656_s9 = inlined_call_operand.hbm [shape: bf16[256,1280], index: 9, kind: input, shape index: {}]   ;;  %s13657_s10 = inlined_call_operand.vmem [shape: bf16[1280,20], index: 10, kind: input, shape index: {}]   ;;  %s13658_s11 = inlined_call_operand.vmem [shape: f32[1,1280], index: 11, kind: input, shape index: {}]   ;;  %s13659_s12 = inlined_call_operand.vmem [shape: f32[6,6], index: 12, kind: input, shape index: {}]   ;;  %s13660_s13 = inlined_call_operand.hbm [shape: bf16[1280,256], index: 13, kind: input, shape index: {}]   ;;  %s13661_s14 = inlined_call_operand.vmem [shape: bf16[256,2], index: 14, kind: input, shape index: {}]   ;;  %s13662_s15 = inlined_call_operand.vmem [shape: f32[1,256], index: 15, kind: input, shape index: {}]   ;;  %s13663_s16 = inlined_call_operand.vmem [shape: f32[8,2], index: 16, kind: input, shape index: {}]   ;;  %s13664_s17 = inlined_call_operand.vmem [shape: f32[1,256], index: 17, kind: input, shape index: {}]   ;;  %s13665_s18 = inlined_call_operand.hbm [shape: f32[2,6], index: 18, kind: output, shape index: {0}]   ;;  %s13666_s19 = inlined_call_operand.hbm [shape: f32[2,256], index: 19, kind: output, shape index: {1}]   ;;  %s13667_s20 = inlined_call_operand.hbm [shape: f32[6,256], index: 20, kind: output, shape index: {2}]  }
   0x1   :  { %13671 = sst [smem:[#allocation18_spill]] %s13647_s0 }
   0x2   :  { %13672 = sst [smem:[#allocation19_spill]] %s13648_s1 }
   0x3   :  { %13673 = sst [smem:[#allocation20_spill]] %s13649_s2 }
   0x4   :  { %13674 = sst [smem:[#allocation21_spill]] %s13650_s3 }
   0x5   :  { %13675 = sst [smem:[#allocation22_spill]] %s13651_s4 }
   0x6   :  { %26 = vsyncpa [#allocation5], 0 }
   0x7   :  { %27 = vsyncpa [#allocation8], 0 }
   0x8   :  { %28 = vsyncpa [#allocation6], 0 }
   0x9   :  { %29 = vsyncpa [#allocation12], 0  ;;  %s11810_s1 = smov [#allocation7]   ;;  %s11811_s23 = smov [#allocation4]  }
   0xa   :  { %s63_s22 = sshll.u32 %s11810_s1, 4  ;;  %s37_s24 = sshll.u32 %s11811_s23, 4  ;;  %s64_s22 = int_to_ptr.vmem [resolvable:$true] %s63_s22  ;;  %s38_s24 = int_to_ptr.vmem [resolvable:$true] %s37_s24 }
   0xb   :  { %s11690_s17 = scalar_lea.vmem %s64_s22, 20480  ;;  %p11695_p1 = scmp.lt.s32.totalorder %s64_s22, %s64_s22 }
   0xc   :  { %p11691_p0 = scmp.ne.s32.totalorder %s64_s22, %s11690_s17  ;;  %p11696_p2 = scmp.lt.s32.totalorder %s11690_s17, %s11690_s17 }
   0xe   :  { %p11697_p3 = por %p11696_p2, %p11695_p1 }
  0x10   :  { %p11698_p4 = pnand %p11697_p3, %p11691_p0 }
  0x12   :  { %11701 = shalt.err (!%p11698_p4)
}
  0x13   :  { %s11812_s2 = smov 640   ;;  %s11813_s25 = smov 40  }
  0x14   :  { %69 = dma.hbm_to_vmem [thread:$0]  %s13656_s9, 20480, %s64_s22, [#allocation8], %s11812_s2, %s11812_s2, %s11813_s25  }
  0x15   :  { %s11710_s27 = scalar_lea.vmem %s38_s24, 10240  ;;  %p11715_p6 = scmp.lt.s32.totalorder %s38_s24, %s38_s24 }
  0x16   :  { %p11711_p5 = scmp.ne.s32.totalorder %s38_s24, %s11710_s27  ;;  %p11716_p7 = scmp.lt.s32.totalorder %s11710_s27, %s11710_s27 }
  0x18   :  { %p11717_p8 = por %p11716_p7, %p11715_p6 }
  0x1a   :  { %p11718_p9 = pnand %p11717_p8, %p11711_p5 }
  0x1c   :  { %11721 = shalt.err (!%p11718_p9)
}
  0x1d   :  { %s13676_s29 = sld [smem:[#allocation19_spill]]  ;;  %s11814_s30 = smov [#allocation9]  }
  0x1e   :  { %s81_s0 = sshll.u32 %s11814_s30, 4  ;;  %s82_s0 = int_to_ptr.vmem [resolvable:$true] %s81_s0 }
  0x1f   :  { %s11730_s21 = scalar_lea.vmem %s82_s0, 20480  ;;  %p11735_p11 = scmp.lt.s32.totalorder %s82_s0, %s82_s0 }
  0x20   :  { %p11731_p10 = scmp.ne.s32.totalorder %s82_s0, %s11730_s21  ;;  %p11736_p12 = scmp.lt.s32.totalorder %s11730_s21, %s11730_s21 }
  0x22   :  { %p11737_p13 = por %p11736_p12, %p11735_p11 }
  0x23   :  { %43 = dma.hbm_to_vmem [thread:$0]  %s13676_s29, 10240, %s38_s24, [#allocation5], %s11812_s2, %s11812_s2, %s11813_s25  }
  0x24   :  { %p11738_p0 = pnand %p11737_p13, %p11731_p10 }
  0x26   :  { %11741 = shalt.err (!%p11738_p0)
}
  0x27   :  { %s11815_s9 = smov 128   ;;  %s11816_s1 = smov 8  }
  0x28   :  { %87 = dma.hbm_to_vmem [thread:$0]  %s13660_s13, 20480, %s82_s0, [#allocation8], %s11815_s9, %s11815_s9, %s11816_s1  }
  0x29   :  { %11802 = dma.done.wait [#allocation5], 10240  }
  0x2a   :  { %11803 = vsyncadd [#allocation5], 4294957056 }
  0x2b   :  { %11804 = dma.done.wait [#allocation8], 40960  }
  0x2c   :  { %11805 = vsyncadd [#allocation8], 4294926336  ;;  %v10548_v0 = vld [vmem:[#allocation7 + $0x234] ss:$40 sps:$4 sm:$0xff]   ;;  %v10552_v2 = vld [vmem:[#allocation7 + $0x230] ss:$40 sps:$4 sm:$0xff]  }
  0x2d   :  { %v10550_v1 = vld [vmem:[#allocation7 + $0x23c] ss:$40 sps:$4 sm:$0xff]   ;;  %1075 = vmatprep.subr.bf16.mxu0 %v10548_v0  ;;  %v10553_v3 = vld [vmem:[#allocation7 + $0x238] ss:$40 sps:$4 sm:$0xff]   ;;  %v10556_v5 = vld [vmem:[#allocation7 + $0x1ec] ss:$40 sps:$4 sm:$0xff]  }
  0x2e   :  { %1116 = vmatprep.subr.bf16.mxu1 %v10550_v1  ;;  %v10554_v4 = vld [vmem:[#allocation7 + $0x1e4] ss:$40 sps:$4 sm:$0xff]   ;;  %1076 = vmatpush1.bf16.msra.mxu0 %v10552_v2  ;;  %v10558_v6 = vld [vmem:[#allocation7 + $0x1e0] ss:$40 sps:$4 sm:$0xff]   ;;  %v10560_v8 = vld [vmem:[#allocation7 + $0x194] ss:$40 sps:$4 sm:$0xff]  }
  0x2f   :  { %1117 = vmatpush1.bf16.msra.mxu1 %v10553_v3  ;;  %1077 = vmatprep.subr.bf16.mxu0 %v10554_v4  ;;  %v10559_v7 = vld [vmem:[#allocation7 + $0x1e8] ss:$40 sps:$4 sm:$0xff]   ;;  %v10562_v9 = vld [vmem:[#allocation7 + $0x19c] ss:$40 sps:$4 sm:$0xff]   ;;  %v10565_v11 = vld [vmem:[#allocation7 + $0x198] ss:$40 sps:$4 sm:$0xff]  }
  0x30   :  { %1118 = vmatprep.subr.bf16.mxu1 %v10556_v5  ;;  %v10564_v10 = vld [vmem:[#allocation7 + $0x190] ss:$40 sps:$4 sm:$0xff]   ;;  %v10566_v12 = vld [vmem:[#allocation7 + $0x144] ss:$40 sps:$4 sm:$0xff]   ;;  %v10570_v14 = vld [vmem:[#allocation7 + $0x140] ss:$40 sps:$4 sm:$0xff]  }
  0x31   :  { %v10568_v13 = vld [vmem:[#allocation7 + $0x14c] ss:$40 sps:$4 sm:$0xff]   ;;  %v10571_v15 = vld [vmem:[#allocation7 + $0x148] ss:$40 sps:$4 sm:$0xff]   ;;  %v10574_v17 = vld [vmem:[#allocation7 + $0xfc] ss:$40 sps:$4 sm:$0xff]  }
  0x32   :  { %1078 = vmatpush1.bf16.msra.mxu0 %v10558_v6  ;;  %v10572_v16 = vld [vmem:[#allocation7 + $0xf4] ss:$40 sps:$4 sm:$0xff]   ;;  %v10576_v18 = vld [vmem:[#allocation7 + $0xf0] ss:$40 sps:$4 sm:$0xff]   ;;  %v10578_v20 = vld [vmem:[#allocation7 + $0xa4] ss:$40 sps:$4 sm:$0xff]  }
  0x33   :  { %1119 = vmatpush1.bf16.msra.mxu1 %v10559_v7  ;;  %1079 = vmatprep.subr.bf16.mxu0 %v10560_v8  ;;  %v10577_v19 = vld [vmem:[#allocation7 + $0xf8] ss:$40 sps:$4 sm:$0xff]   ;;  %v10580_v21 = vld [vmem:[#allocation7 + $0xac] ss:$40 sps:$4 sm:$0xff]   ;;  %v10583_v23 = vld [vmem:[#allocation7 + $0xa8] ss:$40 sps:$4 sm:$0xff]  }
  0x34   :  { %1120 = vmatprep.subr.bf16.mxu1 %v10562_v9  ;;  %v10582_v22 = vld [vmem:[#allocation7 + $0xa0] ss:$40 sps:$4 sm:$0xff]   ;;  %v10584_v24 = vld [vmem:[#allocation7 + $0x54] ss:$40 sps:$4 sm:$0xff]   ;;  %v10588_v26 = vld [vmem:[#allocation7 + $0x50] ss:$40 sps:$4 sm:$0xff]  }
  0x35   :  { %v10586_v25 = vld [vmem:[#allocation7 + $0x5c] ss:$40 sps:$4 sm:$0xff]   ;;  %v10589_v27 = vld [vmem:[#allocation7 + $0x58] ss:$40 sps:$4 sm:$0xff]   ;;  %v10592_v29 = vld [vmem:[#allocation7 + $0xc] ss:$40 sps:$4 sm:$0xff]  }
  0x36   :  { %1080 = vmatpush1.bf16.msra.mxu0 %v10564_v10  ;;  %v10590_v28 = vld [vmem:[#allocation7 + $0x4] ss:$40 sps:$4 sm:$0xff]   ;;  %v10594_v30 = vld [vmem:[#allocation7] ss:$40 sps:$4 sm:$0xff]   ;;  %v10596_v32 = vld [vmem:[#allocation7 + $0x4b4] ss:$40 sps:$4 sm:$0xff]  }
  0x37   :  { %1121 = vmatpush1.bf16.msra.mxu1 %v10565_v11  ;;  %1081 = vmatprep.subr.bf16.mxu0 %v10566_v12  ;;  %v10595_v31 = vld [vmem:[#allocation7 + $0x8] ss:$40 sps:$4 sm:$0xff]   ;;  %v10598_v33 = vld [vmem:[#allocation7 + $0x4bc] ss:$40 sps:$4 sm:$0xff]   ;;  %v10601_v35 = vld [vmem:[#allocation7 + $0x4b8] ss:$40 sps:$4 sm:$0xff]  }
  0x38   :  { %1122 = vmatprep.subr.bf16.mxu1 %v10568_v13  ;;  %v10600_v34 = vld [vmem:[#allocation7 + $0x4b0] ss:$40 sps:$4 sm:$0xff]   ;;  %v10602_v36 = vld [vmem:[#allocation7 + $0x464] ss:$40 sps:$4 sm:$0xff]   ;;  %v10606_v38 = vld [vmem:[#allocation7 + $0x460] ss:$40 sps:$4 sm:$0xff]  }
  0x39   :  { %v10604_v37 = vld [vmem:[#allocation7 + $0x46c] ss:$40 sps:$4 sm:$0xff]   ;;  %v10607_v39 = vld [vmem:[#allocation7 + $0x468] ss:$40 sps:$4 sm:$0xff]   ;;  %v10610_v41 = vld [vmem:[#allocation7 + $0x41c] ss:$40 sps:$4 sm:$0xff]  }
  0x3a   :  { %1082 = vmatpush1.bf16.msra.mxu0 %v10570_v14  ;;  %v10608_v40 = vld [vmem:[#allocation7 + $0x414] ss:$40 sps:$4 sm:$0xff]   ;;  %v10612_v42 = vld [vmem:[#allocation7 + $0x410] ss:$40 sps:$4 sm:$0xff]   ;;  %v10614_v44 = vld [vmem:[#allocation7 + $0x3c4] ss:$40 sps:$4 sm:$0xff]  }
  0x3b   :  { %1123 = vmatpush1.bf16.msra.mxu1 %v10571_v15  ;;  %1083 = vmatprep.subr.bf16.mxu0 %v10572_v16  ;;  %v10613_v43 = vld [vmem:[#allocation7 + $0x418] ss:$40 sps:$4 sm:$0xff]   ;;  %v10616_v45 = vld [vmem:[#allocation7 + $0x3cc] ss:$40 sps:$4 sm:$0xff]   ;;  %v10619_v49 = vld [vmem:[#allocation7 + $0x3c8] ss:$40 sps:$4 sm:$0xff]  }
  0x3c   :  { %1124 = vmatprep.subr.bf16.mxu1 %v10574_v17  ;;  %v107_v46 = vld [vmem:[%s13655_s8] sm:$0x77]  ;;  %v10618_v47 = vld [vmem:[#allocation7 + $0x3c0] ss:$40 sps:$4 sm:$0xff]   ;;  %v10626_v54 = vld [vmem:[#allocation7 + $0x324] ss:$40 sps:$4 sm:$0xff]  }
  0x3d   :  { %v11961_v48 = vcombine.high %v107_v46, %v107_v46  ;;  %v10620_v50 = vld [vmem:[#allocation7 + $0x374] ss:$40 sps:$4 sm:$0xff]   ;;  %v10624_v52 = vld [vmem:[#allocation7 + $0x370] ss:$40 sps:$4 sm:$0xff]   ;;  %v10630_v56 = vld [vmem:[#allocation7 + $0x320] ss:$40 sps:$4 sm:$0xff]   ;;  %v11965_v4 = vcombine.low %v107_v46, %v107_v46 }
  0x3e   :  { %1084 = vmatpush1.bf16.msra.mxu0 %v10576_v18  ;;  %v10622_v51 = vld [vmem:[#allocation7 + $0x37c] ss:$40 sps:$4 sm:$0xff]   ;;  %v10625_v53 = vld [vmem:[#allocation7 + $0x378] ss:$40 sps:$4 sm:$0xff]   ;;  %v10628_v55 = vld [vmem:[#allocation7 + $0x32c] ss:$40 sps:$4 sm:$0xff]  }
  0x3f   :  { %1125 = vmatpush1.bf16.msra.mxu1 %v10577_v19  ;;  %1085 = vmatprep.subr.bf16.mxu0 %v10578_v20  ;;  %v10631_v57 = vld [vmem:[#allocation7 + $0x328] ss:$40 sps:$4 sm:$0xff]   ;;  %v10632_v58 = vld [vmem:[#allocation7 + $0x2d4] ss:$40 sps:$4 sm:$0xff]   ;;  %v10637_v61 = vld [vmem:[#allocation7 + $0x2d8] ss:$40 sps:$4 sm:$0xff]  }
  0x40   :  { %1126 = vmatprep.subr.bf16.mxu1 %v10580_v21  ;;  %1107 = vmatprep.mubr.bf16.mxu0 %v11961_v48  ;;  %v10634_v59 = vld [vmem:[#allocation7 + $0x2dc] ss:$40 sps:$4 sm:$0xff]   ;;  %v10636_v60 = vld [vmem:[#allocation7 + $0x2d0] ss:$40 sps:$4 sm:$0xff]   ;;  %v10640_v63 = vld [vmem:[#allocation7 + $0x28c] ss:$40 sps:$4 sm:$0xff]  }
  0x41   :  { %1148 = vmatprep.mubr.bf16.mxu1 %v11961_v48  ;;  %v10638_v62 = vld [vmem:[#allocation7 + $0x284] ss:$40 sps:$4 sm:$0xff]   ;;  %v10642_v0 = vld [vmem:[#allocation7 + $0x280] ss:$40 sps:$4 sm:$0xff]   ;;  %v10654_v7 = vld [vmem:[#allocation7 + $0x1f4] ss:$40 sps:$4 sm:$0xff]  }
  0x42   :  { %1086 = vmatpush1.bf16.msra.mxu0 %v10582_v22  ;;  %v10643_v1 = vld [vmem:[#allocation7 + $0x288] ss:$40 sps:$4 sm:$0xff]   ;;  %v10648_v2 = vld [vmem:[#allocation7 + $0x244] ss:$40 sps:$4 sm:$0xff]   ;;  %v10655_v10 = vld [vmem:[#allocation7 + $0x1f8] ss:$40 sps:$4 sm:$0xff]  }
  0x43   :  { %1127 = vmatpush1.bf16.msra.mxu1 %v10583_v23  ;;  %1087 = vmatprep.subr.bf16.mxu0 %v10584_v24  ;;  %v10651_v3 = vld [vmem:[#allocation7 + $0x24c] ss:$40 sps:$4 sm:$0xff]   ;;  %v10646_v5 = vld [vmem:[#allocation7 + $0x240] ss:$40 sps:$4 sm:$0xff]   ;;  %v10657_v8 = vld [vmem:[#allocation7 + $0x1fc] ss:$40 sps:$4 sm:$0xff]  }
  0x44   :  { %1128 = vmatprep.subr.bf16.mxu1 %v10586_v25  ;;  %v10649_v6 = vld [vmem:[#allocation7 + $0x248] ss:$40 sps:$4 sm:$0xff]   ;;  %v10660_v11 = vld [vmem:[#allocation7 + $0x1a4] ss:$40 sps:$4 sm:$0xff]   ;;  %v10666_v15 = vld [vmem:[#allocation7 + $0x154] ss:$40 sps:$4 sm:$0xff]  }
  0x45   :  { %v10652_v9 = vld [vmem:[#allocation7 + $0x1f0] ss:$40 sps:$4 sm:$0xff]   ;;  %v10663_v12 = vld [vmem:[#allocation7 + $0x1ac] ss:$40 sps:$4 sm:$0xff]   ;;  %v10658_v13 = vld [vmem:[#allocation7 + $0x1a0] ss:$40 sps:$4 sm:$0xff]  }
  0x46   :  { %1088 = vmatpush1.bf16.msra.mxu0 %v10588_v26  ;;  %v10661_v14 = vld [vmem:[#allocation7 + $0x1a8] ss:$40 sps:$4 sm:$0xff]   ;;  %v10669_v16 = vld [vmem:[#allocation7 + $0x15c] ss:$40 sps:$4 sm:$0xff]   ;;  %v10667_v18 = vld [vmem:[#allocation7 + $0x158] ss:$40 sps:$4 sm:$0xff]  }
  0x47   :  { %1129 = vmatpush1.bf16.msra.mxu1 %v10589_v27  ;;  %1089 = vmatprep.subr.bf16.mxu0 %v10590_v28  ;;  %v10664_v17 = vld [vmem:[#allocation7 + $0x150] ss:$40 sps:$4 sm:$0xff]   ;;  %v10672_v19 = vld [vmem:[#allocation7 + $0x104] ss:$40 sps:$4 sm:$0xff]   ;;  %v10670_v21 = vld [vmem:[#allocation7 + $0x100] ss:$40 sps:$4 sm:$0xff]  }
  0x48   :  { %1130 = vmatprep.subr.bf16.mxu1 %v10592_v29  ;;  %v10675_v20 = vld [vmem:[#allocation7 + $0x10c] ss:$40 sps:$4 sm:$0xff]   ;;  %v10673_v22 = vld [vmem:[#allocation7 + $0x108] ss:$40 sps:$4 sm:$0xff]   ;;  %v10681_v24 = vld [vmem:[#allocation7 + $0xbc] ss:$40 sps:$4 sm:$0xff]  }
  0x49   :  { %v10678_v23 = vld [vmem:[#allocation7 + $0xb4] ss:$40 sps:$4 sm:$0xff]   ;;  %v10676_v25 = vld [vmem:[#allocation7 + $0xb0] ss:$40 sps:$4 sm:$0xff]   ;;  %v10684_v27 = vld [vmem:[#allocation7 + $0x64] ss:$40 sps:$4 sm:$0xff]  }
  0x4a   :  { %1090 = vmatpush1.bf16.msra.mxu0 %v10594_v30  ;;  %v10679_v26 = vld [vmem:[#allocation7 + $0xb8] ss:$40 sps:$4 sm:$0xff]   ;;  %v10687_v28 = vld [vmem:[#allocation7 + $0x6c] ss:$40 sps:$4 sm:$0xff]   ;;  %v10685_v30 = vld [vmem:[#allocation7 + $0x68] ss:$40 sps:$4 sm:$0xff]  }
  0x4b   :  { %1131 = vmatpush1.bf16.msra.mxu1 %v10595_v31  ;;  %1091 = vmatprep.subr.bf16.mxu0 %v10596_v32  ;;  %v10682_v29 = vld [vmem:[#allocation7 + $0x60] ss:$40 sps:$4 sm:$0xff]   ;;  %v10690_v31 = vld [vmem:[#allocation7 + $0x14] ss:$40 sps:$4 sm:$0xff]   ;;  %vm2203_vm0 = vcmask 1042432   ;;  %s11822_s4 = smov 117  }
  0x4c   :  { %1132 = vmatprep.subr.bf16.mxu1 %v10598_v33  ;;  %v10693_v32 = vld [vmem:[#allocation7 + $0x1c] ss:$40 sps:$4 sm:$0xff]   ;;  %v10688_v33 = vld [vmem:[#allocation7 + $0x10] ss:$40 sps:$4 sm:$0xff]   ;;  %s11823_s29 = smov 116   ;;  %s11824_s30 = smov 113  }
  0x4d   :  { %v10709_v46 = vld [vmem:[#allocation7 + $0x428] ss:$40 sps:$4 sm:$0xff]   ;;  %s11826_s0 = smov 115   ;;  %s11827_s21 = smov 114   ;;  %vm2179_vm2 = vcmask 46080   ;;  %vm11838_vm9 = vmmov 0  }
  0x4e   :  { %1092 = vmatpush2.bf16.msra.mxu0 %v10600_v34  ;;  %v10691_v34 = vld [vmem:[#allocation7 + $0x18] ss:$40 sps:$4 sm:$0xff]   ;;  %s11829_s9 = smov 112   ;;  %s11831_s1 = smov 110   ;;  %vm2199_vm13 = vcmask 48128   ;;  %vm6405_vm15 = vcmask 1043456  }
  0x4f   :  { %1133 = vmatpush2.bf16.msra.mxu1 %v10601_v35  ;;  %1093 = vmatprep.subr.bf16.mxu0 %v10602_v36  ;;  %v10696_v35 = vld [vmem:[#allocation7 + $0x4c4] ss:$40 sps:$4 sm:$0xff]   ;;  %s11833_s22 = smov 111   ;;  %s11835_s23 = smov 109  }
  0x50   :  { %1134 = vmatprep.subr.bf16.mxu1 %v10604_v37  ;;  %v10699_v36 = vld [vmem:[#allocation7 + $0x4cc] ss:$40 sps:$4 sm:$0xff]   ;;  %v10694_v37 = vld [vmem:[#allocation7 + $0x4c0] ss:$40 sps:$4 sm:$0xff]   ;;  %s13678_s3 = sld [smem:[#allocation20_spill]] }
  0x52   :  { %1094 = vmatpush2.bf16.msra.mxu0 %v10606_v38  ;;  %v10697_v38 = vld [vmem:[#allocation7 + $0x4c8] ss:$40 sps:$4 sm:$0xff]  }
  0x53   :  { %1135 = vmatpush2.bf16.msra.mxu1 %v10607_v39  ;;  %1095 = vmatprep.subr.bf16.mxu0 %v10608_v40  ;;  %v10702_v39 = vld [vmem:[#allocation7 + $0x474] ss:$40 sps:$4 sm:$0xff]  }
  0x54   :  { %1136 = vmatprep.subr.bf16.mxu1 %v10610_v41  ;;  %v10705_v40 = vld [vmem:[#allocation7 + $0x47c] ss:$40 sps:$4 sm:$0xff]   ;;  %v10700_v41 = vld [vmem:[#allocation7 + $0x470] ss:$40 sps:$4 sm:$0xff]  }
  0x56   :  { %1096 = vmatpush2.bf16.msra.mxu0 %v10612_v42  ;;  %v10703_v42 = vld [vmem:[#allocation7 + $0x478] ss:$40 sps:$4 sm:$0xff]  }
  0x57   :  { %1137 = vmatpush2.bf16.msra.mxu1 %v10613_v43  ;;  %1097 = vmatprep.subr.bf16.mxu0 %v10614_v44  ;;  %v10708_v43 = vld [vmem:[#allocation7 + $0x424] ss:$40 sps:$4 sm:$0xff]  }
  0x58   :  { %1138 = vmatprep.subr.bf16.mxu1 %v10616_v45  ;;  %v10711_v44 = vld [vmem:[#allocation7 + $0x42c] ss:$40 sps:$4 sm:$0xff]   ;;  %v10706_v45 = vld [vmem:[#allocation7 + $0x420] ss:$40 sps:$4 sm:$0xff]  }
  0x5a   :  { %1098 = vmatpush2.bf16.msra.mxu0 %v10618_v47  ;;  %v10714_v47 = vld [vmem:[#allocation7 + $0x3d4] ss:$40 sps:$4 sm:$0xff]  }
  0x5b   :  { %1139 = vmatpush2.bf16.msra.mxu1 %v10619_v49  ;;  %1099 = vmatprep.subr.bf16.mxu0 %v10620_v50  ;;  %v10717_v49 = vld [vmem:[#allocation7 + $0x3dc] ss:$40 sps:$4 sm:$0xff]   ;;  %v10712_v50 = vld [vmem:[#allocation7 + $0x3d0] ss:$40 sps:$4 sm:$0xff]  }
  0x5c   :  { %1140 = vmatprep.subr.bf16.mxu1 %v10622_v51  ;;  %v10715_v51 = vld [vmem:[#allocation7 + $0x3d8] ss:$40 sps:$4 sm:$0xff]  }
  0x5e   :  { %1100 = vmatpush2.bf16.msra.mxu0 %v10624_v52  ;;  %v10720_v52 = vld [vmem:[#allocation7 + $0x384] ss:$40 sps:$4 sm:$0xff]  }
  0x5f   :  { %1141 = vmatpush2.bf16.msra.mxu1 %v10625_v53  ;;  %1101 = vmatprep.subr.bf16.mxu0 %v10626_v54  ;;  %v10723_v53 = vld [vmem:[#allocation7 + $0x38c] ss:$40 sps:$4 sm:$0xff]   ;;  %v10718_v54 = vld [vmem:[#allocation7 + $0x380] ss:$40 sps:$4 sm:$0xff]  }
  0x60   :  { %1142 = vmatprep.subr.bf16.mxu1 %v10628_v55  ;;  %v10721_v55 = vld [vmem:[#allocation7 + $0x388] ss:$40 sps:$4 sm:$0xff]  }
  0x62   :  { %1102 = vmatpush2.bf16.msra.mxu0 %v10630_v56  ;;  %v10726_v56 = vld [vmem:[#allocation7 + $0x334] ss:$40 sps:$4 sm:$0xff]  }
  0x63   :  { %1143 = vmatpush2.bf16.msra.mxu1 %v10631_v57  ;;  %1103 = vmatprep.subr.bf16.mxu0 %v10632_v58  ;;  %v10729_v57 = vld [vmem:[#allocation7 + $0x33c] ss:$40 sps:$4 sm:$0xff]   ;;  %v10724_v58 = vld [vmem:[#allocation7 + $0x330] ss:$40 sps:$4 sm:$0xff]  }
  0x64   :  { %1144 = vmatprep.subr.bf16.mxu1 %v10634_v59  ;;  %v10727_v59 = vld [vmem:[#allocation7 + $0x338] ss:$40 sps:$4 sm:$0xff]  }
  0x66   :  { %1104 = vmatpush2.bf16.msra.mxu0 %v10636_v60  ;;  %v10732_v60 = vld [vmem:[#allocation7 + $0x2e4] ss:$40 sps:$4 sm:$0xff]  }
  0x67   :  { %1145 = vmatpush2.bf16.msra.mxu1 %v10637_v61  ;;  %1105 = vmatprep.subr.bf16.mxu0 %v10638_v62  ;;  %v10735_v61 = vld [vmem:[#allocation7 + $0x2ec] ss:$40 sps:$4 sm:$0xff]   ;;  %v10730_v62 = vld [vmem:[#allocation7 + $0x2e0] ss:$40 sps:$4 sm:$0xff]  }
  0x68   :  { %1146 = vmatprep.subr.bf16.mxu1 %v10640_v63  ;;  %v10733_v63 = vld [vmem:[#allocation7 + $0x2e8] ss:$40 sps:$4 sm:$0xff]  }
  0x6a   :  { %1106 = vmatpush2.bf16.msra.mxu0 %v10642_v0  ;;  %v10738_v0 = vld [vmem:[#allocation7 + $0x294] ss:$40 sps:$4 sm:$0xff]  }
  0x6b   :  { %1147 = vmatpush2.bf16.msra.mxu1 %v10643_v1  ;;  %1157 = vmatprep.subr.bf16.mxu0 %v10648_v2  ;;  %v10741_v1 = vld [vmem:[#allocation7 + $0x29c] ss:$40 sps:$4 sm:$0xff]   ;;  %v10736_v2 = vld [vmem:[#allocation7 + $0x290] ss:$40 sps:$4 sm:$0xff]  }
  0x6c   :  { %1198 = vmatprep.subr.bf16.mxu1 %v10651_v3  ;;  %v10739_v3 = vld [vmem:[#allocation7 + $0x298] ss:$40 sps:$4 sm:$0xff]  }
  0x6d   :  { %1108 = vmatmul.mubr.bf16.vlgmr.msra.gmra.mxu0 %v11965_v4 }
  0x6e   :  { %1149 = vmatmul.mubr.bf16.vlgmr.msra.gmra.mxu1 %v11965_v4  ;;  %1158 = vmatpush1.bf16.msra.mxu0 %v10646_v5  ;;  %v10744_v5 = vld [vmem:[#allocation7 + $0x254] ss:$40 sps:$4 sm:$0xff]  }
  0x6f   :  { %1199 = vmatpush1.bf16.msra.mxu1 %v10649_v6  ;;  %1159 = vmatprep.subr.bf16.mxu0 %v10654_v7  ;;  %v10790_v6 = vld [vmem:[%s13657_s10 + $0x78] sm:$0xff]  }
  0x70   :  { %1200 = vmatprep.subr.bf16.mxu1 %v10657_v8  ;;  %1189 = vmatprep.mubr.bf16.mxu0 %v11961_v48  ;;  %v10742_v7 = vld [vmem:[#allocation7 + $0x250] ss:$40 sps:$4 sm:$0xff]   ;;  %v10747_v8 = vld [vmem:[#allocation7 + $0x204] ss:$40 sps:$4 sm:$0xff]  }
  0x71   :  { %1230 = vmatprep.mubr.bf16.mxu1 %v11961_v48 }
  0x72   :  { %1160 = vmatpush1.bf16.msra.mxu0 %v10652_v9  ;;  %v10791_v9 = vld [vmem:[%s13657_s10 + $0x38] sm:$0xff]  }
  0x73   :  { %1201 = vmatpush1.bf16.msra.mxu1 %v10655_v10  ;;  %1161 = vmatprep.subr.bf16.mxu0 %v10660_v11  ;;  %v10745_v10 = vld [vmem:[#allocation7 + $0x200] ss:$40 sps:$4 sm:$0xff]  }
  0x74   :  { %1202 = vmatprep.subr.bf16.mxu1 %v10663_v12  ;;  %v10792_v11 = vld [vmem:[%s13657_s10 + $0x70] sm:$0xff]   ;;  %v10750_v12 = vld [vmem:[#allocation7 + $0x1b4] ss:$40 sps:$4 sm:$0xff]  }
  0x76   :  { %1162 = vmatpush1.bf16.msra.mxu0 %v10658_v13  ;;  %v10793_v13 = vld [vmem:[%s13657_s10 + $0x30] sm:$0xff]  }
  0x77   :  { %1203 = vmatpush1.bf16.msra.mxu1 %v10661_v14  ;;  %1163 = vmatprep.subr.bf16.mxu0 %v10666_v15  ;;  %v10748_v14 = vld [vmem:[#allocation7 + $0x1b0] ss:$40 sps:$4 sm:$0xff]   ;;  %v10794_v15 = vld [vmem:[%s13657_s10 + $0x68] sm:$0xff]  }
  0x78   :  { %1204 = vmatprep.subr.bf16.mxu1 %v10669_v16  ;;  %v10753_v16 = vld [vmem:[#allocation7 + $0x164] ss:$40 sps:$4 sm:$0xff]  }
  0x7a   :  { %1164 = vmatpush1.bf16.msra.mxu0 %v10664_v17  ;;  %v10795_v17 = vld [vmem:[%s13657_s10 + $0x28] sm:$0xff]  }
  0x7b   :  { %1205 = vmatpush1.bf16.msra.mxu1 %v10667_v18  ;;  %1165 = vmatprep.subr.bf16.mxu0 %v10672_v19  ;;  %v10751_v18 = vld [vmem:[#allocation7 + $0x160] ss:$40 sps:$4 sm:$0xff]   ;;  %v10756_v19 = vld [vmem:[#allocation7 + $0x114] ss:$40 sps:$4 sm:$0xff]  }
  0x7c   :  { %1206 = vmatprep.subr.bf16.mxu1 %v10675_v20  ;;  %v10797_v20 = vld [vmem:[%s13657_s10 + $0x20] sm:$0xff]  }
  0x7e   :  { %1166 = vmatpush1.bf16.msra.mxu0 %v10670_v21  ;;  %v10754_v21 = vld [vmem:[#allocation7 + $0x110] ss:$40 sps:$4 sm:$0xff]  }
  0x7f   :  { %1207 = vmatpush1.bf16.msra.mxu1 %v10673_v22  ;;  %1167 = vmatprep.subr.bf16.mxu0 %v10678_v23  ;;  %v10798_v22 = vld [vmem:[%s13657_s10 + $0x58] sm:$0xff]   ;;  %v10759_v23 = vld [vmem:[#allocation7 + $0xc4] ss:$40 sps:$4 sm:$0xff]  }
  0x80   :  { %1208 = vmatprep.subr.bf16.mxu1 %v10681_v24  ;;  %v10799_v24 = vld [vmem:[%s13657_s10 + $0x18] sm:$0xff]  }
  0x82   :  { %1168 = vmatpush1.bf16.msra.mxu0 %v10676_v25  ;;  %v10757_v25 = vld [vmem:[#allocation7 + $0xc0] ss:$40 sps:$4 sm:$0xff]  }
  0x83   :  { %1209 = vmatpush1.bf16.msra.mxu1 %v10679_v26  ;;  %1169 = vmatprep.subr.bf16.mxu0 %v10684_v27  ;;  %v10800_v26 = vld [vmem:[%s13657_s10 + $0x50] sm:$0xff]   ;;  %v10762_v27 = vld [vmem:[#allocation7 + $0x74] ss:$40 sps:$4 sm:$0xff]  }
  0x84   :  { %1210 = vmatprep.subr.bf16.mxu1 %v10687_v28  ;;  %v10801_v28 = vld [vmem:[%s13657_s10 + $0x10] sm:$0xff]  }
  0x86   :  { %1170 = vmatpush1.bf16.msra.mxu0 %v10682_v29  ;;  %v10760_v29 = vld [vmem:[#allocation7 + $0x70] ss:$40 sps:$4 sm:$0xff]  }
  0x87   :  { %1211 = vmatpush1.bf16.msra.mxu1 %v10685_v30  ;;  %1171 = vmatprep.subr.bf16.mxu0 %v10690_v31  ;;  %v10802_v30 = vld [vmem:[%s13657_s10 + $0x48] sm:$0xff]  }
  0x88   :  { %1212 = vmatprep.subr.bf16.mxu1 %v10693_v32  ;;  %v10765_v31 = vld [vmem:[#allocation7 + $0x24] ss:$40 sps:$4 sm:$0xff]  }
  0x89   :  { %v10803_v32 = vld [vmem:[%s13657_s10 + $0x8] sm:$0xff]  }
  0x8a   :  { %1172 = vmatpush1.bf16.msra.mxu0 %v10688_v33  ;;  %v10763_v33 = vld [vmem:[#allocation7 + $0x20] ss:$40 sps:$4 sm:$0xff]  }
  0x8b   :  { %1213 = vmatpush1.bf16.msra.mxu1 %v10691_v34  ;;  %1173 = vmatprep.subr.bf16.mxu0 %v10696_v35  ;;  %v10804_v34 = vld [vmem:[%s13657_s10 + $0x40] sm:$0xff]  }
  0x8c   :  { %1214 = vmatprep.subr.bf16.mxu1 %v10699_v36  ;;  %v10768_v35 = vld [vmem:[#allocation7 + $0x4d4] ss:$40 sps:$4 sm:$0xff]  }
  0x8d   :  { %v10805_v36 = vld [vmem:[%s13657_s10] sm:$0xff]  }
  0x8e   :  { %1174 = vmatpush2.bf16.msra.mxu0 %v10694_v37  ;;  %v10766_v37 = vld [vmem:[#allocation7 + $0x4d0] ss:$40 sps:$4 sm:$0xff]  }
  0x8f   :  { %1215 = vmatpush2.bf16.msra.mxu1 %v10697_v38  ;;  %1175 = vmatprep.subr.bf16.mxu0 %v10702_v39  ;;  %v10806_v38 = vld [vmem:[%s13657_s10 + $0xf8] sm:$0xff]   ;;  %v10771_v39 = vld [vmem:[#allocation7 + $0x484] ss:$40 sps:$4 sm:$0xff]  }
  0x90   :  { %1216 = vmatprep.subr.bf16.mxu1 %v10705_v40  ;;  %v10769_v40 = vld [vmem:[#allocation7 + $0x480] ss:$40 sps:$4 sm:$0xff]  }
  0x92   :  { %1176 = vmatpush2.bf16.msra.mxu0 %v10700_v41  ;;  %v10774_v41 = vld [vmem:[#allocation7 + $0x434] ss:$40 sps:$4 sm:$0xff]  }
  0x93   :  { %1217 = vmatpush2.bf16.msra.mxu1 %v10703_v42  ;;  %1177 = vmatprep.subr.bf16.mxu0 %v10708_v43  ;;  %v10772_v42 = vld [vmem:[#allocation7 + $0x430] ss:$40 sps:$4 sm:$0xff]   ;;  %v10777_v43 = vld [vmem:[#allocation7 + $0x3e4] ss:$40 sps:$4 sm:$0xff]  }
  0x94   :  { %1218 = vmatprep.subr.bf16.mxu1 %v10711_v44  ;;  %v10775_v44 = vld [vmem:[#allocation7 + $0x3e0] ss:$40 sps:$4 sm:$0xff]  }
  0x96   :  { %1178 = vmatpush2.bf16.msra.mxu0 %v10706_v45  ;;  %v10780_v45 = vld [vmem:[#allocation7 + $0x394] ss:$40 sps:$4 sm:$0xff]  }
  0x97   :  { %1219 = vmatpush2.bf16.msra.mxu1 %v10709_v46  ;;  %1179 = vmatprep.subr.bf16.mxu0 %v10714_v47  ;;  %v10778_v46 = vld [vmem:[#allocation7 + $0x390] ss:$40 sps:$4 sm:$0xff]   ;;  %v10783_v47 = vld [vmem:[#allocation7 + $0x344] ss:$40 sps:$4 sm:$0xff]  }
  0x98   :  { %1220 = vmatprep.subr.bf16.mxu1 %v10717_v49  ;;  %v10781_v49 = vld [vmem:[#allocation7 + $0x340] ss:$40 sps:$4 sm:$0xff]  }
  0x9a   :  { %1180 = vmatpush2.bf16.msra.mxu0 %v10712_v50  ;;  %v10786_v50 = vld [vmem:[#allocation7 + $0x2f4] ss:$40 sps:$4 sm:$0xff]  }
  0x9b   :  { %1221 = vmatpush2.bf16.msra.mxu1 %v10715_v51  ;;  %1181 = vmatprep.subr.bf16.mxu0 %v10720_v52  ;;  %v10784_v51 = vld [vmem:[#allocation7 + $0x2f0] ss:$40 sps:$4 sm:$0xff]   ;;  %v10789_v52 = vld [vmem:[#allocation7 + $0x2a4] ss:$40 sps:$4 sm:$0xff]  }
  0x9c   :  { %1222 = vmatprep.subr.bf16.mxu1 %v10723_v53  ;;  %v10787_v53 = vld [vmem:[#allocation7 + $0x2a0] ss:$40 sps:$4 sm:$0xff]  }
  0x9e   :  { %1182 = vmatpush2.bf16.msra.mxu0 %v10718_v54  ;;  %v10823_v54 = vld [vmem:[%s13657_s10 + $0x178] sm:$0xff]  }
  0x9f   :  { %1223 = vmatpush2.bf16.msra.mxu1 %v10721_v55  ;;  %1183 = vmatprep.subr.bf16.mxu0 %v10726_v56  ;;  %v10825_v55 = vld [vmem:[%s13657_s10 + $0x138] sm:$0xff]   ;;  %v10827_v56 = vld [vmem:[%s13657_s10 + $0x170] sm:$0xff]  }
  0xa0   :  { %1224 = vmatprep.subr.bf16.mxu1 %v10729_v57  ;;  %v10829_v57 = vld [vmem:[%s13657_s10 + $0x130] sm:$0xff]  }
  0xa2   :  { %1184 = vmatpush2.bf16.msra.mxu0 %v10724_v58  ;;  %v10831_v58 = vld [vmem:[%s13657_s10 + $0x168] sm:$0xff]  }
  0xa3   :  { %1225 = vmatpush2.bf16.msra.mxu1 %v10727_v59  ;;  %1185 = vmatprep.subr.bf16.mxu0 %v10732_v60  ;;  %v10833_v59 = vld [vmem:[%s13657_s10 + $0x128] sm:$0xff]   ;;  %v10835_v60 = vld [vmem:[%s13657_s10 + $0x160] sm:$0xff]  }
  0xa4   :  { %1226 = vmatprep.subr.bf16.mxu1 %v10735_v61  ;;  %v10839_v61 = vld [vmem:[%s13657_s10 + $0x158] sm:$0xff]  }
  0xa6   :  { %1186 = vmatpush2.bf16.msra.mxu0 %v10730_v62  ;;  %v10841_v62 = vld [vmem:[%s13657_s10 + $0x118] sm:$0xff]  }
  0xa7   :  { %1227 = vmatpush2.bf16.msra.mxu1 %v10733_v63  ;;  %1187 = vmatprep.subr.bf16.mxu0 %v10738_v0  ;;  %v10843_v63 = vld [vmem:[%s13657_s10 + $0x150] sm:$0xff]  }
  0xa8   :  { %1228 = vmatprep.subr.bf16.mxu1 %v10741_v1  ;;  %v10845_v0 = vld [vmem:[%s13657_s10 + $0x110] sm:$0xff]   ;;  %v10847_v1 = vld [vmem:[%s13657_s10 + $0x148] sm:$0xff]  }
  0xaa   :  { %1188 = vmatpush2.bf16.msra.mxu0 %v10736_v2  ;;  %v10849_v2 = vld [vmem:[%s13657_s10 + $0x108] sm:$0xff]  }
  0xab   :  { %1229 = vmatpush2.bf16.msra.mxu1 %v10739_v3  ;;  %1239 = vmatprep.subr.bf16.mxu0 %v10744_v5  ;;  %v10851_v3 = vld [vmem:[%s13657_s10 + $0x140] sm:$0xff]  }
  0xac   :  { %10066 = vmatprep.subr.bf16.mxu1 %v10790_v6  ;;  %v10853_v5 = vld [vmem:[%s13657_s10 + $0x100] sm:$0xff]   ;;  %v10854_v6 = vld [vmem:[%s13657_s10 + $0x278] sm:$0xff]  }
  0xad   :  { %1190 = vmatmul.mubr.bf16.vlgmr.msra.gmra.mxu0 %v11965_v4 }
  0xae   :  { %1231 = vmatmul.mubr.bf16.vlgmr.msra.gmra.mxu1 %v11965_v4  ;;  %1240 = vmatpush1.bf16.msra.mxu0 %v10742_v7 }
  0xaf   :  { %1271 = vmatprep.mubr.bf16.mxu0 %v11961_v48  ;;  %1241 = vmatprep.subr.bf16.mxu0 %v10747_v8  ;;  %v10796_v48 = vld [vmem:[%s13657_s10 + $0x60] sm:$0xff]  }
  0xb0   :  { %10067 = vmatpush3.bf16.msra.mxu1 %v10791_v9  ;;  %v10807_v9 = vld [vmem:[%s13657_s10 + $0xb8] sm:$0xff]  }
  0xb1   :  { %10068 = vmatprep.subr.bf16.mxu1 %v10792_v11  ;;  %v10808_v11 = vld [vmem:[%s13657_s10 + $0xf0] sm:$0xff]  }
  0xb2   :  { %1242 = vmatpush1.bf16.msra.mxu0 %v10745_v10 }
  0xb3   :  { %1243 = vmatprep.subr.bf16.mxu0 %v10750_v12 }
  0xb4   :  { %10069 = vmatpush3.bf16.msra.mxu1 %v10793_v13 }
  0xb5   :  { %10070 = vmatprep.subr.bf16.mxu1 %v10794_v15 }
  0xb6   :  { %1244 = vmatpush1.bf16.msra.mxu0 %v10748_v14 }
  0xb7   :  { %1245 = vmatprep.subr.bf16.mxu0 %v10753_v16 }
  0xb8   :  { %10071 = vmatpush3.bf16.msra.mxu1 %v10795_v17 }
  0xb9   :  { %10072 = vmatprep.subr.bf16.mxu1 %v10796_v48 }
  0xba   :  { %1246 = vmatpush1.bf16.msra.mxu0 %v10751_v18  ;;  %v10809_v18 = vld [vmem:[%s13657_s10 + $0xb0] sm:$0xff]  }
  0xbb   :  { %1247 = vmatprep.subr.bf16.mxu0 %v10756_v19  ;;  %v10810_v19 = vld [vmem:[%s13657_s10 + $0xe8] sm:$0xff]  }
  0xbc   :  { %10073 = vmatpush3.bf16.msra.mxu1 %v10797_v20 }
  0xbd   :  { %10074 = vmatprep.subr.bf16.mxu1 %v10798_v22  ;;  %v10812_v22 = vld [vmem:[%s13657_s10 + $0xe0] sm:$0xff]  }
  0xbe   :  { %1248 = vmatpush1.bf16.msra.mxu0 %v10754_v21  ;;  %v10811_v21 = vld [vmem:[%s13657_s10 + $0xa8] sm:$0xff]  }
  0xbf   :  { %1249 = vmatprep.subr.bf16.mxu0 %v10759_v23  ;;  %v10813_v23 = vld [vmem:[%s13657_s10 + $0xa0] sm:$0xff]  }
  0xc0   :  { %10075 = vmatpush3.bf16.msra.mxu1 %v10799_v24  ;;  %v10814_v24 = vld [vmem:[%s13657_s10 + $0xd8] sm:$0xff]  }
  0xc1   :  { %10076 = vmatprep.subr.bf16.mxu1 %v10800_v26  ;;  %v10816_v26 = vld [vmem:[%s13657_s10 + $0xd0] sm:$0xff]  }
  0xc2   :  { %1250 = vmatpush1.bf16.msra.mxu0 %v10757_v25  ;;  %v10815_v25 = vld [vmem:[%s13657_s10 + $0x98] sm:$0xff]  }
  0xc3   :  { %1251 = vmatprep.subr.bf16.mxu0 %v10762_v27  ;;  %v10817_v27 = vld [vmem:[%s13657_s10 + $0x90] sm:$0xff]  }
  0xc4   :  { %10077 = vmatpush3.bf16.msra.mxu1 %v10801_v28  ;;  %v10818_v28 = vld [vmem:[%s13657_s10 + $0xc8] sm:$0xff]  }
  0xc5   :  { %10078 = vmatprep.subr.bf16.mxu1 %v10802_v30  ;;  %v10820_v30 = vld [vmem:[%s13657_s10 + $0xc0] sm:$0xff]  }
  0xc6   :  { %1252 = vmatpush1.bf16.msra.mxu0 %v10760_v29  ;;  %v10819_v29 = vld [vmem:[%s13657_s10 + $0x88] sm:$0xff]  }
  0xc7   :  { %1253 = vmatprep.subr.bf16.mxu0 %v10765_v31  ;;  %v10821_v31 = vld [vmem:[%s13657_s10 + $0x80] sm:$0xff]  }
  0xc8   :  { %10079 = vmatpush3.bf16.msra.mxu1 %v10803_v32  ;;  %v10822_v32 = vld [vmem:[%s13657_s10 + $0x1f8] sm:$0xff]  }
  0xc9   :  { %10080 = vmatprep.subr.bf16.mxu1 %v10804_v34 }
  0xca   :  { %1254 = vmatpush1.bf16.msra.mxu0 %v10763_v33  ;;  %v10824_v33 = vld [vmem:[%s13657_s10 + $0x1b8] sm:$0xff]  }
  0xcb   :  { %1255 = vmatprep.subr.bf16.mxu0 %v10768_v35  ;;  %v10826_v35 = vld [vmem:[%s13657_s10 + $0x1f0] sm:$0xff]  }
  0xcc   :  { %10081 = vmatpush3.bf16.msra.mxu1 %v10805_v36  ;;  %v10828_v36 = vld [vmem:[%s13657_s10 + $0x1b0] sm:$0xff]  }
  0xcd   :  { %10088 = vmatprep.subr.bf16.mxu1 %v10806_v38  ;;  %v10832_v38 = vld [vmem:[%s13657_s10 + $0x1a8] sm:$0xff]  }
  0xce   :  { %1256 = vmatpush2.bf16.msra.mxu0 %v10766_v37  ;;  %v10830_v37 = vld [vmem:[%s13657_s10 + $0x1e8] sm:$0xff]  }
  0xcf   :  { %1257 = vmatprep.subr.bf16.mxu0 %v10771_v39  ;;  %v10834_v39 = vld [vmem:[%s13657_s10 + $0x1e0] sm:$0xff]  }
  0xd2   :  { %1258 = vmatpush2.bf16.msra.mxu0 %v10769_v40  ;;  %v10836_v40 = vld [vmem:[%s13657_s10 + $0x1a0] sm:$0xff]  }
  0xd3   :  { %1259 = vmatprep.subr.bf16.mxu0 %v10774_v41  ;;  %v10838_v41 = vld [vmem:[%s13657_s10 + $0x1d8] sm:$0xff]  }
  0xd6   :  { %1260 = vmatpush2.bf16.msra.mxu0 %v10772_v42  ;;  %v10840_v42 = vld [vmem:[%s13657_s10 + $0x198] sm:$0xff]  }
  0xd7   :  { %1261 = vmatprep.subr.bf16.mxu0 %v10777_v43  ;;  %v10842_v43 = vld [vmem:[%s13657_s10 + $0x1d0] sm:$0xff]  }
  0xda   :  { %1262 = vmatpush2.bf16.msra.mxu0 %v10775_v44  ;;  %v10844_v44 = vld [vmem:[%s13657_s10 + $0x190] sm:$0xff]  }
  0xdb   :  { %1263 = vmatprep.subr.bf16.mxu0 %v10780_v45  ;;  %v10846_v45 = vld [vmem:[%s13657_s10 + $0x1c8] sm:$0xff]  }
  0xde   :  { %1264 = vmatpush2.bf16.msra.mxu0 %v10778_v46  ;;  %v10848_v46 = vld [vmem:[%s13657_s10 + $0x188] sm:$0xff]  }
  0xdf   :  { %1265 = vmatprep.subr.bf16.mxu0 %v10783_v47  ;;  %v10850_v47 = vld [vmem:[%s13657_s10 + $0x1c0] sm:$0xff]  }
  0xe2   :  { %1266 = vmatpush2.bf16.msra.mxu0 %v10781_v49  ;;  %v10852_v49 = vld [vmem:[%s13657_s10 + $0x180] sm:$0xff]  }
  0xe3   :  { %1267 = vmatprep.subr.bf16.mxu0 %v10786_v50 }
  0xe6   :  { %1268 = vmatpush2.bf16.msra.mxu0 %v10784_v51 }
  0xe7   :  { %1269 = vmatprep.subr.bf16.mxu0 %v10789_v52  ;;  %v10855_v52 = vld [vmem:[%s13657_s10 + $0x238] sm:$0xff]  }
  0xea   :  { %1270 = vmatpush2.bf16.msra.mxu0 %v10787_v53 }
  0xeb   :  { %10110 = vmatprep.subr.bf16.mxu0 %v10823_v54 }
  0xed   :  { %1272 = vmatmul.mubr.bf16.vlgmr.msra.gmra.mxu0 %v11965_v4  ;;  %v10837_v4 = vld [vmem:[%s13657_s10 + $0x120] sm:$0xff]  }
  0xee   :  { %10111 = vmatpush3.bf16.msra.mxu0 %v10825_v55 }
  0xef   :  { %10112 = vmatprep.subr.bf16.mxu0 %v10827_v56 }
  0xf2   :  { %10113 = vmatpush3.bf16.msra.mxu0 %v10829_v57 }
  0xf3   :  { %10114 = vmatprep.subr.bf16.mxu0 %v10831_v58  ;;  %v10856_v58 = vld [vmem:[%s13657_s10 + $0x270] sm:$0xff]  }
  0xf6   :  { %10115 = vmatpush3.bf16.msra.mxu0 %v10833_v59 }
  0xf7   :  { %10116 = vmatprep.subr.bf16.mxu0 %v10835_v60 }
  0xfa   :  { %10117 = vmatpush3.bf16.msra.mxu0 %v10837_v4  ;;  %v11817_v4 = vmov 0.0  }
  0xfb   :  { %10118 = vmatprep.subr.bf16.mxu0 %v10839_v61 }
  0xfe   :  { %10119 = vmatpush3.bf16.msra.mxu0 %v10841_v62 }
  0xff   :  { %10120 = vmatprep.subr.bf16.mxu0 %v10843_v63  ;;  %v10857_v63 = vld [vmem:[%s13657_s10 + $0x230] sm:$0xff]  }
 0x102   :  { %10121 = vmatpush3.bf16.msra.mxu0 %v10845_v0 }
 0x103   :  { %10122 = vmatprep.subr.bf16.mxu0 %v10847_v1  ;;  %v10858_v1 = vld [vmem:[%s13657_s10 + $0x268] sm:$0xff]  }
 0x106   :  { %10123 = vmatpush3.bf16.msra.mxu0 %v10849_v2 }
 0x107   :  { %10124 = vmatprep.subr.bf16.mxu0 %v10851_v3  ;;  %v10859_v3 = vld [vmem:[%s13657_s10 + $0x228] sm:$0xff]  }
 0x10a   :  { %10125 = vmatpush3.bf16.msra.mxu0 %v10853_v5  ;;  %v10860_v5 = vld [vmem:[%s13657_s10 + $0x260] sm:$0xff]  }
 0x10b   :  { %10154 = vmatprep.subr.bf16.mxu0 %v10854_v6  ;;  %v10861_v6 = vld [vmem:[%s13657_s10 + $0x220] sm:$0xff]  }
 0x12d   :  { %v1109_v7 = vpop.f32.mrf.mxu0 }
 0x12e   :  { %v1150_v8 = vpop.f32.mrf.mxu1  ;;  %v12087_v15 = vpack.c.bf16 %v1109_v7, %v1109_v7  ;;  %v10862_v7 = vld [vmem:[%s13657_s10 + $0x258] sm:$0xff]  }
 0x12f   :  { %v1111_v10 = vpop.f32.mrf.mxu0  ;;  %v12137_v34 = vpack.c.bf16 %v1150_v8, %v1150_v8  ;;  %v10863_v8 = vld [vmem:[%s13657_s10 + $0x218] sm:$0xff]  }
 0x130   :  { %v1152_v12 = vpop.f32.mrf.mxu1  ;;  %v12083_v13 = vpack.c.bf16 %v1111_v10, %v1111_v10  ;;  %v2205_v62 = vsel %vm2203_vm0, %v12087_v15, 0  ;;  %v10865_v10 = vld [vmem:[%s13657_s10 + $0x210] sm:$0xff]  }
 0x131   :  { %v12085_v14 = vpack.c.bf16 %v1152_v12, %v1152_v12  ;;  %v1113_v16 = vpop.f32.mrf.mxu0  ;;  %v10867_v12 = vld [vmem:[%s13657_s10 + $0x208] sm:$0xff]  }
 0x132   :  { %v1154_v17 = vpop.f32.mrf.mxu1  ;;  %1962 = vmatprep.mubr.bf16.mxu1 %v12083_v13  ;;  %v10869_v16 = vld [vmem:[%s13657_s10 + $0x200] sm:$0xff]  }
 0x133   :  { %v1114_v48 = vpop.f32.mrf.mxu0  ;;  %1963 = vmatmul.mubr.bf16.vlgmr.msra.gmra.mxu1 %v12087_v15  ;;  %v10868_v15 = vld [vmem:[%s13657_s10 + $0x240] sm:$0xff]  }
 0x134   :  { %v1155_v20 = vpop.f32.mrf.mxu1  ;;  %10089 = vmatpush3.bf16.msra.mxu1 %v10807_v9  ;;  %2002 = vmatprep.mubr.bf16.mxu1 %v12085_v14  ;;  %v10864_v9 = vld [vmem:[%s13657_s10 + $0x250] sm:$0xff]  }
 0x135   :  { %10090 = vmatprep.subr.bf16.mxu1 %v10808_v11  ;;  %v10866_v11 = vld [vmem:[%s13657_s10 + $0x248] sm:$0xff]   ;;  %s11820_s10 = smov 118  }
 0x138   :  { %10091 = vmatpush3.bf16.msra.mxu1 %v10809_v18 }
 0x139   :  { %10092 = vmatprep.subr.bf16.mxu1 %v10810_v19 }
 0x13c   :  { %10093 = vmatpush3.bf16.msra.mxu1 %v10811_v21 }
 0x13d   :  { %10094 = vmatprep.subr.bf16.mxu1 %v10812_v22 }
 0x140   :  { %10095 = vmatpush3.bf16.msra.mxu1 %v10813_v23 }
 0x141   :  { %10096 = vmatprep.subr.bf16.mxu1 %v10814_v24 }
 0x144   :  { %10097 = vmatpush3.bf16.msra.mxu1 %v10815_v25 }
 0x145   :  { %10098 = vmatprep.subr.bf16.mxu1 %v10816_v26 }
 0x148   :  { %10099 = vmatpush3.bf16.msra.mxu1 %v10817_v27 }
 0x149   :  { %10100 = vmatprep.subr.bf16.mxu1 %v10818_v28  ;;  %v11818_v28 = vmov 0  }
 0x14a   :  { %10524 = vset.pattern.permute.xlu1 %v11818_v28 }
 0x14c   :  { %10101 = vmatpush3.bf16.msra.mxu1 %v10819_v29 }
 0x14d   :  { %10102 = vmatprep.subr.bf16.mxu1 %v10820_v30  ;;  %v11819_v30 = vmov 8  }
 0x14e   :  { %10532 = vset.pattern.permute.xlu0 %v11819_v30 }
 0x150   :  { %10103 = vmatpush3.bf16.msra.mxu1 %v10821_v31 }
 0x151   :  { %10132 = vmatprep.subr.bf16.mxu1 %v10822_v32 }
 0x153   :  { %2003 = vmatmul.mubr.bf16.vlgmr.msra.gmra.mxu1 %v12137_v34 }
 0x154   :  { %10133 = vmatpush3.bf16.msra.mxu1 %v10824_v33 }
 0x155   :  { %10134 = vmatprep.subr.bf16.mxu1 %v10826_v35 }
 0x158   :  { %10135 = vmatpush3.bf16.msra.mxu1 %v10828_v36 }
 0x159   :  { %10136 = vmatprep.subr.bf16.mxu1 %v10830_v37 }
 0x15c   :  { %10137 = vmatpush3.bf16.msra.mxu1 %v10832_v38 }
 0x15d   :  { %10138 = vmatprep.subr.bf16.mxu1 %v10834_v39 }
 0x160   :  { %10139 = vmatpush3.bf16.msra.mxu1 %v10836_v40 }
 0x161   :  { %10140 = vmatprep.subr.bf16.mxu1 %v10838_v41 }
 0x164   :  { %10141 = vmatpush3.bf16.msra.mxu1 %v10840_v42 }
 0x165   :  { %10142 = vmatprep.subr.bf16.mxu1 %v10842_v43 }
 0x168   :  { %10143 = vmatpush3.bf16.msra.mxu1 %v10844_v44 }
 0x169   :  { %10144 = vmatprep.subr.bf16.mxu1 %v10846_v45 }
 0x16c   :  { %10145 = vmatpush3.bf16.msra.mxu1 %v10848_v46 }
 0x16d   :  { %v1191_v50 = vpop.f32.mrf.mxu0  ;;  %10146 = vmatprep.subr.bf16.mxu1 %v10850_v47 }
 0x16e   :  { %v1232_v51 = vpop.f32.mrf.mxu1  ;;  %v1284_v59 = vpack.c.bf16 %v1191_v50, %v1191_v50 }
 0x16f   :  { %v12185_v53 = vpack.c.bf16 %v1232_v51, %v1232_v51  ;;  %v1193_v54 = vpop.f32.mrf.mxu0 }
 0x170   :  { %v1234_v55 = vpop.f32.mrf.mxu1  ;;  %v12187_v56 = vpack.c.bf16 %v1193_v54, %v1193_v54  ;;  %10147 = vmatpush3.bf16.msra.mxu1 %v10852_v49  ;;  %v2661_v21 = vsel %vm2203_vm0, %v1284_v59, 0 }
 0x171   :  { %v12189_v57 = vpack.c.bf16 %v1234_v55, %v1234_v55  ;;  %v1195_v60 = vpop.f32.mrf.mxu0  ;;  %10370 = vmatprep.subr.bf16.mxu1 %v11817_v4 }
 0x172   :  { %v1236_v61 = vpop.f32.mrf.mxu1  ;;  %2042 = vmatprep.mubr.bf16.mxu0 %v12187_v56  ;;  %v11825_v60 = vmov 2  }
 0x173   :  { %2082 = vmatprep.mubr.bf16.mxu1 %v12189_v57  ;;  %v1196_v0 = vpop.f32.mrf.mxu0  ;;  %2043 = vmatmul.mubr.bf16.vlgmr.msra.gmra.mxu0 %v1284_v59  ;;  %v11821_v59 = vmov 1   ;;  %v11828_v61 = vmov 3  }
 0x174   :  { %2083 = vmatmul.mubr.bf16.vlgmr.msra.gmra.mxu1 %v12185_v53  ;;  %v1237_v2 = vpop.f32.mrf.mxu1  ;;  %10155 = vmatpush3.bf16.msra.mxu0 %v10855_v52  ;;  %v11834_v0 = vmov 6  }
 0x175   :  { %10371 = vmatpush3.bf16.msra.mxu1 %v2205_v62  ;;  %10156 = vmatprep.subr.bf16.mxu0 %v10856_v58  ;;  %v11830_v62 = vmov 4   ;;  %v11837_v2 = vmov 9  }
 0x176   :  { %10376 = vmatprep.subr.bf16.mxu1 %v11817_v4  ;;  %10372 = vmatprep.mubr.msk.bf16.mxu1 %vm11838_vm9, %v11817_v4 }
 0x178   :  { %10157 = vmatpush3.bf16.msra.mxu0 %v10857_v63  ;;  %v11832_v63 = vmov 5  }
 0x179   :  { %10158 = vmatprep.subr.bf16.mxu0 %v10858_v1  ;;  %v11836_v1 = vmov 7  }
 0x17c   :  { %10159 = vmatpush3.bf16.msra.mxu0 %v10859_v3 }
 0x17d   :  { %10160 = vmatprep.subr.bf16.mxu0 %v10860_v5 }
 0x180   :  { %10161 = vmatpush3.bf16.msra.mxu0 %v10861_v6 }
 0x181   :  { %10162 = vmatprep.subr.bf16.mxu0 %v10862_v7 }
 0x184   :  { %10163 = vmatpush3.bf16.msra.mxu0 %v10863_v8 }
 0x185   :  { %10164 = vmatprep.subr.bf16.mxu0 %v10864_v9 }
 0x188   :  { %10165 = vmatpush3.bf16.msra.mxu0 %v10865_v10 }
 0x189   :  { %10166 = vmatprep.subr.bf16.mxu0 %v10866_v11 }
 0x18c   :  { %10167 = vmatpush3.bf16.msra.mxu0 %v10867_v12 }
 0x18d   :  { %10168 = vmatprep.subr.bf16.mxu0 %v10868_v15 }
 0x190   :  { %10169 = vmatpush3.bf16.msra.mxu0 %v10869_v16 }
 0x191   :  { %10394 = vmatprep.subr.bf16.mxu0 %v11817_v4 }
 0x1ad   :  { %v1273_v17 = vpop.f32.mrf.mxu0 }
 0x1ae   :  { %v12243_v19 = vpack.c.bf16 %v1273_v17, %v1273_v17 }
 0x1af   :  { %v1275_v18 = vpop.f32.mrf.mxu0 }
 0x1b0   :  { %v12241_v48 = vpack.c.bf16 %v1275_v18, %v1275_v18 }
 0x1b1   :  { %v1277_v20 = vpop.f32.mrf.mxu0 }
 0x1b2   :  { %2122 = vmatprep.mubr.bf16.mxu0 %v12241_v48 }
 0x1b3   :  { %v1278_v22 = vpop.f32.mrf.mxu0  ;;  %2123 = vmatmul.mubr.bf16.vlgmr.msra.gmra.mxu0 %v12243_v19 }
 0x1b4   :  { %10395 = vmatpush3.bf16.msra.mxu0 %v2661_v21  ;;  %10396 = vmatprep.mubr.msk.bf16.mxu0 %vm11838_vm9, %v11817_v4 }
 0x1b5   :  { %10406 = vmatprep.subr.bf16.mxu0 %v11817_v4 }
 0x1f3   :  { %v10082_v23 = vpop.f32.mrf.mxu1 }
 0x1f5   :  { %v10083_v24 = vpop.f32.mrf.mxu1 }
 0x1f6   :  { %v10084_v25 = vadd.f32 %v10083_v24, %v10082_v23  ;;  %v2170_v23 = vlaneseq }
 0x1f7   :  { %v10085_v26 = vpop.f32.mrf.mxu1 }
 0x1f9   :  { %v10086_v27 = vpop.f32.mrf.mxu1 }
 0x213   :  { %v10104_v29 = vpop.f32.mrf.mxu1 }
 0x215   :  { %v10105_v31 = vpop.f32.mrf.mxu1 }
 0x216   :  { %v10106_v32 = vadd.f32 %v10105_v31, %v10104_v29 }
 0x217   :  { %v10107_v33 = vpop.f32.mrf.mxu1 }
 0x218   :  { %v2005_v35 = vadd.f32 %v10106_v32, %v10084_v25  ;;  %v12278_v25 = vshrl.u32 %v2170_v23, 7 }
 0x219   :  { %v10108_v36 = vpop.f32.mrf.mxu1 }
 0x21a   :  { %v12283_v29 = vsub.s32 0, %v12278_v25 }
 0x233   :  { %v10126_v37 = vpop.f32.mrf.mxu0 }
 0x234   :  { %v10148_v38 = vpop.f32.mrf.mxu1 }
 0x235   :  { %v10127_v39 = vpop.f32.mrf.mxu0 }
 0x236   :  { %v10149_v40 = vpop.f32.mrf.mxu1  ;;  %v10128_v41 = vadd.f32 %v10127_v39, %v10126_v37  ;;  %v12292_v39 = vld [vmem:[%s13659_s12] sm:$0x3f] }
 0x237   :  { %v10150_v42 = vadd.f32 %v10149_v40, %v10148_v38  ;;  %v10129_v43 = vpop.f32.mrf.mxu0 }
 0x238   :  { %v10151_v44 = vpop.f32.mrf.mxu1  ;;  %v2045_v45 = vadd.f32 %v10128_v41, %v2005_v35 }
 0x239   :  { %v10130_v46 = vpop.f32.mrf.mxu0 }
 0x23a   :  { %v10152_v47 = vpop.f32.mrf.mxu1  ;;  %v2085_v49 = vadd.f32 %v10150_v42, %v2045_v45 }
 0x273   :  { %v10170_v50 = vpop.f32.mrf.mxu0 }
 0x275   :  { %v10171_v51 = vpop.f32.mrf.mxu0 }
 0x276   :  { %v10172_v52 = vadd.f32 %v10171_v51, %v10170_v50 }
 0x277   :  { %v10173_v54 = vpop.f32.mrf.mxu0 }
 0x278   :  { %v2125_v55 = vadd.f32 %v10172_v52, %v2085_v49 }
 0x279   :  { %v10174_v58 = vpop.f32.mrf.mxu0 }
 0x27a   :  { %2167 = vperm.xlu1 %10524, %v2125_v55   ;;  %2131 = vrot.lane.b32.xlu0 %v2125_v55, %s11820_s10 }
 0x27e   :  { %10525 = vset.pattern.permute.xlu1 %v11821_v59  ;;  %2248 = vrot.lane.b32.xlu0 %v2125_v55, %s11822_s4 }
 0x27f   :  { %2284 = vperm.xlu1 %10525, %v2125_v55  }
 0x282   :  { %2362 = vrot.lane.b32.xlu0 %v2125_v55, %s11823_s29 }
 0x283   :  { %2704 = vrot.lane.b32.xlu1 %v2125_v55, %s11824_s30 }
 0x284   :  { %10526 = vset.pattern.permute.xlu1 %v11825_v60 }
 0x286   :  { %2476 = vrot.lane.b32.xlu0 %v2125_v55, %s11826_s0 }
 0x287   :  { %2398 = vperm.xlu1 %10526, %v2125_v55  }
 0x28a   :  { %2590 = vrot.lane.b32.xlu0 %v2125_v55, %s11827_s21 }
 0x28b   :  { %10527 = vset.pattern.permute.xlu1 %v11828_v61 }
 0x28c   :  { %2512 = vperm.xlu1 %10527, %v2125_v55  }
 0x28e   :  { %2818 = vrot.lane.b32.xlu0 %v2125_v55, %s11829_s9 }
 0x290   :  { %10528 = vset.pattern.permute.xlu1 %v11830_v62 }
 0x291   :  { %2626 = vperm.xlu1 %10528, %v2125_v55  }
 0x292   :  { %3046 = vrot.lane.b32.xlu0 %v2125_v55, %s11831_s1 }
 0x295   :  { %10529 = vset.pattern.permute.xlu1 %v11832_v63 }
 0x296   :  { %2740 = vperm.xlu1 %10529, %v2125_v55   ;;  %3082 = vperm.xlu0 %10532, %v2125_v55  }
 0x29a   :  { %2932 = vrot.lane.b32.xlu1 %v2125_v55, %s11833_s22 }
 0x29b   :  { %10530 = vset.pattern.permute.xlu1 %v11834_v0 }
 0x29e   :  { %3160 = vrot.lane.b32.xlu1 %v2125_v55, %s11835_s23 }
 0x2a2   :  { %2854 = vperm.xlu1 %10530, %v2125_v55  }
 0x2a6   :  { %10531 = vset.pattern.permute.xlu1 %v11836_v1 }
 0x2a7   :  { %2968 = vperm.xlu1 %10531, %v2125_v55  }
 0x2ab   :  { %10533 = vset.pattern.permute.xlu1 %v11837_v2 }
 0x2ac   :  { %3196 = vperm.xlu1 %10533, %v2125_v55  }
 0x2ec   :  { %v2132_v3 = vpop.permute.xlu0 %2131 }
 0x2ed   :  { %2134 = vxpose.xlu1.b32.start.end [1/1] (short) (narrow) %v2132_v3, 8 }
 0x2f0   :  { %v2249_v5 = vpop.permute.xlu0 %2248 }
 0x2f1   :  { %2251 = vxpose.xlu0.b32.start.end [1/1] (short) (narrow) %v2249_v5, 8 }
 0x2f4   :  { %v2363_v6 = vpop.permute.xlu0 %2362 }
 0x2f5   :  { %v2168_v7 = vpop.permute.xlu1 %2167  ;;  %2365 = vxpose.xlu0.b32.start.end [1/1] (short) (narrow) %v2363_v6, 8 }
 0x2f8   :  { %v2477_v8 = vpop.permute.xlu0 %2476 }
 0x2f9   :  { %2479 = vxpose.xlu1.b32.start.end [1/1] (short) (narrow) %v2477_v8, 8 }
 0x2fa   :  { %v2285_v9 = vpop.permute.xlu1 %2284 }
 0x2fc   :  { %v2591_v10 = vpop.permute.xlu0 %2590 }
 0x2fd   :  { %2593 = vxpose.xlu0.b32.start.end [1/1] (short) (narrow) %v2591_v10, 8 }
 0x2fe   :  { %v2705_v11 = vpop.permute.xlu1 %2704 }
 0x2ff   :  { %2707 = vxpose.xlu1.b32.start.end [1/1] (short) (narrow) %v2705_v11, 8 }
 0x300   :  { %v2819_v12 = vpop.permute.xlu0 %2818 }
 0x302   :  { %v2399_v15 = vpop.permute.xlu1 %2398 }
 0x303   :  { %2821 = vxpose.xlu1.b32.start.end [1/1] (short) (narrow) %v2819_v12, 8 }
 0x304   :  { %v3047_v26 = vpop.permute.xlu0 %3046 }
 0x307   :  { %v2513_v16 = vpop.permute.xlu1 %2512 }
 0x30c   :  { %v2627_v17 = vpop.permute.xlu1 %2626 }
 0x311   :  { %v2741_v18 = vpop.permute.xlu1 %2740  ;;  %v12285_v31 = vpop.permute.xlu0 %3082 }
 0x315   :  { %v12269_v20 = vpop.permute.xlu1 %2932 }
 0x319   :  { %v12271_v21 = vpop.permute.xlu1 %3160 }
 0x31d   :  { %v12273_v22 = vpop.permute.xlu1 %2854 }
 0x322   :  { %v12275_v24 = vpop.permute.xlu1 %2968 }
 0x327   :  { %v12280_v27 = vpop.permute.xlu1 %3196 }
 0x369   :  { %v2150_v32 = vpop.trf.xlu1 }
 0x36a   :  { %v2173_v33 = vrot.slane %v2150_v32, %v12283_v29 }
 0x36c   :  { %v2174_v35 = vadd.f32 %v2173_v33, %v2168_v7 }
 0x36d   :  { %v2267_v36 = vpop.trf.xlu0 }
 0x36e   :  { %v2176_v37 = vmul.f32 0.2, %v2174_v35  ;;  %v2290_v38 = vrot.slane %v2267_v36, %v12283_v29  ;;  %vm2175_vm1 = vcmp.ge.f32.partialorder %v2174_v35, 0.0 }
 0x370   :  { %v2291_v40 = vadd.f32 %v2290_v38, %v2285_v9  ;;  %v2177_v41 = vsel %vm2175_vm1, %v2174_v35, %v2176_v37 }
 0x371   :  { %v2381_v42 = vpop.trf.xlu0  ;;  %v2178_v43 = vadd.f32 %v2177_v41, %v12292_v39 }
 0x372   :  { %v2404_v44 = vrot.slane %v2381_v42, %v12283_v29  ;;  %vm2292_vm3 = vcmp.ge.f32.partialorder %v2291_v40, 0.0  ;;  %v2293_v45 = vmul.f32 0.2, %v2291_v40 }
 0x373   :  { %v2180_v46 = vsel %vm2179_vm2, %v2178_v43, -inf }
 0x374   :  { %v2405_v47 = vadd.f32 %v2404_v44, %v2399_v15  ;;  %2181 = vmax.xlane.f32.xlu0 %v2180_v46  ;;  %v2294_v49 = vsel %vm2292_vm3, %v2291_v40, %v2293_v45 }
 0x375   :  { %v2495_v50 = vpop.trf.xlu1  ;;  %v2295_v51 = vadd.f32 %v2294_v49, %v12292_v39 }
 0x376   :  { %v2518_v52 = vrot.slane %v2495_v50, %v12283_v29  ;;  %vm2406_vm4 = vcmp.ge.f32.partialorder %v2405_v47, 0.0  ;;  %v2407_v54 = vmul.f32 0.2, %v2405_v47 }
 0x377   :  { %v2296_v55 = vsel %vm2179_vm2, %v2295_v51, -inf }
 0x378   :  { %v2519_v58 = vadd.f32 %v2518_v52, %v2513_v16  ;;  %2297 = vmax.xlane.f32.xlu1 %v2296_v55  ;;  %v2408_v3 = vsel %vm2406_vm4, %v2405_v47, %v2407_v54 }
 0x379   :  { %v2609_v5 = vpop.trf.xlu0  ;;  %v2409_v6 = vadd.f32 %v2408_v3, %v12292_v39 }
 0x37a   :  { %v2521_v7 = vmul.f32 0.2, %v2519_v58  ;;  %v2632_v8 = vrot.slane %v2609_v5, %v12283_v29  ;;  %vm2520_vm5 = vcmp.ge.f32.partialorder %v2519_v58, 0.0 }
 0x37b   :  { %v2723_v9 = vpop.trf.xlu1  ;;  %v2410_v10 = vsel %vm2179_vm2, %v2409_v6, -inf }
 0x37c   :  { %v2633_v11 = vadd.f32 %v2632_v8, %v2627_v17  ;;  %v2746_v12 = vrot.slane %v2723_v9, %v12283_v29  ;;  %2411 = vmax.xlane.f32.xlu0 %v2410_v10  ;;  %v2522_v15 = vsel %vm2520_vm5, %v2519_v58, %v2521_v7 }
 0x37d   :  { %v2523_v32 = vadd.f32 %v2522_v15, %v12292_v39 }
 0x37e   :  { %v2635_v16 = vmul.f32 0.2, %v2633_v11  ;;  %v2747_v33 = vadd.f32 %v2746_v12, %v2741_v18  ;;  %vm2634_vm6 = vcmp.ge.f32.partialorder %v2633_v11, 0.0 }
 0x37f   :  { %v2524_v35 = vsel %vm2179_vm2, %v2523_v32, -inf  ;;  %v2837_v18 = vpop.trf.xlu1 }
 0x380   :  { %v2749_v36 = vmul.f32 0.2, %v2747_v33  ;;  %2525 = vmax.xlane.f32.xlu1 %v2524_v35  ;;  %v2636_v37 = vsel %vm2634_vm6, %v2633_v11, %v2635_v16  ;;  %vm2748_vm7 = vcmp.ge.f32.partialorder %v2747_v33, 0.0  ;;  %v2860_v47 = vrot.slane %v2837_v18, %v12283_v29 }
 0x381   :  { %v2637_v38 = vadd.f32 %v2636_v37, %v12292_v39 }
 0x382   :  { %v2750_v40 = vsel %vm2748_vm7, %v2747_v33, %v2749_v36  ;;  %v2861_v54 = vadd.f32 %v2860_v47, %v12273_v22 }
 0x383   :  { %v2638_v17 = vsel %vm2179_vm2, %v2637_v38, -inf  ;;  %v2751_v41 = vadd.f32 %v2750_v40, %v12292_v39 }
 0x384   :  { %2639 = vmax.xlane.f32.xlu1 %v2638_v17  ;;  %v2863_v55 = vmul.f32 0.2, %v2861_v54  ;;  %vm2862_vm8 = vcmp.ge.f32.partialorder %v2861_v54, 0.0 }
 0x385   :  { %v2752_v42 = vsel %vm2179_vm2, %v2751_v41, -inf }
 0x386   :  { %2753 = vmax.xlane.f32.xlu0 %v2752_v42 }
 0x3b3   :  { %2935 = vxpose.xlu0.b32.start.end [1/1] (short) (narrow) %v12269_v20, 8  ;;  %v2864_v20 = vsel %vm2862_vm8, %v2861_v54, %v2863_v55 }
 0x3b7   :  { %3049 = vxpose.xlu1.b32.start.end [1/1] (short) (narrow) %v3047_v26, 8 }
 0x3bb   :  { %3163 = vxpose.xlu1.b32.start.end [1/1] (short) (narrow) %v12271_v21, 8 }
 0x3dc   :  { %10534 = vset.pattern.permute.xlu0 %v11818_v28 }
 0x3fd   :  { %v2182_v44 = vpop.xlane.xlu0 %2181 }
 0x3fe   :  { %v2183_v45 = vsub.f32 %v2178_v43, %v2182_v44  ;;  %v12320_v43 = vadd.f32 %v2864_v20, %v12292_v39 }
 0x400   :  { %v2184_v46 = vmul.f32 1.442695, %v2183_v45  ;;  %v2866_v22 = vsel %vm2179_vm2, %v12320_v43, -inf }
 0x401   :  { %v2298_v49 = vpop.xlane.xlu1 %2297 }
 0x402   :  { %11592 = vpow2.f32 %v2184_v46  ;;  %v2299_v50 = vsub.f32 %v2295_v51, %v2298_v49 }
 0x404   :  { %v2300_v52 = vmul.f32 1.442695, %v2299_v50 }
 0x405   :  { %v2412_v5 = vpop.xlane.xlu0 %2411 }
 0x406   :  { %11594 = vpow2.f32 %v2300_v52  ;;  %v2413_v7 = vsub.f32 %v2409_v6, %v2412_v5 }
 0x408   :  { %v2414_v11 = vmul.f32 1.442695, %v2413_v7 }
 0x409   :  { %v2526_v3 = vpop.xlane.xlu1 %2525 }
 0x40a   :  { %v2527_v10 = vsub.f32 %v2523_v32, %v2526_v3  ;;  %11596 = vpow2.f32 %v2414_v11 }
 0x40c   :  { %v2528_v16 = vmul.f32 1.442695, %v2527_v10 }
 0x40d   :  { %v2640_v8 = vpop.xlane.xlu1 %2639 }
 0x40e   :  { %v2641_v12 = vsub.f32 %v2637_v38, %v2640_v8  ;;  %11598 = vpow2.f32 %v2528_v16 }
 0x40f   :  { %v12315_v26 = vpop.eup %11592  ;;  %v2754_v9 = vpop.xlane.xlu0 %2753 }
 0x410   :  { %v2186_v21 = vsel %vm2179_vm2, %v12315_v26, 0.0  ;;  %v2642_v35 = vmul.f32 1.442695, %v2641_v12  ;;  %v2755_v36 = vsub.f32 %v2751_v41, %v2754_v9 }
 0x411   :  { %2187 = vadd.xlane.f32.xlu0 %v2186_v21 }
 0x412   :  { %11600 = vpow2.f32 %v2642_v35  ;;  %v2756_v6 = vmul.f32 1.442695, %v2755_v36  ;;  %v2319_v35 = vsel %vm2203_vm0, %v12083_v13, 0  ;;  %v2433_v13 = vsel %vm2203_vm0, %v12137_v34, 0 }
 0x413   :  { %v12322_v58 = vpop.eup %11594 }
 0x414   :  { %v2302_v51 = vsel %vm2179_vm2, %v12322_v58, 0.0  ;;  %11602 = vpow2.f32 %v2756_v6 }
 0x415   :  { %2303 = vadd.xlane.f32.xlu1 %v2302_v51  ;;  %2867 = vmax.xlane.f32.xlu0 %v2866_v22 }
 0x417   :  { %v12342_v52 = vpop.eup %11596 }
 0x418   :  { %v2416_v21 = vsel %vm2179_vm2, %v12342_v52, 0.0 }
 0x41b   :  { %v12345_v20 = vpop.eup %11598 }
 0x41c   :  { %v2530_v3 = vsel %vm2179_vm2, %v12345_v20, 0.0 }
 0x41f   :  { %v12350_v51 = vpop.eup %11600 }
 0x420   :  { %v2644_v22 = vsel %vm2179_vm2, %v12350_v51, 0.0 }
 0x421   :  { %v12356_v5 = vpop.eup %11602 }
 0x42f   :  { %v2951_v15 = vpop.trf.xlu0 }
 0x430   :  { %v2974_v33 = vrot.slane %v2951_v15, %v12283_v29 }
 0x432   :  { %v2975_v37 = vadd.f32 %v2974_v33, %v12275_v24 }
 0x433   :  { %v3065_v40 = vpop.trf.xlu1 }
 0x434   :  { %v2977_v17 = vmul.f32 0.2, %v2975_v37  ;;  %v3088_v42 = vrot.slane %v3065_v40, %v12283_v29  ;;  %vm2976_vm10 = vcmp.ge.f32.partialorder %v2975_v37, 0.0 }
 0x436   :  { %v3089_v32 = vadd.f32 %v3088_v42, %v12285_v31  ;;  %v2978_v38 = vsel %vm2976_vm10, %v2975_v37, %v2977_v17 }
 0x437   :  { %v3179_v18 = vpop.trf.xlu1  ;;  %v2979_v44 = vadd.f32 %v2978_v38, %v12292_v39 }
 0x438   :  { %v3091_v45 = vmul.f32 0.2, %v3089_v32  ;;  %v3202_v46 = vrot.slane %v3179_v18, %v12283_v29  ;;  %vm3090_vm11 = vcmp.ge.f32.partialorder %v3089_v32, 0.0 }
 0x439   :  { %v2980_v24 = vsel %vm2179_vm2, %v2979_v44, -inf }
 0x43a   :  { %v3203_v41 = vadd.f32 %v3202_v46, %v12280_v27  ;;  %2981 = vmax.xlane.f32.xlu0 %v2980_v24  ;;  %v3092_v47 = vsel %vm3090_vm11, %v3089_v32, %v3091_v45 }
 0x43b   :  { %v3093_v49 = vadd.f32 %v3092_v47, %v12292_v39 }
 0x43c   :  { %v3205_v50 = vmul.f32 0.2, %v3203_v41  ;;  %vm3204_vm12 = vcmp.ge.f32.partialorder %v3203_v41, 0.0 }
 0x43d   :  { %v3094_v31 = vsel %vm2179_vm2, %v3093_v49, -inf }
 0x43e   :  { %3095 = vmax.xlane.f32.xlu1 %v3094_v31  ;;  %v3206_v54 = vsel %vm3204_vm12, %v3203_v41, %v3205_v50  ;;  %vm9038_vm12 = vcmp.lt.s32.totalorder %v2170_v23, 256 }
 0x43f   :  { %v3207_v55 = vadd.f32 %v3206_v54, %v12292_v39  ;;  %v2758_v39 = vsel %vm2179_vm2, %v12356_v5, 0.0 }
 0x441   :  { %v3208_v27 = vsel %vm2179_vm2, %v3207_v55, -inf }
 0x442   :  { %2417 = vadd.xlane.f32.xlu1 %v2416_v21  ;;  %3209 = vmax.xlane.f32.xlu0 %v3208_v27 }
 0x446   :  { %2645 = vadd.xlane.f32.xlu1 %v2644_v22  ;;  %2531 = vadd.xlane.f32.xlu0 %v2530_v3 }
 0x44a   :  { %2759 = vadd.xlane.f32.xlu0 %v2758_v39  ;;  %v2547_v39 = vsel %vm2203_vm0, %v12085_v14, 0 }
 0x49a   :  { %v2188_v7 = vpop.xlane.xlu0 %2187 }
 0x49b   :  { %11604 = vrcp.f32 %v2188_v7 }
 0x49e   :  { %v2304_v8 = vpop.xlane.xlu1 %2303  ;;  %v2868_v9 = vpop.xlane.xlu0 %2867 }
 0x49f   :  { %11606 = vrcp.f32 %v2304_v8  ;;  %v2869_v10 = vsub.f32 %v12320_v43, %v2868_v9  ;;  %v2889_v9 = vsel %vm2203_vm0, %v12185_v53, 0 }
 0x4a1   :  { %v2870_v11 = vmul.f32 1.442695, %v2869_v10  ;;  %v2775_v10 = vsel %vm2203_vm0, %v12187_v56, 0 }
 0x4a3   :  { %11608 = vpow2.f32 %v2870_v11  ;;  %v3003_v11 = vsel %vm2203_vm0, %v12189_v57, 0 }
 0x4a8   :  { %v11605_v12 = vpop.eup %11604 }
 0x4a9   :  { %v2190_v15 = vmul.f32 %v11605_v12, %v12315_v26 }
 0x4ab   :  { %v2191_v16 = vpack.c.bf16 %v2190_v15, %v2190_v15 }
 0x4ac   :  { %v11607_v33 = vpop.eup %11606 }
 0x4ad   :  { %10373 = vmatmul.mubr.msk.bf16.vlgmr.msra.gmra.mxu1 %vm2199_vm13, %v2191_v16  ;;  %v2306_v43 = vmul.f32 %v11607_v33, %v12322_v58  ;;  %v10872_v33 = vld [vmem:[#allocation9 + $0x74] ss:$8 sps:$4 sm:$0xff]  }
 0x4ae   :  { %10377 = vmatpush3.bf16.msra.mxu1 %v2319_v35  ;;  %10378 = vmatprep.mubr.msk.bf16.mxu1 %vm11838_vm9, %v11817_v4 }
 0x4af   :  { %10382 = vmatprep.subr.bf16.mxu1 %v11817_v4  ;;  %v2307_v37 = vpack.c.bf16 %v2306_v43, %v2306_v43 }
 0x4b0   :  { %v12369_v36 = vpop.eup %11608 }
 0x4b1   :  { %v2872_v26 = vsel %vm2179_vm2, %v12369_v36, 0.0 }
 0x4b2   :  { %2873 = vadd.xlane.f32.xlu1 %v2872_v26 }
 0x4b5   :  { %10379 = vmatmul.mubr.msk.bf16.vlgmr.msra.gmra.mxu1 %vm2199_vm13, %v2307_v37 }
 0x4b6   :  { %10383 = vmatpush3.bf16.msra.mxu1 %v2433_v13  ;;  %10384 = vmatprep.mubr.msk.bf16.mxu1 %vm11838_vm9, %v11817_v4 }
 0x4b7   :  { %10388 = vmatprep.subr.bf16.mxu1 %v11817_v4 }
 0x4c3   :  { %v2982_v40 = vpop.xlane.xlu0 %2981 }
 0x4c4   :  { %v2983_v58 = vsub.f32 %v2979_v44, %v2982_v40 }
 0x4c6   :  { %v2984_v17 = vmul.f32 1.442695, %v2983_v58 }
 0x4c7   :  { %v3096_v42 = vpop.xlane.xlu1 %3095 }
 0x4c8   :  { %11610 = vpow2.f32 %v2984_v17  ;;  %v3097_v6 = vsub.f32 %v3093_v49, %v3096_v42 }
 0x4ca   :  { %v3098_v32 = vmul.f32 1.442695, %v3097_v6  ;;  %v10878_v6 = vld [vmem:[#allocation9 + $0x174] ss:$8 sps:$4 sm:$0xff]  }
 0x4cb   :  { %v2418_v38 = vpop.xlane.xlu1 %2417  ;;  %v3210_v18 = vpop.xlane.xlu0 %3209 }
 0x4cc   :  { %11612 = vpow2.f32 %v3098_v32  ;;  %v3211_v45 = vsub.f32 %v3207_v55, %v3210_v18  ;;  %v3231_v18 = vsel %vm2203_vm0, %v12241_v48, 0 }
 0x4cd   :  { %11614 = vrcp.f32 %v2418_v38 }
 0x4ce   :  { %v3212_v34 = vmul.f32 1.442695, %v3211_v45 }
 0x4cf   :  { %v2646_v46 = vpop.xlane.xlu1 %2645  ;;  %v2532_v24 = vpop.xlane.xlu0 %2531 }
 0x4d0   :  { %11616 = vpow2.f32 %v3212_v34  ;;  %v9453_v34 = vld [vmem:[%s13658_s11 + $0x1] ss:$0 sm:$0xff] }
 0x4d1   :  { %11618 = vrcp.f32 %v2646_v46 }
 0x4d2   :  { %11620 = vrcp.f32 %v2532_v24  ;;  %v10870_v24 = vld [vmem:[#allocation9 + $0x70] ss:$8 sps:$4 sm:$0xff]  }
 0x4d3   :  { %v2760_v47 = vpop.xlane.xlu0 %2759 }
 0x4d4   :  { %11622 = vrcp.f32 %v2760_v47 }
 0x4d5   :  { %v12379_v41 = vpop.eup %11610 }
 0x4d6   :  { %v2986_v44 = vsel %vm2179_vm2, %v12379_v41, 0.0 }
 0x4d7   :  { %2987 = vadd.xlane.f32.xlu0 %v2986_v44  ;;  %v10875_v44 = vld [vmem:[#allocation9 + $0x64] ss:$8 sps:$4 sm:$0xff]  }
 0x4d9   :  { %v12383_v49 = vpop.eup %11612 }
 0x4da   :  { %v11615_v50 = vpop.eup %11614  ;;  %v3100_v31 = vsel %vm2179_vm2, %v12383_v49, 0.0 }
 0x4db   :  { %3101 = vadd.xlane.f32.xlu1 %v3100_v31  ;;  %v2420_v54 = vmul.f32 %v11615_v50, %v12342_v52 }
 0x4dd   :  { %v12388_v55 = vpop.eup %11616  ;;  %v2421_v21 = vpack.c.bf16 %v2420_v54, %v2420_v54 }
 0x4de   :  { %v11619_v27 = vpop.eup %11618  ;;  %v3214_v22 = vsel %vm2179_vm2, %v12388_v55, 0.0 }
 0x4df   :  { %v11621_v3 = vpop.eup %11620  ;;  %10385 = vmatmul.mubr.msk.bf16.vlgmr.msra.gmra.mxu1 %vm2199_vm13, %v2421_v21  ;;  %3215 = vadd.xlane.f32.xlu0 %v3214_v22  ;;  %v2648_v7 = vmul.f32 %v11619_v27, %v12350_v51  ;;  %v10876_v27 = vld [vmem:[#allocation9 + $0x170] ss:$8 sps:$4 sm:$0xff]  }
 0x4e0   :  { %10389 = vmatpush3.bf16.msra.mxu1 %v2547_v39  ;;  %10390 = vmatprep.mubr.msk.bf16.mxu1 %vm11838_vm9, %v11817_v4  ;;  %v2534_v8 = vmul.f32 %v11621_v3, %v12345_v20  ;;  %v10881_v39 = vld [vmem:[#allocation9 + $0x54] ss:$8 sps:$4 sm:$0xff]  }
 0x4e1   :  { %v2649_v52 = vpack.c.bf16 %v2648_v7, %v2648_v7  ;;  %10400 = vmatprep.subr.bf16.mxu1 %v11817_v4  ;;  %v11623_v51 = vpop.eup %11622  ;;  %v10884_v7 = vld [vmem:[#allocation9 + $0x164] ss:$8 sps:$4 sm:$0xff]  }
 0x4e2   :  { %v2535_v14 = vpack.c.bf16 %v2534_v8, %v2534_v8  ;;  %v2762_v53 = vmul.f32 %v11623_v51, %v12356_v5  ;;  %v3117_v5 = vsel %vm2203_vm0, %v12243_v19, 0  ;;  %v10890_v51 = vld [vmem:[#allocation9 + $0x154] ss:$8 sps:$4 sm:$0xff]  }
 0x4e3   :  { %10397 = vmatmul.mubr.msk.bf16.vlgmr.msra.gmra.mxu0 %vm2199_vm13, %v2649_v52 }
 0x4e4   :  { %10407 = vmatpush3.bf16.msra.mxu0 %v2889_v9  ;;  %10408 = vmatprep.mubr.msk.bf16.mxu0 %vm11838_vm9, %v11817_v4  ;;  %v2763_v20 = vpack.c.bf16 %v2762_v53, %v2762_v53  ;;  %v10879_v9 = vld [vmem:[#allocation9 + $0x50] ss:$8 sps:$4 sm:$0xff]  }
 0x4e5   :  { %10418 = vmatprep.subr.bf16.mxu0 %v11817_v4  ;;  %v10888_v53 = vld [vmem:[#allocation9 + $0x150] ss:$8 sps:$4 sm:$0xff]  }
 0x4e7   :  { %10391 = vmatmul.mubr.msk.bf16.vlgmr.msra.gmra.mxu1 %vm2199_vm13, %v2535_v14  ;;  %v10882_v14 = vld [vmem:[#allocation9 + $0x160] ss:$8 sps:$4 sm:$0xff]  }
 0x4e8   :  { %10401 = vmatpush3.bf16.msra.mxu1 %v2775_v10  ;;  %10402 = vmatprep.mubr.msk.bf16.mxu1 %vm11838_vm9, %v11817_v4  ;;  %v10885_v10 = vld [vmem:[#allocation9 + $0x40] ss:$8 sps:$4 sm:$0xff]  }
 0x4e9   :  { %10412 = vmatprep.subr.bf16.mxu1 %v11817_v4 }
 0x4ef   :  { %10403 = vmatmul.mubr.msk.bf16.vlgmr.msra.gmra.mxu1 %vm2199_vm13, %v2763_v20  ;;  %v10893_v20 = vld [vmem:[#allocation9 + $0x34] ss:$8 sps:$4 sm:$0xff]  }
 0x4f0   :  { %10413 = vmatpush3.bf16.msra.mxu1 %v3003_v11  ;;  %10414 = vmatprep.mubr.msk.bf16.mxu1 %vm11838_vm9, %v11817_v4  ;;  %v10898_v11 = vld [vmem:[#allocation9 + $0x144] ss:$8 sps:$4 sm:$0xff]  }
 0x4f1   :  { %10424 = vmatprep.subr.bf16.mxu1 %v11817_v4 }
 0x53b   :  { %v2874_v56 = vpop.xlane.xlu1 %2873 }
 0x53c   :  { %11624 = vrcp.f32 %v2874_v56 }
 0x549   :  { %v11625_v12 = vpop.eup %11624 }
 0x54a   :  { %v2876_v15 = vmul.f32 %v11625_v12, %v12369_v36  ;;  %v9451_v36 = vld [vmem:[%s13658_s11] ss:$0 sm:$0xff] }
 0x54b   :  { %v10891_v12 = vld [vmem:[#allocation9 + $0x30] ss:$8 sps:$4 sm:$0xff]  }
 0x54c   :  { %v2877_v16 = vpack.c.bf16 %v2876_v15, %v2876_v15 }
 0x54e   :  { %10409 = vmatmul.mubr.msk.bf16.vlgmr.msra.gmra.mxu0 %vm2199_vm13, %v2877_v16  ;;  %v10896_v16 = vld [vmem:[#allocation9 + $0x140] ss:$8 sps:$4 sm:$0xff]  }
 0x54f   :  { %10419 = vmatpush3.bf16.msra.mxu0 %v3117_v5  ;;  %10420 = vmatprep.mubr.msk.bf16.mxu0 %vm11838_vm9, %v11817_v4  ;;  %v10904_v5 = vld [vmem:[#allocation9 + $0x134] ss:$8 sps:$4 sm:$0xff]  }
 0x550   :  { %4294 = vmatprep.subr.bf16.mxu0 %v10872_v33  ;;  %v10901_v33 = vld [vmem:[#allocation9 + $0x24] ss:$8 sps:$4 sm:$0xff]  }
 0x560   :  { %v2988_v57 = vpop.xlane.xlu0 %2987 }
 0x561   :  { %11626 = vrcp.f32 %v2988_v57  ;;  %v10899_v57 = vld [vmem:[#allocation9 + $0x20] ss:$8 sps:$4 sm:$0xff]  }
 0x564   :  { %v3102_v35 = vpop.xlane.xlu1 %3101 }
 0x565   :  { %11628 = vrcp.f32 %v3102_v35  ;;  %v10902_v35 = vld [vmem:[#allocation9 + $0x130] ss:$8 sps:$4 sm:$0xff]  }
 0x568   :  { %v3216_v43 = vpop.xlane.xlu0 %3215 }
 0x569   :  { %11630 = vrcp.f32 %v3216_v43  ;;  %v10907_v43 = vld [vmem:[#allocation9 + $0x14] ss:$8 sps:$4 sm:$0xff]  }
 0x56d   :  { %v2241_v26 = vpop.f32.mrf.mxu1 }
 0x56e   :  { %v11627_v37 = vpop.eup %11626  ;;  %v2242_v19 = vadd.f32 %v9451_v36, %v2241_v26  ;;  %v10910_v36 = vld [vmem:[#allocation9 + $0x124] ss:$8 sps:$4 sm:$0xff]   ;;  %v10905_v26 = vld [vmem:[#allocation9 + $0x10] ss:$8 sps:$4 sm:$0xff]  }
 0x56f   :  { %v10374_v13 = vpop.f32.mrf.mxu1  ;;  %v2990_v40 = vmul.f32 %v11627_v37, %v12379_v41  ;;  %v10908_v37 = vld [vmem:[#allocation9 + $0x120] ss:$8 sps:$4 sm:$0xff]  }
 0x570   :  { %v2247_v58 = vmax.f32 %v2242_v19, 0.0  ;;  %v10913_v19 = vld [vmem:[#allocation9 + $0x4] ss:$8 sps:$4 sm:$0xff]   ;;  %v10916_v13 = vld [vmem:[#allocation9 + $0x114] ss:$8 sps:$4 sm:$0xff]  }
 0x571   :  { %v2244_v17 = vpop.f32.mrf.mxu1  ;;  %v2991_v42 = vpack.c.bf16 %v2990_v40, %v2990_v40  ;;  %v10911_v40 = vld [vmem:[#allocation9] ss:$8 sps:$4 sm:$0xff]  }
 0x572   :  { %v11629_v32 = vpop.eup %11628  ;;  %v3274_v38 = vpack.c.bf16 %v2247_v58, %v2247_v58  ;;  %v10914_v58 = vld [vmem:[#allocation9 + $0x110] ss:$8 sps:$4 sm:$0xff]   ;;  %v10919_v17 = vld [vmem:[#allocation9 + $0xf4] ss:$8 sps:$4 sm:$0xff]  }
 0x573   :  { %v10375_v45 = vpop.f32.mrf.mxu1  ;;  %10415 = vmatmul.mubr.msk.bf16.vlgmr.msra.gmra.mxu1 %vm2199_vm13, %v2991_v42  ;;  %v3104_v46 = vmul.f32 %v11629_v32, %v12383_v49  ;;  %v10873_v49 = vld [vmem:[#allocation9 + $0x60] ss:$8 sps:$4 sm:$0xff]   ;;  %v10922_v42 = vld [vmem:[#allocation9 + $0x104] ss:$8 sps:$4 sm:$0xff]  }
 0x574   :  { %3275 = vst [vmem:[#allocation3] sm:$0x7] %v3274_v38  ;;  %10425 = vmatpush3.bf16.msra.mxu1 %v3231_v18  ;;  %10426 = vmatprep.mubr.msk.bf16.mxu1 %vm11838_vm9, %v11817_v4  ;;  %v10920_v32 = vld [vmem:[#allocation9 + $0x100] ss:$8 sps:$4 sm:$0xff]   ;;  %v10925_v38 = vld [vmem:[#allocation9 + $0xe4] ss:$8 sps:$4 sm:$0xff]  }
 0x575   :  { %v2355_v41 = vpop.f32.mrf.mxu1  ;;  %v3105_v47 = vpack.c.bf16 %v3104_v46, %v3104_v46  ;;  %4335 = vmatprep.subr.bf16.mxu1 %v10878_v6  ;;  %v10917_v6 = vld [vmem:[#allocation9 + $0xf0] ss:$8 sps:$4 sm:$0xff]   ;;  %v10928_v18 = vld [vmem:[#allocation9 + $0x1f4] ss:$8 sps:$4 sm:$0xff]   ;;  %v10923_v45 = vld [vmem:[#allocation9 + $0xe0] ss:$8 sps:$4 sm:$0xff]  }
 0x576   :  { %v11631_v48 = vpop.eup %11630  ;;  %v2356_v50 = vadd.f32 %v9453_v34, %v2355_v41  ;;  %v10926_v34 = vld [vmem:[#allocation9 + $0x1f0] ss:$8 sps:$4 sm:$0xff]   ;;  %v10931_v46 = vld [vmem:[#allocation9 + $0xd4] ss:$8 sps:$4 sm:$0xff]  }
 0x577   :  { %v10380_v31 = vpop.f32.mrf.mxu1  ;;  %10421 = vmatmul.mubr.msk.bf16.vlgmr.msra.gmra.mxu0 %vm2199_vm13, %v3105_v47  ;;  %v3218_v54 = vmul.f32 %v11631_v48, %v12388_v55  ;;  %v10887_v55 = vld [vmem:[#allocation9 + $0x44] ss:$8 sps:$4 sm:$0xff]   ;;  %v10929_v41 = vld [vmem:[#allocation9 + $0xd0] ss:$8 sps:$4 sm:$0xff]   ;;  %v10932_v47 = vld [vmem:[#allocation9 + $0x1e0] ss:$8 sps:$4 sm:$0xff]  }
 0x578   :  { %v2361_v21 = vmax.f32 %v2356_v50, 0.0  ;;  %4295 = vmatpush1.bf16.msra.mxu0 %v10870_v24  ;;  %v10934_v24 = vld [vmem:[#allocation9 + $0x1e4] ss:$8 sps:$4 sm:$0xff]   ;;  %v10940_v50 = vld [vmem:[#allocation9 + $0x1d4] ss:$8 sps:$4 sm:$0xff]  }
 0x579   :  { %v2358_v22 = vpop.f32.mrf.mxu1  ;;  %4296 = vmatprep.subr.bf16.mxu0 %v10875_v44  ;;  %v3219_v3 = vpack.c.bf16 %v3218_v54, %v3218_v54  ;;  %v9455_v44 = vld [vmem:[%s13658_s11 + $0x2] ss:$0 sm:$0xff]  ;;  %v10937_v48 = vld [vmem:[#allocation9 + $0xc4] ss:$8 sps:$4 sm:$0xff]  }
 0x57a   :  { %v3276_v52 = vpack.c.bf16 %v2361_v21, %v2361_v21  ;;  %v10935_v21 = vld [vmem:[#allocation9 + $0xc0] ss:$8 sps:$4 sm:$0xff]   ;;  %v9459_v22 = vld [vmem:[%s13658_s11 + $0x4] ss:$0 sm:$0xff] }
 0x57b   :  { %v10381_v8 = vpop.f32.mrf.mxu1  ;;  %10427 = vmatmul.mubr.msk.bf16.vlgmr.msra.gmra.mxu1 %vm2199_vm13, %v3219_v3  ;;  %v10943_v3 = vld [vmem:[#allocation9 + $0xb4] ss:$8 sps:$4 sm:$0xff]  }
 0x57c   :  { %3277 = vst [vmem:[#allocation3 + $0x4] sm:$0x7] %v3276_v52  ;;  %4297 = vmatpush1.bf16.msra.mxu0 %v10873_v49  ;;  %4336 = vmatpush1.bf16.msra.mxu1 %v10876_v27  ;;  %v10938_v49 = vld [vmem:[#allocation9 + $0x1d0] ss:$8 sps:$4 sm:$0xff]  }
 0x57d   :  { %4298 = vmatprep.subr.bf16.mxu0 %v10881_v39  ;;  %4337 = vmatprep.subr.bf16.mxu1 %v10884_v7  ;;  %v10946_v39 = vld [vmem:[#allocation9 + $0x1c4] ss:$8 sps:$4 sm:$0xff]  }
 0x580   :  { %4299 = vmatpush1.bf16.msra.mxu0 %v10879_v9  ;;  %4338 = vmatpush1.bf16.msra.mxu1 %v10882_v14 }
 0x581   :  { %4300 = vmatprep.subr.bf16.mxu0 %v10887_v55  ;;  %4339 = vmatprep.subr.bf16.mxu1 %v10890_v51  ;;  %v10941_v55 = vld [vmem:[#allocation9 + $0xb0] ss:$8 sps:$4 sm:$0xff]   ;;  %v10944_v51 = vld [vmem:[#allocation9 + $0x1c0] ss:$8 sps:$4 sm:$0xff]  }
 0x583   :  { %v12441_v56 = vld [vmem:[#allocation3] sm:$0x77] }
 0x584   :  { %4301 = vmatpush1.bf16.msra.mxu0 %v10885_v10  ;;  %4340 = vmatpush1.bf16.msra.mxu1 %v10888_v53  ;;  %v9472_v15 = vcombine.high %v12441_v56, %v12441_v56 }
 0x585   :  { %4302 = vmatprep.subr.bf16.mxu0 %v10893_v20  ;;  %4341 = vmatprep.subr.bf16.mxu1 %v10898_v11  ;;  %v9457_v20 = vld [vmem:[%s13658_s11 + $0x3] ss:$0 sm:$0xff]  ;;  %v10949_v11 = vld [vmem:[#allocation9 + $0xa4] ss:$8 sps:$4 sm:$0xff]  }
 0x586   :  { %4326 = vmatprep.mubr.bf16.mxu0 %v9472_v15 }
 0x588   :  { %4303 = vmatpush1.bf16.msra.mxu0 %v10891_v12  ;;  %4342 = vmatpush1.bf16.msra.mxu1 %v10896_v16  ;;  %v10952_v12 = vld [vmem:[#allocation9 + $0x1b4] ss:$8 sps:$4 sm:$0xff]  }
 0x589   :  { %4304 = vmatprep.subr.bf16.mxu0 %v10901_v33  ;;  %4343 = vmatprep.subr.bf16.mxu1 %v10904_v5 }
 0x58c   :  { %4305 = vmatpush1.bf16.msra.mxu0 %v10899_v57  ;;  %4344 = vmatpush1.bf16.msra.mxu1 %v10902_v35  ;;  %v10947_v35 = vld [vmem:[#allocation9 + $0xa0] ss:$8 sps:$4 sm:$0xff]  }
 0x58d   :  { %4306 = vmatprep.subr.bf16.mxu0 %v10907_v43  ;;  %4345 = vmatprep.subr.bf16.mxu1 %v10910_v36  ;;  %v10950_v43 = vld [vmem:[#allocation9 + $0x1b0] ss:$8 sps:$4 sm:$0xff]  }
 0x590   :  { %4307 = vmatpush1.bf16.msra.mxu0 %v10905_v26  ;;  %4346 = vmatpush1.bf16.msra.mxu1 %v10908_v37  ;;  %v10955_v37 = vld [vmem:[#allocation9 + $0x94] ss:$8 sps:$4 sm:$0xff]  }
 0x591   :  { %4308 = vmatprep.subr.bf16.mxu0 %v10913_v19  ;;  %4347 = vmatprep.subr.bf16.mxu1 %v10916_v13  ;;  %v10958_v19 = vld [vmem:[#allocation9 + $0x1a4] ss:$8 sps:$4 sm:$0xff]  }
 0x594   :  { %4309 = vmatpush1.bf16.msra.mxu0 %v10911_v40  ;;  %4348 = vmatpush1.bf16.msra.mxu1 %v10914_v58 }
 0x595   :  { %4310 = vmatprep.subr.bf16.mxu0 %v10919_v17  ;;  %4349 = vmatprep.subr.bf16.mxu1 %v10922_v42  ;;  %v10953_v17 = vld [vmem:[#allocation9 + $0x90] ss:$8 sps:$4 sm:$0xff]   ;;  %v10956_v42 = vld [vmem:[#allocation9 + $0x1a0] ss:$8 sps:$4 sm:$0xff]  }
 0x598   :  { %4311 = vmatpush2.bf16.msra.mxu0 %v10917_v6  ;;  %4350 = vmatpush1.bf16.msra.mxu1 %v10920_v32  ;;  %v9461_v32 = vld [vmem:[%s13658_s11 + $0x5] ss:$0 sm:$0xff] }
 0x599   :  { %4312 = vmatprep.subr.bf16.mxu0 %v10925_v38  ;;  %4351 = vmatprep.subr.bf16.mxu1 %v10928_v18  ;;  %v10961_v38 = vld [vmem:[#allocation9 + $0x84] ss:$8 sps:$4 sm:$0xff]   ;;  %v10964_v18 = vld [vmem:[#allocation9 + $0x194] ss:$8 sps:$4 sm:$0xff]  }
 0x59c   :  { %4313 = vmatpush2.bf16.msra.mxu0 %v10923_v45  ;;  %4352 = vmatpush2.bf16.msra.mxu1 %v10926_v34 }
 0x59d   :  { %4314 = vmatprep.subr.bf16.mxu0 %v10931_v46  ;;  %4353 = vmatprep.subr.bf16.mxu1 %v10934_v24  ;;  %v10959_v46 = vld [vmem:[#allocation9 + $0x80] ss:$8 sps:$4 sm:$0xff]   ;;  %v10962_v24 = vld [vmem:[#allocation9 + $0x190] ss:$8 sps:$4 sm:$0xff]  }
 0x59f   :  { %v2469_v31 = vpop.f32.mrf.mxu1 }
 0x5a0   :  { %v2470_v54 = vadd.f32 %v9455_v44, %v2469_v31  ;;  %4315 = vmatpush2.bf16.msra.mxu0 %v10929_v41  ;;  %4354 = vmatpush2.bf16.msra.mxu1 %v10932_v47  ;;  %v10967_v47 = vld [vmem:[#allocation9 + $0x184] ss:$8 sps:$4 sm:$0xff]   ;;  %v10970_v44 = vld [vmem:[#allocation9 + $0x274] ss:$8 sps:$4 sm:$0xff]  }
 0x5a1   :  { %v10386_v27 = vpop.f32.mrf.mxu1  ;;  %4316 = vmatprep.subr.bf16.mxu0 %v10937_v48  ;;  %4355 = vmatprep.subr.bf16.mxu1 %v10940_v50 }
 0x5a2   :  { %v2475_v7 = vmax.f32 %v2470_v54, 0.0  ;;  %v10965_v54 = vld [vmem:[#allocation9 + $0x180] ss:$8 sps:$4 sm:$0xff]   ;;  %v10968_v27 = vld [vmem:[#allocation9 + $0x270] ss:$8 sps:$4 sm:$0xff]  }
 0x5a3   :  { %v2472_v52 = vpop.f32.mrf.mxu1  ;;  %v2697_v8 = vpop.f32.mrf.mxu0 }
 0x5a4   :  { %v3278_v9 = vpack.c.bf16 %v2475_v7, %v2475_v7  ;;  %v2698_v14 = vadd.f32 %v9459_v22, %v2697_v8  ;;  %4317 = vmatpush2.bf16.msra.mxu0 %v10935_v21  ;;  %4356 = vmatpush2.bf16.msra.mxu1 %v10938_v49  ;;  %v9471_v21 = vcombine.low %v12441_v56, %v12441_v56  ;;  %v10975_v7 = vld [vmem:[#allocation9 + $0x264] ss:$8 sps:$4 sm:$0xff]   ;;  %v11020_v52 = vld [vmem:[#allocation9 + $0x370] ss:$8 sps:$4 sm:$0xff]   ;;  %v10978_v56 = vld [vmem:[#allocation9 + $0x254] ss:$8 sps:$4 sm:$0xff]  }
 0x5a5   :  { %v10387_v10 = vpop.f32.mrf.mxu1  ;;  %v10398_v53 = vpop.f32.mrf.mxu0  ;;  %4318 = vmatprep.subr.bf16.mxu0 %v10943_v3  ;;  %4357 = vmatprep.subr.bf16.mxu1 %v10946_v39  ;;  %v11022_v3 = vld [vmem:[#allocation9 + $0x374] ss:$8 sps:$4 sm:$0xff]  }
 0x5a6   :  { %3279 = vst [vmem:[#allocation3 + $0x8] sm:$0x7] %v3278_v9  ;;  %v2703_v15 = vmax.f32 %v2698_v14, 0.0  ;;  %v10973_v9 = vld [vmem:[#allocation9 + $0x260] ss:$8 sps:$4 sm:$0xff]  }
 0x5a7   :  { %v2583_v16 = vpop.f32.mrf.mxu1  ;;  %v2700_v33 = vpop.f32.mrf.mxu0  ;;  %v11025_v14 = vld [vmem:[#allocation9 + $0x364] ss:$8 sps:$4 sm:$0xff]   ;;  %v11028_v53 = vld [vmem:[#allocation9 + $0x354] ss:$8 sps:$4 sm:$0xff]  }
 0x5a8   :  { %v3282_v5 = vpack.c.bf16 %v2703_v15, %v2703_v15  ;;  %v2584_v57 = vadd.f32 %v9457_v20, %v2583_v16  ;;  %4319 = vmatpush2.bf16.msra.mxu0 %v10941_v55  ;;  %4358 = vmatpush2.bf16.msra.mxu1 %v10944_v51  ;;  %v11023_v55 = vld [vmem:[#allocation9 + $0x360] ss:$8 sps:$4 sm:$0xff]   ;;  %v10976_v51 = vld [vmem:[#allocation9 + $0x250] ss:$8 sps:$4 sm:$0xff]   ;;  %v11034_v16 = vld [vmem:[#allocation9 + $0x344] ss:$8 sps:$4 sm:$0xff]  }
 0x5a9   :  { %v10392_v36 = vpop.f32.mrf.mxu1  ;;  %v10399_v26 = vpop.f32.mrf.mxu0  ;;  %4320 = vmatprep.subr.bf16.mxu0 %v10949_v11  ;;  %4359 = vmatprep.subr.bf16.mxu1 %v10952_v12  ;;  %v10983_v11 = vld [vmem:[#allocation9 + $0x244] ss:$8 sps:$4 sm:$0xff]   ;;  %v11026_v12 = vld [vmem:[#allocation9 + $0x350] ss:$8 sps:$4 sm:$0xff]   ;;  %v10981_v15 = vld [vmem:[#allocation9 + $0x240] ss:$8 sps:$4 sm:$0xff]  }
 0x5aa   :  { %3283 = vst [vmem:[#allocation3 + $0x10] sm:$0x7] %v3282_v5  ;;  %v2589_v13 = vmax.f32 %v2584_v57, 0.0  ;;  %v10986_v33 = vld [vmem:[#allocation9 + $0x234] ss:$8 sps:$4 sm:$0xff]  }
 0x5ab   :  { %v2586_v40 = vpop.f32.mrf.mxu1  ;;  %v11032_v5 = vld [vmem:[#allocation9 + $0x340] ss:$8 sps:$4 sm:$0xff]   ;;  %v10984_v57 = vld [vmem:[#allocation9 + $0x230] ss:$8 sps:$4 sm:$0xff]  }
 0x5ac   :  { %v3280_v58 = vpack.c.bf16 %v2589_v13, %v2589_v13  ;;  %4321 = vmatpush2.bf16.msra.mxu0 %v10947_v35  ;;  %4360 = vmatpush2.bf16.msra.mxu1 %v10950_v43  ;;  %v11040_v35 = vld [vmem:[#allocation9 + $0x334] ss:$8 sps:$4 sm:$0xff]   ;;  %v10989_v43 = vld [vmem:[#allocation9 + $0x224] ss:$8 sps:$4 sm:$0xff]   ;;  %v11038_v36 = vld [vmem:[#allocation9 + $0x330] ss:$8 sps:$4 sm:$0xff]  }
 0x5ad   :  { %v10393_v6 = vpop.f32.mrf.mxu1  ;;  %4322 = vmatprep.subr.bf16.mxu0 %v10955_v37  ;;  %4361 = vmatprep.subr.bf16.mxu1 %v10958_v19  ;;  %v10987_v26 = vld [vmem:[#allocation9 + $0x220] ss:$8 sps:$4 sm:$0xff]   ;;  %v11046_v37 = vld [vmem:[#allocation9 + $0x324] ss:$8 sps:$4 sm:$0xff]   ;;  %v10992_v19 = vld [vmem:[#allocation9 + $0x214] ss:$8 sps:$4 sm:$0xff]  }
 0x5ae   :  { %3281 = vst [vmem:[#allocation3 + $0xc] sm:$0x7] %v3280_v58  ;;  %v11044_v13 = vld [vmem:[#allocation9 + $0x320] ss:$8 sps:$4 sm:$0xff]   ;;  %v10990_v40 = vld [vmem:[#allocation9 + $0x210] ss:$8 sps:$4 sm:$0xff]  }
 0x5af   :  { %v2811_v45 = vpop.f32.mrf.mxu1  ;;  %v11052_v58 = vld [vmem:[#allocation9 + $0x314] ss:$8 sps:$4 sm:$0xff]   ;;  %v10993_v6 = vld [vmem:[#allocation9 + $0x200] ss:$8 sps:$4 sm:$0xff]  }
 0x5b0   :  { %v2812_v34 = vadd.f32 %v9461_v32, %v2811_v45  ;;  %4323 = vmatpush2.bf16.msra.mxu0 %v10953_v17  ;;  %4362 = vmatpush2.bf16.msra.mxu1 %v10956_v42  ;;  %v10995_v17 = vld [vmem:[#allocation9 + $0x204] ss:$8 sps:$4 sm:$0xff]   ;;  %v11050_v42 = vld [vmem:[#allocation9 + $0x310] ss:$8 sps:$4 sm:$0xff]  }
 0x5b1   :  { %v10404_v41 = vpop.f32.mrf.mxu1  ;;  %4324 = vmatprep.subr.bf16.mxu0 %v10961_v38  ;;  %4363 = vmatprep.subr.bf16.mxu1 %v10964_v18  ;;  %v11058_v32 = vld [vmem:[#allocation9 + $0x304] ss:$8 sps:$4 sm:$0xff]   ;;  %v10998_v38 = vld [vmem:[#allocation9 + $0x2f4] ss:$8 sps:$4 sm:$0xff]   ;;  %v11056_v18 = vld [vmem:[#allocation9 + $0x300] ss:$8 sps:$4 sm:$0xff]  }
 0x5b2   :  { %v2817_v48 = vmax.f32 %v2812_v34, 0.0  ;;  %v10996_v45 = vld [vmem:[#allocation9 + $0x2f0] ss:$8 sps:$4 sm:$0xff]   ;;  %v11064_v34 = vld [vmem:[#allocation9 + $0x3f4] ss:$8 sps:$4 sm:$0xff]  }
 0x5b3   :  { %v2814_v50 = vpop.f32.mrf.mxu1  ;;  %v10999_v41 = vld [vmem:[#allocation9 + $0x2e0] ss:$8 sps:$4 sm:$0xff]  }
 0x5b4   :  { %v3284_v31 = vpack.c.bf16 %v2817_v48, %v2817_v48  ;;  %4325 = vmatpush2.bf16.msra.mxu0 %v10959_v46  ;;  %4364 = vmatpush2.bf16.msra.mxu1 %v10962_v24  ;;  %v11001_v46 = vld [vmem:[#allocation9 + $0x2e4] ss:$8 sps:$4 sm:$0xff]   ;;  %v11062_v24 = vld [vmem:[#allocation9 + $0x3f0] ss:$8 sps:$4 sm:$0xff]   ;;  %v11068_v48 = vld [vmem:[#allocation9 + $0x3e0] ss:$8 sps:$4 sm:$0xff]  }
 0x5b5   :  { %v10405_v49 = vpop.f32.mrf.mxu1  ;;  %4365 = vmatprep.subr.bf16.mxu1 %v10967_v47  ;;  %4376 = vmatprep.subr.bf16.mxu0 %v10970_v44  ;;  %v3295_v22 = vld [vmem:[#allocation3 + $0x8] sm:$0x77]  ;;  %v11004_v44 = vld [vmem:[#allocation9 + $0x2d4] ss:$8 sps:$4 sm:$0xff]   ;;  %v11002_v50 = vld [vmem:[#allocation9 + $0x2d0] ss:$8 sps:$4 sm:$0xff]  }
 0x5b6   :  { %3285 = vst [vmem:[#allocation3 + $0x14] sm:$0x7] %v3284_v31  ;;  %v9474_v39 = vcombine.high %v3295_v22, %v3295_v22  ;;  %v9473_v8 = vcombine.low %v3295_v22, %v3295_v22  ;;  %v11070_v47 = vld [vmem:[#allocation9 + $0x3e4] ss:$8 sps:$4 sm:$0xff]   ;;  %v11076_v31 = vld [vmem:[#allocation9 + $0x3d4] ss:$8 sps:$4 sm:$0xff]  }
 0x5b7   :  { %4327 = vmatmul.mubr.bf16.vlgmr.msra.gmra.mxu0 %v9471_v21  ;;  %v11074_v21 = vld [vmem:[#allocation9 + $0x3d0] ss:$8 sps:$4 sm:$0xff]   ;;  %v11005_v49 = vld [vmem:[#allocation9 + $0x2c0] ss:$8 sps:$4 sm:$0xff]   ;;  %v11010_v22 = vld [vmem:[#allocation9 + $0x2b4] ss:$8 sps:$4 sm:$0xff]  }
 0x5b8   :  { %4366 = vmatpush2.bf16.msra.mxu1 %v10965_v54  ;;  %4367 = vmatprep.mubr.bf16.mxu1 %v9474_v39  ;;  %v11007_v54 = vld [vmem:[#allocation9 + $0x2c4] ss:$8 sps:$4 sm:$0xff]   ;;  %v11008_v39 = vld [vmem:[#allocation9 + $0x2b0] ss:$8 sps:$4 sm:$0xff]  }
 0x5b9   :  { %4377 = vmatpush1.bf16.msra.mxu0 %v10968_v27  ;;  %4417 = vmatprep.subr.bf16.mxu1 %v11022_v3  ;;  %v11082_v27 = vld [vmem:[#allocation9 + $0x3c4] ss:$8 sps:$4 sm:$0xff]   ;;  %v11080_v3 = vld [vmem:[#allocation9 + $0x3c0] ss:$8 sps:$4 sm:$0xff]  }
 0x5ba   :  { %4378 = vmatprep.subr.bf16.mxu0 %v10975_v7  ;;  %v11088_v7 = vld [vmem:[#allocation9 + $0x3b4] ss:$8 sps:$4 sm:$0xff]  }
 0x5bb   :  { %4368 = vmatmul.mubr.bf16.vlgmr.msra.gmra.mxu1 %v9473_v8  ;;  %v11086_v8 = vld [vmem:[#allocation9 + $0x3b0] ss:$8 sps:$4 sm:$0xff]  }
 0x5bc   :  { %4418 = vmatpush1.bf16.msra.mxu1 %v11020_v52  ;;  %v11013_v52 = vld [vmem:[#allocation9 + $0x2a4] ss:$8 sps:$4 sm:$0xff]  }
 0x5bd   :  { %4379 = vmatpush1.bf16.msra.mxu0 %v10973_v9  ;;  %v12459_v10 = vld [vmem:[#allocation3 + $0x10] sm:$0x77]  ;;  %4419 = vmatprep.subr.bf16.mxu1 %v11025_v14 }
 0x5be   :  { %4380 = vmatprep.subr.bf16.mxu0 %v10978_v56  ;;  %v9476_v20 = vcombine.high %v12459_v10, %v12459_v10  ;;  %v11011_v9 = vld [vmem:[#allocation9 + $0x2a0] ss:$8 sps:$4 sm:$0xff]   ;;  %v11094_v14 = vld [vmem:[#allocation9 + $0x3a4] ss:$8 sps:$4 sm:$0xff]   ;;  %v11016_v56 = vld [vmem:[#allocation9 + $0x294] ss:$8 sps:$4 sm:$0xff]  }
 0x5c0   :  { %4408 = vmatprep.mubr.bf16.mxu0 %v9476_v20  ;;  %4420 = vmatpush1.bf16.msra.mxu1 %v11023_v55  ;;  %v11092_v55 = vld [vmem:[#allocation9 + $0x3a0] ss:$8 sps:$4 sm:$0xff]   ;;  %v11019_v20 = vld [vmem:[#allocation9 + $0x284] ss:$8 sps:$4 sm:$0xff]  }
 0x5c1   :  { %4381 = vmatpush1.bf16.msra.mxu0 %v10976_v51  ;;  %4421 = vmatprep.subr.bf16.mxu1 %v11028_v53  ;;  %v11014_v51 = vld [vmem:[#allocation9 + $0x290] ss:$8 sps:$4 sm:$0xff]   ;;  %v11100_v53 = vld [vmem:[#allocation9 + $0x394] ss:$8 sps:$4 sm:$0xff]  }
 0x5c2   :  { %4382 = vmatprep.subr.bf16.mxu0 %v10983_v11  ;;  %v11098_v11 = vld [vmem:[#allocation9 + $0x390] ss:$8 sps:$4 sm:$0xff]  }
 0x5c4   :  { %4422 = vmatpush1.bf16.msra.mxu1 %v11026_v12  ;;  %v11017_v12 = vld [vmem:[#allocation9 + $0x280] ss:$8 sps:$4 sm:$0xff]  }
 0x5c5   :  { %4383 = vmatpush1.bf16.msra.mxu0 %v10981_v15  ;;  %4423 = vmatprep.subr.bf16.mxu1 %v11034_v16  ;;  %v11106_v15 = vld [vmem:[#allocation9 + $0x384] ss:$8 sps:$4 sm:$0xff]   ;;  %v11031_v16 = vld [vmem:[#allocation9 + $0x474] ss:$8 sps:$4 sm:$0xff]  }
 0x5c6   :  { %4384 = vmatprep.subr.bf16.mxu0 %v10986_v33  ;;  %v11104_v33 = vld [vmem:[#allocation9 + $0x380] ss:$8 sps:$4 sm:$0xff]  }
 0x5c8   :  { %4424 = vmatpush1.bf16.msra.mxu1 %v11032_v5  ;;  %v11029_v5 = vld [vmem:[#allocation9 + $0x470] ss:$8 sps:$4 sm:$0xff]  }
 0x5c9   :  { %4385 = vmatpush1.bf16.msra.mxu0 %v10984_v57  ;;  %4425 = vmatprep.subr.bf16.mxu1 %v11040_v35  ;;  %v9475_v57 = vcombine.low %v12459_v10, %v12459_v10  ;;  %v11037_v35 = vld [vmem:[#allocation9 + $0x464] ss:$8 sps:$4 sm:$0xff]  }
 0x5ca   :  { %4386 = vmatprep.subr.bf16.mxu0 %v10989_v43  ;;  %v11035_v43 = vld [vmem:[#allocation9 + $0x460] ss:$8 sps:$4 sm:$0xff]   ;;  %v11061_v10 = vld [vmem:[#allocation9 + $0x424] ss:$8 sps:$4 sm:$0xff]  }
 0x5cc   :  { %4426 = vmatpush1.bf16.msra.mxu1 %v11038_v36  ;;  %v11043_v36 = vld [vmem:[#allocation9 + $0x454] ss:$8 sps:$4 sm:$0xff]  }
 0x5cd   :  { %4387 = vmatpush1.bf16.msra.mxu0 %v10987_v26  ;;  %4427 = vmatprep.subr.bf16.mxu1 %v11046_v37  ;;  %v11041_v26 = vld [vmem:[#allocation9 + $0x450] ss:$8 sps:$4 sm:$0xff]   ;;  %v11049_v37 = vld [vmem:[#allocation9 + $0x444] ss:$8 sps:$4 sm:$0xff]  }
 0x5ce   :  { %4388 = vmatprep.subr.bf16.mxu0 %v10992_v19  ;;  %v11047_v19 = vld [vmem:[#allocation9 + $0x440] ss:$8 sps:$4 sm:$0xff]  }
 0x5d0   :  { %4428 = vmatpush1.bf16.msra.mxu1 %v11044_v13  ;;  %v11055_v13 = vld [vmem:[#allocation9 + $0x434] ss:$8 sps:$4 sm:$0xff]  }
 0x5d1   :  { %4389 = vmatpush1.bf16.msra.mxu0 %v10990_v40  ;;  %4429 = vmatprep.subr.bf16.mxu1 %v11052_v58  ;;  %v11053_v40 = vld [vmem:[#allocation9 + $0x430] ss:$8 sps:$4 sm:$0xff]   ;;  %v11059_v58 = vld [vmem:[#allocation9 + $0x420] ss:$8 sps:$4 sm:$0xff]  }
 0x5d2   :  { %4390 = vmatprep.subr.bf16.mxu0 %v10995_v17  ;;  %v11067_v17 = vld [vmem:[#allocation9 + $0x414] ss:$8 sps:$4 sm:$0xff]  }
 0x5d4   :  { %4430 = vmatpush1.bf16.msra.mxu1 %v11050_v42  ;;  %v9463_v42 = vld [vmem:[%s13658_s11 + $0x6] ss:$0 sm:$0xff] }
 0x5d5   :  { %4391 = vmatpush1.bf16.msra.mxu0 %v10993_v6  ;;  %4431 = vmatprep.subr.bf16.mxu1 %v11058_v32  ;;  %v11065_v6 = vld [vmem:[#allocation9 + $0x410] ss:$8 sps:$4 sm:$0xff]  }
 0x5d6   :  { %4392 = vmatprep.subr.bf16.mxu0 %v10998_v38  ;;  %v11073_v38 = vld [vmem:[#allocation9 + $0x404] ss:$8 sps:$4 sm:$0xff]  }
 0x5d8   :  { %4432 = vmatpush1.bf16.msra.mxu1 %v11056_v18 }
 0x5d9   :  { %4393 = vmatpush2.bf16.msra.mxu0 %v10996_v45  ;;  %4433 = vmatprep.subr.bf16.mxu1 %v11064_v34 }
 0x5da   :  { %4394 = vmatprep.subr.bf16.mxu0 %v11001_v46  ;;  %v11071_v46 = vld [vmem:[#allocation9 + $0x400] ss:$8 sps:$4 sm:$0xff]  }
 0x5dc   :  { %4434 = vmatpush2.bf16.msra.mxu1 %v11062_v24 }
 0x5dd   :  { %4395 = vmatpush2.bf16.msra.mxu0 %v10999_v41  ;;  %4435 = vmatprep.subr.bf16.mxu1 %v11070_v47  ;;  %v11079_v41 = vld [vmem:[#allocation9 + $0x4f4] ss:$8 sps:$4 sm:$0xff]  }
 0x5de   :  { %4396 = vmatprep.subr.bf16.mxu0 %v11004_v44 }
 0x5e0   :  { %4436 = vmatpush2.bf16.msra.mxu1 %v11068_v48  ;;  %v11077_v48 = vld [vmem:[#allocation9 + $0x4f0] ss:$8 sps:$4 sm:$0xff]  }
 0x5e1   :  { %4397 = vmatpush2.bf16.msra.mxu0 %v11002_v50  ;;  %4437 = vmatprep.subr.bf16.mxu1 %v11076_v31  ;;  %v11085_v50 = vld [vmem:[#allocation9 + $0x4e4] ss:$8 sps:$4 sm:$0xff]   ;;  %v11083_v31 = vld [vmem:[#allocation9 + $0x4e0] ss:$8 sps:$4 sm:$0xff]  }
 0x5e2   :  { %4398 = vmatprep.subr.bf16.mxu0 %v11007_v54  ;;  %v11091_v54 = vld [vmem:[#allocation9 + $0x4d4] ss:$8 sps:$4 sm:$0xff]  }
 0x5e4   :  { %4438 = vmatpush2.bf16.msra.mxu1 %v11074_v21  ;;  %v11089_v21 = vld [vmem:[#allocation9 + $0x4d0] ss:$8 sps:$4 sm:$0xff]  }
 0x5e5   :  { %4399 = vmatpush2.bf16.msra.mxu0 %v11005_v49  ;;  %4439 = vmatprep.subr.bf16.mxu1 %v11082_v27  ;;  %v11097_v49 = vld [vmem:[#allocation9 + $0x4c4] ss:$8 sps:$4 sm:$0xff]   ;;  %v11095_v27 = vld [vmem:[#allocation9 + $0x4c0] ss:$8 sps:$4 sm:$0xff]  }
 0x5e6   :  { %4400 = vmatprep.subr.bf16.mxu0 %v11010_v22  ;;  %v11103_v22 = vld [vmem:[#allocation9 + $0x4b4] ss:$8 sps:$4 sm:$0xff]  }
 0x5e8   :  { %4440 = vmatpush2.bf16.msra.mxu1 %v11080_v3  ;;  %v11101_v3 = vld [vmem:[#allocation9 + $0x4b0] ss:$8 sps:$4 sm:$0xff]  }
 0x5e9   :  { %4401 = vmatpush2.bf16.msra.mxu0 %v11008_v39  ;;  %4441 = vmatprep.subr.bf16.mxu1 %v11088_v7  ;;  %v11109_v39 = vld [vmem:[#allocation9 + $0x4a4] ss:$8 sps:$4 sm:$0xff]   ;;  %v11107_v7 = vld [vmem:[#allocation9 + $0x4a0] ss:$8 sps:$4 sm:$0xff]  }
 0x5ea   :  { %4402 = vmatprep.subr.bf16.mxu0 %v11013_v52  ;;  %v11114_v52 = vld [vmem:[#allocation9 + $0x494] ss:$8 sps:$4 sm:$0xff]  }
 0x5ec   :  { %4442 = vmatpush2.bf16.msra.mxu1 %v11086_v8  ;;  %v11112_v8 = vld [vmem:[#allocation9 + $0x490] ss:$8 sps:$4 sm:$0xff]  }
 0x5ed   :  { %4403 = vmatpush2.bf16.msra.mxu0 %v11011_v9  ;;  %4443 = vmatprep.subr.bf16.mxu1 %v11094_v14  ;;  %v11117_v9 = vld [vmem:[#allocation9 + $0x484] ss:$8 sps:$4 sm:$0xff]   ;;  %v9465_v14 = vld [vmem:[%s13658_s11 + $0x7] ss:$0 sm:$0xff] }
 0x5ee   :  { %4404 = vmatprep.subr.bf16.mxu0 %v11016_v56  ;;  %v11115_v56 = vld [vmem:[#allocation9 + $0x480] ss:$8 sps:$4 sm:$0xff]  }
 0x5f0   :  { %4444 = vmatpush2.bf16.msra.mxu1 %v11092_v55 }
 0x5f1   :  { %4405 = vmatpush2.bf16.msra.mxu0 %v11014_v51  ;;  %4445 = vmatprep.subr.bf16.mxu1 %v11100_v53 }
 0x5f2   :  { %4406 = vmatprep.subr.bf16.mxu0 %v11019_v20  ;;  %v9467_v20 = vld [vmem:[%s13658_s11 + $0x8] ss:$0 sm:$0xff] }
 0x5f4   :  { %4446 = vmatpush2.bf16.msra.mxu1 %v11098_v11 }
 0x5f5   :  { %4407 = vmatpush2.bf16.msra.mxu0 %v11017_v12  ;;  %4447 = vmatprep.subr.bf16.mxu1 %v11106_v15 }
 0x5f6   :  { %4458 = vmatprep.subr.bf16.mxu0 %v11031_v16 }
 0x5f8   :  { %4409 = vmatmul.mubr.bf16.vlgmr.msra.gmra.mxu0 %v9475_v57  ;;  %4448 = vmatpush2.bf16.msra.mxu1 %v11104_v33 }
 0x5f9   :  { %4459 = vmatpush1.bf16.msra.mxu0 %v11029_v5 }
 0x5fa   :  { %4460 = vmatprep.subr.bf16.mxu0 %v11037_v35  ;;  %v9469_v35 = vld [vmem:[%s13658_s11 + $0x9] ss:$0 sm:$0xff]  ;;  %s13677_s11 = sld [smem:[#allocation18_spill]] }
 0x5fd   :  { %4461 = vmatpush1.bf16.msra.mxu0 %v11035_v43 }
 0x5fe   :  { %4462 = vmatprep.subr.bf16.mxu0 %v11043_v36 }
 0x601   :  { %4463 = vmatpush1.bf16.msra.mxu0 %v11041_v26 }
 0x602   :  { %4464 = vmatprep.subr.bf16.mxu0 %v11049_v37 }
 0x605   :  { %4465 = vmatpush1.bf16.msra.mxu0 %v11047_v19 }
 0x606   :  { %4466 = vmatprep.subr.bf16.mxu0 %v11055_v13 }
 0x609   :  { %4467 = vmatpush1.bf16.msra.mxu0 %v11053_v40 }
 0x60a   :  { %4468 = vmatprep.subr.bf16.mxu0 %v11061_v10 }
 0x60d   :  { %4469 = vmatpush1.bf16.msra.mxu0 %v11059_v58  ;;  %v11120_v58 = vld [vmem:[%s13661_s14 + $0x78] sm:$0xff]  }
 0x60e   :  { %v2925_v32 = vpop.f32.mrf.mxu0  ;;  %4470 = vmatprep.subr.bf16.mxu0 %v11067_v17  ;;  %10196 = vmatprep.subr.bf16.mxu1 %v11120_v58 }
 0x60f   :  { %v2926_v18 = vadd.f32 %v9463_v42, %v2925_v32 }
 0x610   :  { %v10410_v45 = vpop.f32.mrf.mxu0 }
 0x611   :  { %v2931_v34 = vmax.f32 %v2926_v18, 0.0  ;;  %4471 = vmatpush1.bf16.msra.mxu0 %v11065_v6  ;;  %v11121_v45 = vld [vmem:[%s13661_s14 + $0x38] sm:$0xff]  }
 0x612   :  { %v2928_v24 = vpop.f32.mrf.mxu0  ;;  %4472 = vmatprep.subr.bf16.mxu0 %v11073_v38 }
 0x613   :  { %v3286_v47 = vpack.c.bf16 %v2931_v34, %v2931_v34  ;;  %v11122_v34 = vld [vmem:[%s13661_s14 + $0x70] sm:$0xff]   ;;  %v11124_v24 = vld [vmem:[%s13661_s14 + $0x68] sm:$0xff]  }
 0x614   :  { %v10411_v44 = vpop.f32.mrf.mxu0 }
 0x615   :  { %3287 = vst [vmem:[#allocation3 + $0x18] sm:$0x7] %v3286_v47  ;;  %4473 = vmatpush1.bf16.msra.mxu0 %v11071_v46  ;;  %v11123_v46 = vld [vmem:[%s13661_s14 + $0x30] sm:$0xff]  }
 0x616   :  { %4474 = vmatprep.subr.bf16.mxu0 %v11079_v41 }
 0x619   :  { %4475 = vmatpush2.bf16.msra.mxu0 %v11077_v48  ;;  %v11125_v48 = vld [vmem:[%s13661_s14 + $0x28] sm:$0xff]  }
 0x61a   :  { %4476 = vmatprep.subr.bf16.mxu0 %v11085_v50  ;;  %v11126_v50 = vld [vmem:[%s13661_s14 + $0x60] sm:$0xff]  }
 0x61d   :  { %4477 = vmatpush2.bf16.msra.mxu0 %v11083_v31  ;;  %v11127_v31 = vld [vmem:[%s13661_s14 + $0x20] sm:$0xff]  }
 0x61e   :  { %4478 = vmatprep.subr.bf16.mxu0 %v11091_v54  ;;  %v11128_v54 = vld [vmem:[%s13661_s14 + $0x58] sm:$0xff]  }
 0x621   :  { %4479 = vmatpush2.bf16.msra.mxu0 %v11089_v21 }
 0x622   :  { %4480 = vmatprep.subr.bf16.mxu0 %v11097_v49 }
 0x625   :  { %4481 = vmatpush2.bf16.msra.mxu0 %v11095_v27 }
 0x626   :  { %4482 = vmatprep.subr.bf16.mxu0 %v11103_v22 }
 0x629   :  { %4483 = vmatpush2.bf16.msra.mxu0 %v11101_v3 }
 0x62a   :  { %4484 = vmatprep.subr.bf16.mxu0 %v11109_v39 }
 0x62d   :  { %4485 = vmatpush2.bf16.msra.mxu0 %v11107_v7 }
 0x62e   :  { %4486 = vmatprep.subr.bf16.mxu0 %v11114_v52 }
 0x631   :  { %4487 = vmatpush2.bf16.msra.mxu0 %v11112_v8 }
 0x632   :  { %4488 = vmatprep.subr.bf16.mxu0 %v11117_v9 }
 0x633   :  { %v3039_v55 = vpop.f32.mrf.mxu1 }
 0x634   :  { %v3040_v51 = vadd.f32 %v9465_v14, %v3039_v55  ;;  %v11129_v14 = vld [vmem:[%s13661_s14 + $0x18] sm:$0xff]   ;;  %v11131_v55 = vld [vmem:[%s13661_s14 + $0x10] sm:$0xff]  }
 0x635   :  { %v10416_v53 = vpop.f32.mrf.mxu1  ;;  %4489 = vmatpush2.bf16.msra.mxu0 %v11115_v56  ;;  %v11130_v56 = vld [vmem:[%s13661_s14 + $0x50] sm:$0xff]  }
 0x636   :  { %v3045_v11 = vmax.f32 %v3040_v51, 0.0  ;;  %v11132_v51 = vld [vmem:[%s13661_s14 + $0x48] sm:$0xff]  }
 0x637   :  { %v3042_v12 = vpop.f32.mrf.mxu1  ;;  %v3153_v15 = vpop.f32.mrf.mxu0  ;;  %v11133_v53 = vld [vmem:[%s13661_s14 + $0x8] sm:$0xff]  }
 0x638   :  { %v3288_v16 = vpack.c.bf16 %v3045_v11, %v3045_v11  ;;  %v3154_v33 = vadd.f32 %v9467_v20, %v3153_v15  ;;  %v11134_v20 = vld [vmem:[%s13661_s14 + $0x40] sm:$0xff]  }
 0x639   :  { %v10417_v5 = vpop.f32.mrf.mxu1  ;;  %v10422_v57 = vpop.f32.mrf.mxu0  ;;  %v11135_v11 = vld [vmem:[%s13661_s14] sm:$0xff]   ;;  %s11839_s14 = smov 127  }
 0x63a   :  { %3289 = vst [vmem:[#allocation3 + $0x1c] sm:$0x7] %v3288_v16  ;;  %v3159_v43 = vmax.f32 %v3154_v33, 0.0 }
 0x63b   :  { %v3156_v36 = vpop.f32.mrf.mxu0  ;;  %v3267_v26 = vpop.f32.mrf.mxu1 }
 0x63c   :  { %v3290_v37 = vpack.c.bf16 %v3159_v43, %v3159_v43  ;;  %v3268_v19 = vadd.f32 %v9469_v35, %v3267_v26 }
 0x63d   :  { %v10423_v13 = vpop.f32.mrf.mxu0  ;;  %v10428_v40 = vpop.f32.mrf.mxu1 }
 0x63e   :  { %3291 = vst [vmem:[#allocation3 + $0x20] sm:$0x7] %v3290_v37  ;;  %v3273_v10 = vmax.f32 %v3268_v19, 0.0 }
 0x63f   :  { %v3270_v17 = vpop.f32.mrf.mxu1 }
 0x640   :  { %v3292_v42 = vpack.c.bf16 %v3273_v10, %v3273_v10 }
 0x641   :  { %v10429_v6 = vpop.f32.mrf.mxu1  ;;  %v3297_v32 = vld [vmem:[#allocation3 + $0x18] sm:$0x77] }
 0x642   :  { %3293 = vst [vmem:[#allocation3 + $0x24] sm:$0x7] %v3292_v42  ;;  %v9477_v38 = vcombine.low %v3297_v32, %v3297_v32  ;;  %v9478_v18 = vcombine.high %v3297_v32, %v3297_v32 }
 0x644   :  { %4449 = vmatprep.mubr.bf16.mxu1 %v9478_v18 }
 0x645   :  { %4450 = vmatmul.mubr.bf16.vlgmr.msra.gmra.mxu1 %v9477_v38 }
 0x646   :  { %10197 = vmatpush3.bf16.msra.mxu1 %v11121_v45 }
 0x647   :  { %10198 = vmatprep.subr.bf16.mxu1 %v11122_v34 }
 0x649   :  { %v3298_v41 = vld [vmem:[#allocation3 + $0x20] sm:$0x77] }
 0x64a   :  { %v9479_v47 = vcombine.low %v3298_v41, %v3298_v41  ;;  %v9480_v44 = vcombine.high %v3298_v41, %v3298_v41  ;;  %10199 = vmatpush3.bf16.msra.mxu1 %v11123_v46 }
 0x64b   :  { %10200 = vmatprep.subr.bf16.mxu1 %v11124_v24 }
 0x64c   :  { %4490 = vmatprep.mubr.bf16.mxu0 %v9480_v44 }
 0x64d   :  { %4491 = vmatmul.mubr.bf16.vlgmr.msra.gmra.mxu0 %v9479_v47 }
 0x64e   :  { %10201 = vmatpush3.bf16.msra.mxu1 %v11125_v48  ;;  %5351 = vmatprep.mubr.bf16.mxu0 %v11818_v28 }
 0x64f   :  { %10202 = vmatprep.subr.bf16.mxu1 %v11126_v50 }
 0x652   :  { %10203 = vmatpush3.bf16.msra.mxu1 %v11127_v31 }
 0x653   :  { %10204 = vmatprep.subr.bf16.mxu1 %v11128_v54 }
 0x656   :  { %10205 = vmatpush3.bf16.msra.mxu1 %v11129_v14  ;;  %v11145_v14 = vld [vmem:[#allocation4 + $0x148] ss:$40 sps:$4 sm:$0xff]  }
 0x657   :  { %10206 = vmatprep.subr.bf16.mxu1 %v11130_v56 }
 0x65a   :  { %10207 = vmatpush3.bf16.msra.mxu1 %v11131_v55 }
 0x65b   :  { %10208 = vmatprep.subr.bf16.mxu1 %v11132_v51 }
 0x65e   :  { %10209 = vmatpush3.bf16.msra.mxu1 %v11133_v53 }
 0x65f   :  { %10210 = vmatprep.subr.bf16.mxu1 %v11134_v20 }
 0x662   :  { %10211 = vmatpush3.bf16.msra.mxu1 %v11135_v11  ;;  %v11148_v11 = vld [vmem:[#allocation4 + $0xf8] ss:$40 sps:$4 sm:$0xff]  }
 0x677   :  { %v4328_v21 = vpop.f32.mrf.mxu0 }
 0x679   :  { %v4330_v49 = vpop.f32.mrf.mxu0 }
 0x67b   :  { %v4332_v27 = vpop.f32.mrf.mxu0  ;;  %v4369_v22 = vpop.f32.mrf.mxu1 }
 0x67c   :  { %v4370_v3 = vadd.f32 %v4369_v22, %v4328_v21  ;;  %v11680_v21 = vld [vmem:[%s13659_s12] sm:$0x3f] }
 0x67d   :  { %v4333_v39 = vpop.f32.mrf.mxu0  ;;  %v4371_v7 = vpop.f32.mrf.mxu1  ;;  %v11136_v22 = vld [vmem:[#allocation4 + $0x238] ss:$40 sps:$4 sm:$0xff]  }
 0x67e   :  { %v4372_v52 = vadd.f32 %v4371_v7, %v4330_v49  ;;  %v11141_v39 = vld [vmem:[#allocation4 + $0x1ec] ss:$40 sps:$4 sm:$0xff]   ;;  %v11139_v7 = vld [vmem:[#allocation4 + $0x1e8] ss:$40 sps:$4 sm:$0xff]  }
 0x67f   :  { %v4373_v8 = vpop.f32.mrf.mxu1 }
 0x680   :  { %v11142_v8 = vld [vmem:[#allocation4 + $0x198] ss:$40 sps:$4 sm:$0xff]  }
 0x681   :  { %v4374_v9 = vpop.f32.mrf.mxu1 }
 0x682   :  { %v11147_v9 = vld [vmem:[#allocation4 + $0x14c] ss:$40 sps:$4 sm:$0xff]  }
 0x6b8   :  { %v4410_v12 = vpop.f32.mrf.mxu0 }
 0x6b9   :  { %v4411_v15 = vadd.f32 %v4410_v12, %v4370_v3  ;;  %v11138_v3 = vld [vmem:[#allocation4 + $0x23c] ss:$40 sps:$4 sm:$0xff]  }
 0x6ba   :  { %v4412_v16 = vpop.f32.mrf.mxu0  ;;  %5319 = vmatprep.subr.bf16.mxu0 %v11138_v3  ;;  %v11150_v12 = vld [vmem:[#allocation4 + $0xfc] ss:$40 sps:$4 sm:$0xff]   ;;  %v11187_v3 = vld [vmem:[#allocation4 + $0xf0] ss:$40 sps:$4 sm:$0xff]  }
 0x6bb   :  { %v4413_v33 = vadd.f32 %v4412_v16, %v4372_v52  ;;  %5320 = vmatpush1.bf16.msra.mxu0 %v11136_v22  ;;  %v11144_v52 = vld [vmem:[#allocation4 + $0x19c] ss:$40 sps:$4 sm:$0xff]   ;;  %v11151_v16 = vld [vmem:[#allocation4 + $0xa8] ss:$40 sps:$4 sm:$0xff]  }
 0x6bc   :  { %v4414_v5 = vpop.f32.mrf.mxu0  ;;  %5321 = vmatprep.subr.bf16.mxu0 %v11141_v39  ;;  %v11189_v22 = vld [vmem:[#allocation4 + $0xf4] ss:$40 sps:$4 sm:$0xff]   ;;  %v11195_v39 = vld [vmem:[#allocation4 + $0xa4] ss:$40 sps:$4 sm:$0xff]  }
 0x6bd   :  { %v11165_v5 = vld [vmem:[#allocation4 + $0x234] ss:$40 sps:$4 sm:$0xff]  }
 0x6be   :  { %v4415_v57 = vpop.f32.mrf.mxu0 }
 0x6bf   :  { %5322 = vmatpush1.bf16.msra.mxu0 %v11139_v7  ;;  %v11154_v57 = vld [vmem:[#allocation4 + $0x58] ss:$40 sps:$4 sm:$0xff]  }
 0x6c0   :  { %5323 = vmatprep.subr.bf16.mxu0 %v11144_v52  ;;  %v11193_v7 = vld [vmem:[#allocation4 + $0xa0] ss:$40 sps:$4 sm:$0xff]   ;;  %v11201_v52 = vld [vmem:[#allocation4 + $0x54] ss:$40 sps:$4 sm:$0xff]  }
 0x6c3   :  { %5324 = vmatpush1.bf16.msra.mxu0 %v11142_v8  ;;  %v11199_v8 = vld [vmem:[#allocation4 + $0x50] ss:$40 sps:$4 sm:$0xff]  }
 0x6c4   :  { %5325 = vmatprep.subr.bf16.mxu0 %v11147_v9  ;;  %v11207_v9 = vld [vmem:[#allocation4 + $0x4] ss:$40 sps:$4 sm:$0xff]  }
 0x6c7   :  { %5326 = vmatpush1.bf16.msra.mxu0 %v11145_v14  ;;  %v11205_v14 = vld [vmem:[#allocation4] ss:$40 sps:$4 sm:$0xff]  }
 0x6c8   :  { %5327 = vmatprep.subr.bf16.mxu0 %v11150_v12  ;;  %v11219_v12 = vld [vmem:[#allocation4 + $0x154] ss:$40 sps:$4 sm:$0xff]  }
 0x6cb   :  { %5328 = vmatpush1.bf16.msra.mxu0 %v11148_v11  ;;  %v11214_v11 = vld [vmem:[#allocation4 + $0x1a0] ss:$40 sps:$4 sm:$0xff]  }
 0x705   :  { %v4451_v35 = vpop.f32.mrf.mxu1 }
 0x706   :  { %v4452_v37 = vadd.f32 %v4451_v35, %v4411_v15  ;;  %v11153_v15 = vld [vmem:[#allocation4 + $0xac] ss:$40 sps:$4 sm:$0xff]  }
 0x707   :  { %v4453_v43 = vpop.f32.mrf.mxu1  ;;  %5329 = vmatprep.subr.bf16.mxu0 %v11153_v15  ;;  %v11159_v35 = vld [vmem:[#allocation4 + $0xc] ss:$40 sps:$4 sm:$0xff]   ;;  %v11217_v15 = vld [vmem:[#allocation4 + $0x150] ss:$40 sps:$4 sm:$0xff]  }
 0x708   :  { %v4454_v13 = vadd.f32 %v4453_v43, %v4413_v33  ;;  %v11156_v33 = vld [vmem:[#allocation4 + $0x5c] ss:$40 sps:$4 sm:$0xff]   ;;  %5330 = vmatpush1.bf16.msra.mxu0 %v11151_v16  ;;  %v11157_v43 = vld [vmem:[#allocation4 + $0x8] ss:$40 sps:$4 sm:$0xff]  }
 0x709   :  { %v4455_v36 = vpop.f32.mrf.mxu1  ;;  %5331 = vmatprep.subr.bf16.mxu0 %v11156_v33  ;;  %v11222_v16 = vld [vmem:[#allocation4 + $0x104] ss:$40 sps:$4 sm:$0xff]   ;;  %v11220_v33 = vld [vmem:[#allocation4 + $0x100] ss:$40 sps:$4 sm:$0xff]  }
 0x70a   :  { %v11162_v36 = vld [vmem:[#allocation4 + $0x24c] ss:$40 sps:$4 sm:$0xff]  }
 0x70b   :  { %v4456_v26 = vpop.f32.mrf.mxu1 }
 0x70c   :  { %5332 = vmatpush1.bf16.msra.mxu0 %v11154_v57  ;;  %v12539_v26 = vld [vmem:[%s13677_s11] sm:$0xf] }
 0x70d   :  { %v4492_v19 = vpop.f32.mrf.mxu0  ;;  %5333 = vmatprep.subr.bf16.mxu0 %v11159_v35  ;;  %v11223_v57 = vld [vmem:[#allocation4 + $0xb0] ss:$40 sps:$4 sm:$0xff]   ;;  %v11228_v35 = vld [vmem:[#allocation4 + $0x64] ss:$40 sps:$4 sm:$0xff]  }
 0x70e   :  { %v4493_v40 = vadd.f32 %v4492_v19, %v4452_v37  ;;  %v11160_v37 = vld [vmem:[#allocation4 + $0x248] ss:$40 sps:$4 sm:$0xff]   ;;  %v11166_v19 = vld [vmem:[#allocation4 + $0x1f8] ss:$40 sps:$4 sm:$0xff]  }
 0x70f   :  { %v4494_v10 = vpop.f32.mrf.mxu0 }
 0x710   :  { %v4495_v58 = vadd.f32 %v4494_v10, %v4454_v13  ;;  %v4499_v17 = vpack.c.bf16 %v4493_v40, %v4493_v40  ;;  %5334 = vmatpush1.bf16.msra.mxu0 %v11157_v43  ;;  %v11168_v13 = vld [vmem:[#allocation4 + $0x1fc] ss:$40 sps:$4 sm:$0xff]   ;;  %v11172_v40 = vld [vmem:[#allocation4 + $0x1a8] ss:$40 sps:$4 sm:$0xff]   ;;  %v11174_v10 = vld [vmem:[#allocation4 + $0x1ac] ss:$40 sps:$4 sm:$0xff]  }
 0x711   :  { %v4496_v42 = vpop.f32.mrf.mxu0  ;;  %5401 = vmatprep.subr.bf16.mxu0 %v11162_v36  ;;  %v11226_v43 = vld [vmem:[#allocation4 + $0x60] ss:$40 sps:$4 sm:$0xff]   ;;  %v11231_v36 = vld [vmem:[#allocation4 + $0x14] ss:$40 sps:$4 sm:$0xff]  }
 0x712   :  { %v4500_v6 = vpack.c.bf16 %v4495_v58, %v4495_v58  ;;  %v4746_v38 = vsel %vm2203_vm0, %v4499_v17, 0  ;;  %v11178_v58 = vld [vmem:[#allocation4 + $0x158] ss:$40 sps:$4 sm:$0xff]   ;;  %v11184_v42 = vld [vmem:[#allocation4 + $0x108] ss:$40 sps:$4 sm:$0xff]  }
 0x713   :  { %v4497_v32 = vpop.f32.mrf.mxu0  ;;  %5352 = vmatmul.mubr.bf16.vlgmr.msra.gmra.mxu0 %v12539_v26 }
 0x714   :  { %4661 = vmatprep.mubr.bf16.mxu1 %v4500_v6  ;;  %9657 = vmatprep.subr.msk.bf16.mxu1 %vm2203_vm0, %v4500_v6  ;;  %v11186_v6 = vld [vmem:[#allocation4 + $0x10c] ss:$40 sps:$4 sm:$0xff]   ;;  %v11190_v32 = vld [vmem:[#allocation4 + $0xb8] ss:$40 sps:$4 sm:$0xff]  }
 0x715   :  { %4662 = vmatmul.mubr.bf16.vlgmr.msra.gmra.mxu1 %v4499_v17  ;;  %5402 = vmatpush1.bf16.msra.mxu0 %v11160_v37  ;;  %v11180_v17 = vld [vmem:[#allocation4 + $0x15c] ss:$40 sps:$4 sm:$0xff]   ;;  %v11229_v37 = vld [vmem:[#allocation4 + $0x10] ss:$40 sps:$4 sm:$0xff]  }
 0x716   :  { %4766 = vmatpush1.bf16.msra.mxu1 %v4746_v38  ;;  %4783 = vmatprep.mubr.bf16.mxu1 %v11818_v28  ;;  %v11192_v38 = vld [vmem:[#allocation4 + $0xbc] ss:$40 sps:$4 sm:$0xff]  }
 0x717   :  { %5278 = vmatprep.subr.bf16.mxu1 %v11165_v5  ;;  %5433 = vmatprep.mubr.bf16.mxu0 %v11818_v28  ;;  %v11225_v5 = vld [vmem:[#allocation4 + $0xb4] ss:$40 sps:$4 sm:$0xff]  }
 0x718   :  { %5403 = vmatprep.subr.bf16.mxu0 %v11168_v13  ;;  %v11232_v13 = vld [vmem:[#allocation4 + $0x250] ss:$40 sps:$4 sm:$0xff]  }
 0x719   :  { %5404 = vmatpush1.bf16.msra.mxu0 %v11166_v19  ;;  %v11234_v19 = vld [vmem:[#allocation4 + $0x254] ss:$40 sps:$4 sm:$0xff]  }
 0x71a   :  { %5405 = vmatprep.subr.bf16.mxu0 %v11174_v10 }
 0x71d   :  { %5406 = vmatpush1.bf16.msra.mxu0 %v11172_v40  ;;  %v11237_v40 = vld [vmem:[#allocation4 + $0x204] ss:$40 sps:$4 sm:$0xff]  }
 0x71e   :  { %5407 = vmatprep.subr.bf16.mxu0 %v11180_v17  ;;  %v11240_v17 = vld [vmem:[#allocation4 + $0x1b4] ss:$40 sps:$4 sm:$0xff]  }
 0x721   :  { %5408 = vmatpush1.bf16.msra.mxu0 %v11178_v58  ;;  %v11235_v58 = vld [vmem:[#allocation4 + $0x200] ss:$40 sps:$4 sm:$0xff]  }
 0x722   :  { %5409 = vmatprep.subr.bf16.mxu0 %v11186_v6  ;;  %v11273_v6 = vld [vmem:[%s13678_s3 + $0x78] sm:$0xff]  }
 0x725   :  { %5410 = vmatpush1.bf16.msra.mxu0 %v11184_v42 }
 0x726   :  { %5411 = vmatprep.subr.bf16.mxu0 %v11192_v38  ;;  %v11238_v38 = vld [vmem:[#allocation4 + $0x1b0] ss:$40 sps:$4 sm:$0xff]  }
 0x729   :  { %5412 = vmatpush1.bf16.msra.mxu0 %v11190_v32 }
 0x7d3   :  { %v12549_v10 = vpop.f32.mrf.mxu0 }
 0x7d5   :  { %v10212_v18 = vpop.f32.mrf.mxu1  ;;  %v5355_v42 = vpop.f32.mrf.mxu0 }
 0x7d7   :  { %v10213_v45 = vpop.f32.mrf.mxu1  ;;  %v5357_v32 = vpop.f32.mrf.mxu0 }
 0x7d8   :  { %v10214_v34 = vadd.f32 %v10213_v45, %v10212_v18  ;;  %v11196_v18 = vld [vmem:[#allocation4 + $0x68] ss:$40 sps:$4 sm:$0xff]   ;;  %v11198_v45 = vld [vmem:[#allocation4 + $0x6c] ss:$40 sps:$4 sm:$0xff]   ;;  %v11271_v32 = vld [vmem:[%s13678_s3 + $0x80] sm:$0xff]  }
 0x7d9   :  { %v10215_v46 = vpop.f32.mrf.mxu1  ;;  %5413 = vmatprep.subr.bf16.mxu0 %v11198_v45  ;;  %v11243_v45 = vld [vmem:[#allocation4 + $0x164] ss:$40 sps:$4 sm:$0xff]  }
 0x7da   :  { %4706 = vperm.xlu0 %10534, %v10214_v34   ;;  %4670 = vrot.lane.b32.xlu1 %v10214_v34, %s11839_s14  ;;  %v11202_v34 = vld [vmem:[#allocation4 + $0x18] ss:$40 sps:$4 sm:$0xff]   ;;  %v11204_v46 = vld [vmem:[#allocation4 + $0x1c] ss:$40 sps:$4 sm:$0xff]  }
 0x7db   :  { %v10216_v24 = vpop.f32.mrf.mxu1  ;;  %5414 = vmatpush1.bf16.msra.mxu0 %v11196_v18  ;;  %v11275_v18 = vld [vmem:[%s13678_s3 + $0x38] sm:$0xff]  }
 0x7dc   :  { %5415 = vmatprep.subr.bf16.mxu0 %v11204_v46  ;;  %v11277_v46 = vld [vmem:[%s13678_s3 + $0x70] sm:$0xff]  }
 0x7df   :  { %5416 = vmatpush1.bf16.msra.mxu0 %v11202_v34  ;;  %v5358_v34 = vpop.f32.mrf.mxu0 }
 0x7e0   :  { %10218 = vmatprep.subr.bf16.mxu0 %v11273_v6  ;;  %v11270_v6 = vld [vmem:[%s13678_s3 + $0xc0] sm:$0xff]  }
 0x7e2   :  { %5434 = vmatmul.mubr.bf16.vlgmr.msra.gmra.mxu0 %v12539_v26 }
 0x7e3   :  { %10219 = vmatpush3.bf16.msra.mxu0 %v11275_v18  ;;  %v12662_v18 = vpack.c.bf16 %v12549_v10, %v12549_v10  ;;  %v11278_v10 = vld [vmem:[%s13678_s3 + $0x1b0] sm:$0xff]  }
 0x7e4   :  { %10220 = vmatprep.subr.bf16.mxu0 %v11277_v46  ;;  %v11276_v46 = vld [vmem:[%s13678_s3 + $0x1f0] sm:$0xff]  }
 0x84c   :  { %v4671_v41 = vpop.permute.xlu1 %4670 }
 0x84d   :  { %4673 = vxpose.xlu1.b32.start.end [1/1] (short) (narrow) %v4671_v41, 8 }
 0x855   :  { %v4707_v48 = vpop.permute.xlu0 %4706 }
 0x8c9   :  { %v4689_v47 = vpop.trf.xlu1 }
 0x8ca   :  { %v4712_v44 = vrot.slane %v4689_v47, %v12283_v29 }
 0x8cc   :  { %v4713_v50 = vadd.f32 %v4712_v44, %v4707_v48  ;;  %v11163_v44 = vld [vmem:[#allocation4 + $0x230] ss:$40 sps:$4 sm:$0xff]  }
 0x8ce   :  { %v4715_v31 = vmul.f32 0.2, %v4713_v50  ;;  %vm4714_vm14 = vcmp.ge.f32.partialorder %v4713_v50, 0.0 }
 0x8d0   :  { %v4716_v54 = vsel %vm4714_vm14, %v4713_v50, %v4715_v31  ;;  %v11171_v50 = vld [vmem:[#allocation4 + $0x1e4] ss:$40 sps:$4 sm:$0xff]   ;;  %v11169_v31 = vld [vmem:[#allocation4 + $0x1e0] ss:$40 sps:$4 sm:$0xff]  }
 0x8d1   :  { %v4717_v49 = vadd.f32 %v11680_v21, %v4716_v54  ;;  %v11177_v54 = vld [vmem:[#allocation4 + $0x194] ss:$40 sps:$4 sm:$0xff]   ;;  %v11175_v21 = vld [vmem:[#allocation4 + $0x190] ss:$40 sps:$4 sm:$0xff]  }
 0x8d3   :  { %v4718_v27 = vsel %vm2179_vm2, %v4717_v49, -inf }
 0x8d4   :  { %4719 = vmax.xlane.f32.xlu0 %v4718_v27  ;;  %v11181_v27 = vld [vmem:[#allocation4 + $0x140] ss:$40 sps:$4 sm:$0xff]  }
 0x95d   :  { %v4720_v56 = vpop.xlane.xlu0 %4719 }
 0x95e   :  { %v4721_v55 = vsub.f32 %v4717_v49, %v4720_v56  ;;  %v11183_v49 = vld [vmem:[#allocation4 + $0x144] ss:$40 sps:$4 sm:$0xff]  }
 0x95f   :  { %v11210_v56 = vld [vmem:[#allocation4 + $0x244] ss:$40 sps:$4 sm:$0xff]  }
 0x960   :  { %v4722_v51 = vmul.f32 1.442695, %v4721_v55  ;;  %v11208_v55 = vld [vmem:[#allocation4 + $0x240] ss:$40 sps:$4 sm:$0xff]  }
 0x962   :  { %11632 = vpow2.f32 %v4722_v51  ;;  %v11213_v51 = vld [vmem:[#allocation4 + $0x1f4] ss:$40 sps:$4 sm:$0xff]  }
 0x96f   :  { %v11633_v53 = vpop.eup %11632 }
 0x970   :  { %v4724_v20 = vsel %vm2179_vm2, %v11633_v53, 0.0  ;;  %vm6382_vm2 = vcmask 64512  }
 0x971   :  { %4725 = vadd.xlane.f32.xlu1 %v4724_v20  ;;  %v11216_v20 = vld [vmem:[#allocation4 + $0x1a4] ss:$40 sps:$4 sm:$0xff]  }
 0x9fa   :  { %v4726_v24 = vpop.xlane.xlu1 %4725 }
 0x9fb   :  { %11634 = vrcp.f32 %v4726_v24  ;;  %v11279_v24 = vld [vmem:[%s13678_s3 + $0x30] sm:$0xff]  }
 0x9fc   :  { %10221 = vmatpush3.bf16.msra.mxu0 %v11279_v24  ;;  %v11280_v24 = vld [vmem:[%s13678_s3 + $0x1e8] sm:$0xff]  }
 0xa08   :  { %v11635_v41 = vpop.eup %11634 }
 0xa09   :  { %v4728_v47 = vmul.f32 %v11635_v41, %v11633_v53  ;;  %v11211_v53 = vld [vmem:[#allocation4 + $0x1f0] ss:$40 sps:$4 sm:$0xff]   ;;  %v11281_v41 = vld [vmem:[%s13678_s3 + $0x68] sm:$0xff]  }
 0xa0a   :  { %10222 = vmatprep.subr.bf16.mxu0 %v11281_v41  ;;  %v11282_v41 = vld [vmem:[%s13678_s3 + $0x1a8] sm:$0xff]  }
 0xa0b   :  { %v4729_v48 = vpack.c.bf16 %v4728_v47, %v4728_v47  ;;  %v11241_v47 = vld [vmem:[#allocation4 + $0x160] ss:$40 sps:$4 sm:$0xff]  }
 0xa0d   :  { %9658 = vmatmul.mubr.msk.bf16.vlgmr.msra.gmra.mxu1 %vm2199_vm13, %v4729_v48  ;;  %v11283_v48 = vld [vmem:[%s13678_s3 + $0x28] sm:$0xff]  }
 0xa0e   :  { %5279 = vmatpush1.bf16.msra.mxu1 %v11163_v44  ;;  %5310 = vmatprep.mubr.bf16.mxu1 %v11818_v28  ;;  %v11246_v44 = vld [vmem:[#allocation4 + $0x114] ss:$40 sps:$4 sm:$0xff]  }
 0xa0f   :  { %5280 = vmatprep.subr.bf16.mxu1 %v11171_v50  ;;  %v11285_v50 = vld [vmem:[%s13678_s3 + $0x60] sm:$0xff]   ;;  %10223 = vmatpush3.bf16.msra.mxu0 %v11283_v48  ;;  %v11288_v48 = vld [vmem:[%s13678_s3 + $0x1d8] sm:$0xff]  }
 0xa10   :  { %10224 = vmatprep.subr.bf16.mxu0 %v11285_v50  ;;  %v11290_v50 = vld [vmem:[%s13678_s3 + $0x198] sm:$0xff]  }
 0xa12   :  { %5281 = vmatpush1.bf16.msra.mxu1 %v11169_v31  ;;  %v11244_v31 = vld [vmem:[#allocation4 + $0x110] ss:$40 sps:$4 sm:$0xff]  }
 0xa13   :  { %5282 = vmatprep.subr.bf16.mxu1 %v11177_v54  ;;  %v11249_v54 = vld [vmem:[#allocation4 + $0xc4] ss:$40 sps:$4 sm:$0xff]  }
 0xa16   :  { %5283 = vmatpush1.bf16.msra.mxu1 %v11175_v21  ;;  %v11287_v21 = vld [vmem:[%s13678_s3 + $0x20] sm:$0xff]  }
 0xa17   :  { %5284 = vmatprep.subr.bf16.mxu1 %v11183_v49  ;;  %v11289_v49 = vld [vmem:[%s13678_s3 + $0x58] sm:$0xff]   ;;  %10225 = vmatpush3.bf16.msra.mxu0 %v11287_v21  ;;  %v11296_v21 = vld [vmem:[%s13678_s3 + $0x1c8] sm:$0xff]  }
 0xa18   :  { %10226 = vmatprep.subr.bf16.mxu0 %v11289_v49  ;;  %v11298_v49 = vld [vmem:[%s13678_s3 + $0x188] sm:$0xff]  }
 0xa1a   :  { %5285 = vmatpush1.bf16.msra.mxu1 %v11181_v27  ;;  %v11247_v27 = vld [vmem:[#allocation4 + $0xc0] ss:$40 sps:$4 sm:$0xff]  }
 0xa1b   :  { %5286 = vmatprep.subr.bf16.mxu1 %v11189_v22  ;;  %v11252_v22 = vld [vmem:[#allocation4 + $0x74] ss:$40 sps:$4 sm:$0xff]  }
 0xa1e   :  { %5287 = vmatpush1.bf16.msra.mxu1 %v11187_v3  ;;  %v11291_v3 = vld [vmem:[%s13678_s3 + $0x18] sm:$0xff]  }
 0xa1f   :  { %5288 = vmatprep.subr.bf16.mxu1 %v11195_v39  ;;  %v11293_v39 = vld [vmem:[%s13678_s3 + $0x50] sm:$0xff]   ;;  %10227 = vmatpush3.bf16.msra.mxu0 %v11291_v3 }
 0xa20   :  { %10228 = vmatprep.subr.bf16.mxu0 %v11293_v39  ;;  %v4730_v39 = vld [vmem:[%s13662_s15] sm:$0x3] }
 0xa22   :  { %5289 = vmatpush1.bf16.msra.mxu1 %v11193_v7  ;;  %v11250_v7 = vld [vmem:[#allocation4 + $0x70] ss:$40 sps:$4 sm:$0xff]  }
 0xa23   :  { %5290 = vmatprep.subr.bf16.mxu1 %v11201_v52  ;;  %v11255_v52 = vld [vmem:[#allocation4 + $0x24] ss:$40 sps:$4 sm:$0xff]  }
 0xa26   :  { %5291 = vmatpush1.bf16.msra.mxu1 %v11199_v8  ;;  %v11295_v8 = vld [vmem:[%s13678_s3 + $0x10] sm:$0xff]  }
 0xa27   :  { %5292 = vmatprep.subr.bf16.mxu1 %v11207_v9  ;;  %v11297_v9 = vld [vmem:[%s13678_s3 + $0x48] sm:$0xff]   ;;  %10229 = vmatpush3.bf16.msra.mxu0 %v11295_v8 }
 0xa28   :  { %10230 = vmatprep.subr.bf16.mxu0 %v11297_v9 }
 0xa2a   :  { %5293 = vmatpush1.bf16.msra.mxu1 %v11205_v14  ;;  %v11253_v14 = vld [vmem:[#allocation4 + $0x20] ss:$40 sps:$4 sm:$0xff]  }
 0xa2b   :  { %5360 = vmatprep.subr.bf16.mxu1 %v11210_v56  ;;  %v11256_v56 = vld [vmem:[%s13678_s3 + $0xf8] sm:$0xff]  }
 0xa2d   :  { %5311 = vmatmul.mubr.bf16.vlgmr.msra.gmra.mxu1 %v12539_v26 }
 0xa2e   :  { %5361 = vmatpush1.bf16.msra.mxu1 %v11208_v55  ;;  %5392 = vmatprep.mubr.bf16.mxu1 %v11818_v28  ;;  %v11299_v55 = vld [vmem:[%s13678_s3 + $0x8] sm:$0xff]  }
 0xa2f   :  { %5362 = vmatprep.subr.bf16.mxu1 %v11213_v51  ;;  %v11257_v51 = vld [vmem:[%s13678_s3 + $0xb8] sm:$0xff]   ;;  %10231 = vmatpush3.bf16.msra.mxu0 %v11299_v55 }
 0xa32   :  { %5363 = vmatpush1.bf16.msra.mxu1 %v11211_v53  ;;  %v12600_v53 = vpack.c.bf16 %v5355_v42, %v5355_v42  ;;  %v11269_v42 = vld [vmem:[%s13678_s3 + $0x88] sm:$0xff]  }
 0xa33   :  { %5364 = vmatprep.subr.bf16.mxu1 %v11216_v20  ;;  %v11258_v20 = vld [vmem:[%s13678_s3 + $0xf0] sm:$0xff]  }
 0xa36   :  { %5365 = vmatpush1.bf16.msra.mxu1 %v11214_v11  ;;  %v12606_v11 = vpop.f32.mrf.mxu0 }
 0xa37   :  { %5366 = vmatprep.subr.bf16.mxu1 %v11219_v12  ;;  %v11301_v12 = vld [vmem:[%s13678_s3 + $0x40] sm:$0xff]   ;;  %v12715_v3 = vpack.c.bf16 %v12606_v11, %v12606_v11 }
 0xa38   :  { %10232 = vmatprep.subr.bf16.mxu0 %v11301_v12 }
 0xa3a   :  { %5367 = vmatpush1.bf16.msra.mxu1 %v11217_v15  ;;  %v11259_v15 = vld [vmem:[%s13678_s3 + $0xb0] sm:$0xff]  }
 0xa3b   :  { %5368 = vmatprep.subr.bf16.mxu1 %v11222_v16  ;;  %v11303_v16 = vld [vmem:[%s13678_s3] sm:$0xff]  }
 0xa3c   :  { %10233 = vmatpush3.bf16.msra.mxu0 %v11303_v16 }
 0xa3e   :  { %5369 = vmatpush1.bf16.msra.mxu1 %v11220_v33  ;;  %v5437_v33 = vpop.f32.mrf.mxu0 }
 0xa3f   :  { %5370 = vmatprep.subr.bf16.mxu1 %v11225_v5  ;;  %v11304_v5 = vld [vmem:[%s13678_s3 + $0x178] sm:$0xff]   ;;  %v12667_v34 = vpack.c.bf16 %v5437_v33, %v5437_v33 }
 0xa40   :  { %10262 = vmatprep.subr.bf16.mxu0 %v11304_v5 }
 0xa42   :  { %5371 = vmatpush1.bf16.msra.mxu1 %v11223_v57  ;;  %v5439_v57 = vpop.f32.mrf.mxu0 }
 0xa43   :  { %5372 = vmatprep.subr.bf16.mxu1 %v11228_v35  ;;  %v11261_v35 = vld [vmem:[%s13678_s3 + $0xa8] sm:$0xff]   ;;  %v11305_v57 = vld [vmem:[%s13678_s3 + $0x138] sm:$0xff]  }
 0xa46   :  { %5373 = vmatpush1.bf16.msra.mxu1 %v11226_v43  ;;  %v11262_v43 = vld [vmem:[%s13678_s3 + $0xe0] sm:$0xff]  }
 0xa47   :  { %5374 = vmatprep.subr.bf16.mxu1 %v11231_v36  ;;  %v5440_v36 = vpop.f32.mrf.mxu0 }
 0xa4a   :  { %5375 = vmatpush1.bf16.msra.mxu1 %v11229_v37  ;;  %v11263_v37 = vld [vmem:[%s13678_s3 + $0xa0] sm:$0xff]  }
 0xa4b   :  { %5442 = vmatprep.subr.bf16.mxu1 %v11234_v19  ;;  %v11264_v19 = vld [vmem:[%s13678_s3 + $0xd8] sm:$0xff]  }
 0xa4d   :  { %5393 = vmatmul.mubr.bf16.vlgmr.msra.gmra.mxu1 %v12539_v26 }
 0xa4e   :  { %5443 = vmatpush1.bf16.msra.mxu1 %v11232_v13  ;;  %5474 = vmatprep.mubr.bf16.mxu1 %v11818_v28  ;;  %v11265_v13 = vld [vmem:[%s13678_s3 + $0x98] sm:$0xff]  }
 0xa4f   :  { %5444 = vmatprep.subr.bf16.mxu1 %v11237_v40  ;;  %v11266_v40 = vld [vmem:[%s13678_s3 + $0xd0] sm:$0xff]  }
 0xa52   :  { %5445 = vmatpush1.bf16.msra.mxu1 %v11235_v58  ;;  %v11267_v58 = vld [vmem:[%s13678_s3 + $0x90] sm:$0xff]  }
 0xa53   :  { %5446 = vmatprep.subr.bf16.mxu1 %v11240_v17  ;;  %v11268_v17 = vld [vmem:[%s13678_s3 + $0xc8] sm:$0xff]  }
 0xa56   :  { %5447 = vmatpush1.bf16.msra.mxu1 %v11238_v38  ;;  %v11272_v38 = vld [vmem:[%s13678_s3 + $0x1f8] sm:$0xff]  }
 0xa57   :  { %5448 = vmatprep.subr.bf16.mxu1 %v11243_v45  ;;  %v11274_v45 = vld [vmem:[%s13678_s3 + $0x1b8] sm:$0xff]  }
 0xa5a   :  { %5449 = vmatpush1.bf16.msra.mxu1 %v11241_v47  ;;  %v11284_v47 = vld [vmem:[%s13678_s3 + $0x1e0] sm:$0xff]  }
 0xa5b   :  { %5450 = vmatprep.subr.bf16.mxu1 %v11246_v44  ;;  %v11286_v44 = vld [vmem:[%s13678_s3 + $0x1a0] sm:$0xff]  }
 0xa5e   :  { %5451 = vmatpush1.bf16.msra.mxu1 %v11244_v31  ;;  %v11292_v31 = vld [vmem:[%s13678_s3 + $0x1d0] sm:$0xff]  }
 0xa5f   :  { %5452 = vmatprep.subr.bf16.mxu1 %v11249_v54  ;;  %v11294_v54 = vld [vmem:[%s13678_s3 + $0x190] sm:$0xff]  }
 0xa62   :  { %5453 = vmatpush1.bf16.msra.mxu1 %v11247_v27  ;;  %v11300_v27 = vld [vmem:[%s13678_s3 + $0x1c0] sm:$0xff]  }
 0xa63   :  { %5454 = vmatprep.subr.bf16.mxu1 %v11252_v22  ;;  %v11302_v22 = vld [vmem:[%s13678_s3 + $0x180] sm:$0xff]  }
 0xa66   :  { %5455 = vmatpush1.bf16.msra.mxu1 %v11250_v7  ;;  %v4738_v7 = vsub.s32 1, %v12278_v25 }
 0xa67   :  { %5456 = vmatprep.subr.bf16.mxu1 %v11255_v52  ;;  %v4735_v52 = vrot.slane %v4730_v39, %v12283_v29 }
 0xa68   :  { %v4739_v8 = vrot.slane %v4730_v39, %v4738_v7  ;;  %v11326_v39 = vld [vmem:[%s13678_s3 + $0x260] sm:$0xff]  }
 0xa6a   :  { %5457 = vmatpush1.bf16.msra.mxu1 %v11253_v14 }
 0xa6b   :  { %10240 = vmatprep.subr.bf16.mxu1 %v11256_v56 }
 0xa6d   :  { %5475 = vmatmul.mubr.bf16.vlgmr.msra.gmra.mxu1 %v12539_v26  ;;  %v11260_v26 = vld [vmem:[%s13678_s3 + $0xe8] sm:$0xff]  }
 0xa6e   :  { %10241 = vmatpush3.bf16.msra.mxu1 %v11257_v51  ;;  %6205 = vmatprep.mubr.bf16.mxu1 %v12600_v53 }
 0xa6f   :  { %10242 = vmatprep.subr.bf16.mxu1 %v11258_v20 }
 0xa72   :  { %10243 = vmatpush3.bf16.msra.mxu1 %v11259_v15 }
 0xa73   :  { %10244 = vmatprep.subr.bf16.mxu1 %v11260_v26 }
 0xa76   :  { %10245 = vmatpush3.bf16.msra.mxu1 %v11261_v35 }
 0xa77   :  { %10246 = vmatprep.subr.bf16.mxu1 %v11262_v43  ;;  %v11306_v43 = vld [vmem:[%s13678_s3 + $0x170] sm:$0xff]  }
 0xa7a   :  { %10247 = vmatpush3.bf16.msra.mxu1 %v11263_v37  ;;  %v11307_v37 = vld [vmem:[%s13678_s3 + $0x130] sm:$0xff]  }
 0xa7b   :  { %10248 = vmatprep.subr.bf16.mxu1 %v11264_v19  ;;  %v11308_v19 = vld [vmem:[%s13678_s3 + $0x168] sm:$0xff]  }
 0xa7e   :  { %10249 = vmatpush3.bf16.msra.mxu1 %v11265_v13  ;;  %v11309_v13 = vld [vmem:[%s13678_s3 + $0x128] sm:$0xff]  }
 0xa7f   :  { %10250 = vmatprep.subr.bf16.mxu1 %v11266_v40  ;;  %v11310_v40 = vld [vmem:[%s13678_s3 + $0x160] sm:$0xff]  }
 0xa82   :  { %10251 = vmatpush3.bf16.msra.mxu1 %v11267_v58  ;;  %v11311_v58 = vld [vmem:[%s13678_s3 + $0x120] sm:$0xff]  }
 0xa83   :  { %10252 = vmatprep.subr.bf16.mxu1 %v11268_v17  ;;  %v11312_v17 = vld [vmem:[%s13678_s3 + $0x158] sm:$0xff]  }
 0xa86   :  { %10253 = vmatpush3.bf16.msra.mxu1 %v11269_v42  ;;  %v11313_v42 = vld [vmem:[%s13678_s3 + $0x118] sm:$0xff]  }
 0xa87   :  { %10254 = vmatprep.subr.bf16.mxu1 %v11270_v6  ;;  %v11314_v6 = vld [vmem:[%s13678_s3 + $0x150] sm:$0xff]  }
 0xa8a   :  { %10255 = vmatpush3.bf16.msra.mxu1 %v11271_v32  ;;  %v11315_v32 = vld [vmem:[%s13678_s3 + $0x110] sm:$0xff]  }
 0xa8b   :  { %10284 = vmatprep.subr.bf16.mxu1 %v11272_v38  ;;  %v11316_v38 = vld [vmem:[%s13678_s3 + $0x148] sm:$0xff]  }
 0xa8d   :  { %6206 = vmatmul.mubr.bf16.vlgmr.msra.gmra.mxu1 %v12662_v18 }
 0xa8e   :  { %10285 = vmatpush3.bf16.msra.mxu1 %v11274_v45  ;;  %6285 = vmatprep.mubr.bf16.mxu1 %v12667_v34  ;;  %v11317_v45 = vld [vmem:[%s13678_s3 + $0x108] sm:$0xff]  }
 0xa8f   :  { %10286 = vmatprep.subr.bf16.mxu1 %v11276_v46  ;;  %v11318_v46 = vld [vmem:[%s13678_s3 + $0x140] sm:$0xff]  }
 0xa92   :  { %10287 = vmatpush3.bf16.msra.mxu1 %v11278_v10  ;;  %v11319_v10 = vld [vmem:[%s13678_s3 + $0x100] sm:$0xff]  }
 0xa93   :  { %10288 = vmatprep.subr.bf16.mxu1 %v11280_v24 }
 0xa96   :  { %10289 = vmatpush3.bf16.msra.mxu1 %v11282_v41  ;;  %v11320_v41 = vld [vmem:[%s13678_s3 + $0x278] sm:$0xff]  }
 0xa97   :  { %10290 = vmatprep.subr.bf16.mxu1 %v11284_v47 }
 0xa9a   :  { %10291 = vmatpush3.bf16.msra.mxu1 %v11286_v44 }
 0xa9b   :  { %10292 = vmatprep.subr.bf16.mxu1 %v11288_v48  ;;  %v11321_v48 = vld [vmem:[%s13678_s3 + $0x238] sm:$0xff]  }
 0xa9e   :  { %10293 = vmatpush3.bf16.msra.mxu1 %v11290_v50 }
 0xa9f   :  { %10294 = vmatprep.subr.bf16.mxu1 %v11292_v31 }
 0xaa2   :  { %10295 = vmatpush3.bf16.msra.mxu1 %v11294_v54  ;;  %v11322_v54 = vld [vmem:[%s13678_s3 + $0x270] sm:$0xff]  }
 0xaa3   :  { %10296 = vmatprep.subr.bf16.mxu1 %v11296_v21 }
 0xaa6   :  { %10297 = vmatpush3.bf16.msra.mxu1 %v11298_v49  ;;  %v11323_v49 = vld [vmem:[%s13678_s3 + $0x230] sm:$0xff]  }
 0xaa7   :  { %10298 = vmatprep.subr.bf16.mxu1 %v11300_v27  ;;  %v11324_v27 = vld [vmem:[%s13678_s3 + $0x268] sm:$0xff]  }
 0xaaa   :  { %10299 = vmatpush3.bf16.msra.mxu1 %v11302_v22  ;;  %v11325_v22 = vld [vmem:[%s13678_s3 + $0x228] sm:$0xff]  }
 0xaab   :  { %10430 = vmatprep.subr.bf16.mxu1 %v11817_v4 }
 0xaad   :  { %6286 = vmatmul.mubr.bf16.vlgmr.msra.gmra.mxu1 %v12715_v3 }
 0xaae   :  { %10432 = vmatprep.mubr.msk.bf16.mxu1 %vm11838_vm9, %v11817_v4 }
 0xacd   :  { %v4785_v9 = vpop.f32.mrf.mxu1 }
 0xace   :  { %v4786_v14 = vadd.f32 %v4785_v9, %v4735_v52  ;;  %v11327_v52 = vld [vmem:[%s13678_s3 + $0x220] sm:$0xff]   ;;  %v11329_v9 = vld [vmem:[%s13678_s3 + $0x218] sm:$0xff]  }
 0xacf   :  { %v4787_v56 = vpop.f32.mrf.mxu1 }
 0xad0   :  { %v12728_v55 = vmax.f32 %v4786_v14, 0.0  ;;  %v4788_v51 = vadd.f32 %v4787_v56, %v4739_v8  ;;  %v11328_v8 = vld [vmem:[%s13678_s3 + $0x258] sm:$0xff]   ;;  %v11330_v14 = vld [vmem:[%s13678_s3 + $0x250] sm:$0xff]  }
 0xad1   :  { %v4789_v20 = vpop.f32.mrf.mxu1  ;;  %v11331_v56 = vld [vmem:[%s13678_s3 + $0x210] sm:$0xff]  }
 0xad2   :  { %4794 = vst [vmem:[#allocation13] sm:$0x3f] %v12728_v55  ;;  %v12731_v11 = vmax.f32 %v4788_v51, 0.0  ;;  %v11332_v51 = vld [vmem:[%s13678_s3 + $0x248] sm:$0xff]  }
 0xad3   :  { %v4790_v12 = vpop.f32.mrf.mxu1  ;;  %v11333_v20 = vld [vmem:[%s13678_s3 + $0x208] sm:$0xff]  }
 0xad4   :  { %4795 = vst [vmem:[#allocation13 + $0x8] sm:$0x3f] %v12731_v11  ;;  %v11334_v12 = vld [vmem:[%s13678_s3 + $0x240] sm:$0xff]  }
 0xaed   :  { %v5312_v15 = vpop.f32.mrf.mxu1 }
 0xaee   :  { %v5483_v16 = vpack.c.bf16 %v5312_v15, %v5312_v15  ;;  %v11335_v15 = vld [vmem:[%s13678_s3 + $0x200] sm:$0xff]  }
 0xaef   :  { %v5314_v26 = vpop.f32.mrf.mxu1 }
 0xaf0   :  { %v6407_v33 = vsel %vm6405_vm15, %v5483_v16, 0  ;;  %v12735_v5 = vpack.c.bf16 %v5314_v26, %v5314_v26 }
 0xaf1   :  { %v5316_v35 = vpop.f32.mrf.mxu1  ;;  %10431 = vmatpush3.bf16.msra.mxu1 %v6407_v33 }
 0xaf2   :  { %6165 = vmatprep.mubr.bf16.mxu0 %v12735_v5  ;;  %10436 = vmatprep.subr.bf16.mxu1 %v11817_v4 }
 0xaf3   :  { %v5317_v36 = vpop.f32.mrf.mxu1  ;;  %6166 = vmatmul.mubr.bf16.vlgmr.msra.gmra.mxu0 %v5483_v16 }
 0xaf4   :  { %10263 = vmatpush3.bf16.msra.mxu0 %v11305_v57 }
 0xaf5   :  { %10264 = vmatprep.subr.bf16.mxu0 %v11306_v43  ;;  %v6749_v43 = vsel %vm6405_vm15, %v12600_v53, 0 }
 0xaf8   :  { %10265 = vmatpush3.bf16.msra.mxu0 %v11307_v37 }
 0xaf9   :  { %10266 = vmatprep.subr.bf16.mxu0 %v11308_v19 }
 0xafc   :  { %10267 = vmatpush3.bf16.msra.mxu0 %v11309_v13 }
 0xafd   :  { %10268 = vmatprep.subr.bf16.mxu0 %v11310_v40 }
 0xb00   :  { %10269 = vmatpush3.bf16.msra.mxu0 %v11311_v58 }
 0xb01   :  { %10270 = vmatprep.subr.bf16.mxu0 %v11312_v17 }
 0xb04   :  { %10271 = vmatpush3.bf16.msra.mxu0 %v11313_v42 }
 0xb05   :  { %10272 = vmatprep.subr.bf16.mxu0 %v11314_v6 }
 0xb08   :  { %10273 = vmatpush3.bf16.msra.mxu0 %v11315_v32 }
 0xb09   :  { %10274 = vmatprep.subr.bf16.mxu0 %v11316_v38 }
 0xb0c   :  { %10275 = vmatpush3.bf16.msra.mxu0 %v11317_v45 }
 0xb0d   :  { %v5394_v24 = vpop.f32.mrf.mxu1  ;;  %10276 = vmatprep.subr.bf16.mxu0 %v11318_v46 }
 0xb0e   :  { %v12792_v50 = vpack.c.bf16 %v5394_v24, %v5394_v24 }
 0xb0f   :  { %v5396_v47 = vpop.f32.mrf.mxu1 }
 0xb10   :  { %v12787_v44 = vpack.c.bf16 %v5396_v47, %v5396_v47  ;;  %10277 = vmatpush3.bf16.msra.mxu0 %v11319_v10 }
 0xb11   :  { %v5398_v31 = vpop.f32.mrf.mxu1  ;;  %10306 = vmatprep.subr.bf16.mxu0 %v11320_v41 }
 0xb12   :  { %6245 = vmatprep.mubr.bf16.mxu0 %v12787_v44 }
 0xb13   :  { %v5399_v21 = vpop.f32.mrf.mxu1  ;;  %6246 = vmatmul.mubr.bf16.vlgmr.msra.gmra.mxu0 %v12792_v50 }
 0xb14   :  { %10307 = vmatpush3.bf16.msra.mxu0 %v11321_v48 }
 0xb15   :  { %10308 = vmatprep.subr.bf16.mxu0 %v11322_v54 }
 0xb18   :  { %10309 = vmatpush3.bf16.msra.mxu0 %v11323_v49 }
 0xb19   :  { %10310 = vmatprep.subr.bf16.mxu0 %v11324_v27 }
 0xb1c   :  { %10311 = vmatpush3.bf16.msra.mxu0 %v11325_v22 }
 0xb1d   :  { %10312 = vmatprep.subr.bf16.mxu0 %v11326_v39 }
 0xb20   :  { %10313 = vmatpush3.bf16.msra.mxu0 %v11327_v52 }
 0xb21   :  { %10314 = vmatprep.subr.bf16.mxu0 %v11328_v8 }
 0xb24   :  { %10315 = vmatpush3.bf16.msra.mxu0 %v11329_v9 }
 0xb25   :  { %10316 = vmatprep.subr.bf16.mxu0 %v11330_v14 }
 0xb28   :  { %10317 = vmatpush3.bf16.msra.mxu0 %v11331_v56 }
 0xb29   :  { %10318 = vmatprep.subr.bf16.mxu0 %v11332_v51 }
 0xb2c   :  { %10319 = vmatpush3.bf16.msra.mxu0 %v11333_v20 }
 0xb2d   :  { %v5476_v16 = vpop.f32.mrf.mxu1  ;;  %10320 = vmatprep.subr.bf16.mxu0 %v11334_v12 }
 0xb2e   :  { %v12840_v57 = vpack.c.bf16 %v5476_v16, %v5476_v16 }
 0xb2f   :  { %v5478_v26 = vpop.f32.mrf.mxu1 }
 0xb30   :  { %v12838_v33 = vpack.c.bf16 %v5478_v26, %v5478_v26  ;;  %10321 = vmatpush3.bf16.msra.mxu0 %v11335_v15 }
 0xb31   :  { %v5480_v35 = vpop.f32.mrf.mxu1  ;;  %10448 = vmatprep.subr.bf16.mxu0 %v11817_v4 }
 0xb32   :  { %6325 = vmatprep.mubr.bf16.mxu0 %v12838_v33 }
 0xb33   :  { %v5481_v36 = vpop.f32.mrf.mxu1  ;;  %6326 = vmatmul.mubr.bf16.vlgmr.msra.gmra.mxu0 %v12840_v57 }
 0xb34   :  { %10449 = vmatpush3.bf16.msra.mxu0 %v6749_v43  ;;  %10450 = vmatprep.mubr.msk.bf16.mxu0 %vm11838_vm9, %v11817_v4 }
 0xb35   :  { %10460 = vmatprep.subr.bf16.mxu0 %v11817_v4 }
 0xb4d   :  { %v10256_v37 = vpop.f32.mrf.mxu1 }
 0xb4f   :  { %v10257_v19 = vpop.f32.mrf.mxu1 }
 0xb50   :  { %v10258_v13 = vadd.f32 %v10257_v19, %v10256_v37 }
 0xb51   :  { %v10259_v40 = vpop.f32.mrf.mxu1 }
 0xb53   :  { %v10260_v58 = vpop.f32.mrf.mxu1 }
 0xb6d   :  { %v10300_v17 = vpop.f32.mrf.mxu1 }
 0xb6f   :  { %v10301_v42 = vpop.f32.mrf.mxu1 }
 0xb70   :  { %v10302_v6 = vadd.f32 %v10301_v42, %v10300_v17 }
 0xb71   :  { %v10303_v32 = vpop.f32.mrf.mxu1 }
 0xb73   :  { %v10304_v38 = vpop.f32.mrf.mxu1 }
 0xbb3   :  { %v10234_v53 = vpop.f32.mrf.mxu0 }
 0xbb5   :  { %v10235_v45 = vpop.f32.mrf.mxu0 }
 0xbb6   :  { %v10236_v24 = vadd.f32 %v10235_v45, %v10234_v53 }
 0xbb7   :  { %v10237_v46 = vpop.f32.mrf.mxu0 }
 0xbb8   :  { %v6208_v48 = vadd.f32 %v10258_v13, %v10236_v24 }
 0xbb9   :  { %v10238_v10 = vpop.f32.mrf.mxu0 }
 0xbd3   :  { %v10278_v41 = vpop.f32.mrf.mxu0 }
 0xbd5   :  { %v10279_v47 = vpop.f32.mrf.mxu0 }
 0xbd6   :  { %v10280_v31 = vadd.f32 %v10279_v47, %v10278_v41 }
 0xbd7   :  { %v10281_v54 = vpop.f32.mrf.mxu0 }
 0xbd8   :  { %v6248_v21 = vadd.f32 %v10280_v31, %v6208_v48 }
 0xbd9   :  { %v10282_v49 = vpop.f32.mrf.mxu0 }
 0xbda   :  { %v6288_v27 = vadd.f32 %v10302_v6, %v6248_v21 }
 0xbf3   :  { %v10322_v22 = vpop.f32.mrf.mxu0 }
 0xbf5   :  { %v10323_v39 = vpop.f32.mrf.mxu0 }
 0xbf6   :  { %v10324_v52 = vadd.f32 %v10323_v39, %v10322_v22 }
 0xbf7   :  { %v10325_v8 = vpop.f32.mrf.mxu0 }
 0xbf8   :  { %v12850_v9 = vadd.f32 %v10324_v52, %v6288_v27 }
 0xbf9   :  { %v10326_v14 = vpop.f32.mrf.mxu0 }
 0xbfa   :  { %6450 = vrot.lane.b32.xlu1 %v12850_v9, %s11822_s4  ;;  %6334 = vrot.lane.b32.xlu0 %v12850_v9, %s11820_s10 }
 0xbfe   :  { %6678 = vrot.lane.b32.xlu1 %v12850_v9, %s11826_s0  ;;  %6370 = vperm.xlu0 %10534, %v12850_v9  }
 0xc02   :  { %6564 = vrot.lane.b32.xlu1 %v12850_v9, %s11823_s29  ;;  %10535 = vset.pattern.permute.xlu0 %v11821_v59  ;;  %s13679_s29 = sld [smem:[#allocation22_spill]] }
 0xc03   :  { %6486 = vperm.xlu0 %10535, %v12850_v9  }
 0xc06   :  { %6792 = vrot.lane.b32.xlu1 %v12850_v9, %s11827_s21 }
 0xc07   :  { %6906 = vrot.lane.b32.xlu0 %v12850_v9, %s11824_s30 }
 0xc08   :  { %10536 = vset.pattern.permute.xlu0 %v11828_v61  ;;  %v12894_v38 = vld [vmem:[%s13679_s29] sm:$0xff] }
 0xc0a   :  { %7134 = vrot.lane.b32.xlu1 %v12850_v9, %s11833_s22 }
 0xc0b   :  { %6714 = vperm.xlu0 %10536, %v12850_v9  }
 0xc0f   :  { %10537 = vset.pattern.permute.xlu0 %v11825_v60 }
 0xc10   :  { %6600 = vperm.xlu0 %10537, %v12850_v9  }
 0xc14   :  { %10538 = vset.pattern.permute.xlu0 %v11832_v63 }
 0xc15   :  { %6942 = vperm.xlu0 %10538, %v12850_v9  }
 0xc19   :  { %10539 = vset.pattern.permute.xlu0 %v11830_v62 }
 0xc1a   :  { %6828 = vperm.xlu0 %10539, %v12850_v9  }
 0xc1e   :  { %7020 = vrot.lane.b32.xlu0 %v12850_v9, %s11829_s9 }
 0xc1f   :  { %10540 = vset.pattern.permute.xlu0 %v11837_v2 }
 0xc22   :  { %7248 = vrot.lane.b32.xlu0 %v12850_v9, %s11831_s1 }
 0xc26   :  { %7398 = vperm.xlu0 %10540, %v12850_v9  }
 0xc6c   :  { %v6451_v60 = vpop.permute.xlu1 %6450  ;;  %v6335_v61 = vpop.permute.xlu0 %6334 }
 0xc6d   :  { %6453 = vxpose.xlu1.b32.start.end [1/1] (short) (narrow) %v6451_v60, 8  ;;  %6337 = vxpose.xlu0.b32.start.end [1/1] (short) (narrow) %v6335_v61, 8 }
 0xc70   :  { %v6679_v63 = vpop.permute.xlu1 %6678 }
 0xc71   :  { %6681 = vxpose.xlu1.b32.start.end [1/1] (short) (narrow) %v6679_v63, 8 }
 0xc74   :  { %v6565_v56 = vpop.permute.xlu1 %6564 }
 0xc75   :  { %6567 = vxpose.xlu0.b32.start.end [1/1] (short) (narrow) %v6565_v56, 8 }
 0xc78   :  { %v6793_v62 = vpop.permute.xlu1 %6792 }
 0xc79   :  { %6795 = vxpose.xlu0.b32.start.end [1/1] (short) (narrow) %v6793_v62, 8  ;;  %v6371_v51 = vpop.permute.xlu0 %6370 }
 0xc7c   :  { %v7135_v36 = vpop.permute.xlu1 %7134 }
 0xc7e   :  { %v6487_v20 = vpop.permute.xlu0 %6486 }
 0xc82   :  { %v6907_v12 = vpop.permute.xlu0 %6906 }
 0xc83   :  { %6909 = vxpose.xlu1.b32.start.end [1/1] (short) (narrow) %v6907_v12, 8 }
 0xc86   :  { %v6715_v2 = vpop.permute.xlu0 %6714 }
 0xc8b   :  { %v6601_v15 = vpop.permute.xlu0 %6600 }
 0xc90   :  { %v6943_v16 = vpop.permute.xlu0 %6942 }
 0xc95   :  { %v12883_v26 = vpop.permute.xlu0 %6828 }
 0xc99   :  { %v7021_v35 = vpop.permute.xlu0 %7020 }
 0xc9d   :  { %v12885_v43 = vpop.permute.xlu0 %7248 }
 0xca1   :  { %v12887_v37 = vpop.permute.xlu0 %7398 }
 0xce9   :  { %v6469_v19 = vpop.trf.xlu1  ;;  %v6353_v13 = vpop.trf.xlu0 }
 0xcea   :  { %v6492_v40 = vrot.slane %v6469_v19, %v12283_v29  ;;  %v6376_v58 = vrot.slane %v6353_v13, %v12283_v29 }
 0xcec   :  { %v6493_v17 = vadd.f32 %v6492_v40, %v6487_v20  ;;  %v6377_v42 = vadd.f32 %v6376_v58, %v6371_v51 }
 0xced   :  { %v6697_v27 = vpop.trf.xlu1 }
 0xcee   :  { %v6495_v6 = vmul.f32 0.2, %v6493_v17  ;;  %v6379_v32 = vmul.f32 0.2, %v6377_v42  ;;  %vm6494_vm0 = vcmp.ge.f32.partialorder %v6493_v17, 0.0  ;;  %vm6378_vm1 = vcmp.ge.f32.partialorder %v6377_v42, 0.0 }
 0xcef   :  { %v6720_v56 = vrot.slane %v6697_v27, %v12283_v29 }
 0xcf0   :  { %v6496_v53 = vsel %vm6494_vm0, %v6493_v17, %v6495_v6  ;;  %v6380_v45 = vsel %vm6378_vm1, %v6377_v42, %v6379_v32 }
 0xcf1   :  { %v6583_v46 = vpop.trf.xlu0  ;;  %v6497_v10 = vadd.f32 %v6496_v53, %v12894_v38  ;;  %v6381_v24 = vadd.f32 %v6380_v45, %v12894_v38  ;;  %v6721_v62 = vadd.f32 %v6720_v56, %v6715_v2 }
 0xcf2   :  { %v6606_v41 = vrot.slane %v6583_v46, %v12283_v29 }
 0xcf3   :  { %v6498_v47 = vsel %vm6382_vm2, %v6497_v10, -inf  ;;  %v6383_v48 = vsel %vm6382_vm2, %v6381_v24, -inf  ;;  %v6723_v51 = vmul.f32 0.2, %v6721_v62  ;;  %vm6722_vm5 = vcmp.ge.f32.partialorder %v6721_v62, 0.0 }
 0xcf4   :  { %v6607_v31 = vadd.f32 %v6606_v41, %v6601_v15  ;;  %6499 = vmax.xlane.f32.xlu0 %v6498_v47  ;;  %6384 = vmax.xlane.f32.xlu1 %v6383_v48 }
 0xcf5   :  { %v6724_v20 = vsel %vm6722_vm5, %v6721_v62, %v6723_v51 }
 0xcf6   :  { %v6609_v54 = vmul.f32 0.2, %v6607_v31  ;;  %vm6608_vm3 = vcmp.ge.f32.partialorder %v6607_v31, 0.0  ;;  %v12922_v12 = vadd.f32 %v6724_v20, %v12894_v38 }
 0xcf8   :  { %v6610_v21 = vsel %vm6608_vm3, %v6607_v31, %v6609_v54 }
 0xcf9   :  { %v12902_v49 = vadd.f32 %v6610_v21, %v12894_v38 }
 0xcfb   :  { %v6612_v22 = vsel %vm6382_vm2, %v12902_v49, -inf }
 0xcfc   :  { %6613 = vmax.xlane.f32.xlu0 %v6612_v22 }
 0xcff   :  { %v6925_v39 = vpop.trf.xlu1 }
 0xd00   :  { %v6948_v52 = vrot.slane %v6925_v39, %v12283_v29 }
 0xd02   :  { %v6949_v8 = vadd.f32 %v6948_v52, %v6943_v16 }
 0xd04   :  { %v6951_v14 = vmul.f32 0.2, %v6949_v8  ;;  %vm6950_vm4 = vcmp.ge.f32.partialorder %v6949_v8, 0.0 }
 0xd06   :  { %v6952_v60 = vsel %vm6950_vm4, %v6949_v8, %v6951_v14 }
 0xd07   :  { %v12908_v61 = vadd.f32 %v6952_v60, %v12894_v38 }
 0xd09   :  { %v6954_v63 = vsel %vm6382_vm2, %v12908_v61, -inf }
 0xd0a   :  { %6955 = vmax.xlane.f32.xlu0 %v6954_v63 }
 0xd27   :  { %7023 = vxpose.xlu1.b32.start.end [1/1] (short) (narrow) %v7021_v35, 8 }
 0xd37   :  { %7137 = vxpose.xlu0.b32.start.end [1/1] (short) (narrow) %v7135_v36, 8 }
 0xd45   :  { %7362 = vrot.lane.b32.xlu1 %v12850_v9, %s11835_s23  ;;  %s13680_s23 = sld [smem:[#allocation21_spill]] }
 0xd46   :  { %10541 = vset.pattern.permute.xlu1 %v11836_v1  ;;  %v6726_v1 = vsel %vm6382_vm2, %v12922_v12, -inf }
 0xd49   :  { %7170 = vperm.xlu1 %10541, %v12850_v9  }
 0xd4d   :  { %10542 = vset.pattern.permute.xlu1 %v11834_v0  ;;  %v6811_v0 = vpop.trf.xlu0 }
 0xd4e   :  { %7056 = vperm.xlu1 %10542, %v12850_v9   ;;  %v6834_v58 = vrot.slane %v6811_v0, %v12283_v29  ;;  %v6521_v0 = vsel %vm6405_vm15, %v12735_v5, 0 }
 0xd50   :  { %v6835_v42 = vadd.f32 %v6834_v58, %v12883_v26 }
 0xd52   :  { %10543 = vset.pattern.permute.xlu1 %v11819_v30  ;;  %v6837_v6 = vmul.f32 0.2, %v6835_v42  ;;  %vm6836_vm6 = vcmp.ge.f32.partialorder %v6835_v42, 0.0 }
 0xd54   :  { %v6838_v32 = vsel %vm6836_vm6, %v6835_v42, %v6837_v6 }
 0xd55   :  { %v12932_v53 = vadd.f32 %v6838_v32, %v12894_v38 }
 0xd60   :  { %10545 = vset.pattern.permute.xlu0 %v11818_v28 }
 0xd72   :  { %6727 = vmax.xlane.f32.xlu1 %v6726_v1 }
 0xd7d   :  { %v6385_v15 = vpop.xlane.xlu1 %6384  ;;  %v6500_v16 = vpop.xlane.xlu0 %6499 }
 0xd7e   :  { %v6386_v35 = vsub.f32 %v6381_v24, %v6385_v15  ;;  %v6501_v30 = vsub.f32 %v6497_v10, %v6500_v16 }
 0xd80   :  { %v6387_v36 = vmul.f32 1.442695, %v6386_v35  ;;  %v6502_v19 = vmul.f32 1.442695, %v6501_v30  ;;  %v6635_v35 = vsel %vm6405_vm15, %v12662_v18, 0 }
 0xd82   :  { %11636 = vpow2.f32 %v6387_v36 }
 0xd83   :  { %7284 = vperm.xlu1 %10543, %v12850_v9   ;;  %11638 = vpow2.f32 %v6502_v19  ;;  %v6840_v9 = vsel %vm6382_vm2, %v12932_v53, -inf }
 0xd85   :  { %v6614_v21 = vpop.xlane.xlu0 %6613 }
 0xd8f   :  { %v11637_v2 = vpop.eup %11636 }
 0xd90   :  { %v6389_v13 = vsel %vm6382_vm2, %v11637_v2, 0.0  ;;  %v11639_v40 = vpop.eup %11638 }
 0xd91   :  { %6390 = vadd.xlane.f32.xlu0 %v6389_v13  ;;  %v6504_v17 = vsel %vm6382_vm2, %v11639_v40, 0.0 }
 0xd93   :  { %v6956_v27 = vpop.xlane.xlu0 %6955 }
 0xd95   :  { %6505 = vadd.xlane.f32.xlu0 %v6504_v17  ;;  %v6957_v17 = vsub.f32 %v12908_v61, %v6956_v27 }
 0xda3   :  { %v7039_v45 = vpop.trf.xlu1 }
 0xda4   :  { %v7062_v24 = vrot.slane %v7039_v45, %v12283_v29 }
 0xda7   :  { %6841 = vmax.xlane.f32.xlu1 %v6840_v9 }
 0xdb3   :  { %v7153_v22 = vpop.trf.xlu0 }
 0xdb4   :  { %v7176_v39 = vrot.slane %v7153_v22, %v12283_v29 }
 0xdb7   :  { %v7363_v46 = vpop.permute.xlu1 %7362 }
 0xdc4   :  { %v7171_v10 = vpop.permute.xlu1 %7170 }
 0xdc5   :  { %v7177_v52 = vadd.f32 %v7176_v39, %v7171_v10 }
 0xdc7   :  { %v7179_v8 = vmul.f32 0.2, %v7177_v52  ;;  %vm7178_vm8 = vcmp.ge.f32.partialorder %v7177_v52, 0.0 }
 0xdc9   :  { %v7057_v41 = vpop.permute.xlu1 %7056  ;;  %v7180_v14 = vsel %vm7178_vm8, %v7177_v52, %v7179_v8 }
 0xdca   :  { %v7063_v47 = vadd.f32 %v7062_v24, %v7057_v41  ;;  %v12946_v60 = vadd.f32 %v7180_v14, %v12894_v38 }
 0xdcc   :  { %vm7064_vm7 = vcmp.ge.f32.partialorder %v7063_v47, 0.0  ;;  %v7065_v48 = vmul.f32 0.2, %v7063_v47  ;;  %v7182_v63 = vsel %vm6382_vm2, %v12946_v60, -inf }
 0xdce   :  { %v7066_v26 = vsel %vm7064_vm7, %v7063_v47, %v7065_v48 }
 0xdcf   :  { %v12938_v31 = vadd.f32 %v7066_v26, %v12894_v38 }
 0xdd1   :  { %v7068_v54 = vsel %vm6382_vm2, %v12938_v31, -inf }
 0xdd2   :  { %7069 = vmax.xlane.f32.xlu0 %v7068_v54 }
 0xdda   :  { %7365 = vxpose.xlu1.b32.start.end [1/1] (short) (narrow) %v7363_v46, 8 }
 0xdde   :  { %7251 = vxpose.xlu1.b32.start.end [1/1] (short) (narrow) %v12885_v43, 8 }
 0xdfb   :  { %v6728_v5 = vpop.xlane.xlu1 %6727 }
 0xdfc   :  { %10544 = vset.pattern.permute.xlu1 %v11818_v28  ;;  %v6729_v36 = vsub.f32 %v12922_v12, %v6728_v5  ;;  %v6958_v12 = vmul.f32 1.442695, %v6957_v17 }
 0xdfe   :  { %v6730_v13 = vmul.f32 1.442695, %v6729_v36 }
 0xdff   :  { %v7285_v30 = vpop.permute.xlu1 %7284 }
 0xe05   :  { %7183 = vmax.xlane.f32.xlu1 %v7182_v63 }
 0xe1a   :  { %v6391_v56 = vpop.xlane.xlu0 %6390 }
 0xe1b   :  { %11640 = vrcp.f32 %v6391_v56 }
 0xe1e   :  { %v6506_v43 = vpop.xlane.xlu0 %6505 }
 0xe1f   :  { %11642 = vrcp.f32 %v6506_v43 }
 0xe20   :  { %11644 = vpow2.f32 %v6730_v13 }
 0xe28   :  { %v11641_v62 = vpop.eup %11640 }
 0xe29   :  { %v6393_v51 = vmul.f32 %v11641_v62, %v11637_v2  ;;  %v6615_v2 = vsub.f32 %v12902_v49, %v6614_v21 }
 0xe2b   :  { %v6394_v20 = vpack.c.bf16 %v6393_v51, %v6393_v51  ;;  %v6616_v18 = vmul.f32 1.442695, %v6615_v2 }
 0xe2c   :  { %v11643_v1 = vpop.eup %11642 }
 0xe2d   :  { %10433 = vmatmul.mubr.msk.bf16.vlgmr.msra.gmra.mxu1 %vm6382_vm2, %v6394_v20  ;;  %v6508_v15 = vmul.f32 %v11643_v1, %v11639_v40  ;;  %11646 = vpow2.f32 %v6616_v18  ;;  %v11645_v26 = vpop.eup %11644 }
 0xe2e   :  { %10437 = vmatpush3.bf16.msra.mxu1 %v6521_v0  ;;  %10438 = vmatprep.mubr.msk.bf16.mxu1 %vm11838_vm9, %v11817_v4  ;;  %11648 = vpow2.f32 %v6958_v12 }
 0xe2f   :  { %10442 = vmatprep.subr.bf16.mxu1 %v11817_v4  ;;  %v6509_v16 = vpack.c.bf16 %v6508_v15, %v6508_v15 }
 0xe30   :  { %v6842_v19 = vpop.xlane.xlu1 %6841 }
 0xe31   :  { %v6843_v45 = vsub.f32 %v12932_v53, %v6842_v19  ;;  %v6732_v53 = vsel %vm6382_vm2, %v11645_v26, 0.0 }
 0xe33   :  { %v6844_v61 = vmul.f32 1.442695, %v6843_v45 }
 0xe35   :  { %10439 = vmatmul.mubr.msk.bf16.vlgmr.msra.gmra.mxu1 %vm6382_vm2, %v6509_v16  ;;  %11650 = vpow2.f32 %v6844_v61 }
 0xe36   :  { %10443 = vmatpush3.bf16.msra.mxu1 %v6635_v35  ;;  %10444 = vmatprep.mubr.msk.bf16.mxu1 %vm11838_vm9, %v11817_v4 }
 0xe37   :  { %10454 = vmatprep.subr.bf16.mxu1 %v11817_v4 }
 0xe3a   :  { %v11647_v54 = vpop.eup %11646 }
 0xe3b   :  { %v6618_v21 = vsel %vm6382_vm2, %v11647_v54, 0.0  ;;  %v12975_v27 = vpop.eup %11648 }
 0xe3c   :  { %v6960_v22 = vsel %vm6382_vm2, %v12975_v27, 0.0 }
 0xe42   :  { %v12979_v39 = vpop.eup %11650 }
 0xe56   :  { %v7381_v40 = vpop.trf.xlu1 }
 0xe57   :  { %v7404_v58 = vrot.slane %v7381_v40, %v12283_v29 }
 0xe59   :  { %v7405_v42 = vadd.f32 %v7404_v58, %v12887_v37 }
 0xe5a   :  { %v7267_v6 = vpop.trf.xlu1 }
 0xe5b   :  { %v7407_v32 = vmul.f32 0.2, %v7405_v42  ;;  %v7290_v9 = vrot.slane %v7267_v6, %v12283_v29  ;;  %vm7406_vm10 = vcmp.ge.f32.partialorder %v7405_v42, 0.0  ;;  %v7070_v52 = vpop.xlane.xlu0 %7069 }
 0xe5c   :  { %v7071_v8 = vsub.f32 %v12938_v31, %v7070_v52 }
 0xe5d   :  { %v7291_v49 = vadd.f32 %v7290_v9, %v7285_v30  ;;  %v7408_v46 = vsel %vm7406_vm10, %v7405_v42, %v7407_v32 }
 0xe5e   :  { %v7409_v10 = vadd.f32 %v7408_v46, %v12894_v38  ;;  %v7072_v56 = vmul.f32 1.442695, %v7071_v8 }
 0xe5f   :  { %v7293_v24 = vmul.f32 0.2, %v7291_v49  ;;  %vm7292_vm11 = vcmp.ge.f32.partialorder %v7291_v49, 0.0 }
 0xe60   :  { %v7410_v41 = vsel %vm6382_vm2, %v7409_v10, -inf }
 0xe61   :  { %7411 = vmax.xlane.f32.xlu0 %v7410_v41  ;;  %v7294_v37 = vsel %vm7292_vm11, %v7291_v49, %v7293_v24  ;;  %v6977_v41 = vsel %vm6405_vm15, %v12787_v44, 0 }
 0xe62   :  { %v7295_v47 = vadd.f32 %v7294_v37, %v12894_v38  ;;  %v6846_v38 = vsel %vm6382_vm2, %v12979_v39, 0.0 }
 0xe64   :  { %v7296_v48 = vsel %vm6382_vm2, %v7295_v47, -inf }
 0xe65   :  { %7297 = vmax.xlane.f32.xlu0 %v7296_v48  ;;  %v6863_v48 = vsel %vm6405_vm15, %v12792_v50, 0 }
 0xe69   :  { %6733 = vadd.xlane.f32.xlu0 %v6732_v53 }
 0xe6d   :  { %6619 = vadd.xlane.f32.xlu0 %v6618_v21  ;;  %v7205_v21 = vsel %vm6405_vm15, %v12667_v34, 0 }
 0xe71   :  { %6961 = vadd.xlane.f32.xlu0 %v6960_v22 }
 0xe75   :  { %6847 = vadd.xlane.f32.xlu0 %v6846_v38 }
 0xe8e   :  { %v7184_v14 = vpop.xlane.xlu1 %7183 }
 0xe8f   :  { %v7185_v63 = vsub.f32 %v12946_v60, %v7184_v14  ;;  %v7433_v14 = vsel %vm6405_vm15, %v12838_v33, 0 }
 0xe91   :  { %v7186_v43 = vmul.f32 1.442695, %v7185_v63 }
 0xe93   :  { %11652 = vpow2.f32 %v7186_v43  ;;  %v11341_v43 = vld [vmem:[%s13652_s5 + $0x74] ss:$8 sps:$4 sm:$0xff]  }
 0xe94   :  { %11654 = vpow2.f32 %v7072_v56 }
 0xea0   :  { %v12985_v62 = vpop.eup %11652 }
 0xea1   :  { %v7188_v51 = vsel %vm6382_vm2, %v12985_v62, 0.0  ;;  %v12989_v20 = vpop.eup %11654 }
 0xea2   :  { %7189 = vadd.xlane.f32.xlu0 %v7188_v51  ;;  %v7074_v1 = vsel %vm6382_vm2, %v12989_v20, 0.0 }
 0xea6   :  { %7075 = vadd.xlane.f32.xlu0 %v7074_v1 }
 0xeea   :  { %v7412_v31 = vpop.xlane.xlu0 %7411 }
 0xeeb   :  { %v7413_v0 = vsub.f32 %v7409_v10, %v7412_v31 }
 0xeed   :  { %v7414_v15 = vmul.f32 1.442695, %v7413_v0  ;;  %v12993_v60 = vpop.f32.mrf.mxu1  ;;  %v11336_v0 = vld [vmem:[%s13652_s5 + $0x170] ss:$8 sps:$4 sm:$0xff]  }
 0xeee   :  { %v7298_v16 = vpop.xlane.xlu0 %7297 }
 0xeef   :  { %11656 = vpow2.f32 %v7414_v15  ;;  %v7299_v35 = vsub.f32 %v7295_v47, %v7298_v16  ;;  %v10434_v5 = vpop.f32.mrf.mxu1 }
 0xef1   :  { %v7300_v30 = vmul.f32 1.442695, %v7299_v35  ;;  %v6446_v36 = vpop.f32.mrf.mxu1 }
 0xef2   :  { %v6734_v19 = vpop.xlane.xlu0 %6733  ;;  %v11342_v36 = vld [vmem:[%s13652_s5 + $0x160] ss:$8 sps:$4 sm:$0xff]  }
 0xef3   :  { %11658 = vpow2.f32 %v7300_v30  ;;  %v10435_v2 = vpop.f32.mrf.mxu1  ;;  %v11339_v30 = vld [vmem:[%s13652_s5 + $0x70] ss:$8 sps:$4 sm:$0xff]  }
 0xef4   :  { %11660 = vrcp.f32 %v6734_v19  ;;  %v11347_v2 = vld [vmem:[%s13652_s5 + $0x64] ss:$8 sps:$4 sm:$0xff]  }
 0xef5   :  { %v12995_v13 = vpop.f32.mrf.mxu1 }
 0xef6   :  { %v6620_v40 = vpop.xlane.xlu0 %6619 }
 0xef7   :  { %11662 = vrcp.f32 %v6620_v40  ;;  %v10440_v58 = vpop.f32.mrf.mxu1 }
 0xef8   :  { %v11345_v58 = vld [vmem:[%s13652_s5 + $0x60] ss:$8 sps:$4 sm:$0xff]  }
 0xef9   :  { %v6560_v18 = vpop.f32.mrf.mxu1 }
 0xefa   :  { %v6962_v17 = vpop.xlane.xlu0 %6961  ;;  %v11348_v18 = vld [vmem:[%s13652_s5 + $0x150] ss:$8 sps:$4 sm:$0xff]  }
 0xefb   :  { %11664 = vrcp.f32 %v6962_v17  ;;  %v10441_v42 = vpop.f32.mrf.mxu1  ;;  %v11353_v17 = vld [vmem:[%s13652_s5 + $0x54] ss:$8 sps:$4 sm:$0xff]  }
 0xefc   :  { %v12997_v6 = vpop.eup %11656  ;;  %v11356_v42 = vld [vmem:[%s13652_s5 + $0x144] ss:$8 sps:$4 sm:$0xff]  }
 0xefd   :  { %v7416_v32 = vsel %vm6382_vm2, %v12997_v6, 0.0 }
 0xefe   :  { %7417 = vadd.xlane.f32.xlu0 %v7416_v32  ;;  %v6848_v9 = vpop.xlane.xlu0 %6847  ;;  %v11354_v32 = vld [vmem:[%s13652_s5 + $0x140] ss:$8 sps:$4 sm:$0xff]  }
 0xeff   :  { %11666 = vrcp.f32 %v6848_v9  ;;  %v11359_v9 = vld [vmem:[%s13652_s5 + $0x44] ss:$8 sps:$4 sm:$0xff]  }
 0xf00   :  { %v13001_v12 = vpop.eup %11658 }
 0xf01   :  { %v11661_v45 = vpop.eup %11660  ;;  %v7302_v49 = vsel %vm6382_vm2, %v13001_v12, 0.0 }
 0xf02   :  { %7303 = vadd.xlane.f32.xlu1 %v7302_v49  ;;  %v6736_v46 = vmul.f32 %v11661_v45, %v11645_v26  ;;  %v11357_v45 = vld [vmem:[%s13652_s5 + $0x40] ss:$8 sps:$4 sm:$0xff]   ;;  %v11360_v49 = vld [vmem:[%s13652_s5 + $0x130] ss:$8 sps:$4 sm:$0xff]  }
 0xf04   :  { %v11663_v10 = vpop.eup %11662  ;;  %v6737_v24 = vpack.c.bf16 %v6736_v46, %v6736_v46  ;;  %v11365_v46 = vld [vmem:[%s13652_s5 + $0x34] ss:$8 sps:$4 sm:$0xff]  }
 0xf05   :  { %v6622_v61 = vmul.f32 %v11663_v10, %v11647_v54  ;;  %v11368_v10 = vld [vmem:[%s13652_s5 + $0x124] ss:$8 sps:$4 sm:$0xff]  }
 0xf06   :  { %10451 = vmatmul.mubr.msk.bf16.vlgmr.msra.gmra.mxu0 %vm6382_vm2, %v6737_v24  ;;  %v11363_v24 = vld [vmem:[%s13652_s5 + $0x30] ss:$8 sps:$4 sm:$0xff]  }
 0xf07   :  { %10461 = vmatpush3.bf16.msra.mxu0 %v6977_v41  ;;  %v6623_v37 = vpack.c.bf16 %v6622_v61, %v6622_v61  ;;  %10462 = vmatprep.mubr.msk.bf16.mxu0 %vm11838_vm9, %v11817_v4  ;;  %v11366_v61 = vld [vmem:[%s13652_s5 + $0x120] ss:$8 sps:$4 sm:$0xff]   ;;  %v11371_v41 = vld [vmem:[%s13652_s5 + $0x24] ss:$8 sps:$4 sm:$0xff]  }
 0xf08   :  { %v11665_v47 = vpop.eup %11664  ;;  %10472 = vmatprep.subr.bf16.mxu0 %v11817_v4 }
 0xf09   :  { %10445 = vmatmul.mubr.msk.bf16.vlgmr.msra.gmra.mxu1 %vm6382_vm2, %v6623_v37  ;;  %v6964_v26 = vmul.f32 %v11665_v47, %v12975_v27  ;;  %v7091_v27 = vsel %vm6405_vm15, %v12715_v3, 0  ;;  %v11338_v3 = vld [vmem:[%s13652_s5 + $0x174] ss:$8 sps:$4 sm:$0xff]   ;;  %v11369_v47 = vld [vmem:[%s13652_s5 + $0x20] ss:$8 sps:$4 sm:$0xff]  }
 0xf0a   :  { %10455 = vmatpush3.bf16.msra.mxu1 %v6863_v48  ;;  %10456 = vmatprep.mubr.msk.bf16.mxu1 %vm11838_vm9, %v11817_v4  ;;  %v11374_v37 = vld [vmem:[%s13652_s5 + $0x114] ss:$8 sps:$4 sm:$0xff]   ;;  %v11372_v48 = vld [vmem:[%s13652_s5 + $0x110] ss:$8 sps:$4 sm:$0xff]  }
 0xf0b   :  { %v6965_v44 = vpack.c.bf16 %v6964_v26, %v6964_v26  ;;  %10466 = vmatprep.subr.bf16.mxu1 %v11817_v4  ;;  %v11377_v26 = vld [vmem:[%s13652_s5 + $0x14] ss:$8 sps:$4 sm:$0xff]  }
 0xf0c   :  { %v11667_v53 = vpop.eup %11666 }
 0xf0d   :  { %v6850_v54 = vmul.f32 %v11667_v53, %v12979_v39  ;;  %v11375_v53 = vld [vmem:[%s13652_s5 + $0x10] ss:$8 sps:$4 sm:$0xff]  }
 0xf0e   :  { %10463 = vmatmul.mubr.msk.bf16.vlgmr.msra.gmra.mxu0 %vm6382_vm2, %v6965_v44  ;;  %v11380_v44 = vld [vmem:[%s13652_s5 + $0x104] ss:$8 sps:$4 sm:$0xff]  }
 0xf0f   :  { %10473 = vmatpush3.bf16.msra.mxu0 %v7205_v21  ;;  %v6851_v50 = vpack.c.bf16 %v6850_v54, %v6850_v54  ;;  %10474 = vmatprep.mubr.msk.bf16.mxu0 %vm11838_vm9, %v11817_v4  ;;  %v11378_v54 = vld [vmem:[%s13652_s5 + $0x100] ss:$8 sps:$4 sm:$0xff]   ;;  %v11383_v21 = vld [vmem:[%s13652_s5 + $0x4] ss:$8 sps:$4 sm:$0xff]  }
 0xf10   :  { %10484 = vmatprep.subr.bf16.mxu0 %v11817_v4 }
 0xf11   :  { %10457 = vmatmul.mubr.msk.bf16.vlgmr.msra.gmra.mxu1 %vm6382_vm2, %v6851_v50  ;;  %v11386_v50 = vld [vmem:[%s13652_s5 + $0x1f4] ss:$8 sps:$4 sm:$0xff]  }
 0xf12   :  { %10467 = vmatpush3.bf16.msra.mxu1 %v7091_v27  ;;  %10468 = vmatprep.mubr.msk.bf16.mxu1 %vm11838_vm9, %v11817_v4  ;;  %v11381_v27 = vld [vmem:[%s13652_s5] ss:$8 sps:$4 sm:$0xff]  }
 0xf13   :  { %10478 = vmatprep.subr.bf16.mxu1 %v11817_v4 }
 0xf2b   :  { %v7190_v34 = vpop.xlane.xlu0 %7189 }
 0xf2c   :  { %11668 = vrcp.f32 %v7190_v34  ;;  %v11384_v34 = vld [vmem:[%s13652_s5 + $0x1f0] ss:$8 sps:$4 sm:$0xff]  }
 0xf2f   :  { %v7076_v22 = vpop.xlane.xlu0 %7075 }
 0xf30   :  { %11670 = vrcp.f32 %v7076_v22  ;;  %v11389_v22 = vld [vmem:[%s13652_s5 + $0xf4] ss:$8 sps:$4 sm:$0xff]  }
 0xf39   :  { %v11669_v39 = vpop.eup %11668 }
 0xf3a   :  { %v7192_v38 = vmul.f32 %v11669_v39, %v12985_v62  ;;  %v7319_v62 = vsel %vm6405_vm15, %v12840_v57, 0  ;;  %v11392_v39 = vld [vmem:[%s13652_s5 + $0x1e4] ss:$8 sps:$4 sm:$0xff]  }
 0xf3c   :  { %v7193_v52 = vpack.c.bf16 %v7192_v38, %v7192_v38  ;;  %v11387_v38 = vld [vmem:[%s13652_s5 + $0xf0] ss:$8 sps:$4 sm:$0xff]  }
 0xf3d   :  { %v11671_v8 = vpop.eup %11670 }
 0xf3e   :  { %10475 = vmatmul.mubr.msk.bf16.vlgmr.msra.gmra.mxu0 %vm6382_vm2, %v7193_v52  ;;  %v7078_v63 = vmul.f32 %v11671_v8, %v12989_v20  ;;  %v9821_v20 = vld [vmem:[%s13680_s23 + $0x1] ss:$0 sm:$0xff]  ;;  %v11398_v8 = vld [vmem:[%s13652_s5 + $0x1d4] ss:$8 sps:$4 sm:$0xff]  }
 0xf3f   :  { %10485 = vmatpush3.bf16.msra.mxu0 %v7433_v14  ;;  %10486 = vmatprep.mubr.msk.bf16.mxu0 %vm11838_vm9, %v11817_v4  ;;  %v6558_v31 = vadd.f32 %v9821_v20, %v12995_v13  ;;  %v11350_v13 = vld [vmem:[%s13652_s5 + $0x154] ss:$8 sps:$4 sm:$0xff]   ;;  %v11390_v52 = vld [vmem:[%s13652_s5 + $0x1e0] ss:$8 sps:$4 sm:$0xff]   ;;  %v11407_v20 = vld [vmem:[%s13652_s5 + $0xc4] ss:$8 sps:$4 sm:$0xff]  }
 0xf40   :  { %v7079_v56 = vpack.c.bf16 %v7078_v63, %v7078_v63  ;;  %8537 = vmatprep.subr.bf16.mxu0 %v11338_v3  ;;  %v11395_v3 = vld [vmem:[%s13652_s5 + $0xe4] ss:$8 sps:$4 sm:$0xff]   ;;  %v11393_v14 = vld [vmem:[%s13652_s5 + $0xe0] ss:$8 sps:$4 sm:$0xff]   ;;  %v11396_v63 = vld [vmem:[%s13652_s5 + $0x1d0] ss:$8 sps:$4 sm:$0xff]  }
 0xf41   :  { %v6563_v35 = vmax.f32 %v6558_v31, 0.0 }
 0xf42   :  { %10469 = vmatmul.mubr.msk.bf16.vlgmr.msra.gmra.mxu1 %vm6382_vm2, %v7079_v56  ;;  %v11401_v56 = vld [vmem:[%s13652_s5 + $0xd4] ss:$8 sps:$4 sm:$0xff]  }
 0xf43   :  { %10479 = vmatpush3.bf16.msra.mxu1 %v7319_v62  ;;  %10480 = vmatprep.mubr.msk.bf16.mxu1 %vm11838_vm9, %v11817_v4  ;;  %v11344_v4 = vld [vmem:[%s13652_s5 + $0x164] ss:$8 sps:$4 sm:$0xff]   ;;  %v10057_v40 = vpack.c.bf16 %v6563_v35, %v6563_v35  ;;  %v11399_v62 = vld [vmem:[%s13652_s5 + $0xd0] ss:$8 sps:$4 sm:$0xff]  }
 0xf44   :  { %8496 = vmatprep.subr.bf16.mxu1 %v11341_v43  ;;  %v11404_v43 = vld [vmem:[%s13652_s5 + $0x1c4] ss:$8 sps:$4 sm:$0xff]  }
 0xf45   :  { %v11416_v35 = vld [vmem:[%s13652_s5 + $0x1a4] ss:$8 sps:$4 sm:$0xff]  }
 0xf87   :  { %v7418_v33 = vpop.xlane.xlu0 %7417 }
 0xf88   :  { %11672 = vrcp.f32 %v7418_v33  ;;  %v11402_v33 = vld [vmem:[%s13652_s5 + $0x1c0] ss:$8 sps:$4 sm:$0xff]  }
 0xf8b   :  { %v7304_v51 = vpop.xlane.xlu1 %7303 }
 0xf8c   :  { %11674 = vrcp.f32 %v7304_v51  ;;  %v9825_v51 = vld [vmem:[%s13680_s23 + $0x3] ss:$0 sm:$0xff] }
 0xf95   :  { %v11673_v1 = vpop.eup %11672 }
 0xf96   :  { %v7420_v57 = vmul.f32 %v11673_v1, %v12997_v6  ;;  %v11351_v6 = vld [vmem:[%s13652_s5 + $0x50] ss:$8 sps:$4 sm:$0xff]   ;;  %v11410_v1 = vld [vmem:[%s13652_s5 + $0x1b4] ss:$8 sps:$4 sm:$0xff]  }
 0xf98   :  { %v7421_v15 = vpack.c.bf16 %v7420_v57, %v7420_v57 }
 0xf99   :  { %v11675_v16 = vpop.eup %11674 }
 0xf9a   :  { %10487 = vmatmul.mubr.msk.bf16.vlgmr.msra.gmra.mxu0 %vm6382_vm2, %v7421_v15  ;;  %v7306_v5 = vmul.f32 %v11675_v16, %v13001_v12  ;;  %v11362_v12 = vld [vmem:[%s13652_s5 + $0x134] ss:$8 sps:$4 sm:$0xff]   ;;  %v11408_v15 = vld [vmem:[%s13652_s5 + $0x1b0] ss:$8 sps:$4 sm:$0xff]  }
 0xf9b   :  { %8538 = vmatpush1.bf16.msra.mxu0 %v11336_v0  ;;  %v11405_v0 = vld [vmem:[%s13652_s5 + $0xc0] ss:$8 sps:$4 sm:$0xff]   ;;  %v11413_v16 = vld [vmem:[%s13652_s5 + $0xb4] ss:$8 sps:$4 sm:$0xff]  }
 0xf9c   :  { %8539 = vmatprep.subr.bf16.mxu0 %v11344_v4  ;;  %v7307_v19 = vpack.c.bf16 %v7306_v5, %v7306_v5 }
 0xf9e   :  { %10481 = vmatmul.mubr.msk.bf16.vlgmr.msra.gmra.mxu1 %vm6382_vm2, %v7307_v19 }
 0xf9f   :  { %8497 = vmatpush1.bf16.msra.mxu1 %v11339_v30  ;;  %8540 = vmatpush1.bf16.msra.mxu0 %v11342_v36 }
 0xfa0   :  { %8528 = vmatprep.mubr.bf16.mxu1 %v10057_v40  ;;  %8498 = vmatprep.subr.bf16.mxu1 %v11347_v2  ;;  %v11414_v40 = vld [vmem:[%s13652_s5 + $0x1a0] ss:$8 sps:$4 sm:$0xff]  }
 0xfa1   :  { %8541 = vmatprep.subr.bf16.mxu0 %v11350_v13  ;;  %v11411_v13 = vld [vmem:[%s13652_s5 + $0xb0] ss:$8 sps:$4 sm:$0xff]  }
 0xfa3   :  { %8499 = vmatpush1.bf16.msra.mxu1 %v11345_v58  ;;  %8542 = vmatpush1.bf16.msra.mxu0 %v11348_v18  ;;  %v11419_v18 = vld [vmem:[%s13652_s5 + $0xa4] ss:$8 sps:$4 sm:$0xff]  }
 0xfa4   :  { %8500 = vmatprep.subr.bf16.mxu1 %v11353_v17  ;;  %8543 = vmatprep.subr.bf16.mxu0 %v11356_v42  ;;  %v11422_v17 = vld [vmem:[%s13652_s5 + $0x194] ss:$8 sps:$4 sm:$0xff]   ;;  %v9823_v42 = vld [vmem:[%s13680_s23 + $0x2] ss:$0 sm:$0xff] }
 0xfa7   :  { %8501 = vmatpush1.bf16.msra.mxu1 %v11351_v6  ;;  %8544 = vmatpush1.bf16.msra.mxu0 %v11354_v32 }
 0xfa8   :  { %8502 = vmatprep.subr.bf16.mxu1 %v11359_v9  ;;  %8545 = vmatprep.subr.bf16.mxu0 %v11362_v12  ;;  %v11417_v12 = vld [vmem:[%s13652_s5 + $0xa0] ss:$8 sps:$4 sm:$0xff]  }
 0xfab   :  { %8503 = vmatpush1.bf16.msra.mxu1 %v11357_v45  ;;  %8546 = vmatpush1.bf16.msra.mxu0 %v11360_v49  ;;  %v11420_v45 = vld [vmem:[%s13652_s5 + $0x190] ss:$8 sps:$4 sm:$0xff]  }
 0xfac   :  { %8504 = vmatprep.subr.bf16.mxu1 %v11365_v46  ;;  %8547 = vmatprep.subr.bf16.mxu0 %v11368_v10  ;;  %v11425_v10 = vld [vmem:[%s13652_s5 + $0x94] ss:$8 sps:$4 sm:$0xff]  }
 0xfaf   :  { %8505 = vmatpush1.bf16.msra.mxu1 %v11363_v24  ;;  %8548 = vmatpush1.bf16.msra.mxu0 %v11366_v61  ;;  %v11428_v24 = vld [vmem:[%s13652_s5 + $0x184] ss:$8 sps:$4 sm:$0xff]   ;;  %v9819_v61 = vld [vmem:[%s13680_s23] ss:$0 sm:$0xff] }
 0xfb0   :  { %8506 = vmatprep.subr.bf16.mxu1 %v11371_v41  ;;  %8549 = vmatprep.subr.bf16.mxu0 %v11374_v37  ;;  %v9829_v37 = vld [vmem:[%s13680_s23 + $0x5] ss:$0 sm:$0xff] }
 0xfb3   :  { %8507 = vmatpush1.bf16.msra.mxu1 %v11369_v47  ;;  %8550 = vmatpush1.bf16.msra.mxu0 %v11372_v48 }
 0xfb4   :  { %8508 = vmatprep.subr.bf16.mxu1 %v11377_v26  ;;  %8551 = vmatprep.subr.bf16.mxu0 %v11380_v44  ;;  %v11423_v26 = vld [vmem:[%s13652_s5 + $0x90] ss:$8 sps:$4 sm:$0xff]   ;;  %v11426_v44 = vld [vmem:[%s13652_s5 + $0x180] ss:$8 sps:$4 sm:$0xff]  }
 0xfb7   :  { %8509 = vmatpush1.bf16.msra.mxu1 %v11375_v53  ;;  %8552 = vmatpush1.bf16.msra.mxu0 %v11378_v54  ;;  %v6444_v53 = vadd.f32 %v9819_v61, %v12993_v60  ;;  %v11429_v60 = vld [vmem:[%s13652_s5 + $0x80] ss:$8 sps:$4 sm:$0xff]   ;;  %v11483_v61 = vld [vmem:[%s13652_s5 + $0x2f0] ss:$8 sps:$4 sm:$0xff]  }
 0xfb8   :  { %8510 = vmatprep.subr.bf16.mxu1 %v11383_v21  ;;  %8553 = vmatprep.subr.bf16.mxu0 %v11386_v50  ;;  %v11431_v50 = vld [vmem:[%s13652_s5 + $0x84] ss:$8 sps:$4 sm:$0xff]  }
 0xfbb   :  { %8511 = vmatpush1.bf16.msra.mxu1 %v11381_v27  ;;  %8554 = vmatpush2.bf16.msra.mxu0 %v11384_v34  ;;  %v11434_v27 = vld [vmem:[%s13652_s5 + $0x374] ss:$8 sps:$4 sm:$0xff]  }
 0xfbc   :  { %8512 = vmatprep.subr.bf16.mxu1 %v11389_v22  ;;  %8555 = vmatprep.subr.bf16.mxu0 %v11392_v39 }
 0xfbf   :  { %8513 = vmatpush2.bf16.msra.mxu1 %v11387_v38  ;;  %8556 = vmatpush2.bf16.msra.mxu0 %v11390_v52  ;;  %v11432_v38 = vld [vmem:[%s13652_s5 + $0x370] ss:$8 sps:$4 sm:$0xff]   ;;  %v6449_v52 = vmax.f32 %v6444_v53, 0.0 }
 0xfc0   :  { %8514 = vmatprep.subr.bf16.mxu1 %v11395_v3  ;;  %8557 = vmatprep.subr.bf16.mxu0 %v11398_v8  ;;  %v11437_v8 = vld [vmem:[%s13652_s5 + $0x274] ss:$8 sps:$4 sm:$0xff]  }
 0xfc3   :  { %8515 = vmatpush2.bf16.msra.mxu1 %v11393_v14  ;;  %8558 = vmatpush2.bf16.msra.mxu0 %v11396_v63  ;;  %v11440_v14 = vld [vmem:[%s13652_s5 + $0x364] ss:$8 sps:$4 sm:$0xff]  }
 0xfc4   :  { %8516 = vmatprep.subr.bf16.mxu1 %v11401_v56  ;;  %8559 = vmatprep.subr.bf16.mxu0 %v11404_v43  ;;  %v11435_v56 = vld [vmem:[%s13652_s5 + $0x270] ss:$8 sps:$4 sm:$0xff]   ;;  %v10056_v43 = vpack.c.bf16 %v6449_v52, %v6449_v52 }
 0xfc5   :  { %v11495_v52 = vld [vmem:[%s13652_s5 + $0x2d0] ss:$8 sps:$4 sm:$0xff]  }
 0xfc6   :  { %v6785_v31 = vpop.f32.mrf.mxu0 }
 0xfc7   :  { %v6786_v57 = vadd.f32 %v9825_v51, %v6785_v31  ;;  %8517 = vmatpush2.bf16.msra.mxu1 %v11399_v62  ;;  %8560 = vmatpush2.bf16.msra.mxu0 %v11402_v33  ;;  %v11438_v62 = vld [vmem:[%s13652_s5 + $0x360] ss:$8 sps:$4 sm:$0xff]   ;;  %v11443_v33 = vld [vmem:[%s13652_s5 + $0x264] ss:$8 sps:$4 sm:$0xff]   ;;  %v11444_v31 = vld [vmem:[%s13652_s5 + $0x350] ss:$8 sps:$4 sm:$0xff]  }
 0xfc8   :  { %v10452_v4 = vpop.f32.mrf.mxu0  ;;  %8518 = vmatprep.subr.bf16.mxu1 %v11407_v20  ;;  %8561 = vmatprep.subr.bf16.mxu0 %v11410_v1  ;;  %v11446_v20 = vld [vmem:[%s13652_s5 + $0x354] ss:$8 sps:$4 sm:$0xff]   ;;  %v11441_v1 = vld [vmem:[%s13652_s5 + $0x260] ss:$8 sps:$4 sm:$0xff]  }
 0xfc9   :  { %v6791_v5 = vmax.f32 %v6786_v57, 0.0  ;;  %v6671_v30 = vpop.f32.mrf.mxu1  ;;  %v11449_v57 = vld [vmem:[%s13652_s5 + $0x254] ss:$8 sps:$4 sm:$0xff]   ;;  %v11450_v4 = vld [vmem:[%s13652_s5 + $0x340] ss:$8 sps:$4 sm:$0xff]  }
 0xfca   :  { %v6788_v36 = vpop.f32.mrf.mxu0  ;;  %v6672_v49 = vadd.f32 %v9823_v42, %v6671_v30  ;;  %v11456_v30 = vld [vmem:[%s13652_s5 + $0x330] ss:$8 sps:$4 sm:$0xff]   ;;  %v11473_v42 = vld [vmem:[%s13652_s5 + $0x214] ss:$8 sps:$4 sm:$0xff]  }
 0xfcb   :  { %v10059_v19 = vpack.c.bf16 %v6791_v5, %v6791_v5  ;;  %8519 = vmatpush2.bf16.msra.mxu1 %v11405_v0  ;;  %8562 = vmatpush2.bf16.msra.mxu0 %v11408_v15  ;;  %v10446_v2 = vpop.f32.mrf.mxu1  ;;  %v11452_v0 = vld [vmem:[%s13652_s5 + $0x344] ss:$8 sps:$4 sm:$0xff]   ;;  %v11447_v15 = vld [vmem:[%s13652_s5 + $0x250] ss:$8 sps:$4 sm:$0xff]   ;;  %v11453_v5 = vld [vmem:[%s13652_s5 + $0x240] ss:$8 sps:$4 sm:$0xff]  }
 0xfcc   :  { %v10453_v58 = vpop.f32.mrf.mxu0  ;;  %8520 = vmatprep.subr.bf16.mxu1 %v11413_v16  ;;  %8563 = vmatprep.subr.bf16.mxu0 %v11416_v35  ;;  %v6677_v54 = vmax.f32 %v6672_v49, 0.0  ;;  %v11455_v16 = vld [vmem:[%s13652_s5 + $0x244] ss:$8 sps:$4 sm:$0xff]   ;;  %v11458_v35 = vld [vmem:[%s13652_s5 + $0x334] ss:$8 sps:$4 sm:$0xff]  }
 0xfcd   :  { %8569 = vmatprep.mubr.bf16.mxu0 %v10059_v19  ;;  %v6674_v6 = vpop.f32.mrf.mxu1  ;;  %v11461_v36 = vld [vmem:[%s13652_s5 + $0x234] ss:$8 sps:$4 sm:$0xff]   ;;  %v11464_v19 = vld [vmem:[%s13652_s5 + $0x324] ss:$8 sps:$4 sm:$0xff]   ;;  %v11459_v2 = vld [vmem:[%s13652_s5 + $0x230] ss:$8 sps:$4 sm:$0xff]  }
 0xfce   :  { %v7013_v32 = vpop.f32.mrf.mxu0  ;;  %v10058_v3 = vpack.c.bf16 %v6677_v54, %v6677_v54  ;;  %v11470_v58 = vld [vmem:[%s13652_s5 + $0x314] ss:$8 sps:$4 sm:$0xff]   ;;  %v11476_v6 = vld [vmem:[%s13652_s5 + $0x304] ss:$8 sps:$4 sm:$0xff]   ;;  %v11477_v49 = vld [vmem:[%s13652_s5 + $0x200] ss:$8 sps:$4 sm:$0xff]  }
 0xfcf   :  { %8521 = vmatpush2.bf16.msra.mxu1 %v11411_v13  ;;  %8564 = vmatpush2.bf16.msra.mxu0 %v11414_v40  ;;  %v10447_v9 = vpop.f32.mrf.mxu1  ;;  %v7014_v34 = vadd.f32 %v9829_v37, %v7013_v32  ;;  %v11462_v13 = vld [vmem:[%s13652_s5 + $0x320] ss:$8 sps:$4 sm:$0xff]   ;;  %v11467_v40 = vld [vmem:[%s13652_s5 + $0x224] ss:$8 sps:$4 sm:$0xff]   ;;  %v11471_v32 = vld [vmem:[%s13652_s5 + $0x210] ss:$8 sps:$4 sm:$0xff]  }
 0xfd0   :  { %v10464_v46 = vpop.f32.mrf.mxu0  ;;  %8522 = vmatprep.subr.bf16.mxu1 %v11419_v18  ;;  %8565 = vmatprep.subr.bf16.mxu0 %v11422_v17  ;;  %v11465_v18 = vld [vmem:[%s13652_s5 + $0x220] ss:$8 sps:$4 sm:$0xff]   ;;  %v11468_v17 = vld [vmem:[%s13652_s5 + $0x310] ss:$8 sps:$4 sm:$0xff]  }
 0xfd1   :  { %v13240_v41 = vpop.f32.mrf.mxu1  ;;  %v7019_v63 = vmax.f32 %v7014_v34, 0.0  ;;  %v11474_v9 = vld [vmem:[%s13652_s5 + $0x300] ss:$8 sps:$4 sm:$0xff]   ;;  %v11480_v46 = vld [vmem:[%s13652_s5 + $0x3f0] ss:$8 sps:$4 sm:$0xff]  }
 0xfd2   :  { %v7016_v47 = vpop.f32.mrf.mxu0  ;;  %v11486_v37 = vld [vmem:[%s13652_s5 + $0x3e0] ss:$8 sps:$4 sm:$0xff]  }
 0xfd3   :  { %8523 = vmatpush2.bf16.msra.mxu1 %v11417_v12  ;;  %8566 = vmatpush2.bf16.msra.mxu0 %v11420_v45  ;;  %v10458_v48 = vpop.f32.mrf.mxu1  ;;  %v10061_v51 = vpack.c.bf16 %v7019_v63, %v7019_v63  ;;  %v11479_v12 = vld [vmem:[%s13652_s5 + $0x204] ss:$8 sps:$4 sm:$0xff]   ;;  %v11482_v45 = vld [vmem:[%s13652_s5 + $0x3f4] ss:$8 sps:$4 sm:$0xff]   ;;  %v11489_v54 = vld [vmem:[%s13652_s5 + $0x2e0] ss:$8 sps:$4 sm:$0xff]  }
 0xfd4   :  { %v10465_v21 = vpop.f32.mrf.mxu0  ;;  %8524 = vmatprep.subr.bf16.mxu1 %v11425_v10  ;;  %8567 = vmatprep.subr.bf16.mxu0 %v11428_v24  ;;  %v11485_v10 = vld [vmem:[%s13652_s5 + $0x2f4] ss:$8 sps:$4 sm:$0xff]   ;;  %v11488_v24 = vld [vmem:[%s13652_s5 + $0x3e4] ss:$8 sps:$4 sm:$0xff]  }
 0xfd5   :  { %v6902_v22 = vpop.f32.mrf.mxu1  ;;  %v9833_v47 = vld [vmem:[%s13680_s23 + $0x7] ss:$0 sm:$0xff] }
 0xfd6   :  { %v11491_v48 = vld [vmem:[%s13652_s5 + $0x2e4] ss:$8 sps:$4 sm:$0xff]  }
 0xfd7   :  { %8525 = vmatpush2.bf16.msra.mxu1 %v11423_v26  ;;  %8568 = vmatpush2.bf16.msra.mxu0 %v11426_v44  ;;  %v10459_v39 = vpop.f32.mrf.mxu1  ;;  %v11494_v26 = vld [vmem:[%s13652_s5 + $0x3d4] ss:$8 sps:$4 sm:$0xff]   ;;  %v11500_v22 = vld [vmem:[%s13652_s5 + $0x3c4] ss:$8 sps:$4 sm:$0xff]  }
 0xfd8   :  { %8526 = vmatprep.subr.bf16.mxu1 %v11431_v50  ;;  %8619 = vmatprep.subr.bf16.mxu0 %v11434_v27  ;;  %v11492_v50 = vld [vmem:[%s13652_s5 + $0x3d0] ss:$8 sps:$4 sm:$0xff]   ;;  %v11497_v27 = vld [vmem:[%s13652_s5 + $0x2d4] ss:$8 sps:$4 sm:$0xff]   ;;  %v11503_v63 = vld [vmem:[%s13652_s5 + $0x2c4] ss:$8 sps:$4 sm:$0xff]  }
 0xfda   :  { %8570 = vmatmul.mubr.bf16.vlgmr.msra.gmra.mxu0 %v10058_v3 }
 0xfdb   :  { %8527 = vmatpush2.bf16.msra.mxu1 %v11429_v60  ;;  %8620 = vmatpush1.bf16.msra.mxu0 %v11432_v38 }
 0xfdc   :  { %8578 = vmatprep.subr.bf16.mxu1 %v11437_v8  ;;  %8621 = vmatprep.subr.bf16.mxu0 %v11440_v14  ;;  %v11498_v14 = vld [vmem:[%s13652_s5 + $0x3c0] ss:$8 sps:$4 sm:$0xff]  }
 0xfde   :  { %8529 = vmatmul.mubr.bf16.vlgmr.msra.gmra.mxu1 %v10056_v43 }
 0xfdf   :  { %8579 = vmatpush1.bf16.msra.mxu1 %v11435_v56  ;;  %8610 = vmatprep.mubr.bf16.mxu1 %v10061_v51  ;;  %v11506_v56 = vld [vmem:[%s13652_s5 + $0x3b4] ss:$8 sps:$4 sm:$0xff]   ;;  %v11504_v51 = vld [vmem:[%s13652_s5 + $0x3b0] ss:$8 sps:$4 sm:$0xff]  }
 0xfe0   :  { %8622 = vmatpush1.bf16.msra.mxu0 %v11438_v62  ;;  %8580 = vmatprep.subr.bf16.mxu1 %v11443_v33  ;;  %v11501_v62 = vld [vmem:[%s13652_s5 + $0x2c0] ss:$8 sps:$4 sm:$0xff]  }
 0xfe1   :  { %8623 = vmatprep.subr.bf16.mxu0 %v11446_v20  ;;  %v11509_v20 = vld [vmem:[%s13652_s5 + $0x2b4] ss:$8 sps:$4 sm:$0xff]  }
 0xfe3   :  { %8581 = vmatpush1.bf16.msra.mxu1 %v11441_v1  ;;  %v11512_v1 = vld [vmem:[%s13652_s5 + $0x3a4] ss:$8 sps:$4 sm:$0xff]  }
 0xfe4   :  { %8624 = vmatpush1.bf16.msra.mxu0 %v11444_v31  ;;  %8582 = vmatprep.subr.bf16.mxu1 %v11449_v57  ;;  %v11507_v31 = vld [vmem:[%s13652_s5 + $0x2b0] ss:$8 sps:$4 sm:$0xff]   ;;  %v11510_v57 = vld [vmem:[%s13652_s5 + $0x3a0] ss:$8 sps:$4 sm:$0xff]  }
 0xfe5   :  { %8625 = vmatprep.subr.bf16.mxu0 %v11452_v0  ;;  %v11515_v0 = vld [vmem:[%s13652_s5 + $0x2a4] ss:$8 sps:$4 sm:$0xff]  }
 0xfe7   :  { %8583 = vmatpush1.bf16.msra.mxu1 %v11447_v15  ;;  %v11518_v15 = vld [vmem:[%s13652_s5 + $0x394] ss:$8 sps:$4 sm:$0xff]  }
 0xfe8   :  { %8626 = vmatpush1.bf16.msra.mxu0 %v11450_v4  ;;  %8584 = vmatprep.subr.bf16.mxu1 %v11455_v16  ;;  %v9831_v4 = vld [vmem:[%s13680_s23 + $0x6] ss:$0 sm:$0xff]  ;;  %v11513_v16 = vld [vmem:[%s13652_s5 + $0x2a0] ss:$8 sps:$4 sm:$0xff]  }
 0xfe9   :  { %8627 = vmatprep.subr.bf16.mxu0 %v11458_v35  ;;  %v11516_v35 = vld [vmem:[%s13652_s5 + $0x390] ss:$8 sps:$4 sm:$0xff]  }
 0xfeb   :  { %8585 = vmatpush1.bf16.msra.mxu1 %v11453_v5  ;;  %v11521_v5 = vld [vmem:[%s13652_s5 + $0x294] ss:$8 sps:$4 sm:$0xff]  }
 0xfec   :  { %8628 = vmatpush1.bf16.msra.mxu0 %v11456_v30  ;;  %8586 = vmatprep.subr.bf16.mxu1 %v11461_v36  ;;  %v9827_v30 = vld [vmem:[%s13680_s23 + $0x4] ss:$0 sm:$0xff] }
 0xfed   :  { %8629 = vmatprep.subr.bf16.mxu0 %v11464_v19  ;;  %v11524_v19 = vld [vmem:[%s13652_s5 + $0x384] ss:$8 sps:$4 sm:$0xff]  }
 0xfef   :  { %8587 = vmatpush1.bf16.msra.mxu1 %v11459_v2  ;;  %v11519_v2 = vld [vmem:[%s13652_s5 + $0x290] ss:$8 sps:$4 sm:$0xff]  }
 0xff0   :  { %8630 = vmatpush1.bf16.msra.mxu0 %v11462_v13  ;;  %8588 = vmatprep.subr.bf16.mxu1 %v11467_v40  ;;  %v6900_v13 = vadd.f32 %v9827_v30, %v13240_v41  ;;  %v11522_v40 = vld [vmem:[%s13652_s5 + $0x380] ss:$8 sps:$4 sm:$0xff]   ;;  %v11530_v41 = vld [vmem:[%s13652_s5 + $0x474] ss:$8 sps:$4 sm:$0xff]  }
 0xff1   :  { %8631 = vmatprep.subr.bf16.mxu0 %v11470_v58  ;;  %v11527_v58 = vld [vmem:[%s13652_s5 + $0x284] ss:$8 sps:$4 sm:$0xff]  }
 0xff3   :  { %8589 = vmatpush1.bf16.msra.mxu1 %v11465_v18 }
 0xff4   :  { %8632 = vmatpush1.bf16.msra.mxu0 %v11468_v17  ;;  %8590 = vmatprep.subr.bf16.mxu1 %v11473_v42  ;;  %v11525_v17 = vld [vmem:[%s13652_s5 + $0x280] ss:$8 sps:$4 sm:$0xff]   ;;  %v6905_v42 = vmax.f32 %v6900_v13, 0.0  ;;  %v11576_v13 = vld [vmem:[%s13653_s6 + $0x78] sm:$0xff]  }
 0xff5   :  { %8633 = vmatprep.subr.bf16.mxu0 %v11476_v6 }
 0xff7   :  { %8591 = vmatpush1.bf16.msra.mxu1 %v11471_v32  ;;  %v11528_v32 = vld [vmem:[%s13652_s5 + $0x470] ss:$8 sps:$4 sm:$0xff]  }
 0xff8   :  { %8634 = vmatpush1.bf16.msra.mxu0 %v11474_v9  ;;  %8592 = vmatprep.subr.bf16.mxu1 %v11479_v12  ;;  %v10060_v9 = vpack.c.bf16 %v6905_v42, %v6905_v42  ;;  %v11533_v12 = vld [vmem:[%s13652_s5 + $0x464] ss:$8 sps:$4 sm:$0xff]  }
 0xff9   :  { %8635 = vmatprep.subr.bf16.mxu0 %v11482_v45  ;;  %v11531_v45 = vld [vmem:[%s13652_s5 + $0x460] ss:$8 sps:$4 sm:$0xff]  }
 0xffa   :  { %v11581_v42 = vld [vmem:[%s13653_s6 + $0x28] sm:$0xff]  }
 0xffb   :  { %8593 = vmatpush1.bf16.msra.mxu1 %v11477_v49  ;;  %v11536_v49 = vld [vmem:[%s13652_s5 + $0x454] ss:$8 sps:$4 sm:$0xff]  }
 0xffc   :  { %8636 = vmatpush2.bf16.msra.mxu0 %v11480_v46  ;;  %8594 = vmatprep.subr.bf16.mxu1 %v11485_v10  ;;  %v11534_v46 = vld [vmem:[%s13652_s5 + $0x450] ss:$8 sps:$4 sm:$0xff]   ;;  %v11539_v10 = vld [vmem:[%s13652_s5 + $0x444] ss:$8 sps:$4 sm:$0xff]  }
 0xffd   :  { %8637 = vmatprep.subr.bf16.mxu0 %v11488_v24  ;;  %v11537_v24 = vld [vmem:[%s13652_s5 + $0x440] ss:$8 sps:$4 sm:$0xff]  }
 0xffe   :  { %v7241_v44 = vpop.f32.mrf.mxu0 }
 0xfff   :  { %v7242_v53 = vadd.f32 %v9833_v47, %v7241_v44  ;;  %8595 = vmatpush2.bf16.msra.mxu1 %v11483_v61  ;;  %v11542_v61 = vld [vmem:[%s13652_s5 + $0x434] ss:$8 sps:$4 sm:$0xff]   ;;  %v11545_v47 = vld [vmem:[%s13652_s5 + $0x424] ss:$8 sps:$4 sm:$0xff]   ;;  %v11546_v44 = vld [vmem:[%s13652_s5 + $0x410] ss:$8 sps:$4 sm:$0xff]  }
0x1000   :  { %8638 = vmatpush2.bf16.msra.mxu0 %v11486_v37  ;;  %v10476_v21 = vpop.f32.mrf.mxu0  ;;  %8596 = vmatprep.subr.bf16.mxu1 %v11491_v48  ;;  %v11540_v37 = vld [vmem:[%s13652_s5 + $0x430] ss:$8 sps:$4 sm:$0xff]   ;;  %v11543_v48 = vld [vmem:[%s13652_s5 + $0x420] ss:$8 sps:$4 sm:$0xff]  }
0x1001   :  { %v7247_v34 = vmax.f32 %v7242_v53, 0.0  ;;  %8639 = vmatprep.subr.bf16.mxu0 %v11494_v26  ;;  %v11548_v26 = vld [vmem:[%s13652_s5 + $0x414] ss:$8 sps:$4 sm:$0xff]   ;;  %v11551_v53 = vld [vmem:[%s13652_s5 + $0x404] ss:$8 sps:$4 sm:$0xff]  }
0x1002   :  { %v7127_v39 = vpop.f32.mrf.mxu1  ;;  %v7244_v60 = vpop.f32.mrf.mxu0  ;;  %v11554_v21 = vld [vmem:[%s13652_s5 + $0x4f4] ss:$8 sps:$4 sm:$0xff]  }
0x1003   :  { %v10063_v38 = vpack.c.bf16 %v7247_v34, %v7247_v34  ;;  %8597 = vmatpush2.bf16.msra.mxu1 %v11489_v54  ;;  %v7128_v36 = vadd.f32 %v9831_v4, %v7127_v39  ;;  %v11549_v54 = vld [vmem:[%s13652_s5 + $0x400] ss:$8 sps:$4 sm:$0xff]   ;;  %v11558_v39 = vld [vmem:[%s13652_s5 + $0x4d0] ss:$8 sps:$4 sm:$0xff]   ;;  %v11563_v60 = vld [vmem:[%s13652_s5 + $0x4c4] ss:$8 sps:$4 sm:$0xff]  }
0x1004   :  { %8640 = vmatpush2.bf16.msra.mxu0 %v11492_v50  ;;  %v10470_v3 = vpop.f32.mrf.mxu1  ;;  %v10477_v8 = vpop.f32.mrf.mxu0  ;;  %8598 = vmatprep.subr.bf16.mxu1 %v11497_v27  ;;  %v11552_v50 = vld [vmem:[%s13652_s5 + $0x4f0] ss:$8 sps:$4 sm:$0xff]   ;;  %v11557_v27 = vld [vmem:[%s13652_s5 + $0x4e4] ss:$8 sps:$4 sm:$0xff]   ;;  %v11555_v34 = vld [vmem:[%s13652_s5 + $0x4e0] ss:$8 sps:$4 sm:$0xff]  }
0x1005   :  { %8641 = vmatprep.subr.bf16.mxu0 %v11500_v22  ;;  %8651 = vmatprep.mubr.bf16.mxu0 %v10063_v38  ;;  %v7133_v18 = vmax.f32 %v7128_v36, 0.0  ;;  %v11560_v22 = vld [vmem:[%s13652_s5 + $0x4d4] ss:$8 sps:$4 sm:$0xff]   ;;  %v11561_v38 = vld [vmem:[%s13652_s5 + $0x4c0] ss:$8 sps:$4 sm:$0xff]  }
0x1006   :  { %v7130_v43 = vpop.f32.mrf.mxu1  ;;  %v11564_v3 = vld [vmem:[%s13652_s5 + $0x4b0] ss:$8 sps:$4 sm:$0xff]   ;;  %v11569_v8 = vld [vmem:[%s13652_s5 + $0x4a4] ss:$8 sps:$4 sm:$0xff]  }
0x1007   :  { %8599 = vmatpush2.bf16.msra.mxu1 %v11495_v52  ;;  %v10062_v6 = vpack.c.bf16 %v7133_v18, %v7133_v18  ;;  %v11566_v52 = vld [vmem:[%s13652_s5 + $0x4b4] ss:$8 sps:$4 sm:$0xff]   ;;  %v11575_v43 = vld [vmem:[%s13652_s5 + $0x484] ss:$8 sps:$4 sm:$0xff]  }
0x1008   :  { %8642 = vmatpush2.bf16.msra.mxu0 %v11498_v14  ;;  %v10471_v33 = vpop.f32.mrf.mxu1  ;;  %8600 = vmatprep.subr.bf16.mxu1 %v11503_v63  ;;  %v11567_v14 = vld [vmem:[%s13652_s5 + $0x4a0] ss:$8 sps:$4 sm:$0xff]   ;;  %v11572_v63 = vld [vmem:[%s13652_s5 + $0x494] ss:$8 sps:$4 sm:$0xff]  }
0x1009   :  { %8643 = vmatprep.subr.bf16.mxu0 %v11506_v56  ;;  %v11570_v56 = vld [vmem:[%s13652_s5 + $0x490] ss:$8 sps:$4 sm:$0xff]   ;;  %v9837_v33 = vld [vmem:[%s13680_s23 + $0x9] ss:$0 sm:$0xff] }
0x100a   :  { %v11579_v18 = vld [vmem:[%s13653_s6 + $0x30] sm:$0xff]  }
0x100b   :  { %8601 = vmatpush2.bf16.msra.mxu1 %v11501_v62  ;;  %v11573_v62 = vld [vmem:[%s13652_s5 + $0x480] ss:$8 sps:$4 sm:$0xff]  }
0x100c   :  { %8644 = vmatpush2.bf16.msra.mxu0 %v11504_v51  ;;  %8602 = vmatprep.subr.bf16.mxu1 %v11509_v20 }
0x100d   :  { %8645 = vmatprep.subr.bf16.mxu0 %v11512_v1 }
0x100f   :  { %8603 = vmatpush2.bf16.msra.mxu1 %v11507_v31  ;;  %v9835_v31 = vld [vmem:[%s13680_s23 + $0x8] ss:$0 sm:$0xff] }
0x1010   :  { %8646 = vmatpush2.bf16.msra.mxu0 %v11510_v57  ;;  %8604 = vmatprep.subr.bf16.mxu1 %v11515_v0 }
0x1011   :  { %8647 = vmatprep.subr.bf16.mxu0 %v11518_v15 }
0x1013   :  { %8605 = vmatpush2.bf16.msra.mxu1 %v11513_v16 }
0x1014   :  { %8648 = vmatpush2.bf16.msra.mxu0 %v11516_v35  ;;  %8606 = vmatprep.subr.bf16.mxu1 %v11521_v5 }
0x1015   :  { %8649 = vmatprep.subr.bf16.mxu0 %v11524_v19 }
0x1017   :  { %8607 = vmatpush2.bf16.msra.mxu1 %v11519_v2 }
0x1018   :  { %8650 = vmatpush2.bf16.msra.mxu0 %v11522_v40  ;;  %8608 = vmatprep.subr.bf16.mxu1 %v11527_v58  ;;  %v11577_v40 = vld [vmem:[%s13653_s6 + $0x38] sm:$0xff]   ;;  %v11578_v58 = vld [vmem:[%s13653_s6 + $0x70] sm:$0xff]  }
0x1019   :  { %10348 = vmatprep.subr.bf16.mxu0 %v11576_v13 }
0x101b   :  { %8652 = vmatmul.mubr.bf16.vlgmr.msra.gmra.mxu0 %v10062_v6  ;;  %8609 = vmatpush2.bf16.msra.mxu1 %v11525_v17  ;;  %v11580_v17 = vld [vmem:[%s13653_s6 + $0x68] sm:$0xff]   ;;  %v11583_v6 = vld [vmem:[%s13653_s6 + $0x20] sm:$0xff]  }
0x101c   :  { %8660 = vmatprep.subr.bf16.mxu1 %v11530_v41  ;;  %10349 = vmatpush3.bf16.msra.mxu0 %v11577_v40  ;;  %v11582_v41 = vld [vmem:[%s13653_s6 + $0x60] sm:$0xff]  }
0x101d   :  { %10350 = vmatprep.subr.bf16.mxu0 %v11578_v58  ;;  %v11681_v58 = vld [vmem:[%s13679_s29] sm:$0xff] }
0x101e   :  { %8611 = vmatmul.mubr.bf16.vlgmr.msra.gmra.mxu1 %v10060_v9  ;;  %v11585_v9 = vld [vmem:[%s13653_s6 + $0x18] sm:$0xff]  }
0x101f   :  { %8661 = vmatpush1.bf16.msra.mxu1 %v11528_v32  ;;  %v11584_v32 = vld [vmem:[%s13653_s6 + $0x58] sm:$0xff]  }
0x1020   :  { %8662 = vmatprep.subr.bf16.mxu1 %v11533_v12  ;;  %10351 = vmatpush3.bf16.msra.mxu0 %v11579_v18  ;;  %v11586_v12 = vld [vmem:[%s13653_s6 + $0x50] sm:$0xff]  }
0x1021   :  { %10352 = vmatprep.subr.bf16.mxu0 %v11580_v17 }
0x1023   :  { %8663 = vmatpush1.bf16.msra.mxu1 %v11531_v45  ;;  %v11587_v45 = vld [vmem:[%s13653_s6 + $0x10] sm:$0xff]  }
0x1024   :  { %8664 = vmatprep.subr.bf16.mxu1 %v11536_v49  ;;  %10353 = vmatpush3.bf16.msra.mxu0 %v11581_v42  ;;  %v11588_v49 = vld [vmem:[%s13653_s6 + $0x48] sm:$0xff]  }
0x1025   :  { %10354 = vmatprep.subr.bf16.mxu0 %v11582_v41 }
0x1027   :  { %8665 = vmatpush1.bf16.msra.mxu1 %v11534_v46 }
0x1028   :  { %8666 = vmatprep.subr.bf16.mxu1 %v11539_v10  ;;  %10355 = vmatpush3.bf16.msra.mxu0 %v11583_v6 }
0x1029   :  { %10356 = vmatprep.subr.bf16.mxu0 %v11584_v32 }
0x102b   :  { %8667 = vmatpush1.bf16.msra.mxu1 %v11537_v24 }
0x102c   :  { %8668 = vmatprep.subr.bf16.mxu1 %v11542_v61  ;;  %10357 = vmatpush3.bf16.msra.mxu0 %v11585_v9 }
0x102d   :  { %10358 = vmatprep.subr.bf16.mxu0 %v11586_v12  ;;  %v8996_v12 = vld [vmem:[%s13663_s16] sm:$0xff] }
0x102f   :  { %8669 = vmatpush1.bf16.msra.mxu1 %v11540_v37 }
0x1030   :  { %8670 = vmatprep.subr.bf16.mxu1 %v11545_v47  ;;  %10359 = vmatpush3.bf16.msra.mxu0 %v11587_v45 }
0x1031   :  { %10360 = vmatprep.subr.bf16.mxu0 %v11588_v49 }
0x1033   :  { %8671 = vmatpush1.bf16.msra.mxu1 %v11543_v48 }
0x1034   :  { %8672 = vmatprep.subr.bf16.mxu1 %v11548_v26 }
0x1037   :  { %8673 = vmatpush1.bf16.msra.mxu1 %v11546_v44 }
0x1038   :  { %8674 = vmatprep.subr.bf16.mxu1 %v11551_v53 }
0x103b   :  { %8675 = vmatpush1.bf16.msra.mxu1 %v11549_v54  ;;  %v11589_v54 = vld [vmem:[%s13653_s6 + $0x8] sm:$0xff]  }
0x103c   :  { %8676 = vmatprep.subr.bf16.mxu1 %v11554_v21  ;;  %10361 = vmatpush3.bf16.msra.mxu0 %v11589_v54  ;;  %v11590_v21 = vld [vmem:[%s13653_s6 + $0x40] sm:$0xff]  }
0x103d   :  { %10362 = vmatprep.subr.bf16.mxu0 %v11590_v21 }
0x103f   :  { %8677 = vmatpush2.bf16.msra.mxu1 %v11552_v50  ;;  %v11591_v50 = vld [vmem:[%s13653_s6] sm:$0xff]  }
0x1040   :  { %8678 = vmatprep.subr.bf16.mxu1 %v11557_v27  ;;  %10363 = vmatpush3.bf16.msra.mxu0 %v11591_v50 }
0x1043   :  { %8679 = vmatpush2.bf16.msra.mxu1 %v11555_v34 }
0x1044   :  { %8680 = vmatprep.subr.bf16.mxu1 %v11560_v22 }
0x1047   :  { %8681 = vmatpush2.bf16.msra.mxu1 %v11558_v39 }
0x1048   :  { %8682 = vmatprep.subr.bf16.mxu1 %v11563_v60 }
0x104b   :  { %8683 = vmatpush2.bf16.msra.mxu1 %v11561_v38 }
0x104c   :  { %8684 = vmatprep.subr.bf16.mxu1 %v11566_v52 }
0x104f   :  { %8685 = vmatpush2.bf16.msra.mxu1 %v11564_v3 }
0x1050   :  { %8686 = vmatprep.subr.bf16.mxu1 %v11569_v8 }
0x1053   :  { %8687 = vmatpush2.bf16.msra.mxu1 %v11567_v14 }
0x1054   :  { %8688 = vmatprep.subr.bf16.mxu1 %v11572_v63 }
0x1057   :  { %8689 = vmatpush2.bf16.msra.mxu1 %v11570_v56 }
0x1058   :  { %8690 = vmatprep.subr.bf16.mxu1 %v11575_v43 }
0x105a   :  { %v7469_v51 = vpop.f32.mrf.mxu0 }
0x105b   :  { %v7470_v20 = vadd.f32 %v9837_v33, %v7469_v51  ;;  %8691 = vmatpush2.bf16.msra.mxu1 %v11573_v62 }
0x105c   :  { %v10488_v1 = vpop.f32.mrf.mxu0 }
0x105d   :  { %v7475_v57 = vmax.f32 %v7470_v20, 0.0 }
0x105e   :  { %v7355_v0 = vpop.f32.mrf.mxu1  ;;  %v7472_v15 = vpop.f32.mrf.mxu0 }
0x105f   :  { %v10065_v4 = vpack.c.bf16 %v7475_v57, %v7475_v57  ;;  %v7356_v16 = vadd.f32 %v9835_v31, %v7355_v0  ;;  %v8998_v0 = vpack.c.bf16 %v12731_v11, %v12731_v11 }
0x1060   :  { %v10482_v35 = vpop.f32.mrf.mxu1  ;;  %v10489_v5 = vpop.f32.mrf.mxu0 }
0x1061   :  { %v7361_v30 = vmax.f32 %v7356_v16, 0.0  ;;  %8692 = vmatprep.mubr.bf16.mxu1 %v10065_v4 }
0x1062   :  { %v7358_v36 = vpop.f32.mrf.mxu1 }
0x1063   :  { %v10064_v19 = vpack.c.bf16 %v7361_v30, %v7361_v30 }
0x1064   :  { %v10483_v2 = vpop.f32.mrf.mxu1 }
0x1065   :  { %8693 = vmatmul.mubr.bf16.vlgmr.msra.gmra.mxu1 %v10064_v19 }
0x109a   :  { %v8571_v46 = vpop.f32.mrf.mxu0 }
0x109c   :  { %v8573_v10 = vpop.f32.mrf.mxu0 }
0x109e   :  { %v8530_v24 = vpop.f32.mrf.mxu1  ;;  %v8575_v61 = vpop.f32.mrf.mxu0 }
0x109f   :  { %v8572_v37 = vadd.f32 %v8571_v46, %v8530_v24  ;;  %v8997_v24 = vpack.c.bf16 %v12728_v55, %v12728_v55  ;;  %v8932_v61 = vld [vmem:[%s13654_s7] sm:$0x3]  ;;  %s11841_s7 = smov [#allocation11]  }
0x10a0   :  { %v8532_v47 = vpop.f32.mrf.mxu1  ;;  %v8576_v48 = vpop.f32.mrf.mxu0  ;;  %s9182_s16 = sshll.u32 %s11841_s7, 4  ;;  %s9183_s16 = int_to_ptr.vmem [resolvable:$true] %s9182_s16 }
0x10a1   :  { %v8574_v26 = vadd.f32 %v8573_v10, %v8532_v47  ;;  %s11742_s17 = scalar_lea.vmem %s9183_s16, 64  ;;  %p11747_p2 = scmp.lt.s32.totalorder %s9183_s16, %s9183_s16 }
0x10a2   :  { %v8534_v44 = vpop.f32.mrf.mxu1  ;;  %p11743_p1 = scmp.ne.s32.totalorder %s9183_s16, %s11742_s17  ;;  %p11748_p3 = scmp.lt.s32.totalorder %s11742_s17, %s11742_s17 }
0x10a4   :  { %v8535_v53 = vpop.f32.mrf.mxu1  ;;  %p11749_p4 = por %p11748_p3, %p11747_p2 }
0x10a6   :  { %p11750_p5 = pnand %p11749_p4, %p11743_p1 }
0x10db   :  { %v8653_v27 = vpop.f32.mrf.mxu0 }
0x10dd   :  { %v8655_v34 = vpop.f32.mrf.mxu0 }
0x10de   :  { %v8612_v22 = vpop.f32.mrf.mxu1 }
0x10df   :  { %v8613_v39 = vadd.f32 %v8612_v22, %v8572_v37  ;;  %v8657_v60 = vpop.f32.mrf.mxu0  ;;  %v8937_v37 = vrot.slane %v8932_v61, %v12283_v29 }
0x10e0   :  { %v8614_v38 = vpop.f32.mrf.mxu1 }
0x10e1   :  { %v8615_v52 = vadd.f32 %v8614_v38, %v8574_v26  ;;  %v8658_v3 = vpop.f32.mrf.mxu0  ;;  %v8654_v8 = vadd.f32 %v8653_v27, %v8613_v39 }
0x10e2   :  { %v8616_v14 = vpop.f32.mrf.mxu1 }
0x10e3   :  { %v8656_v63 = vadd.f32 %v8655_v34, %v8615_v52  ;;  %v11840_v14 = vmov 1966171168  }
0x10e4   :  { %v8617_v56 = vpop.f32.mrf.mxu1 }
0x1125   :  { %v8694_v43 = vpop.f32.mrf.mxu1 }
0x1126   :  { %v8695_v62 = vadd.f32 %v8694_v43, %v8654_v8 }
0x1127   :  { %v8696_v33 = vpop.f32.mrf.mxu1 }
0x1128   :  { %v8697_v51 = vadd.f32 %v8696_v33, %v8656_v63  ;;  %v8701_v20 = vpack.c.bf16 %v8695_v62, %v8695_v62  ;;  %v9022_v63 = vunpack.c.l.s4 %v11840_v14 }
0x1129   :  { %v8698_v1 = vpop.f32.mrf.mxu1 }
0x112a   :  { %v8702_v31 = vpack.c.bf16 %v8697_v51, %v8697_v51  ;;  %v8948_v15 = vsel %vm6405_vm15, %v8701_v20, 0 }
0x112b   :  { %v8699_v57 = vpop.f32.mrf.mxu1 }
0x112c   :  { %8863 = vmatprep.mubr.bf16.mxu0 %v8702_v31  ;;  %10025 = vmatprep.subr.msk.bf16.mxu0 %vm6405_vm15, %v8702_v31  ;;  %v9023_v57 = vunpack.c.0.s8 %v9022_v63 }
0x112d   :  { %8864 = vmatmul.mubr.bf16.vlgmr.msra.gmra.mxu0 %v8701_v20 }
0x112e   :  { %8968 = vmatpush1.bf16.msra.mxu0 %v8948_v15  ;;  %8985 = vmatprep.mubr.bf16.mxu0 %v11818_v28 }
0x112f   :  { %9057 = vmatprep.subr.bf16.mxu0 %v8998_v0 }
0x11ed   :  { %v10364_v4 = vpop.f32.mrf.mxu0 }
0x11ef   :  { %v10365_v16 = vpop.f32.mrf.mxu0 }
0x11f0   :  { %v10366_v35 = vadd.f32 %v10365_v16, %v10364_v4 }
0x11f1   :  { %v10367_v5 = vpop.f32.mrf.mxu0 }
0x11f2   :  { %8908 = vperm.xlu1 %10544, %v10366_v35   ;;  %8872 = vrot.lane.b32.xlu0 %v10366_v35, %s11839_s14 }
0x11f3   :  { %v10368_v30 = vpop.f32.mrf.mxu0 }
0x1264   :  { %v8873_v36 = vpop.permute.xlu0 %8872 }
0x1265   :  { %8875 = vxpose.xlu1.b32.start.end [1/1] (short) (narrow) %v8873_v36, 8 }
0x126d   :  { %v8909_v11 = vpop.permute.xlu1 %8908 }
0x1283   :  { %10546 = vset.pattern.permute.xlu1 %v11821_v59 }
0x1284   :  { %9086 = vperm.xlu1 %10546, %v8996_v12  }
0x12e1   :  { %v8891_v19 = vpop.trf.xlu1 }
0x12e2   :  { %v8914_v2 = vrot.slane %v8891_v19, %v12283_v29 }
0x12e4   :  { %v8915_v13 = vadd.f32 %v8914_v2, %v8909_v11  ;;  %v9026_v2 = vsub.s32 %v9023_v57, %v12278_v25 }
0x12e6   :  { %v8917_v40 = vmul.f32 0.2, %v8915_v13  ;;  %vm8916_vm9 = vcmp.ge.f32.partialorder %v8915_v13, 0.0 }
0x12e8   :  { %v8918_v28 = vsel %vm8916_vm9, %v8915_v13, %v8917_v40 }
0x12e9   :  { %v8919_v18 = vadd.f32 %v11681_v58, %v8918_v28 }
0x12eb   :  { %v8920_v17 = vsel %vm6382_vm2, %v8919_v18, -inf }
0x12ec   :  { %8921 = vmax.xlane.f32.xlu0 %v8920_v17 }
0x12ff   :  { %v9087_v53 = vpop.permute.xlu1 %9086 }
0x1375   :  { %v8922_v42 = vpop.xlane.xlu0 %8921 }
0x1376   :  { %v8923_v41 = vsub.f32 %v8919_v18, %v8922_v42 }
0x1378   :  { %v8924_v6 = vmul.f32 1.442695, %v8923_v41 }
0x137a   :  { %11676 = vpow2.f32 %v8924_v6 }
0x1387   :  { %v11677_v32 = vpop.eup %11676 }
0x1388   :  { %v8926_v9 = vsel %vm6382_vm2, %v11677_v32, 0.0 }
0x1389   :  { %8927 = vadd.xlane.f32.xlu0 %v8926_v9 }
0x139f   :  { %9001 = vperm.xlu0 %10545, %v8996_v12  }
0x13a3   :  { %10547 = vset.pattern.permute.xlu0 %v11821_v59  ;;  %v8941_v59 = vrot.slane %v8932_v61, %v4738_v7 }
0x1412   :  { %v8928_v45 = vpop.xlane.xlu0 %8927 }
0x1413   :  { %11678 = vrcp.f32 %v8928_v45 }
0x141a   :  { %v9002_v26 = vpop.permute.xlu0 %9001 }
0x1420   :  { %v11679_v49 = vpop.eup %11678 }
0x1421   :  { %v8930_v46 = vmul.f32 %v11679_v49, %v11677_v32 }
0x1423   :  { %v8931_v10 = vpack.c.bf16 %v8930_v46, %v8930_v46 }
0x1425   :  { %10026 = vmatmul.mubr.msk.bf16.vlgmr.msra.gmra.mxu0 %vm6382_vm2, %v8931_v10 }
0x1426   :  { %9058 = vmatpush1.bf16.xpose.msra.mxu0 %v8997_v24 }
0x1427   :  { %9139 = vmatprep.subr.bf16.mxu0 %v8998_v0 }
0x14e5   :  { %v8987_v47 = vpop.f32.mrf.mxu0 }
0x14e6   :  { %v8988_v48 = vadd.f32 %v8987_v47, %v8937_v37 }
0x14e7   :  { %v8989_v44 = vpop.f32.mrf.mxu0 }
0x14e8   :  { %v8994_v54 = vmax.f32 %v8988_v48, 0.0  ;;  %v8990_v55 = vadd.f32 %v8989_v44, %v8941_v59 }
0x14e9   :  { %v8991_v21 = vpop.f32.mrf.mxu0 }
0x14ea   :  { %v8995_v50 = vmax.f32 %v8990_v55, 0.0  ;;  %v9004_v27 = vadd.f32 %v9002_v26, %v8994_v54  ;;  %v9089_v34 = vadd.f32 %v9087_v53, %v8994_v54 }
0x14eb   :  { %v8992_v22 = vpop.f32.mrf.mxu0 }
0x14ec   :  { %v9005_v39 = vadd.f32 %v9002_v26, %v8995_v50  ;;  %v9006_v60 = vrot.slane %v9004_v27, 4  ;;  %v9090_v38 = vadd.f32 %v9087_v53, %v8995_v50  ;;  %v9091_v52 = vrot.slane %v9089_v34, 4 }
0x14ee   :  { %v9007_v29 = vmax.f32 %v9004_v27, %v9006_v60  ;;  %v9012_v3 = vrot.slane %v9005_v39, 4  ;;  %v9092_v8 = vmax.f32 %v9089_v34, %v9091_v52  ;;  %v9097_v7 = vrot.slane %v9090_v38, 4 }
0x14f0   :  { %v9008_v56 = vrot.slane %v9007_v29, 2  ;;  %v9013_v43 = vmax.f32 %v9005_v39, %v9012_v3  ;;  %v9093_v62 = vrot.slane %v9092_v8, 2  ;;  %v9098_v33 = vmax.f32 %v9090_v38, %v9097_v7 }
0x14f2   :  { %v9009_v51 = vmax.f32 %v9007_v29, %v9008_v56  ;;  %v9014_v20 = vrot.slane %v9013_v43, 2  ;;  %v9094_v1 = vmax.f32 %v9092_v8, %v9093_v62  ;;  %v9099_v31 = vrot.slane %v9098_v33, 2 }
0x14f4   :  { %v9010_v0 = vrot.slane %v9009_v51, 1  ;;  %v9015_v15 = vmax.f32 %v9013_v43, %v9014_v20  ;;  %v9095_v4 = vrot.slane %v9094_v1, 1  ;;  %v9100_v16 = vmax.f32 %v9098_v33, %v9099_v31 }
0x14f6   :  { %v9016_v35 = vrot.slane %v9015_v15, 1  ;;  %v9101_v5 = vrot.slane %v9100_v16, 1  ;;  %v9011_v30 = vmax.f32 %v9009_v51, %v9010_v0  ;;  %v9096_v36 = vmax.f32 %v9094_v1, %v9095_v4 }
0x14f8   :  { %v9017_v11 = vmax.f32 %v9015_v15, %v9016_v35  ;;  %v9102_v19 = vmax.f32 %v9100_v16, %v9101_v5  ;;  %v9041_v58 = vpack.c.bf16 %v9011_v30, %v9011_v30  ;;  %v9123_v32 = vpack.c.bf16 %v9096_v36, %v9096_v36 }
0x14fa   :  { %v9020_v13 = vcombine.low %v9011_v30, %v9017_v11  ;;  %v9042_v40 = vpack.c.bf16 %v9017_v11, %v9017_v11  ;;  %v9105_v28 = vcombine.low %v9096_v36, %v9102_v19  ;;  %v9124_v18 = vpack.c.bf16 %v9102_v19, %v9102_v19 }
0x14fc   :  { %9075 = vmatprep.mubr.bf16.mxu0 %v9042_v40  ;;  %v9027_v17 = vrot.slane %v9020_v13, %v9026_v2  ;;  %v9112_v42 = vrot.slane %v9105_v28, %v9026_v2 }
0x14fd   :  { %9076 = vmatmul.mubr.bf16.vlgmr.msra.gmra.mxu0 %v9041_v58 }
0x14fe   :  { %9140 = vmatpush1.bf16.xpose.msra.mxu0 %v8997_v24  ;;  %9157 = vmatprep.mubr.bf16.mxu0 %v9124_v18  ;;  %v9034_v41 = vrot.slane %v9027_v17, %v9026_v2  ;;  %v9119_v6 = vrot.slane %v9112_v42, %v9026_v2 }
0x1500   :  { %9040 = vst.msk [vmem:[#allocation11] ss:$2 sm:$0x3] %vm9038_vm12, %v9034_v41  ;;  %9122 = vst.msk [vmem:[#allocation11 + $0x1] ss:$2 sm:$0x3] %vm9038_vm12, %v9119_v6 }
0x1505   :  { %9158 = vmatmul.mubr.bf16.vlgmr.msra.gmra.mxu0 %v9123_v32 }
0x1506   :  { %11753 = shalt.err (!%p11750_p5)
}
0x1507   :  { %9185 = dma.vmem_to_hbm [thread:$0]  %s9183_s16, 64, %s13666_s19, [#allocation12]  }
0x1508   :  { %s11842_s15 = smov [#allocation13]  }
0x1509   :  { %s9192_s25 = sshll.u32 %s11842_s15, 4  ;;  %s9193_s25 = int_to_ptr.vmem [resolvable:$true] %s9192_s25 }
0x150a   :  { %s11762_s10 = scalar_lea.vmem %s9193_s25, 256  ;;  %p11767_p7 = scmp.lt.s32.totalorder %s9193_s25, %s9193_s25 }
0x150b   :  { %p11763_p6 = scmp.ne.s32.totalorder %s9193_s25, %s11762_s10  ;;  %p11768_p8 = scmp.lt.s32.totalorder %s11762_s10, %s11762_s10 }
0x150d   :  { %p11769_p9 = por %p11768_p8, %p11767_p7 }
0x150f   :  { %p11770_p10 = pnand %p11769_p9, %p11763_p6 }
0x1511   :  { %11773 = shalt.err (!%p11770_p10)
}
0x1512   :  { %9195 = dma.vmem_to_hbm [thread:$0]  %s9193_s25, 256, %s13667_s20, [#allocation12]   ;;  %vm9083_vm13 = vcmask 40960  }
0x1513   :  { %s11843_s19 = smov [#allocation10]  }
0x1514   :  { %s9172_s0 = sshll.u32 %s11843_s19, 4  ;;  %s9173_s0 = int_to_ptr.vmem [resolvable:$true] %s9172_s0 }
0x1515   :  { %s11782_s21 = scalar_lea.vmem %s9173_s0, 32  ;;  %p11787_p12 = scmp.lt.s32.totalorder %s9173_s0, %s9173_s0 }
0x1516   :  { %p11783_p11 = scmp.ne.s32.totalorder %s9173_s0, %s11782_s21  ;;  %p11788_p13 = scmp.lt.s32.totalorder %s11782_s21, %s11782_s21 }
0x1518   :  { %p11789_p0 = por %p11788_p13, %p11787_p12 }
0x151a   :  { %p11790_p1 = pnand %p11789_p0, %p11783_p11 }
0x15bd   :  { %v9077_v23 = vpop.f32.mrf.mxu0 }
0x15be   :  { %9084 = vst.msk [vmem:[#allocation10] sm:$0x1] %vm9083_vm13, %v9077_v23 }
0x15bf   :  { %v9079_v25 = vpop.f32.mrf.mxu0 }
0x15c1   :  { %v9080_v9 = vpop.f32.mrf.mxu0 }
0x15c3   :  { %v9081_v12 = vpop.f32.mrf.mxu0 }
0x15c5   :  { %v9159_v45 = vpop.f32.mrf.mxu0 }
0x15c6   :  { %9165 = vst.msk [vmem:[#allocation10 + $0x1] sm:$0x1] %vm9083_vm13, %v9159_v45 }
0x15c7   :  { %v9161_v49 = vpop.f32.mrf.mxu0 }
0x15c8   :  { %11793 = shalt.err (!%p11790_p1)
}
0x15c9   :  { %9175 = dma.vmem_to_hbm [thread:$0]  %s9173_s0, 32, %s13665_s18, [#allocation6]   ;;  %v9162_v46 = vpop.f32.mrf.mxu0 }
0x15cb   :  { %v9163_v10 = vpop.f32.mrf.mxu0 }
0x15cc   :  { %11806 = dma.done.wait [#allocation6], 32  }
0x15cd   :  { %11807 = vsyncadd [#allocation6], 4294967264 }
0x15ce   :  { %11808 = dma.done.wait [#allocation12], 320  }
0x15cf   :  { %11809 = vsyncadd [#allocation12], 4294966976 }
0x15d0   :  { %9205 = vsyncpa [#allocation5], 1 }
0x15d1   :  { %9206 = vsyncpa [#allocation8], 1 }
0x15d2   :  { %9207 = vsyncpa [#allocation6], 1 }
0x15d3   :  { %9208 = vsyncpa [#allocation12], 1 }

</bundles_post_ra>
